<compile_context>
chip_gen: v7x
topology: tpu7x:2x2x1
jax: 0.10.0
libtpu: 0.0.40
codegen_flags: <defaults>
</compile_context>

<pallas_src>
import jax
import jax.numpy as jnp
from jax import lax
from jax.experimental import pallas as pl
from jax.experimental.pallas import tpu as pltpu


def _round_up(x, m):
    return (x + m - 1) // m * m


# ----------------------------- Hardware queries ------------------------------

def _vmem_capacity_bytes():
    """Physical VMEM per TensorCore; conservative 64 MiB (v7x) if query fails."""
    try:
        info = pltpu.get_tpu_info()
        v = getattr(info, "vmem_capacity_bytes", None)
        if isinstance(v, int) and v > 0:
            return v
    except Exception:
        pass
    return 64 * 1024 * 1024


def _tensorcores_per_chip():
    """Number of TensorCores per chip; default 1 (v5e/v6e) if unknown."""
    try:
        info = pltpu.get_tpu_info()
    except Exception:
        return 1
    for name in ("num_tensorcores", "tensorcores_per_chip", "num_tensorcores_per_chip"):
        v = getattr(info, name, None)
        if isinstance(v, int) and v > 0:
            return v
    return 1


# ----------------------------- Pallas kernel -------------------------------

def _make_lstm_stack_kernel(n_layers, tc, bc, e_dim, h_dim, t_total, ragged, unroll):
    """Fused multi-layer LSTM + fc kernel for one (batch_block, time_chunk) grid cell."""

    def _sigmoid(x):
        # sigmoid(x) = 0.5*(tanh(0.5x)+1): single EUP push per element (vs exp + recip).
        return 0.5 * jnp.tanh(0.5 * x) + 0.5

    def kernel(*refs):
        # inputs: x, then (w_ih, w_hh, b) per layer, then fc_w, fc_b
        x_ref = refs[0]
        layer_refs = refs[1:1 + 3 * n_layers]
        fc_w_ref = refs[1 + 3 * n_layers]
        fc_b_ref = refs[2 + 3 * n_layers]
        o_ref = refs[3 + 3 * n_layers]
        seq_buf, gx_buf, h_state, c_state = refs[4 + 3 * n_layers:]

        t_idx = pl.program_id(1)

        # New batch block (first time chunk): zero carried state and the output block
        # (defensive: the output VMEM block is only flushed once per batch block).
        @pl.when(t_idx == 0)
        def _():
            h_state[...] = jnp.zeros_like(h_state)
            c_state[...] = jnp.zeros_like(c_state)
            o_ref[...] = jnp.zeros_like(o_ref)

        # Valid timesteps in this chunk (only the last chunk can be ragged).
        valid = jnp.minimum(tc, t_total - t_idx * tc) if ragged else None

        for layer in range(n_layers):
            w_ih_ref = layer_refs[3 * layer + 0]
            w_hh_ref = layer_refs[3 * layer + 1]
            b_ref = layer_refs[3 * layer + 2]

            # ---- hoisted input projection: ONE big MXU matmul per chunk ----
            if layer == 0:
                inp = x_ref[...].reshape(tc * bc, e_dim)          # bf16 (Tc*Bc, E)
            else:
                inp = seq_buf[...]                                # bf16 (Tc*Bc, H)
            gx_buf[...] = (
                jnp.dot(inp, w_ih_ref[...], preferred_element_type=jnp.float32)
                + b_ref[...]).astype(gx_buf.dtype)                # bf16 (Tc*Bc, 4H)

            w_hh = w_hh_ref[...]                                  # bf16 (H, 4H)
            write_seq = layer < n_layers - 1

            # TODO(synk): weight-stationary recurrence — pin w_hh in MXU weight regs per
            # (layer, chunk) via pltpu.matmul_push_rhs / matmul_acc_lhs / matmul_pop once
            # bundle dumps confirm the RHS is re-streamed every timestep.
            def step(t, carry, w_hh=w_hh, write_seq=write_seq):
                h_prev, c_prev = carry                            # f32 (Bc, H)
                r = pl.multiple_of(t * bc, bc)
                gates = gx_buf[pl.ds(r, bc), :].astype(jnp.float32) + jnp.dot(
                    h_prev.astype(jnp.bfloat16), w_hh,
                    preferred_element_type=jnp.float32)           # f32 (Bc, 4H)
                # PyTorch gate order [i, f, g, o]; lane-aligned since H % 128 == 0.
                i_g = _sigmoid(gates[:, 0 * h_dim:1 * h_dim])
                f_g = _sigmoid(gates[:, 1 * h_dim:2 * h_dim])
                g_g = jnp.tanh(gates[:, 2 * h_dim:3 * h_dim])
                o_g = _sigmoid(gates[:, 3 * h_dim:4 * h_dim])
                c_new = f_g * c_prev + i_g * g_g
                h_new = o_g * jnp.tanh(c_new)
                if ragged:
                    live = t < valid                              # masked tail timesteps
                    h_new = jnp.where(live, h_new, h_prev)
                    c_new = jnp.where(live, c_new, c_prev)
                if write_seq:                                     # feeds the next layer
                    seq_buf[pl.ds(r, bc), :] = h_new.astype(seq_buf.dtype)
                return h_new, c_new

            h_fin, c_fin = lax.fori_loop(
                0, tc, step, (h_state[layer], c_state[layer]), unroll=unroll)
            h_state[layer] = h_fin
            c_state[layer] = c_fin

        # ---- fused fc epilogue on the last chunk (lane-padded, lane-dense store) ----
        @pl.when(t_idx == pl.num_programs(1) - 1)
        def _():
            h_top = h_state[n_layers - 1].astype(jnp.bfloat16)
            o_ref[...] = (
                jnp.dot(h_top, fc_w_ref[...], preferred_element_type=jnp.float32)
                + fc_b_ref[...])

    return kernel


# ----------------------------- Wrapper --------------------------------------

def baseline_lstm_forward(params, text, *, time_chunk=128):
    """text: (B, T) int32 token ids -> logits (B, output_dim). Eval mode (no dropout)."""
    emb_table = params["embedding"]            # (V, E_pad), E_pad % 128 == 0
    B, T = text.shape
    E = emb_table.shape[1]
    H = params["lstm"][0]["w_hh"].shape[0]
    n_layers = len(params["lstm"])
    fc_w = params["fc_w"]                      # (H, O_pad) bf16, zero-padded columns
    fc_b = params["fc_b"]                      # (1, O_pad) f32, zero-padded
    o_pad = fc_w.shape[1]
    out_dim = params["output_dim"]

    # Embedding gather directly in time-major order (transpose the tiny int id matrix,
    # not the (B, T, E) embedded activations).  Gather stays in XLA.
    x = jnp.take(emb_table, text.T, axis=0).astype(jnp.bfloat16)   # (T, B, E) bf16

    # Sublane-align the batch so per-step h / seq_buf stores are unmasked vst.
    B_pad = _round_up(B, 8)
    if B_pad != B:
        x = jnp.pad(x, ((0, 0), (0, B_pad - B), (0, 0)))

    # ---- generation-aware sizing -------------------------------------------------
    physical_vmem = _vmem_capacity_bytes()
    vmem_limit = int(physical_vmem * 0.75)      # 96 MiB on 128 MiB parts, 48 MiB on v7x

    # Batch split ONLY on multi-TensorCore chips (v7x), and only when each half still
    # feeds the MXU with >=128 rows.  On v5e/v6e the grid is a serial loop on one TC,
    # so splitting just shrinks M of the recurrent matmul and adds per-step overhead.
    n_tc = _tensorcores_per_chip()
    nb = 2 if (n_tc >= 2 and B_pad % 16 == 0 and B_pad // 2 >= 128) else 1
    bc = B_pad // nb

    # Derive the largest time chunk that fits the VMEM budget.
    weights_bytes = 0
    for lp in params["lstm"]:
        for name in ("w_ih", "w_hh", "b"):
            w = lp[name]
            weights_bytes += w.size * w.dtype.itemsize
    weights_bytes += fc_w.size * fc_w.dtype.itemsize + fc_b.size * fc_b.dtype.itemsize
    fixed_bytes = (weights_bytes
                   + 2 * n_layers * bc * H * 4      # carried h / c (f32)
                   + 2 * bc * o_pad * 4             # double-buffered output block
                   + (2 << 20))                     # compiler scratch headroom
    per_tc_bytes = bc * (4 * H * 2      # gx_buf (bf16)
                         + H * 2        # seq_buf (bf16)
                         + 2 * E * 2)   # double-buffered x block (bf16)
    budget = int(physical_vmem * 0.70)
    tc_fit = max(1, (budget - fixed_bytes) // per_tc_bytes)
    tc = int(max(1, min(time_chunk, T, tc_fit)))

    # Fixed tc + zero-padded, masked ragged tail (no divisor-of-T collapse).
    nt = pl.cdiv(T, tc)
    T_pad = nt * tc
    ragged = (T_pad != T)
    if ragged:
        x = jnp.pad(x, ((0, T_pad - T), (0, 0), (0, 0)))

    # vreg-working-set-aware unroll of the serial recurrence.
    gates_bytes = bc * 4 * H * 4
    if tc <= 8:
        unroll = True
    else:
        unroll = 4 if gates_bytes <= 64 * 1024 else 2

    kernel = _make_lstm_stack_kernel(n_layers, tc, bc, E, H, T, ragged, unroll)

    flat_weights = []
    for lp in params["lstm"]:
        for name in ("w_ih", "w_hh", "b"):
            flat_weights.append(lp[name])

    # Advisory cost estimate so XLA schedules around a long-running custom call.
    flops = 0
    for layer in range(n_layers):
        in_dim = E if layer == 0 else H
        flops += 2 * T * B_pad * (in_dim + H) * 4 * H
    flops += 2 * B_pad * H * o_pad
    cost = pl.CostEstimate(
        flops=int(flops),
        transcendentals=int(T * B_pad * n_layers * 5 * H),
        bytes_accessed=int(x.size * 2 + weights_bytes + B_pad * o_pad * 4),
    )

    def build(single_buffer_weights):
        def const_spec(shape):
            idx_map = lambda b, t, _n=len(shape): (0,) * _n
            if single_buffer_weights:
                # Block-invariant weights: no need for double-buffering.
                return pl.BlockSpec(shape, idx_map, pipeline_mode=pl.Buffered(1))
            return pl.BlockSpec(shape, idx_map)

        in_specs = [pl.BlockSpec((tc, bc, E), lambda b, t: (t, b, 0))]
        for w in flat_weights:
            in_specs.append(const_spec(w.shape))
        in_specs += [const_spec(fc_w.shape), const_spec(fc_b.shape)]

        return pl.pallas_call(
            kernel,
            out_shape=jax.ShapeDtypeStruct((B_pad, o_pad), jnp.float32),
            grid_spec=pltpu.PrefetchScalarGridSpec(
                num_scalar_prefetch=0,
                grid=(nb, nt),
                in_specs=in_specs,
                out_specs=pl.BlockSpec((bc, o_pad), lambda b, t: (b, 0)),
                scratch_shapes=[
                    pltpu.VMEM((tc * bc, H), jnp.bfloat16),       # inter-layer sequence
                    pltpu.VMEM((tc * bc, 4 * H), jnp.bfloat16),   # hoisted gate pre-acts
                    pltpu.VMEM((n_layers, bc, H), jnp.float32),   # carried h per layer
                    pltpu.VMEM((n_layers, bc, H), jnp.float32),   # carried c per layer
                ]),
            compiler_params=pltpu.CompilerParams(
                dimension_semantics=("parallel", "arbitrary"),
                vmem_limit_bytes=vmem_limit),
            cost_estimate=cost,
        )

    try:
        logits = build(True)(x, *flat_weights, fc_w, fc_b)
    except Exception:
        # pipeline_mode=pl.Buffered(1) not supported on this jax version — fall back to
        # default (double-buffered) specs; everything else is unchanged.
        logits = build(False)(x, *flat_weights, fc_w, fc_b)

    return logits[:B, :out_dim]


# ----------------------------- Params & reference ---------------------------

def init_params(key, vocab_size, embedding_dim, hidden_dim, output_dim, n_layers):
    assert hidden_dim % 128 == 0, "hidden_dim must be a multiple of 128 (lane-aligned gates)"
    keys = jax.random.split(key, 1 + 4 * n_layers + 2)
    ki = iter(keys)
    scale = float(hidden_dim) ** -0.5
    e_pad = _round_up(max(embedding_dim, 1), 128)
    o_pad = _round_up(max(output_dim, 1), 128)

    emb = jax.random.normal(next(ki), (vocab_size, embedding_dim), jnp.float32)
    emb_p = jnp.zeros((vocab_size, e_pad), jnp.float32).at[:, :embedding_dim].set(emb)

    params = {
        "embedding": emb_p,                    # lane-padded embedding (zero columns)
        "lstm": [],
        "output_dim": output_dim,
    }
    for layer in range(n_layers):
        in_dim = embedding_dim if layer == 0 else hidden_dim
        in_pad = e_pad if layer == 0 else hidden_dim
        w_ih = jax.random.uniform(next(ki), (in_dim, 4 * hidden_dim), jnp.float32,
                                  -scale, scale)
        w_ih_p = jnp.zeros((in_pad, 4 * hidden_dim), jnp.float32).at[:in_dim].set(w_ih)
        w_hh = jax.random.uniform(next(ki), (hidden_dim, 4 * hidden_dim), jnp.float32,
                                  -scale, scale)
        b_ih = jax.random.uniform(next(ki), (4 * hidden_dim,), jnp.float32, -scale, scale)
        b_hh = jax.random.uniform(next(ki), (4 * hidden_dim,), jnp.float32, -scale, scale)
        params["lstm"].append({
            "w_ih": w_ih_p.astype(jnp.bfloat16),                     # bf16 MXU operand
            "w_hh": w_hh.astype(jnp.bfloat16),
            "b": (b_ih + b_hh).reshape(1, 4 * hidden_dim),           # folded bias, f32
        })
    fc_w = jax.random.uniform(next(ki), (hidden_dim, output_dim), jnp.float32,
                              -scale, scale)
    fc_b = jax.random.uniform(next(ki), (output_dim,), jnp.float32, -scale, scale)
    fc_w_p = jnp.zeros((hidden_dim, o_pad), jnp.float32).at[:, :output_dim].set(fc_w)
    fc_b_p = jnp.zeros((1, o_pad), jnp.float32).at[:, :output_dim].set(fc_b)
    params["fc_w"] = fc_w_p.astype(jnp.bfloat16)
    params["fc_b"] = fc_b_p
    return params


def baseline_lstm_reference(params, text):
    """Pure-JAX f32 reference with PyTorch LSTM semantics (eval mode)."""
    emb = jnp.take(params["embedding"], text, axis=0)        # (B, T, E_pad)
    x = jnp.transpose(emb, (1, 0, 2))                        # (T, B, E_pad)
    B = text.shape[0]
    h_top = None
    for lp in params["lstm"]:
        w_ih = lp["w_ih"].astype(jnp.float32)
        w_hh = lp["w_hh"].astype(jnp.float32)
        b = lp["b"]
        H = w_hh.shape[0]

        def step(carry, xt, w_ih=w_ih, w_hh=w_hh, b=b, H=H):
            h, c = carry
            gates = xt @ w_ih + h @ w_hh + b
            i = jax.nn.sigmoid(gates[:, :H])
            f = jax.nn.sigmoid(gates[:, H:2 * H])
            g = jnp.tanh(gates[:, 2 * H:3 * H])
            o = jax.nn.sigmoid(gates[:, 3 * H:4 * H])
            c = f * c + i * g
            h = o * jnp.tanh(c)
            return (h, c), h

        zeros = jnp.zeros((B, H), jnp.float32)
        (h_last, _), h_seq = lax.scan(step, (zeros, zeros), x)
        x = h_seq
        h_top = h_last
    out_dim = params["output_dim"]
    fc_w = params["fc_w"].astype(jnp.float32)[:, :out_dim]
    fc_b = params["fc_b"][0, :out_dim]
    return h_top @ fc_w + fc_b


# ----------------------------- Demo / test -----------------------------------

if __name__ == "__main__":
    vocab_size = 50
    embedding_dim = 64        # padded to 128 lanes inside init_params
    hidden_dim = 128          # multiple of 128 -> lane-aligned gate slices
    output_dim = 2
    n_layers = 2
    batch = 16

    key = jax.random.PRNGKey(0)
    k_params, k_text1, k_text2 = jax.random.split(key, 3)
    params = init_params(k_params, vocab_size, embedding_dim, hidden_dim,
                         output_dim, n_layers)

    # Case 1: T divisible by the time chunk -> 2 chunks, exercises carried (h, c).
    text = jax.random.randint(k_text1, (batch, 8), 0, vocab_size, jnp.int32)
    logits = baseline_lstm_forward(params, text, time_chunk=4)
    jax.block_until_ready(logits)
    assert logits.shape == (batch, output_dim)
    ref = baseline_lstm_reference(params, text)
    err = float(jnp.max(jnp.abs(logits - ref)))
    assert err < 5e-2, f"mismatch vs reference (divisible T): {err}"

    # Case 2: awkward T=7 -> fixed tc=4 with a masked ragged last chunk.
    text2 = jax.random.randint(k_text2, (batch, 7), 0, vocab_size, jnp.int32)
    logits2 = baseline_lstm_forward(params, text2, time_chunk=4)
    jax.block_until_ready(logits2)
    ref2 = baseline_lstm_reference(params, text2)
    err2 = float(jnp.max(jnp.abs(logits2 - ref2)))
    assert err2 < 5e-2, f"mismatch vs reference (ragged T): {err2}"

    print("KERNEL_OK")
</pallas_src>

<mosaic_0001>
module attributes {stable_mosaic.version = 11 : i64} {
  func.func @kernel(%arg0: i32, %arg1: i32, %arg2: memref<4x16x128xbf16, #tpu.memory_space<vmem>>, %arg3: memref<128x512xbf16, #tpu.memory_space<vmem>>, %arg4: memref<128x512xbf16, #tpu.memory_space<vmem>>, %arg5: memref<1x512xf32, #tpu.memory_space<vmem>>, %arg6: memref<128x512xbf16, #tpu.memory_space<vmem>>, %arg7: memref<128x512xbf16, #tpu.memory_space<vmem>>, %arg8: memref<1x512xf32, #tpu.memory_space<vmem>>, %arg9: memref<128x128xbf16, #tpu.memory_space<vmem>>, %arg10: memref<1x128xf32, #tpu.memory_space<vmem>>, %arg11: memref<16x128xf32, #tpu.memory_space<vmem>>, %arg12: memref<64x128xbf16, #tpu.memory_space<vmem>>, %arg13: memref<64x512xbf16, #tpu.memory_space<vmem>>, %arg14: memref<2x16x128xf32, #tpu.memory_space<vmem>>, %arg15: memref<2x16x128xf32, #tpu.memory_space<vmem>>) attributes {dimension_semantics = [#tpu.dimension_semantics<parallel>, #tpu.dimension_semantics<arbitrary>], iteration_bounds = array<i64: 1, 2>, scalar_prefetch = 0 : i64, scratch_operands = 4 : i64, tpu.core_type = #tpu.core_type<tc>, window_params = [{transform_indices = @transform_0, window_bounds = array<i64: 4, 16, 128>}, {pipeline_mode = #tpu.pipeline_mode<synchronous>, transform_indices = @transform_1, window_bounds = array<i64: 128, 512>}, {pipeline_mode = #tpu.pipeline_mode<synchronous>, transform_indices = @transform_2, window_bounds = array<i64: 128, 512>}, {pipeline_mode = #tpu.pipeline_mode<synchronous>, transform_indices = @transform_3, window_bounds = array<i64: 1, 512>}, {pipeline_mode = #tpu.pipeline_mode<synchronous>, transform_indices = @transform_4, window_bounds = array<i64: 128, 512>}, {pipeline_mode = #tpu.pipeline_mode<synchronous>, transform_indices = @transform_5, window_bounds = array<i64: 128, 512>}, {pipeline_mode = #tpu.pipeline_mode<synchronous>, transform_indices = @transform_6, window_bounds = array<i64: 1, 512>}, {pipeline_mode = #tpu.pipeline_mode<synchronous>, transform_indices = @transform_7, window_bounds = array<i64: 128, 128>}, {pipeline_mode = #tpu.pipeline_mode<synchronous>, transform_indices = @transform_8, window_bounds = array<i64: 1, 128>}, {transform_indices = @transform_9, window_bounds = array<i64: 16, 128>}]} {
    %c0_i32 = arith.constant 0 : i32
    %0 = arith.cmpi eq, %arg1, %c0_i32 : i32
    %1 = arith.extui %0 : i1 to i32
    %c0_i32_0 = arith.constant 0 : i32
    %2 = arith.cmpi ne, %1, %c0_i32_0 : i32
    scf.if %2 {
      %cst_152 = arith.constant 0.000000e+00 : f32
      %369 = vector.broadcast %cst_152 : f32 to vector<2x16x128xf32>
      %c0_153 = arith.constant 0 : index
      %c0_154 = arith.constant 0 : index
      %c0_155 = arith.constant 0 : index
      %370 = vector.load %arg14[%c0_153, %c0_154, %c0_155] : memref<2x16x128xf32, #tpu.memory_space<vmem>>, vector<2x16x128xf32>
      tpu.vector_store %arg14[%c0_153, %c0_154, %c0_155], %369 {strides = array<i32>} : memref<2x16x128xf32, #tpu.memory_space<vmem>>, vector<2x16x128xf32>,
      %cst_156 = arith.constant 0.000000e+00 : f32
      %371 = vector.broadcast %cst_156 : f32 to vector<2x16x128xf32>
      %c0_157 = arith.constant 0 : index
      %c0_158 = arith.constant 0 : index
      %c0_159 = arith.constant 0 : index
      %372 = vector.load %arg15[%c0_157, %c0_158, %c0_159] : memref<2x16x128xf32, #tpu.memory_space<vmem>>, vector<2x16x128xf32>
      tpu.vector_store %arg15[%c0_157, %c0_158, %c0_159], %371 {strides = array<i32>} : memref<2x16x128xf32, #tpu.memory_space<vmem>>, vector<2x16x128xf32>,
      %cst_160 = arith.constant 0.000000e+00 : f32
      %373 = vector.broadcast %cst_160 : f32 to vector<16x128xf32>
      %c0_161 = arith.constant 0 : index
      %c0_162 = arith.constant 0 : index
      %374 = vector.load %arg11[%c0_161, %c0_162] : memref<16x128xf32, #tpu.memory_space<vmem>>, vector<16x128xf32>
      tpu.vector_store %arg11[%c0_161, %c0_162], %373 {strides = array<i32>} : memref<16x128xf32, #tpu.memory_space<vmem>>, vector<16x128xf32>,
    } else {
    }
    %c0 = arith.constant 0 : index
    %c0_1 = arith.constant 0 : index
    %c0_2 = arith.constant 0 : index
    %3 = vector.load %arg2[%c0, %c0_1, %c0_2] : memref<4x16x128xbf16, #tpu.memory_space<vmem>>, vector<4x16x128xbf16>
    %4 = vector.shape_cast %3 : vector<4x16x128xbf16> to vector<64x128xbf16>
    %c0_3 = arith.constant 0 : index
    %c0_4 = arith.constant 0 : index
    %5 = vector.load %arg3[%c0_3, %c0_4] : memref<128x512xbf16, #tpu.memory_space<vmem>>, vector<128x512xbf16>
    %cst = arith.constant dense<0.000000e+00> : vector<64x512xf32>
    %6 = tpu.matmul %4, %5, %cst {dimension_numbers = #tpu.dot_dimension_numbers<[1], [0], [0], [1], [0, 0, 1, 1], [], []>} : vector<64x128xbf16>, vector<128x512xbf16>, vector<64x512xf32> -> vector<64x512xf32>
    %c0_5 = arith.constant 0 : index
    %c0_6 = arith.constant 0 : index
    %7 = vector.load %arg5[%c0_5, %c0_6] : memref<1x512xf32, #tpu.memory_space<vmem>>, vector<1x512xf32>
    %8 = vector.broadcast %7 : vector<1x512xf32> to vector<64x512xf32>
    %9 = arith.addf %6, %8 : vector<64x512xf32>
    %10 = arith.truncf %9 : vector<64x512xf32> to vector<64x512xbf16>
    %c0_7 = arith.constant 0 : index
    %c0_8 = arith.constant 0 : index
    %11 = vector.load %arg13[%c0_7, %c0_8] : memref<64x512xbf16, #tpu.memory_space<vmem>>, vector<64x512xbf16>
    tpu.vector_store %arg13[%c0_7, %c0_8], %10 {strides = array<i32>} : memref<64x512xbf16, #tpu.memory_space<vmem>>, vector<64x512xbf16>,
    %c0_9 = arith.constant 0 : index
    %c0_10 = arith.constant 0 : index
    %12 = vector.load %arg4[%c0_9, %c0_10] : memref<128x512xbf16, #tpu.memory_space<vmem>>, vector<128x512xbf16>
    %c0_11 = arith.constant 0 : index
    %c0_12 = arith.constant 0 : index
    %c0_13 = arith.constant 0 : index
    %13 = vector.load %arg14[%c0_11, %c0_12, %c0_13] : memref<2x16x128xf32, #tpu.memory_space<vmem>>, vector<1x16x128xf32>
    %14 = vector.shape_cast %13 : vector<1x16x128xf32> to vector<16x128xf32>
    %c0_14 = arith.constant 0 : index
    %c0_15 = arith.constant 0 : index
    %c0_16 = arith.constant 0 : index
    %15 = vector.load %arg15[%c0_14, %c0_15, %c0_16] : memref<2x16x128xf32, #tpu.memory_space<vmem>>, vector<1x16x128xf32>
    %16 = vector.shape_cast %15 : vector<1x16x128xf32> to vector<16x128xf32>
    %c0_i32_17 = arith.constant 0 : i32
    %c16_i32 = arith.constant 16 : i32
    %17 = arith.muli %c0_i32_17, %c16_i32 : i32
    %18 = tpu.assume_multiple %17, 16 : i32
    %19 = arith.index_cast %18 : i32 to index
    %c0_18 = arith.constant 0 : index
    %20 = vector.load %arg13[%19, %c0_18] : memref<64x512xbf16, #tpu.memory_space<vmem>>, vector<16x512xbf16>
    %21 = arith.extf %20 : vector<16x512xbf16> to vector<16x512xf32>
    %22 = arith.truncf %14 : vector<16x128xf32> to vector<16x128xbf16>
    %cst_19 = arith.constant dense<0.000000e+00> : vector<16x512xf32>
    %23 = tpu.matmul %22, %12, %cst_19 {dimension_numbers = #tpu.dot_dimension_numbers<[1], [0], [0], [1], [0, 0, 1, 1], [], []>} : vector<16x128xbf16>, vector<128x512xbf16>, vector<16x512xf32> -> vector<16x512xf32>
    %24 = arith.addf %21, %23 : vector<16x512xf32>
    %25 = vector.extract_strided_slice %24 {offsets = [0, 0], sizes = [16, 128], strides = [1, 1]} : vector<16x512xf32> to vector<16x128xf32>
    %cst_20 = arith.constant 5.000000e-01 : f32
    %26 = vector.broadcast %cst_20 : f32 to vector<16x128xf32>
    %27 = arith.mulf %26, %25 : vector<16x128xf32>
    %28 = math.tanh %27 : vector<16x128xf32>
    %cst_21 = arith.constant 5.000000e-01 : f32
    %29 = vector.broadcast %cst_21 : f32 to vector<16x128xf32>
    %30 = arith.mulf %29, %28 : vector<16x128xf32>
    %cst_22 = arith.constant 5.000000e-01 : f32
    %31 = vector.broadcast %cst_22 : f32 to vector<16x128xf32>
    %32 = arith.addf %30, %31 : vector<16x128xf32>
    %33 = vector.extract_strided_slice %24 {offsets = [0, 128], sizes = [16, 128], strides = [1, 1]} : vector<16x512xf32> to vector<16x128xf32>
    %cst_23 = arith.constant 5.000000e-01 : f32
    %34 = vector.broadcast %cst_23 : f32 to vector<16x128xf32>
    %35 = arith.mulf %34, %33 : vector<16x128xf32>
    %36 = math.tanh %35 : vector<16x128xf32>
    %cst_24 = arith.constant 5.000000e-01 : f32
    %37 = vector.broadcast %cst_24 : f32 to vector<16x128xf32>
    %38 = arith.mulf %37, %36 : vector<16x128xf32>
    %cst_25 = arith.constant 5.000000e-01 : f32
    %39 = vector.broadcast %cst_25 : f32 to vector<16x128xf32>
    %40 = arith.addf %38, %39 : vector<16x128xf32>
    %41 = vector.extract_strided_slice %24 {offsets = [0, 256], sizes = [16, 128], strides = [1, 1]} : vector<16x512xf32> to vector<16x128xf32>
    %42 = math.tanh %41 : vector<16x128xf32>
    %43 = vector.extract_strided_slice %24 {offsets = [0, 384], sizes = [16, 128], strides = [1, 1]} : vector<16x512xf32> to vector<16x128xf32>
    %cst_26 = arith.constant 5.000000e-01 : f32
    %44 = vector.broadcast %cst_26 : f32 to vector<16x128xf32>
    %45 = arith.mulf %44, %43 : vector<16x128xf32>
    %46 = math.tanh %45 : vector<16x128xf32>
    %cst_27 = arith.constant 5.000000e-01 : f32
    %47 = vector.broadcast %cst_27 : f32 to vector<16x128xf32>
    %48 = arith.mulf %47, %46 : vector<16x128xf32>
    %cst_28 = arith.constant 5.000000e-01 : f32
    %49 = vector.broadcast %cst_28 : f32 to vector<16x128xf32>
    %50 = arith.addf %48, %49 : vector<16x128xf32>
    %51 = arith.mulf %40, %16 : vector<16x128xf32>
    %52 = arith.mulf %32, %42 : vector<16x128xf32>
    %53 = arith.addf %51, %52 : vector<16x128xf32>
    %54 = math.tanh %53 : vector<16x128xf32>
    %55 = arith.mulf %50, %54 : vector<16x128xf32>
    %56 = arith.truncf %55 : vector<16x128xf32> to vector<16x128xbf16>
    %57 = arith.index_cast %18 : i32 to index
    %c0_29 = arith.constant 0 : index
    %58 = vector.load %arg12[%57, %c0_29] : memref<64x128xbf16, #tpu.memory_space<vmem>>, vector<16x128xbf16>
    tpu.vector_store %arg12[%57, %c0_29], %56 {strides = array<i32>} : memref<64x128xbf16, #tpu.memory_space<vmem>>, vector<16x128xbf16>,
    %c1_i32 = arith.constant 1 : i32
    %c16_i32_30 = arith.constant 16 : i32
    %59 = arith.muli %c1_i32, %c16_i32_30 : i32
    %60 = tpu.assume_multiple %59, 16 : i32
    %61 = arith.index_cast %60 : i32 to index
    %c0_31 = arith.constant 0 : index
    %62 = vector.load %arg13[%61, %c0_31] : memref<64x512xbf16, #tpu.memory_space<vmem>>, vector<16x512xbf16>
    %63 = arith.extf %62 : vector<16x512xbf16> to vector<16x512xf32>
    %64 = arith.truncf %55 : vector<16x128xf32> to vector<16x128xbf16>
    %cst_32 = arith.constant dense<0.000000e+00> : vector<16x512xf32>
    %65 = tpu.matmul %64, %12, %cst_32 {dimension_numbers = #tpu.dot_dimension_numbers<[1], [0], [0], [1], [0, 0, 1, 1], [], []>} : vector<16x128xbf16>, vector<128x512xbf16>, vector<16x512xf32> -> vector<16x512xf32>
    %66 = arith.addf %63, %65 : vector<16x512xf32>
    %67 = vector.extract_strided_slice %66 {offsets = [0, 0], sizes = [16, 128], strides = [1, 1]} : vector<16x512xf32> to vector<16x128xf32>
    %cst_33 = arith.constant 5.000000e-01 : f32
    %68 = vector.broadcast %cst_33 : f32 to vector<16x128xf32>
    %69 = arith.mulf %68, %67 : vector<16x128xf32>
    %70 = math.tanh %69 : vector<16x128xf32>
    %cst_34 = arith.constant 5.000000e-01 : f32
    %71 = vector.broadcast %cst_34 : f32 to vector<16x128xf32>
    %72 = arith.mulf %71, %70 : vector<16x128xf32>
    %cst_35 = arith.constant 5.000000e-01 : f32
    %73 = vector.broadcast %cst_35 : f32 to vector<16x128xf32>
    %74 = arith.addf %72, %73 : vector<16x128xf32>
    %75 = vector.extract_strided_slice %66 {offsets = [0, 128], sizes = [16, 128], strides = [1, 1]} : vector<16x512xf32> to vector<16x128xf32>
    %cst_36 = arith.constant 5.000000e-01 : f32
    %76 = vector.broadcast %cst_36 : f32 to vector<16x128xf32>
    %77 = arith.mulf %76, %75 : vector<16x128xf32>
    %78 = math.tanh %77 : vector<16x128xf32>
    %cst_37 = arith.constant 5.000000e-01 : f32
    %79 = vector.broadcast %cst_37 : f32 to vector<16x128xf32>
    %80 = arith.mulf %79, %78 : vector<16x128xf32>
    %cst_38 = arith.constant 5.000000e-01 : f32
    %81 = vector.broadcast %cst_38 : f32 to vector<16x128xf32>
    %82 = arith.addf %80, %81 : vector<16x128xf32>
    %83 = vector.extract_strided_slice %66 {offsets = [0, 256], sizes = [16, 128], strides = [1, 1]} : vector<16x512xf32> to vector<16x128xf32>
    %84 = math.tanh %83 : vector<16x128xf32>
    %85 = vector.extract_strided_slice %66 {offsets = [0, 384], sizes = [16, 128], strides = [1, 1]} : vector<16x512xf32> to vector<16x128xf32>
    %cst_39 = arith.constant 5.000000e-01 : f32
    %86 = vector.broadcast %cst_39 : f32 to vector<16x128xf32>
    %87 = arith.mulf %86, %85 : vector<16x128xf32>
    %88 = math.tanh %87 : vector<16x128xf32>
    %cst_40 = arith.constant 5.000000e-01 : f32
    %89 = vector.broadcast %cst_40 : f32 to vector<16x128xf32>
    %90 = arith.mulf %89, %88 : vector<16x128xf32>
    %cst_41 = arith.constant 5.000000e-01 : f32
    %91 = vector.broadcast %cst_41 : f32 to vector<16x128xf32>
    %92 = arith.addf %90, %91 : vector<16x128xf32>
    %93 = arith.mulf %82, %53 : vector<16x128xf32>
    %94 = arith.mulf %74, %84 : vector<16x128xf32>
    %95 = arith.addf %93, %94 : vector<16x128xf32>
    %96 = math.tanh %95 : vector<16x128xf32>
    %97 = arith.mulf %92, %96 : vector<16x128xf32>
    %98 = arith.truncf %97 : vector<16x128xf32> to vector<16x128xbf16>
    %99 = arith.index_cast %60 : i32 to index
    %c0_42 = arith.constant 0 : index
    %100 = vector.load %arg12[%99, %c0_42] : memref<64x128xbf16, #tpu.memory_space<vmem>>, vector<16x128xbf16>
    tpu.vector_store %arg12[%99, %c0_42], %98 {strides = array<i32>} : memref<64x128xbf16, #tpu.memory_space<vmem>>, vector<16x128xbf16>,
    %c2_i32 = arith.constant 2 : i32
    %c16_i32_43 = arith.constant 16 : i32
    %101 = arith.muli %c2_i32, %c16_i32_43 : i32
    %102 = tpu.assume_multiple %101, 16 : i32
    %103 = arith.index_cast %102 : i32 to index
    %c0_44 = arith.constant 0 : index
    %104 = vector.load %arg13[%103, %c0_44] : memref<64x512xbf16, #tpu.memory_space<vmem>>, vector<16x512xbf16>
    %105 = arith.extf %104 : vector<16x512xbf16> to vector<16x512xf32>
    %106 = arith.truncf %97 : vector<16x128xf32> to vector<16x128xbf16>
    %cst_45 = arith.constant dense<0.000000e+00> : vector<16x512xf32>
    %107 = tpu.matmul %106, %12, %cst_45 {dimension_numbers = #tpu.dot_dimension_numbers<[1], [0], [0], [1], [0, 0, 1, 1], [], []>} : vector<16x128xbf16>, vector<128x512xbf16>, vector<16x512xf32> -> vector<16x512xf32>
    %108 = arith.addf %105, %107 : vector<16x512xf32>
    %109 = vector.extract_strided_slice %108 {offsets = [0, 0], sizes = [16, 128], strides = [1, 1]} : vector<16x512xf32> to vector<16x128xf32>
    %cst_46 = arith.constant 5.000000e-01 : f32
    %110 = vector.broadcast %cst_46 : f32 to vector<16x128xf32>
    %111 = arith.mulf %110, %109 : vector<16x128xf32>
    %112 = math.tanh %111 : vector<16x128xf32>
    %cst_47 = arith.constant 5.000000e-01 : f32
    %113 = vector.broadcast %cst_47 : f32 to vector<16x128xf32>
    %114 = arith.mulf %113, %112 : vector<16x128xf32>
    %cst_48 = arith.constant 5.000000e-01 : f32
    %115 = vector.broadcast %cst_48 : f32 to vector<16x128xf32>
    %116 = arith.addf %114, %115 : vector<16x128xf32>
    %117 = vector.extract_strided_slice %108 {offsets = [0, 128], sizes = [16, 128], strides = [1, 1]} : vector<16x512xf32> to vector<16x128xf32>
    %cst_49 = arith.constant 5.000000e-01 : f32
    %118 = vector.broadcast %cst_49 : f32 to vector<16x128xf32>
    %119 = arith.mulf %118, %117 : vector<16x128xf32>
    %120 = math.tanh %119 : vector<16x128xf32>
    %cst_50 = arith.constant 5.000000e-01 : f32
    %121 = vector.broadcast %cst_50 : f32 to vector<16x128xf32>
    %122 = arith.mulf %121, %120 : vector<16x128xf32>
    %cst_51 = arith.constant 5.000000e-01 : f32
    %123 = vector.broadcast %cst_51 : f32 to vector<16x128xf32>
    %124 = arith.addf %122, %123 : vector<16x128xf32>
    %125 = vector.extract_strided_slice %108 {offsets = [0, 256], sizes = [16, 128], strides = [1, 1]} : vector<16x512xf32> to vector<16x128xf32>
    %126 = math.tanh %125 : vector<16x128xf32>
    %127 = vector.extract_strided_slice %108 {offsets = [0, 384], sizes = [16, 128], strides = [1, 1]} : vector<16x512xf32> to vector<16x128xf32>
    %cst_52 = arith.constant 5.000000e-01 : f32
    %128 = vector.broadcast %cst_52 : f32 to vector<16x128xf32>
    %129 = arith.mulf %128, %127 : vector<16x128xf32>
    %130 = math.tanh %129 : vector<16x128xf32>
    %cst_53 = arith.constant 5.000000e-01 : f32
    %131 = vector.broadcast %cst_53 : f32 to vector<16x128xf32>
    %132 = arith.mulf %131, %130 : vector<16x128xf32>
    %cst_54 = arith.constant 5.000000e-01 : f32
    %133 = vector.broadcast %cst_54 : f32 to vector<16x128xf32>
    %134 = arith.addf %132, %133 : vector<16x128xf32>
    %135 = arith.mulf %124, %95 : vector<16x128xf32>
    %136 = arith.mulf %116, %126 : vector<16x128xf32>
    %137 = arith.addf %135, %136 : vector<16x128xf32>
    %138 = math.tanh %137 : vector<16x128xf32>
    %139 = arith.mulf %134, %138 : vector<16x128xf32>
    %140 = arith.truncf %139 : vector<16x128xf32> to vector<16x128xbf16>
    %141 = arith.index_cast %102 : i32 to index
    %c0_55 = arith.constant 0 : index
    %142 = vector.load %arg12[%141, %c0_55] : memref<64x128xbf16, #tpu.memory_space<vmem>>, vector<16x128xbf16>
    tpu.vector_store %arg12[%141, %c0_55], %140 {strides = array<i32>} : memref<64x128xbf16, #tpu.memory_space<vmem>>, vector<16x128xbf16>,
    %c3_i32 = arith.constant 3 : i32
    %c16_i32_56 = arith.constant 16 : i32
    %143 = arith.muli %c3_i32, %c16_i32_56 : i32
    %144 = tpu.assume_multiple %143, 16 : i32
    %145 = arith.index_cast %144 : i32 to index
    %c0_57 = arith.constant 0 : index
    %146 = vector.load %arg13[%145, %c0_57] : memref<64x512xbf16, #tpu.memory_space<vmem>>, vector<16x512xbf16>
    %147 = arith.extf %146 : vector<16x512xbf16> to vector<16x512xf32>
    %148 = arith.truncf %139 : vector<16x128xf32> to vector<16x128xbf16>
    %cst_58 = arith.constant dense<0.000000e+00> : vector<16x512xf32>
    %149 = tpu.matmul %148, %12, %cst_58 {dimension_numbers = #tpu.dot_dimension_numbers<[1], [0], [0], [1], [0, 0, 1, 1], [], []>} : vector<16x128xbf16>, vector<128x512xbf16>, vector<16x512xf32> -> vector<16x512xf32>
    %150 = arith.addf %147, %149 : vector<16x512xf32>
    %151 = vector.extract_strided_slice %150 {offsets = [0, 0], sizes = [16, 128], strides = [1, 1]} : vector<16x512xf32> to vector<16x128xf32>
    %cst_59 = arith.constant 5.000000e-01 : f32
    %152 = vector.broadcast %cst_59 : f32 to vector<16x128xf32>
    %153 = arith.mulf %152, %151 : vector<16x128xf32>
    %154 = math.tanh %153 : vector<16x128xf32>
    %cst_60 = arith.constant 5.000000e-01 : f32
    %155 = vector.broadcast %cst_60 : f32 to vector<16x128xf32>
    %156 = arith.mulf %155, %154 : vector<16x128xf32>
    %cst_61 = arith.constant 5.000000e-01 : f32
    %157 = vector.broadcast %cst_61 : f32 to vector<16x128xf32>
    %158 = arith.addf %156, %157 : vector<16x128xf32>
    %159 = vector.extract_strided_slice %150 {offsets = [0, 128], sizes = [16, 128], strides = [1, 1]} : vector<16x512xf32> to vector<16x128xf32>
    %cst_62 = arith.constant 5.000000e-01 : f32
    %160 = vector.broadcast %cst_62 : f32 to vector<16x128xf32>
    %161 = arith.mulf %160, %159 : vector<16x128xf32>
    %162 = math.tanh %161 : vector<16x128xf32>
    %cst_63 = arith.constant 5.000000e-01 : f32
    %163 = vector.broadcast %cst_63 : f32 to vector<16x128xf32>
    %164 = arith.mulf %163, %162 : vector<16x128xf32>
    %cst_64 = arith.constant 5.000000e-01 : f32
    %165 = vector.broadcast %cst_64 : f32 to vector<16x128xf32>
    %166 = arith.addf %164, %165 : vector<16x128xf32>
    %167 = vector.extract_strided_slice %150 {offsets = [0, 256], sizes = [16, 128], strides = [1, 1]} : vector<16x512xf32> to vector<16x128xf32>
    %168 = math.tanh %167 : vector<16x128xf32>
    %169 = vector.extract_strided_slice %150 {offsets = [0, 384], sizes = [16, 128], strides = [1, 1]} : vector<16x512xf32> to vector<16x128xf32>
    %cst_65 = arith.constant 5.000000e-01 : f32
    %170 = vector.broadcast %cst_65 : f32 to vector<16x128xf32>
    %171 = arith.mulf %170, %169 : vector<16x128xf32>
    %172 = math.tanh %171 : vector<16x128xf32>
    %cst_66 = arith.constant 5.000000e-01 : f32
    %173 = vector.broadcast %cst_66 : f32 to vector<16x128xf32>
    %174 = arith.mulf %173, %172 : vector<16x128xf32>
    %cst_67 = arith.constant 5.000000e-01 : f32
    %175 = vector.broadcast %cst_67 : f32 to vector<16x128xf32>
    %176 = arith.addf %174, %175 : vector<16x128xf32>
    %177 = arith.mulf %166, %137 : vector<16x128xf32>
    %178 = arith.mulf %158, %168 : vector<16x128xf32>
    %179 = arith.addf %177, %178 : vector<16x128xf32>
    %180 = math.tanh %179 : vector<16x128xf32>
    %181 = arith.mulf %176, %180 : vector<16x128xf32>
    %182 = arith.truncf %181 : vector<16x128xf32> to vector<16x128xbf16>
    %183 = arith.index_cast %144 : i32 to index
    %c0_68 = arith.constant 0 : index
    %184 = vector.load %arg12[%183, %c0_68] : memref<64x128xbf16, #tpu.memory_space<vmem>>, vector<16x128xbf16>
    tpu.vector_store %arg12[%183, %c0_68], %182 {strides = array<i32>} : memref<64x128xbf16, #tpu.memory_space<vmem>>, vector<16x128xbf16>,
    %c4_i32 = arith.constant 4 : i32
    %c0_69 = arith.constant 0 : index
    %c0_70 = arith.constant 0 : index
    %c0_71 = arith.constant 0 : index
    %185 = vector.load %arg14[%c0_69, %c0_70, %c0_71] : memref<2x16x128xf32, #tpu.memory_space<vmem>>, vector<1x16x128xf32>
    %186 = vector.shape_cast %185 : vector<1x16x128xf32> to vector<16x128xf32>
    %187 = vector.shape_cast %181 : vector<16x128xf32> to vector<1x16x128xf32>
    tpu.vector_store %arg14[%c0_69, %c0_70, %c0_71], %187 {strides = array<i32>} : memref<2x16x128xf32, #tpu.memory_space<vmem>>, vector<1x16x128xf32>,
    %c0_72 = arith.constant 0 : index
    %c0_73 = arith.constant 0 : index
    %c0_74 = arith.constant 0 : index
    %188 = vector.load %arg15[%c0_72, %c0_73, %c0_74] : memref<2x16x128xf32, #tpu.memory_space<vmem>>, vector<1x16x128xf32>
    %189 = vector.shape_cast %188 : vector<1x16x128xf32> to vector<16x128xf32>
    %190 = vector.shape_cast %179 : vector<16x128xf32> to vector<1x16x128xf32>
    tpu.vector_store %arg15[%c0_72, %c0_73, %c0_74], %190 {strides = array<i32>} : memref<2x16x128xf32, #tpu.memory_space<vmem>>, vector<1x16x128xf32>,
    %c0_75 = arith.constant 0 : index
    %c0_76 = arith.constant 0 : index
    %191 = vector.load %arg12[%c0_75, %c0_76] : memref<64x128xbf16, #tpu.memory_space<vmem>>, vector<64x128xbf16>
    %c0_77 = arith.constant 0 : index
    %c0_78 = arith.constant 0 : index
    %192 = vector.load %arg6[%c0_77, %c0_78] : memref<128x512xbf16, #tpu.memory_space<vmem>>, vector<128x512xbf16>
    %cst_79 = arith.constant dense<0.000000e+00> : vector<64x512xf32>
    %193 = tpu.matmul %191, %192, %cst_79 {dimension_numbers = #tpu.dot_dimension_numbers<[1], [0], [0], [1], [0, 0, 1, 1], [], []>} : vector<64x128xbf16>, vector<128x512xbf16>, vector<64x512xf32> -> vector<64x512xf32>
    %c0_80 = arith.constant 0 : index
    %c0_81 = arith.constant 0 : index
    %194 = vector.load %arg8[%c0_80, %c0_81] : memref<1x512xf32, #tpu.memory_space<vmem>>, vector<1x512xf32>
    %195 = vector.broadcast %194 : vector<1x512xf32> to vector<64x512xf32>
    %196 = arith.addf %193, %195 : vector<64x512xf32>
    %197 = arith.truncf %196 : vector<64x512xf32> to vector<64x512xbf16>
    %c0_82 = arith.constant 0 : index
    %c0_83 = arith.constant 0 : index
    %198 = vector.load %arg13[%c0_82, %c0_83] : memref<64x512xbf16, #tpu.memory_space<vmem>>, vector<64x512xbf16>
    tpu.vector_store %arg13[%c0_82, %c0_83], %197 {strides = array<i32>} : memref<64x512xbf16, #tpu.memory_space<vmem>>, vector<64x512xbf16>,
    %c0_84 = arith.constant 0 : index
    %c0_85 = arith.constant 0 : index
    %199 = vector.load %arg7[%c0_84, %c0_85] : memref<128x512xbf16, #tpu.memory_space<vmem>>, vector<128x512xbf16>
    %c1 = arith.constant 1 : index
    %c0_86 = arith.constant 0 : index
    %c0_87 = arith.constant 0 : index
    %200 = vector.load %arg14[%c1, %c0_86, %c0_87] : memref<2x16x128xf32, #tpu.memory_space<vmem>>, vector<1x16x128xf32>
    %201 = vector.shape_cast %200 : vector<1x16x128xf32> to vector<16x128xf32>
    %c1_88 = arith.constant 1 : index
    %c0_89 = arith.constant 0 : index
    %c0_90 = arith.constant 0 : index
    %202 = vector.load %arg15[%c1_88, %c0_89, %c0_90] : memref<2x16x128xf32, #tpu.memory_space<vmem>>, vector<1x16x128xf32>
    %203 = vector.shape_cast %202 : vector<1x16x128xf32> to vector<16x128xf32>
    %c0_i32_91 = arith.constant 0 : i32
    %c16_i32_92 = arith.constant 16 : i32
    %204 = arith.muli %c0_i32_91, %c16_i32_92 : i32
    %205 = tpu.assume_multiple %204, 16 : i32
    %206 = arith.index_cast %205 : i32 to index
    %c0_93 = arith.constant 0 : index
    %207 = vector.load %arg13[%206, %c0_93] : memref<64x512xbf16, #tpu.memory_space<vmem>>, vector<16x512xbf16>
    %208 = arith.extf %207 : vector<16x512xbf16> to vector<16x512xf32>
    %209 = arith.truncf %201 : vector<16x128xf32> to vector<16x128xbf16>
    %cst_94 = arith.constant dense<0.000000e+00> : vector<16x512xf32>
    %210 = tpu.matmul %209, %199, %cst_94 {dimension_numbers = #tpu.dot_dimension_numbers<[1], [0], [0], [1], [0, 0, 1, 1], [], []>} : vector<16x128xbf16>, vector<128x512xbf16>, vector<16x512xf32> -> vector<16x512xf32>
    %211 = arith.addf %208, %210 : vector<16x512xf32>
    %212 = vector.extract_strided_slice %211 {offsets = [0, 0], sizes = [16, 128], strides = [1, 1]} : vector<16x512xf32> to vector<16x128xf32>
    %cst_95 = arith.constant 5.000000e-01 : f32
    %213 = vector.broadcast %cst_95 : f32 to vector<16x128xf32>
    %214 = arith.mulf %213, %212 : vector<16x128xf32>
    %215 = math.tanh %214 : vector<16x128xf32>
    %cst_96 = arith.constant 5.000000e-01 : f32
    %216 = vector.broadcast %cst_96 : f32 to vector<16x128xf32>
    %217 = arith.mulf %216, %215 : vector<16x128xf32>
    %cst_97 = arith.constant 5.000000e-01 : f32
    %218 = vector.broadcast %cst_97 : f32 to vector<16x128xf32>
    %219 = arith.addf %217, %218 : vector<16x128xf32>
    %220 = vector.extract_strided_slice %211 {offsets = [0, 128], sizes = [16, 128], strides = [1, 1]} : vector<16x512xf32> to vector<16x128xf32>
    %cst_98 = arith.constant 5.000000e-01 : f32
    %221 = vector.broadcast %cst_98 : f32 to vector<16x128xf32>
    %222 = arith.mulf %221, %220 : vector<16x128xf32>
    %223 = math.tanh %222 : vector<16x128xf32>
    %cst_99 = arith.constant 5.000000e-01 : f32
    %224 = vector.broadcast %cst_99 : f32 to vector<16x128xf32>
    %225 = arith.mulf %224, %223 : vector<16x128xf32>
    %cst_100 = arith.constant 5.000000e-01 : f32
    %226 = vector.broadcast %cst_100 : f32 to vector<16x128xf32>
    %227 = arith.addf %225, %226 : vector<16x128xf32>
    %228 = vector.extract_strided_slice %211 {offsets = [0, 256], sizes = [16, 128], strides = [1, 1]} : vector<16x512xf32> to vector<16x128xf32>
    %229 = math.tanh %228 : vector<16x128xf32>
    %230 = vector.extract_strided_slice %211 {offsets = [0, 384], sizes = [16, 128], strides = [1, 1]} : vector<16x512xf32> to vector<16x128xf32>
    %cst_101 = arith.constant 5.000000e-01 : f32
    %231 = vector.broadcast %cst_101 : f32 to vector<16x128xf32>
    %232 = arith.mulf %231, %230 : vector<16x128xf32>
    %233 = math.tanh %232 : vector<16x128xf32>
    %cst_102 = arith.constant 5.000000e-01 : f32
    %234 = vector.broadcast %cst_102 : f32 to vector<16x128xf32>
    %235 = arith.mulf %234, %233 : vector<16x128xf32>
    %cst_103 = arith.constant 5.000000e-01 : f32
    %236 = vector.broadcast %cst_103 : f32 to vector<16x128xf32>
    %237 = arith.addf %235, %236 : vector<16x128xf32>
    %238 = arith.mulf %227, %203 : vector<16x128xf32>
    %239 = arith.mulf %219, %229 : vector<16x128xf32>
    %240 = arith.addf %238, %239 : vector<16x128xf32>
    %241 = math.tanh %240 : vector<16x128xf32>
    %242 = arith.mulf %237, %241 : vector<16x128xf32>
    %c1_i32_104 = arith.constant 1 : i32
    %c16_i32_105 = arith.constant 16 : i32
    %243 = arith.muli %c1_i32_104, %c16_i32_105 : i32
    %244 = tpu.assume_multiple %243, 16 : i32
    %245 = arith.index_cast %244 : i32 to index
    %c0_106 = arith.constant 0 : index
    %246 = vector.load %arg13[%245, %c0_106] : memref<64x512xbf16, #tpu.memory_space<vmem>>, vector<16x512xbf16>
    %247 = arith.extf %246 : vector<16x512xbf16> to vector<16x512xf32>
    %248 = arith.truncf %242 : vector<16x128xf32> to vector<16x128xbf16>
    %cst_107 = arith.constant dense<0.000000e+00> : vector<16x512xf32>
    %249 = tpu.matmul %248, %199, %cst_107 {dimension_numbers = #tpu.dot_dimension_numbers<[1], [0], [0], [1], [0, 0, 1, 1], [], []>} : vector<16x128xbf16>, vector<128x512xbf16>, vector<16x512xf32> -> vector<16x512xf32>
    %250 = arith.addf %247, %249 : vector<16x512xf32>
    %251 = vector.extract_strided_slice %250 {offsets = [0, 0], sizes = [16, 128], strides = [1, 1]} : vector<16x512xf32> to vector<16x128xf32>
    %cst_108 = arith.constant 5.000000e-01 : f32
    %252 = vector.broadcast %cst_108 : f32 to vector<16x128xf32>
    %253 = arith.mulf %252, %251 : vector<16x128xf32>
    %254 = math.tanh %253 : vector<16x128xf32>
    %cst_109 = arith.constant 5.000000e-01 : f32
    %255 = vector.broadcast %cst_109 : f32 to vector<16x128xf32>
    %256 = arith.mulf %255, %254 : vector<16x128xf32>
    %cst_110 = arith.constant 5.000000e-01 : f32
    %257 = vector.broadcast %cst_110 : f32 to vector<16x128xf32>
    %258 = arith.addf %256, %257 : vector<16x128xf32>
    %259 = vector.extract_strided_slice %250 {offsets = [0, 128], sizes = [16, 128], strides = [1, 1]} : vector<16x512xf32> to vector<16x128xf32>
    %cst_111 = arith.constant 5.000000e-01 : f32
    %260 = vector.broadcast %cst_111 : f32 to vector<16x128xf32>
    %261 = arith.mulf %260, %259 : vector<16x128xf32>
    %262 = math.tanh %261 : vector<16x128xf32>
    %cst_112 = arith.constant 5.000000e-01 : f32
    %263 = vector.broadcast %cst_112 : f32 to vector<16x128xf32>
    %264 = arith.mulf %263, %262 : vector<16x128xf32>
    %cst_113 = arith.constant 5.000000e-01 : f32
    %265 = vector.broadcast %cst_113 : f32 to vector<16x128xf32>
    %266 = arith.addf %264, %265 : vector<16x128xf32>
    %267 = vector.extract_strided_slice %250 {offsets = [0, 256], sizes = [16, 128], strides = [1, 1]} : vector<16x512xf32> to vector<16x128xf32>
    %268 = math.tanh %267 : vector<16x128xf32>
    %269 = vector.extract_strided_slice %250 {offsets = [0, 384], sizes = [16, 128], strides = [1, 1]} : vector<16x512xf32> to vector<16x128xf32>
    %cst_114 = arith.constant 5.000000e-01 : f32
    %270 = vector.broadcast %cst_114 : f32 to vector<16x128xf32>
    %271 = arith.mulf %270, %269 : vector<16x128xf32>
    %272 = math.tanh %271 : vector<16x128xf32>
    %cst_115 = arith.constant 5.000000e-01 : f32
    %273 = vector.broadcast %cst_115 : f32 to vector<16x128xf32>
    %274 = arith.mulf %273, %272 : vector<16x128xf32>
    %cst_116 = arith.constant 5.000000e-01 : f32
    %275 = vector.broadcast %cst_116 : f32 to vector<16x128xf32>
    %276 = arith.addf %274, %275 : vector<16x128xf32>
    %277 = arith.mulf %266, %240 : vector<16x128xf32>
    %278 = arith.mulf %258, %268 : vector<16x128xf32>
    %279 = arith.addf %277, %278 : vector<16x128xf32>
    %280 = math.tanh %279 : vector<16x128xf32>
    %281 = arith.mulf %276, %280 : vector<16x128xf32>
    %c2_i32_117 = arith.constant 2 : i32
    %c16_i32_118 = arith.constant 16 : i32
    %282 = arith.muli %c2_i32_117, %c16_i32_118 : i32
    %283 = tpu.assume_multiple %282, 16 : i32
    %284 = arith.index_cast %283 : i32 to index
    %c0_119 = arith.constant 0 : index
    %285 = vector.load %arg13[%284, %c0_119] : memref<64x512xbf16, #tpu.memory_space<vmem>>, vector<16x512xbf16>
    %286 = arith.extf %285 : vector<16x512xbf16> to vector<16x512xf32>
    %287 = arith.truncf %281 : vector<16x128xf32> to vector<16x128xbf16>
    %cst_120 = arith.constant dense<0.000000e+00> : vector<16x512xf32>
    %288 = tpu.matmul %287, %199, %cst_120 {dimension_numbers = #tpu.dot_dimension_numbers<[1], [0], [0], [1], [0, 0, 1, 1], [], []>} : vector<16x128xbf16>, vector<128x512xbf16>, vector<16x512xf32> -> vector<16x512xf32>
    %289 = arith.addf %286, %288 : vector<16x512xf32>
    %290 = vector.extract_strided_slice %289 {offsets = [0, 0], sizes = [16, 128], strides = [1, 1]} : vector<16x512xf32> to vector<16x128xf32>
    %cst_121 = arith.constant 5.000000e-01 : f32
    %291 = vector.broadcast %cst_121 : f32 to vector<16x128xf32>
    %292 = arith.mulf %291, %290 : vector<16x128xf32>
    %293 = math.tanh %292 : vector<16x128xf32>
    %cst_122 = arith.constant 5.000000e-01 : f32
    %294 = vector.broadcast %cst_122 : f32 to vector<16x128xf32>
    %295 = arith.mulf %294, %293 : vector<16x128xf32>
    %cst_123 = arith.constant 5.000000e-01 : f32
    %296 = vector.broadcast %cst_123 : f32 to vector<16x128xf32>
    %297 = arith.addf %295, %296 : vector<16x128xf32>
    %298 = vector.extract_strided_slice %289 {offsets = [0, 128], sizes = [16, 128], strides = [1, 1]} : vector<16x512xf32> to vector<16x128xf32>
    %cst_124 = arith.constant 5.000000e-01 : f32
    %299 = vector.broadcast %cst_124 : f32 to vector<16x128xf32>
    %300 = arith.mulf %299, %298 : vector<16x128xf32>
    %301 = math.tanh %300 : vector<16x128xf32>
    %cst_125 = arith.constant 5.000000e-01 : f32
    %302 = vector.broadcast %cst_125 : f32 to vector<16x128xf32>
    %303 = arith.mulf %302, %301 : vector<16x128xf32>
    %cst_126 = arith.constant 5.000000e-01 : f32
    %304 = vector.broadcast %cst_126 : f32 to vector<16x128xf32>
    %305 = arith.addf %303, %304 : vector<16x128xf32>
    %306 = vector.extract_strided_slice %289 {offsets = [0, 256], sizes = [16, 128], strides = [1, 1]} : vector<16x512xf32> to vector<16x128xf32>
    %307 = math.tanh %306 : vector<16x128xf32>
    %308 = vector.extract_strided_slice %289 {offsets = [0, 384], sizes = [16, 128], strides = [1, 1]} : vector<16x512xf32> to vector<16x128xf32>
    %cst_127 = arith.constant 5.000000e-01 : f32
    %309 = vector.broadcast %cst_127 : f32 to vector<16x128xf32>
    %310 = arith.mulf %309, %308 : vector<16x128xf32>
    %311 = math.tanh %310 : vector<16x128xf32>
    %cst_128 = arith.constant 5.000000e-01 : f32
    %312 = vector.broadcast %cst_128 : f32 to vector<16x128xf32>
    %313 = arith.mulf %312, %311 : vector<16x128xf32>
    %cst_129 = arith.constant 5.000000e-01 : f32
    %314 = vector.broadcast %cst_129 : f32 to vector<16x128xf32>
    %315 = arith.addf %313, %314 : vector<16x128xf32>
    %316 = arith.mulf %305, %279 : vector<16x128xf32>
    %317 = arith.mulf %297, %307 : vector<16x128xf32>
    %318 = arith.addf %316, %317 : vector<16x128xf32>
    %319 = math.tanh %318 : vector<16x128xf32>
    %320 = arith.mulf %315, %319 : vector<16x128xf32>
    %c3_i32_130 = arith.constant 3 : i32
    %c16_i32_131 = arith.constant 16 : i32
    %321 = arith.muli %c3_i32_130, %c16_i32_131 : i32
    %322 = tpu.assume_multiple %321, 16 : i32
    %323 = arith.index_cast %322 : i32 to index
    %c0_132 = arith.constant 0 : index
    %324 = vector.load %arg13[%323, %c0_132] : memref<64x512xbf16, #tpu.memory_space<vmem>>, vector<16x512xbf16>
    %325 = arith.extf %324 : vector<16x512xbf16> to vector<16x512xf32>
    %326 = arith.truncf %320 : vector<16x128xf32> to vector<16x128xbf16>
    %cst_133 = arith.constant dense<0.000000e+00> : vector<16x512xf32>
    %327 = tpu.matmul %326, %199, %cst_133 {dimension_numbers = #tpu.dot_dimension_numbers<[1], [0], [0], [1], [0, 0, 1, 1], [], []>} : vector<16x128xbf16>, vector<128x512xbf16>, vector<16x512xf32> -> vector<16x512xf32>
    %328 = arith.addf %325, %327 : vector<16x512xf32>
    %329 = vector.extract_strided_slice %328 {offsets = [0, 0], sizes = [16, 128], strides = [1, 1]} : vector<16x512xf32> to vector<16x128xf32>
    %cst_134 = arith.constant 5.000000e-01 : f32
    %330 = vector.broadcast %cst_134 : f32 to vector<16x128xf32>
    %331 = arith.mulf %330, %329 : vector<16x128xf32>
    %332 = math.tanh %331 : vector<16x128xf32>
    %cst_135 = arith.constant 5.000000e-01 : f32
    %333 = vector.broadcast %cst_135 : f32 to vector<16x128xf32>
    %334 = arith.mulf %333, %332 : vector<16x128xf32>
    %cst_136 = arith.constant 5.000000e-01 : f32
    %335 = vector.broadcast %cst_136 : f32 to vector<16x128xf32>
    %336 = arith.addf %334, %335 : vector<16x128xf32>
    %337 = vector.extract_strided_slice %328 {offsets = [0, 128], sizes = [16, 128], strides = [1, 1]} : vector<16x512xf32> to vector<16x128xf32>
    %cst_137 = arith.constant 5.000000e-01 : f32
    %338 = vector.broadcast %cst_137 : f32 to vector<16x128xf32>
    %339 = arith.mulf %338, %337 : vector<16x128xf32>
    %340 = math.tanh %339 : vector<16x128xf32>
    %cst_138 = arith.constant 5.000000e-01 : f32
    %341 = vector.broadcast %cst_138 : f32 to vector<16x128xf32>
    %342 = arith.mulf %341, %340 : vector<16x128xf32>
    %cst_139 = arith.constant 5.000000e-01 : f32
    %343 = vector.broadcast %cst_139 : f32 to vector<16x128xf32>
    %344 = arith.addf %342, %343 : vector<16x128xf32>
    %345 = vector.extract_strided_slice %328 {offsets = [0, 256], sizes = [16, 128], strides = [1, 1]} : vector<16x512xf32> to vector<16x128xf32>
    %346 = math.tanh %345 : vector<16x128xf32>
    %347 = vector.extract_strided_slice %328 {offsets = [0, 384], sizes = [16, 128], strides = [1, 1]} : vector<16x512xf32> to vector<16x128xf32>
    %cst_140 = arith.constant 5.000000e-01 : f32
    %348 = vector.broadcast %cst_140 : f32 to vector<16x128xf32>
    %349 = arith.mulf %348, %347 : vector<16x128xf32>
    %350 = math.tanh %349 : vector<16x128xf32>
    %cst_141 = arith.constant 5.000000e-01 : f32
    %351 = vector.broadcast %cst_141 : f32 to vector<16x128xf32>
    %352 = arith.mulf %351, %350 : vector<16x128xf32>
    %cst_142 = arith.constant 5.000000e-01 : f32
    %353 = vector.broadcast %cst_142 : f32 to vector<16x128xf32>
    %354 = arith.addf %352, %353 : vector<16x128xf32>
    %355 = arith.mulf %344, %318 : vector<16x128xf32>
    %356 = arith.mulf %336, %346 : vector<16x128xf32>
    %357 = arith.addf %355, %356 : vector<16x128xf32>
    %358 = math.tanh %357 : vector<16x128xf32>
    %359 = arith.mulf %354, %358 : vector<16x128xf32>
    %c4_i32_143 = arith.constant 4 : i32
    %c1_144 = arith.constant 1 : index
    %c0_145 = arith.constant 0 : index
    %c0_146 = arith.constant 0 : index
    %360 = vector.load %arg14[%c1_144, %c0_145, %c0_146] : memref<2x16x128xf32, #tpu.memory_space<vmem>>, vector<1x16x128xf32>
    %361 = vector.shape_cast %360 : vector<1x16x128xf32> to vector<16x128xf32>
    %362 = vector.shape_cast %359 : vector<16x128xf32> to vector<1x16x128xf32>
    tpu.vector_store %arg14[%c1_144, %c0_145, %c0_146], %362 {strides = array<i32>} : memref<2x16x128xf32, #tpu.memory_space<vmem>>, vector<1x16x128xf32>,
    %c1_147 = arith.constant 1 : index
    %c0_148 = arith.constant 0 : index
    %c0_149 = arith.constant 0 : index
    %363 = vector.load %arg15[%c1_147, %c0_148, %c0_149] : memref<2x16x128xf32, #tpu.memory_space<vmem>>, vector<1x16x128xf32>
    %364 = vector.shape_cast %363 : vector<1x16x128xf32> to vector<16x128xf32>
    %365 = vector.shape_cast %357 : vector<16x128xf32> to vector<1x16x128xf32>
    tpu.vector_store %arg15[%c1_147, %c0_148, %c0_149], %365 {strides = array<i32>} : memref<2x16x128xf32, #tpu.memory_space<vmem>>, vector<1x16x128xf32>,
    %c1_i32_150 = arith.constant 1 : i32
    %366 = arith.cmpi eq, %arg1, %c1_i32_150 : i32
    %367 = arith.extui %366 : i1 to i32
    %c0_i32_151 = arith.constant 0 : i32
    %368 = arith.cmpi ne, %367, %c0_i32_151 : i32
    scf.if %368 {
      %c1_152 = arith.constant 1 : index
      %c0_153 = arith.constant 0 : index
      %c0_154 = arith.constant 0 : index
      %369 = vector.load %arg14[%c1_152, %c0_153, %c0_154] : memref<2x16x128xf32, #tpu.memory_space<vmem>>, vector<1x16x128xf32>
      %370 = vector.shape_cast %369 : vector<1x16x128xf32> to vector<16x128xf32>
      %371 = arith.truncf %370 : vector<16x128xf32> to vector<16x128xbf16>
      %c0_155 = arith.constant 0 : index
      %c0_156 = arith.constant 0 : index
      %372 = vector.load %arg9[%c0_155, %c0_156] : memref<128x128xbf16, #tpu.memory_space<vmem>>, vector<128x128xbf16>
      %cst_157 = arith.constant dense<0.000000e+00> : vector<16x128xf32>
      %373 = tpu.matmul %371, %372, %cst_157 {dimension_numbers = #tpu.dot_dimension_numbers<[1], [0], [0], [1], [0, 0, 1, 1], [], []>} : vector<16x128xbf16>, vector<128x128xbf16>, vector<16x128xf32> -> vector<16x128xf32>
      %c0_158 = arith.constant 0 : index
      %c0_159 = arith.constant 0 : index
      %374 = vector.load %arg10[%c0_158, %c0_159] : memref<1x128xf32, #tpu.memory_space<vmem>>, vector<1x128xf32>
      %375 = vector.broadcast %374 : vector<1x128xf32> to vector<16x128xf32>
      %376 = arith.addf %373, %375 : vector<16x128xf32>
      %c0_160 = arith.constant 0 : index
      %c0_161 = arith.constant 0 : index
      %377 = vector.load %arg11[%c0_160, %c0_161] : memref<16x128xf32, #tpu.memory_space<vmem>>, vector<16x128xf32>
      tpu.vector_store %arg11[%c0_160, %c0_161], %376 {strides = array<i32>} : memref<16x128xf32, #tpu.memory_space<vmem>>, vector<16x128xf32>,
    } else {
    }
    return
  }
  func.func @transform_0(%arg0: i32, %arg1: i32) -> (i32, i32, i32) {
    %c0_i32 = arith.constant 0 : i32
    %c0_i32_0 = arith.constant 0 : i32
    return %arg1, %arg0, %c0_i32 : i32, i32, i32
  }
  func.func @transform_1(%arg0: i32, %arg1: i32) -> (i32, i32) {
    %c0_i32 = arith.constant 0 : i32
    %c0_i32_0 = arith.constant 0 : i32
    %c0_i32_1 = arith.constant 0 : i32
    return %c0_i32, %c0_i32_0 : i32, i32
  }
  func.func @transform_2(%arg0: i32, %arg1: i32) -> (i32, i32) {
    %c0_i32 = arith.constant 0 : i32
    %c0_i32_0 = arith.constant 0 : i32
    %c0_i32_1 = arith.constant 0 : i32
    return %c0_i32, %c0_i32_0 : i32, i32
  }
  func.func @transform_3(%arg0: i32, %arg1: i32) -> (i32, i32) {
    %c0_i32 = arith.constant 0 : i32
    %c0_i32_0 = arith.constant 0 : i32
    %c0_i32_1 = arith.constant 0 : i32
    return %c0_i32, %c0_i32_0 : i32, i32
  }
  func.func @transform_4(%arg0: i32, %arg1: i32) -> (i32, i32) {
    %c0_i32 = arith.constant 0 : i32
    %c0_i32_0 = arith.constant 0 : i32
    %c0_i32_1 = arith.constant 0 : i32
    return %c0_i32, %c0_i32_0 : i32, i32
  }
  func.func @transform_5(%arg0: i32, %arg1: i32) -> (i32, i32) {
    %c0_i32 = arith.constant 0 : i32
    %c0_i32_0 = arith.constant 0 : i32
    %c0_i32_1 = arith.constant 0 : i32
    return %c0_i32, %c0_i32_0 : i32, i32
  }
  func.func @transform_6(%arg0: i32, %arg1: i32) -> (i32, i32) {
    %c0_i32 = arith.constant 0 : i32
    %c0_i32_0 = arith.constant 0 : i32
    %c0_i32_1 = arith.constant 0 : i32
    return %c0_i32, %c0_i32_0 : i32, i32
  }
  func.func @transform_7(%arg0: i32, %arg1: i32) -> (i32, i32) {
    %c0_i32 = arith.constant 0 : i32
    %c0_i32_0 = arith.constant 0 : i32
    %c0_i32_1 = arith.constant 0 : i32
    return %c0_i32, %c0_i32_0 : i32, i32
  }
  func.func @transform_8(%arg0: i32, %arg1: i32) -> (i32, i32) {
    %c0_i32 = arith.constant 0 : i32
    %c0_i32_0 = arith.constant 0 : i32
    %c0_i32_1 = arith.constant 0 : i32
    return %c0_i32, %c0_i32_0 : i32, i32
  }
  func.func @transform_9(%arg0: i32, %arg1: i32) -> (i32, i32) {
    %c0_i32 = arith.constant 0 : i32
    %c0_i32_0 = arith.constant 0 : i32
    return %arg0, %c0_i32 : i32, i32
  }
}

module attributes {stable_mosaic.version = 11 : i64} {
  func.func @kernel(%arg0: i32, %arg1: i32, %arg2: memref<4x16x128xbf16, #tpu.memory_space<vmem>>, %arg3: memref<128x512xbf16, #tpu.memory_space<vmem>>, %arg4: memref<128x512xbf16, #tpu.memory_space<vmem>>, %arg5: memref<1x512xf32, #tpu.memory_space<vmem>>, %arg6: memref<128x512xbf16, #tpu.memory_space<vmem>>, %arg7: memref<128x512xbf16, #tpu.memory_space<vmem>>, %arg8: memref<1x512xf32, #tpu.memory_space<vmem>>, %arg9: memref<128x128xbf16, #tpu.memory_space<vmem>>, %arg10: memref<1x128xf32, #tpu.memory_space<vmem>>, %arg11: memref<16x128xf32, #tpu.memory_space<vmem>>, %arg12: memref<64x128xbf16, #tpu.memory_space<vmem>>, %arg13: memref<64x512xbf16, #tpu.memory_space<vmem>>, %arg14: memref<2x16x128xf32, #tpu.memory_space<vmem>>, %arg15: memref<2x16x128xf32, #tpu.memory_space<vmem>>) attributes {dimension_semantics = [#tpu.dimension_semantics<parallel>, #tpu.dimension_semantics<arbitrary>], iteration_bounds = array<i64: 1, 2>, scalar_prefetch = 0 : i64, scratch_operands = 4 : i64, tpu.core_type = #tpu.core_type<tc>, window_params = [{transform_indices = @transform_0, window_bounds = array<i64: 4, 16, 128>}, {pipeline_mode = #tpu.pipeline_mode<synchronous>, transform_indices = @transform_1, window_bounds = array<i64: 128, 512>}, {pipeline_mode = #tpu.pipeline_mode<synchronous>, transform_indices = @transform_2, window_bounds = array<i64: 128, 512>}, {pipeline_mode = #tpu.pipeline_mode<synchronous>, transform_indices = @transform_3, window_bounds = array<i64: 1, 512>}, {pipeline_mode = #tpu.pipeline_mode<synchronous>, transform_indices = @transform_4, window_bounds = array<i64: 128, 512>}, {pipeline_mode = #tpu.pipeline_mode<synchronous>, transform_indices = @transform_5, window_bounds = array<i64: 128, 512>}, {pipeline_mode = #tpu.pipeline_mode<synchronous>, transform_indices = @transform_6, window_bounds = array<i64: 1, 512>}, {pipeline_mode = #tpu.pipeline_mode<synchronous>, transform_indices = @transform_7, window_bounds = array<i64: 128, 128>}, {pipeline_mode = #tpu.pipeline_mode<synchronous>, transform_indices = @transform_8, window_bounds = array<i64: 1, 128>}, {transform_indices = @transform_9, window_bounds = array<i64: 16, 128>}]} {
    %c0_i32 = arith.constant 0 : i32
    %0 = arith.cmpi eq, %arg1, %c0_i32 : i32
    %1 = arith.extui %0 : i1 to i32
    %c0_i32_0 = arith.constant 0 : i32
    %2 = arith.cmpi ne, %1, %c0_i32_0 : i32
    scf.if %2 {
      %cst_152 = arith.constant 0.000000e+00 : f32
      %369 = vector.broadcast %cst_152 : f32 to vector<2x16x128xf32>
      %c0_153 = arith.constant 0 : index
      %c0_154 = arith.constant 0 : index
      %c0_155 = arith.constant 0 : index
      %370 = vector.load %arg14[%c0_153, %c0_154, %c0_155] : memref<2x16x128xf32, #tpu.memory_space<vmem>>, vector<2x16x128xf32>
      tpu.vector_store %arg14[%c0_153, %c0_154, %c0_155], %369 {strides = array<i32>} : memref<2x16x128xf32, #tpu.memory_space<vmem>>, vector<2x16x128xf32>,
      %cst_156 = arith.constant 0.000000e+00 : f32
      %371 = vector.broadcast %cst_156 : f32 to vector<2x16x128xf32>
      %c0_157 = arith.constant 0 : index
      %c0_158 = arith.constant 0 : index
      %c0_159 = arith.constant 0 : index
      %372 = vector.load %arg15[%c0_157, %c0_158, %c0_159] : memref<2x16x128xf32, #tpu.memory_space<vmem>>, vector<2x16x128xf32>
      tpu.vector_store %arg15[%c0_157, %c0_158, %c0_159], %371 {strides = array<i32>} : memref<2x16x128xf32, #tpu.memory_space<vmem>>, vector<2x16x128xf32>,
      %cst_160 = arith.constant 0.000000e+00 : f32
      %373 = vector.broadcast %cst_160 : f32 to vector<16x128xf32>
      %c0_161 = arith.constant 0 : index
      %c0_162 = arith.constant 0 : index
      %374 = vector.load %arg11[%c0_161, %c0_162] : memref<16x128xf32, #tpu.memory_space<vmem>>, vector<16x128xf32>
      tpu.vector_store %arg11[%c0_161, %c0_162], %373 {strides = array<i32>} : memref<16x128xf32, #tpu.memory_space<vmem>>, vector<16x128xf32>,
    } else {
    }
    %c0 = arith.constant 0 : index
    %c0_1 = arith.constant 0 : index
    %c0_2 = arith.constant 0 : index
    %3 = vector.load %arg2[%c0, %c0_1, %c0_2] : memref<4x16x128xbf16, #tpu.memory_space<vmem>>, vector<4x16x128xbf16>
    %4 = vector.shape_cast %3 : vector<4x16x128xbf16> to vector<64x128xbf16>
    %c0_3 = arith.constant 0 : index
    %c0_4 = arith.constant 0 : index
    %5 = vector.load %arg3[%c0_3, %c0_4] : memref<128x512xbf16, #tpu.memory_space<vmem>>, vector<128x512xbf16>
    %cst = arith.constant dense<0.000000e+00> : vector<64x512xf32>
    %6 = tpu.matmul %4, %5, %cst {dimension_numbers = #tpu.dot_dimension_numbers<[1], [0], [0], [1], [0, 0, 1, 1], [], []>} : vector<64x128xbf16>, vector<128x512xbf16>, vector<64x512xf32> -> vector<64x512xf32>
    %c0_5 = arith.constant 0 : index
    %c0_6 = arith.constant 0 : index
    %7 = vector.load %arg5[%c0_5, %c0_6] : memref<1x512xf32, #tpu.memory_space<vmem>>, vector<1x512xf32>
    %8 = vector.broadcast %7 : vector<1x512xf32> to vector<64x512xf32>
    %9 = arith.addf %6, %8 : vector<64x512xf32>
    %10 = arith.truncf %9 : vector<64x512xf32> to vector<64x512xbf16>
    %c0_7 = arith.constant 0 : index
    %c0_8 = arith.constant 0 : index
    %11 = vector.load %arg13[%c0_7, %c0_8] : memref<64x512xbf16, #tpu.memory_space<vmem>>, vector<64x512xbf16>
    tpu.vector_store %arg13[%c0_7, %c0_8], %10 {strides = array<i32>} : memref<64x512xbf16, #tpu.memory_space<vmem>>, vector<64x512xbf16>,
    %c0_9 = arith.constant 0 : index
    %c0_10 = arith.constant 0 : index
    %12 = vector.load %arg4[%c0_9, %c0_10] : memref<128x512xbf16, #tpu.memory_space<vmem>>, vector<128x512xbf16>
    %c0_11 = arith.constant 0 : index
    %c0_12 = arith.constant 0 : index
    %c0_13 = arith.constant 0 : index
    %13 = vector.load %arg14[%c0_11, %c0_12, %c0_13] : memref<2x16x128xf32, #tpu.memory_space<vmem>>, vector<1x16x128xf32>
    %14 = vector.shape_cast %13 : vector<1x16x128xf32> to vector<16x128xf32>
    %c0_14 = arith.constant 0 : index
    %c0_15 = arith.constant 0 : index
    %c0_16 = arith.constant 0 : index
    %15 = vector.load %arg15[%c0_14, %c0_15, %c0_16] : memref<2x16x128xf32, #tpu.memory_space<vmem>>, vector<1x16x128xf32>
    %16 = vector.shape_cast %15 : vector<1x16x128xf32> to vector<16x128xf32>
    %c0_i32_17 = arith.constant 0 : i32
    %c16_i32 = arith.constant 16 : i32
    %17 = arith.muli %c0_i32_17, %c16_i32 : i32
    %18 = tpu.assume_multiple %17, 16 : i32
    %19 = arith.index_cast %18 : i32 to index
    %c0_18 = arith.constant 0 : index
    %20 = vector.load %arg13[%19, %c0_18] : memref<64x512xbf16, #tpu.memory_space<vmem>>, vector<16x512xbf16>
    %21 = arith.extf %20 : vector<16x512xbf16> to vector<16x512xf32>
    %22 = arith.truncf %14 : vector<16x128xf32> to vector<16x128xbf16>
    %cst_19 = arith.constant dense<0.000000e+00> : vector<16x512xf32>
    %23 = tpu.matmul %22, %12, %cst_19 {dimension_numbers = #tpu.dot_dimension_numbers<[1], [0], [0], [1], [0, 0, 1, 1], [], []>} : vector<16x128xbf16>, vector<128x512xbf16>, vector<16x512xf32> -> vector<16x512xf32>
    %24 = arith.addf %21, %23 : vector<16x512xf32>
    %25 = vector.extract_strided_slice %24 {offsets = [0, 0], sizes = [16, 128], strides = [1, 1]} : vector<16x512xf32> to vector<16x128xf32>
    %cst_20 = arith.constant 5.000000e-01 : f32
    %26 = vector.broadcast %cst_20 : f32 to vector<16x128xf32>
    %27 = arith.mulf %26, %25 : vector<16x128xf32>
    %28 = math.tanh %27 : vector<16x128xf32>
    %cst_21 = arith.constant 5.000000e-01 : f32
    %29 = vector.broadcast %cst_21 : f32 to vector<16x128xf32>
    %30 = arith.mulf %29, %28 : vector<16x128xf32>
    %cst_22 = arith.constant 5.000000e-01 : f32
    %31 = vector.broadcast %cst_22 : f32 to vector<16x128xf32>
    %32 = arith.addf %30, %31 : vector<16x128xf32>
    %33 = vector.extract_strided_slice %24 {offsets = [0, 128], sizes = [16, 128], strides = [1, 1]} : vector<16x512xf32> to vector<16x128xf32>
    %cst_23 = arith.constant 5.000000e-01 : f32
    %34 = vector.broadcast %cst_23 : f32 to vector<16x128xf32>
    %35 = arith.mulf %34, %33 : vector<16x128xf32>
    %36 = math.tanh %35 : vector<16x128xf32>
    %cst_24 = arith.constant 5.000000e-01 : f32
    %37 = vector.broadcast %cst_24 : f32 to vector<16x128xf32>
    %38 = arith.mulf %37, %36 : vector<16x128xf32>
    %cst_25 = arith.constant 5.000000e-01 : f32
    %39 = vector.broadcast %cst_25 : f32 to vector<16x128xf32>
    %40 = arith.addf %38, %39 : vector<16x128xf32>
    %41 = vector.extract_strided_slice %24 {offsets = [0, 256], sizes = [16, 128], strides = [1, 1]} : vector<16x512xf32> to vector<16x128xf32>
    %42 = math.tanh %41 : vector<16x128xf32>
    %43 = vector.extract_strided_slice %24 {offsets = [0, 384], sizes = [16, 128], strides = [1, 1]} : vector<16x512xf32> to vector<16x128xf32>
    %cst_26 = arith.constant 5.000000e-01 : f32
    %44 = vector.broadcast %cst_26 : f32 to vector<16x128xf32>
    %45 = arith.mulf %44, %43 : vector<16x128xf32>
    %46 = math.tanh %45 : vector<16x128xf32>
    %cst_27 = arith.constant 5.000000e-01 : f32
    %47 = vector.broadcast %cst_27 : f32 to vector<16x128xf32>
    %48 = arith.mulf %47, %46 : vector<16x128xf32>
    %cst_28 = arith.constant 5.000000e-01 : f32
    %49 = vector.broadcast %cst_28 : f32 to vector<16x128xf32>
    %50 = arith.addf %48, %49 : vector<16x128xf32>
    %51 = arith.mulf %40, %16 : vector<16x128xf32>
    %52 = arith.mulf %32, %42 : vector<16x128xf32>
    %53 = arith.addf %51, %52 : vector<16x128xf32>
    %54 = math.tanh %53 : vector<16x128xf32>
    %55 = arith.mulf %50, %54 : vector<16x128xf32>
    %56 = arith.truncf %55 : vector<16x128xf32> to vector<16x128xbf16>
    %57 = arith.index_cast %18 : i32 to index
    %c0_29 = arith.constant 0 : index
    %58 = vector.load %arg12[%57, %c0_29] : memref<64x128xbf16, #tpu.memory_space<vmem>>, vector<16x128xbf16>
    tpu.vector_store %arg12[%57, %c0_29], %56 {strides = array<i32>} : memref<64x128xbf16, #tpu.memory_space<vmem>>, vector<16x128xbf16>,
    %c1_i32 = arith.constant 1 : i32
    %c16_i32_30 = arith.constant 16 : i32
    %59 = arith.muli %c1_i32, %c16_i32_30 : i32
    %60 = tpu.assume_multiple %59, 16 : i32
    %61 = arith.index_cast %60 : i32 to index
    %c0_31 = arith.constant 0 : index
    %62 = vector.load %arg13[%61, %c0_31] : memref<64x512xbf16, #tpu.memory_space<vmem>>, vector<16x512xbf16>
    %63 = arith.extf %62 : vector<16x512xbf16> to vector<16x512xf32>
    %64 = arith.truncf %55 : vector<16x128xf32> to vector<16x128xbf16>
    %cst_32 = arith.constant dense<0.000000e+00> : vector<16x512xf32>
    %65 = tpu.matmul %64, %12, %cst_32 {dimension_numbers = #tpu.dot_dimension_numbers<[1], [0], [0], [1], [0, 0, 1, 1], [], []>} : vector<16x128xbf16>, vector<128x512xbf16>, vector<16x512xf32> -> vector<16x512xf32>
    %66 = arith.addf %63, %65 : vector<16x512xf32>
    %67 = vector.extract_strided_slice %66 {offsets = [0, 0], sizes = [16, 128], strides = [1, 1]} : vector<16x512xf32> to vector<16x128xf32>
    %cst_33 = arith.constant 5.000000e-01 : f32
    %68 = vector.broadcast %cst_33 : f32 to vector<16x128xf32>
    %69 = arith.mulf %68, %67 : vector<16x128xf32>
    %70 = math.tanh %69 : vector<16x128xf32>
    %cst_34 = arith.constant 5.000000e-01 : f32
    %71 = vector.broadcast %cst_34 : f32 to vector<16x128xf32>
    %72 = arith.mulf %71, %70 : vector<16x128xf32>
    %cst_35 = arith.constant 5.000000e-01 : f32
    %73 = vector.broadcast %cst_35 : f32 to vector<16x128xf32>
    %74 = arith.addf %72, %73 : vector<16x128xf32>
    %75 = vector.extract_strided_slice %66 {offsets = [0, 128], sizes = [16, 128], strides = [1, 1]} : vector<16x512xf32> to vector<16x128xf32>
    %cst_36 = arith.constant 5.000000e-01 : f32
    %76 = vector.broadcast %cst_36 : f32 to vector<16x128xf32>
    %77 = arith.mulf %76, %75 : vector<16x128xf32>
    %78 = math.tanh %77 : vector<16x128xf32>
    %cst_37 = arith.constant 5.000000e-01 : f32
    %79 = vector.broadcast %cst_37 : f32 to vector<16x128xf32>
    %80 = arith.mulf %79, %78 : vector<16x128xf32>
    %cst_38 = arith.constant 5.000000e-01 : f32
    %81 = vector.broadcast %cst_38 : f32 to vector<16x128xf32>
    %82 = arith.addf %80, %81 : vector<16x128xf32>
    %83 = vector.extract_strided_slice %66 {offsets = [0, 256], sizes = [16, 128], strides = [1, 1]} : vector<16x512xf32> to vector<16x128xf32>
    %84 = math.tanh %83 : vector<16x128xf32>
    %85 = vector.extract_strided_slice %66 {offsets = [0, 384], sizes = [16, 128], strides = [1, 1]} : vector<16x512xf32> to vector<16x128xf32>
    %cst_39 = arith.constant 5.000000e-01 : f32
    %86 = vector.broadcast %cst_39 : f32 to vector<16x128xf32>
    %87 = arith.mulf %86, %85 : vector<16x128xf32>
    %88 = math.tanh %87 : vector<16x128xf32>
    %cst_40 = arith.constant 5.000000e-01 : f32
    %89 = vector.broadcast %cst_40 : f32 to vector<16x128xf32>
    %90 = arith.mulf %89, %88 : vector<16x128xf32>
    %cst_41 = arith.constant 5.000000e-01 : f32
    %91 = vector.broadcast %cst_41 : f32 to vector<16x128xf32>
    %92 = arith.addf %90, %91 : vector<16x128xf32>
    %93 = arith.mulf %82, %53 : vector<16x128xf32>
    %94 = arith.mulf %74, %84 : vector<16x128xf32>
    %95 = arith.addf %93, %94 : vector<16x128xf32>
    %96 = math.tanh %95 : vector<16x128xf32>
    %97 = arith.mulf %92, %96 : vector<16x128xf32>
    %98 = arith.truncf %97 : vector<16x128xf32> to vector<16x128xbf16>
    %99 = arith.index_cast %60 : i32 to index
    %c0_42 = arith.constant 0 : index
    %100 = vector.load %arg12[%99, %c0_42] : memref<64x128xbf16, #tpu.memory_space<vmem>>, vector<16x128xbf16>
    tpu.vector_store %arg12[%99, %c0_42], %98 {strides = array<i32>} : memref<64x128xbf16, #tpu.memory_space<vmem>>, vector<16x128xbf16>,
    %c2_i32 = arith.constant 2 : i32
    %c16_i32_43 = arith.constant 16 : i32
    %101 = arith.muli %c2_i32, %c16_i32_43 : i32
    %102 = tpu.assume_multiple %101, 16 : i32
    %103 = arith.index_cast %102 : i32 to index
    %c0_44 = arith.constant 0 : index
    %104 = vector.load %arg13[%103, %c0_44] : memref<64x512xbf16, #tpu.memory_space<vmem>>, vector<16x512xbf16>
    %105 = arith.extf %104 : vector<16x512xbf16> to vector<16x512xf32>
    %106 = arith.truncf %97 : vector<16x128xf32> to vector<16x128xbf16>
    %cst_45 = arith.constant dense<0.000000e+00> : vector<16x512xf32>
    %107 = tpu.matmul %106, %12, %cst_45 {dimension_numbers = #tpu.dot_dimension_numbers<[1], [0], [0], [1], [0, 0, 1, 1], [], []>} : vector<16x128xbf16>, vector<128x512xbf16>, vector<16x512xf32> -> vector<16x512xf32>
    %108 = arith.addf %105, %107 : vector<16x512xf32>
    %109 = vector.extract_strided_slice %108 {offsets = [0, 0], sizes = [16, 128], strides = [1, 1]} : vector<16x512xf32> to vector<16x128xf32>
    %cst_46 = arith.constant 5.000000e-01 : f32
    %110 = vector.broadcast %cst_46 : f32 to vector<16x128xf32>
    %111 = arith.mulf %110, %109 : vector<16x128xf32>
    %112 = math.tanh %111 : vector<16x128xf32>
    %cst_47 = arith.constant 5.000000e-01 : f32
    %113 = vector.broadcast %cst_47 : f32 to vector<16x128xf32>
    %114 = arith.mulf %113, %112 : vector<16x128xf32>
    %cst_48 = arith.constant 5.000000e-01 : f32
    %115 = vector.broadcast %cst_48 : f32 to vector<16x128xf32>
    %116 = arith.addf %114, %115 : vector<16x128xf32>
    %117 = vector.extract_strided_slice %108 {offsets = [0, 128], sizes = [16, 128], strides = [1, 1]} : vector<16x512xf32> to vector<16x128xf32>
    %cst_49 = arith.constant 5.000000e-01 : f32
    %118 = vector.broadcast %cst_49 : f32 to vector<16x128xf32>
    %119 = arith.mulf %118, %117 : vector<16x128xf32>
    %120 = math.tanh %119 : vector<16x128xf32>
    %cst_50 = arith.constant 5.000000e-01 : f32
    %121 = vector.broadcast %cst_50 : f32 to vector<16x128xf32>
    %122 = arith.mulf %121, %120 : vector<16x128xf32>
    %cst_51 = arith.constant 5.000000e-01 : f32
    %123 = vector.broadcast %cst_51 : f32 to vector<16x128xf32>
    %124 = arith.addf %122, %123 : vector<16x128xf32>
    %125 = vector.extract_strided_slice %108 {offsets = [0, 256], sizes = [16, 128], strides = [1, 1]} : vector<16x512xf32> to vector<16x128xf32>
    %126 = math.tanh %125 : vector<16x128xf32>
    %127 = vector.extract_strided_slice %108 {offsets = [0, 384], sizes = [16, 128], strides = [1, 1]} : vector<16x512xf32> to vector<16x128xf32>
    %cst_52 = arith.constant 5.000000e-01 : f32
    %128 = vector.broadcast %cst_52 : f32 to vector<16x128xf32>
    %129 = arith.mulf %128, %127 : vector<16x128xf32>
    %130 = math.tanh %129 : vector<16x128xf32>
    %cst_53 = arith.constant 5.000000e-01 : f32
    %131 = vector.broadcast %cst_53 : f32 to vector<16x128xf32>
    %132 = arith.mulf %131, %130 : vector<16x128xf32>
    %cst_54 = arith.constant 5.000000e-01 : f32
    %133 = vector.broadcast %cst_54 : f32 to vector<16x128xf32>
    %134 = arith.addf %132, %133 : vector<16x128xf32>
    %135 = arith.mulf %124, %95 : vector<16x128xf32>
    %136 = arith.mulf %116, %126 : vector<16x128xf32>
    %137 = arith.addf %135, %136 : vector<16x128xf32>
    %138 = math.tanh %137 : vector<16x128xf32>
    %139 = arith.mulf %134, %138 : vector<16x128xf32>
    %140 = arith.truncf %139 : vector<16x128xf32> to vector<16x128xbf16>
    %141 = arith.index_cast %102 : i32 to index
    %c0_55 = arith.constant 0 : index
    %142 = vector.load %arg12[%141, %c0_55] : memref<64x128xbf16, #tpu.memory_space<vmem>>, vector<16x128xbf16>
    tpu.vector_store %arg12[%141, %c0_55], %140 {strides = array<i32>} : memref<64x128xbf16, #tpu.memory_space<vmem>>, vector<16x128xbf16>,
    %c3_i32 = arith.constant 3 : i32
    %c16_i32_56 = arith.constant 16 : i32
    %143 = arith.muli %c3_i32, %c16_i32_56 : i32
    %144 = tpu.assume_multiple %143, 16 : i32
    %145 = arith.index_cast %144 : i32 to index
    %c0_57 = arith.constant 0 : index
    %146 = vector.load %arg13[%145, %c0_57] : memref<64x512xbf16, #tpu.memory_space<vmem>>, vector<16x512xbf16>
    %147 = arith.extf %146 : vector<16x512xbf16> to vector<16x512xf32>
    %148 = arith.truncf %139 : vector<16x128xf32> to vector<16x128xbf16>
    %cst_58 = arith.constant dense<0.000000e+00> : vector<16x512xf32>
    %149 = tpu.matmul %148, %12, %cst_58 {dimension_numbers = #tpu.dot_dimension_numbers<[1], [0], [0], [1], [0, 0, 1, 1], [], []>} : vector<16x128xbf16>, vector<128x512xbf16>, vector<16x512xf32> -> vector<16x512xf32>
    %150 = arith.addf %147, %149 : vector<16x512xf32>
    %151 = vector.extract_strided_slice %150 {offsets = [0, 0], sizes = [16, 128], strides = [1, 1]} : vector<16x512xf32> to vector<16x128xf32>
    %cst_59 = arith.constant 5.000000e-01 : f32
    %152 = vector.broadcast %cst_59 : f32 to vector<16x128xf32>
    %153 = arith.mulf %152, %151 : vector<16x128xf32>
    %154 = math.tanh %153 : vector<16x128xf32>
    %cst_60 = arith.constant 5.000000e-01 : f32
    %155 = vector.broadcast %cst_60 : f32 to vector<16x128xf32>
    %156 = arith.mulf %155, %154 : vector<16x128xf32>
    %cst_61 = arith.constant 5.000000e-01 : f32
    %157 = vector.broadcast %cst_61 : f32 to vector<16x128xf32>
    %158 = arith.addf %156, %157 : vector<16x128xf32>
    %159 = vector.extract_strided_slice %150 {offsets = [0, 128], sizes = [16, 128], strides = [1, 1]} : vector<16x512xf32> to vector<16x128xf32>
    %cst_62 = arith.constant 5.000000e-01 : f32
    %160 = vector.broadcast %cst_62 : f32 to vector<16x128xf32>
    %161 = arith.mulf %160, %159 : vector<16x128xf32>
    %162 = math.tanh %161 : vector<16x128xf32>
    %cst_63 = arith.constant 5.000000e-01 : f32
    %163 = vector.broadcast %cst_63 : f32 to vector<16x128xf32>
    %164 = arith.mulf %163, %162 : vector<16x128xf32>
    %cst_64 = arith.constant 5.000000e-01 : f32
    %165 = vector.broadcast %cst_64 : f32 to vector<16x128xf32>
    %166 = arith.addf %164, %165 : vector<16x128xf32>
    %167 = vector.extract_strided_slice %150 {offsets = [0, 256], sizes = [16, 128], strides = [1, 1]} : vector<16x512xf32> to vector<16x128xf32>
    %168 = math.tanh %167 : vector<16x128xf32>
    %169 = vector.extract_strided_slice %150 {offsets = [0, 384], sizes = [16, 128], strides = [1, 1]} : vector<16x512xf32> to vector<16x128xf32>
    %cst_65 = arith.constant 5.000000e-01 : f32
    %170 = vector.broadcast %cst_65 : f32 to vector<16x128xf32>
    %171 = arith.mulf %170, %169 : vector<16x128xf32>
    %172 = math.tanh %171 : vector<16x128xf32>
    %cst_66 = arith.constant 5.000000e-01 : f32
    %173 = vector.broadcast %cst_66 : f32 to vector<16x128xf32>
    %174 = arith.mulf %173, %172 : vector<16x128xf32>
    %cst_67 = arith.constant 5.000000e-01 : f32
    %175 = vector.broadcast %cst_67 : f32 to vector<16x128xf32>
    %176 = arith.addf %174, %175 : vector<16x128xf32>
    %177 = arith.mulf %166, %137 : vector<16x128xf32>
    %178 = arith.mulf %158, %168 : vector<16x128xf32>
    %179 = arith.addf %177, %178 : vector<16x128xf32>
    %180 = math.tanh %179 : vector<16x128xf32>
    %181 = arith.mulf %176, %180 : vector<16x128xf32>
    %182 = arith.truncf %181 : vector<16x128xf32> to vector<16x128xbf16>
    %183 = arith.index_cast %144 : i32 to index
    %c0_68 = arith.constant 0 : index
    %184 = vector.load %arg12[%183, %c0_68] : memref<64x128xbf16, #tpu.memory_space<vmem>>, vector<16x128xbf16>
    tpu.vector_store %arg12[%183, %c0_68], %182 {strides = array<i32>} : memref<64x128xbf16, #tpu.memory_space<vmem>>, vector<16x128xbf16>,
    %c4_i32 = arith.constant 4 : i32
    %c0_69 = arith.constant 0 : index
    %c0_70 = arith.constant 0 : index
    %c0_71 = arith.constant 0 : index
    %185 = vector.load %arg14[%c0_69, %c0_70, %c0_71] : memref<2x16x128xf32, #tpu.memory_space<vmem>>, vector<1x16x128xf32>
    %186 = vector.shape_cast %185 : vector<1x16x128xf32> to vector<16x128xf32>
    %187 = vector.shape_cast %181 : vector<16x128xf32> to vector<1x16x128xf32>
    tpu.vector_store %arg14[%c0_69, %c0_70, %c0_71], %187 {strides = array<i32>} : memref<2x16x128xf32, #tpu.memory_space<vmem>>, vector<1x16x128xf32>,
    %c0_72 = arith.constant 0 : index
    %c0_73 = arith.constant 0 : index
    %c0_74 = arith.constant 0 : index
    %188 = vector.load %arg15[%c0_72, %c0_73, %c0_74] : memref<2x16x128xf32, #tpu.memory_space<vmem>>, vector<1x16x128xf32>
    %189 = vector.shape_cast %188 : vector<1x16x128xf32> to vector<16x128xf32>
    %190 = vector.shape_cast %179 : vector<16x128xf32> to vector<1x16x128xf32>
    tpu.vector_store %arg15[%c0_72, %c0_73, %c0_74], %190 {strides = array<i32>} : memref<2x16x128xf32, #tpu.memory_space<vmem>>, vector<1x16x128xf32>,
    %c0_75 = arith.constant 0 : index
    %c0_76 = arith.constant 0 : index
    %191 = vector.load %arg12[%c0_75, %c0_76] : memref<64x128xbf16, #tpu.memory_space<vmem>>, vector<64x128xbf16>
    %c0_77 = arith.constant 0 : index
    %c0_78 = arith.constant 0 : index
    %192 = vector.load %arg6[%c0_77, %c0_78] : memref<128x512xbf16, #tpu.memory_space<vmem>>, vector<128x512xbf16>
    %cst_79 = arith.constant dense<0.000000e+00> : vector<64x512xf32>
    %193 = tpu.matmul %191, %192, %cst_79 {dimension_numbers = #tpu.dot_dimension_numbers<[1], [0], [0], [1], [0, 0, 1, 1], [], []>} : vector<64x128xbf16>, vector<128x512xbf16>, vector<64x512xf32> -> vector<64x512xf32>
    %c0_80 = arith.constant 0 : index
    %c0_81 = arith.constant 0 : index
    %194 = vector.load %arg8[%c0_80, %c0_81] : memref<1x512xf32, #tpu.memory_space<vmem>>, vector<1x512xf32>
    %195 = vector.broadcast %194 : vector<1x512xf32> to vector<64x512xf32>
    %196 = arith.addf %193, %195 : vector<64x512xf32>
    %197 = arith.truncf %196 : vector<64x512xf32> to vector<64x512xbf16>
    %c0_82 = arith.constant 0 : index
    %c0_83 = arith.constant 0 : index
    %198 = vector.load %arg13[%c0_82, %c0_83] : memref<64x512xbf16, #tpu.memory_space<vmem>>, vector<64x512xbf16>
    tpu.vector_store %arg13[%c0_82, %c0_83], %197 {strides = array<i32>} : memref<64x512xbf16, #tpu.memory_space<vmem>>, vector<64x512xbf16>,
    %c0_84 = arith.constant 0 : index
    %c0_85 = arith.constant 0 : index
    %199 = vector.load %arg7[%c0_84, %c0_85] : memref<128x512xbf16, #tpu.memory_space<vmem>>, vector<128x512xbf16>
    %c1 = arith.constant 1 : index
    %c0_86 = arith.constant 0 : index
    %c0_87 = arith.constant 0 : index
    %200 = vector.load %arg14[%c1, %c0_86, %c0_87] : memref<2x16x128xf32, #tpu.memory_space<vmem>>, vector<1x16x128xf32>
    %201 = vector.shape_cast %200 : vector<1x16x128xf32> to vector<16x128xf32>
    %c1_88 = arith.constant 1 : index
    %c0_89 = arith.constant 0 : index
    %c0_90 = arith.constant 0 : index
    %202 = vector.load %arg15[%c1_88, %c0_89, %c0_90] : memref<2x16x128xf32, #tpu.memory_space<vmem>>, vector<1x16x128xf32>
    %203 = vector.shape_cast %202 : vector<1x16x128xf32> to vector<16x128xf32>
    %c0_i32_91 = arith.constant 0 : i32
    %c16_i32_92 = arith.constant 16 : i32
    %204 = arith.muli %c0_i32_91, %c16_i32_92 : i32
    %205 = tpu.assume_multiple %204, 16 : i32
    %206 = arith.index_cast %205 : i32 to index
    %c0_93 = arith.constant 0 : index
    %207 = vector.load %arg13[%206, %c0_93] : memref<64x512xbf16, #tpu.memory_space<vmem>>, vector<16x512xbf16>
    %208 = arith.extf %207 : vector<16x512xbf16> to vector<16x512xf32>
    %209 = arith.truncf %201 : vector<16x128xf32> to vector<16x128xbf16>
    %cst_94 = arith.constant dense<0.000000e+00> : vector<16x512xf32>
    %210 = tpu.matmul %209, %199, %cst_94 {dimension_numbers = #tpu.dot_dimension_numbers<[1], [0], [0], [1], [0, 0, 1, 1], [], []>} : vector<16x128xbf16>, vector<128x512xbf16>, vector<16x512xf32> -> vector<16x512xf32>
    %211 = arith.addf %208, %210 : vector<16x512xf32>
    %212 = vector.extract_strided_slice %211 {offsets = [0, 0], sizes = [16, 128], strides = [1, 1]} : vector<16x512xf32> to vector<16x128xf32>
    %cst_95 = arith.constant 5.000000e-01 : f32
    %213 = vector.broadcast %cst_95 : f32 to vector<16x128xf32>
    %214 = arith.mulf %213, %212 : vector<16x128xf32>
    %215 = math.tanh %214 : vector<16x128xf32>
    %cst_96 = arith.constant 5.000000e-01 : f32
    %216 = vector.broadcast %cst_96 : f32 to vector<16x128xf32>
    %217 = arith.mulf %216, %215 : vector<16x128xf32>
    %cst_97 = arith.constant 5.000000e-01 : f32
    %218 = vector.broadcast %cst_97 : f32 to vector<16x128xf32>
    %219 = arith.addf %217, %218 : vector<16x128xf32>
    %220 = vector.extract_strided_slice %211 {offsets = [0, 128], sizes = [16, 128], strides = [1, 1]} : vector<16x512xf32> to vector<16x128xf32>
    %cst_98 = arith.constant 5.000000e-01 : f32
    %221 = vector.broadcast %cst_98 : f32 to vector<16x128xf32>
    %222 = arith.mulf %221, %220 : vector<16x128xf32>
    %223 = math.tanh %222 : vector<16x128xf32>
    %cst_99 = arith.constant 5.000000e-01 : f32
    %224 = vector.broadcast %cst_99 : f32 to vector<16x128xf32>
    %225 = arith.mulf %224, %223 : vector<16x128xf32>
    %cst_100 = arith.constant 5.000000e-01 : f32
    %226 = vector.broadcast %cst_100 : f32 to vector<16x128xf32>
    %227 = arith.addf %225, %226 : vector<16x128xf32>
    %228 = vector.extract_strided_slice %211 {offsets = [0, 256], sizes = [16, 128], strides = [1, 1]} : vector<16x512xf32> to vector<16x128xf32>
    %229 = math.tanh %228 : vector<16x128xf32>
    %230 = vector.extract_strided_slice %211 {offsets = [0, 384], sizes = [16, 128], strides = [1, 1]} : vector<16x512xf32> to vector<16x128xf32>
    %cst_101 = arith.constant 5.000000e-01 : f32
    %231 = vector.broadcast %cst_101 : f32 to vector<16x128xf32>
    %232 = arith.mulf %231, %230 : vector<16x128xf32>
    %233 = math.tanh %232 : vector<16x128xf32>
    %cst_102 = arith.constant 5.000000e-01 : f32
    %234 = vector.broadcast %cst_102 : f32 to vector<16x128xf32>
    %235 = arith.mulf %234, %233 : vector<16x128xf32>
    %cst_103 = arith.constant 5.000000e-01 : f32
    %236 = vector.broadcast %cst_103 : f32 to vector<16x128xf32>
    %237 = arith.addf %235, %236 : vector<16x128xf32>
    %238 = arith.mulf %227, %203 : vector<16x128xf32>
    %239 = arith.mulf %219, %229 : vector<16x128xf32>
    %240 = arith.addf %238, %239 : vector<16x128xf32>
    %241 = math.tanh %240 : vector<16x128xf32>
    %242 = arith.mulf %237, %241 : vector<16x128xf32>
    %c1_i32_104 = arith.constant 1 : i32
    %c16_i32_105 = arith.constant 16 : i32
    %243 = arith.muli %c1_i32_104, %c16_i32_105 : i32
    %244 = tpu.assume_multiple %243, 16 : i32
    %245 = arith.index_cast %244 : i32 to index
    %c0_106 = arith.constant 0 : index
    %246 = vector.load %arg13[%245, %c0_106] : memref<64x512xbf16, #tpu.memory_space<vmem>>, vector<16x512xbf16>
    %247 = arith.extf %246 : vector<16x512xbf16> to vector<16x512xf32>
    %248 = arith.truncf %242 : vector<16x128xf32> to vector<16x128xbf16>
    %cst_107 = arith.constant dense<0.000000e+00> : vector<16x512xf32>
    %249 = tpu.matmul %248, %199, %cst_107 {dimension_numbers = #tpu.dot_dimension_numbers<[1], [0], [0], [1], [0, 0, 1, 1], [], []>} : vector<16x128xbf16>, vector<128x512xbf16>, vector<16x512xf32> -> vector<16x512xf32>
    %250 = arith.addf %247, %249 : vector<16x512xf32>
    %251 = vector.extract_strided_slice %250 {offsets = [0, 0], sizes = [16, 128], strides = [1, 1]} : vector<16x512xf32> to vector<16x128xf32>
    %cst_108 = arith.constant 5.000000e-01 : f32
    %252 = vector.broadcast %cst_108 : f32 to vector<16x128xf32>
    %253 = arith.mulf %252, %251 : vector<16x128xf32>
    %254 = math.tanh %253 : vector<16x128xf32>
    %cst_109 = arith.constant 5.000000e-01 : f32
    %255 = vector.broadcast %cst_109 : f32 to vector<16x128xf32>
    %256 = arith.mulf %255, %254 : vector<16x128xf32>
    %cst_110 = arith.constant 5.000000e-01 : f32
    %257 = vector.broadcast %cst_110 : f32 to vector<16x128xf32>
    %258 = arith.addf %256, %257 : vector<16x128xf32>
    %259 = vector.extract_strided_slice %250 {offsets = [0, 128], sizes = [16, 128], strides = [1, 1]} : vector<16x512xf32> to vector<16x128xf32>
    %cst_111 = arith.constant 5.000000e-01 : f32
    %260 = vector.broadcast %cst_111 : f32 to vector<16x128xf32>
    %261 = arith.mulf %260, %259 : vector<16x128xf32>
    %262 = math.tanh %261 : vector<16x128xf32>
    %cst_112 = arith.constant 5.000000e-01 : f32
    %263 = vector.broadcast %cst_112 : f32 to vector<16x128xf32>
    %264 = arith.mulf %263, %262 : vector<16x128xf32>
    %cst_113 = arith.constant 5.000000e-01 : f32
    %265 = vector.broadcast %cst_113 : f32 to vector<16x128xf32>
    %266 = arith.addf %264, %265 : vector<16x128xf32>
    %267 = vector.extract_strided_slice %250 {offsets = [0, 256], sizes = [16, 128], strides = [1, 1]} : vector<16x512xf32> to vector<16x128xf32>
    %268 = math.tanh %267 : vector<16x128xf32>
    %269 = vector.extract_strided_slice %250 {offsets = [0, 384], sizes = [16, 128], strides = [1, 1]} : vector<16x512xf32> to vector<16x128xf32>
    %cst_114 = arith.constant 5.000000e-01 : f32
    %270 = vector.broadcast %cst_114 : f32 to vector<16x128xf32>
    %271 = arith.mulf %270, %269 : vector<16x128xf32>
    %272 = math.tanh %271 : vector<16x128xf32>
    %cst_115 = arith.constant 5.000000e-01 : f32
    %273 = vector.broadcast %cst_115 : f32 to vector<16x128xf32>
    %274 = arith.mulf %273, %272 : vector<16x128xf32>
    %cst_116 = arith.constant 5.000000e-01 : f32
    %275 = vector.broadcast %cst_116 : f32 to vector<16x128xf32>
    %276 = arith.addf %274, %275 : vector<16x128xf32>
    %277 = arith.mulf %266, %240 : vector<16x128xf32>
    %278 = arith.mulf %258, %268 : vector<16x128xf32>
    %279 = arith.addf %277, %278 : vector<16x128xf32>
    %280 = math.tanh %279 : vector<16x128xf32>
    %281 = arith.mulf %276, %280 : vector<16x128xf32>
    %c2_i32_117 = arith.constant 2 : i32
    %c16_i32_118 = arith.constant 16 : i32
    %282 = arith.muli %c2_i32_117, %c16_i32_118 : i32
    %283 = tpu.assume_multiple %282, 16 : i32
    %284 = arith.index_cast %283 : i32 to index
    %c0_119 = arith.constant 0 : index
    %285 = vector.load %arg13[%284, %c0_119] : memref<64x512xbf16, #tpu.memory_space<vmem>>, vector<16x512xbf16>
    %286 = arith.extf %285 : vector<16x512xbf16> to vector<16x512xf32>
    %287 = arith.truncf %281 : vector<16x128xf32> to vector<16x128xbf16>
    %cst_120 = arith.constant dense<0.000000e+00> : vector<16x512xf32>
    %288 = tpu.matmul %287, %199, %cst_120 {dimension_numbers = #tpu.dot_dimension_numbers<[1], [0], [0], [1], [0, 0, 1, 1], [], []>} : vector<16x128xbf16>, vector<128x512xbf16>, vector<16x512xf32> -> vector<16x512xf32>
    %289 = arith.addf %286, %288 : vector<16x512xf32>
    %290 = vector.extract_strided_slice %289 {offsets = [0, 0], sizes = [16, 128], strides = [1, 1]} : vector<16x512xf32> to vector<16x128xf32>
    %cst_121 = arith.constant 5.000000e-01 : f32
    %291 = vector.broadcast %cst_121 : f32 to vector<16x128xf32>
    %292 = arith.mulf %291, %290 : vector<16x128xf32>
    %293 = math.tanh %292 : vector<16x128xf32>
    %cst_122 = arith.constant 5.000000e-01 : f32
    %294 = vector.broadcast %cst_122 : f32 to vector<16x128xf32>
    %295 = arith.mulf %294, %293 : vector<16x128xf32>
    %cst_123 = arith.constant 5.000000e-01 : f32
    %296 = vector.broadcast %cst_123 : f32 to vector<16x128xf32>
    %297 = arith.addf %295, %296 : vector<16x128xf32>
    %298 = vector.extract_strided_slice %289 {offsets = [0, 128], sizes = [16, 128], strides = [1, 1]} : vector<16x512xf32> to vector<16x128xf32>
    %cst_124 = arith.constant 5.000000e-01 : f32
    %299 = vector.broadcast %cst_124 : f32 to vector<16x128xf32>
    %300 = arith.mulf %299, %298 : vector<16x128xf32>
    %301 = math.tanh %300 : vector<16x128xf32>
    %cst_125 = arith.constant 5.000000e-01 : f32
    %302 = vector.broadcast %cst_125 : f32 to vector<16x128xf32>
    %303 = arith.mulf %302, %301 : vector<16x128xf32>
    %cst_126 = arith.constant 5.000000e-01 : f32
    %304 = vector.broadcast %cst_126 : f32 to vector<16x128xf32>
    %305 = arith.addf %303, %304 : vector<16x128xf32>
    %306 = vector.extract_strided_slice %289 {offsets = [0, 256], sizes = [16, 128], strides = [1, 1]} : vector<16x512xf32> to vector<16x128xf32>
    %307 = math.tanh %306 : vector<16x128xf32>
    %308 = vector.extract_strided_slice %289 {offsets = [0, 384], sizes = [16, 128], strides = [1, 1]} : vector<16x512xf32> to vector<16x128xf32>
    %cst_127 = arith.constant 5.000000e-01 : f32
    %309 = vector.broadcast %cst_127 : f32 to vector<16x128xf32>
    %310 = arith.mulf %309, %308 : vector<16x128xf32>
    %311 = math.tanh %310 : vector<16x128xf32>
    %cst_128 = arith.constant 5.000000e-01 : f32
    %312 = vector.broadcast %cst_128 : f32 to vector<16x128xf32>
    %313 = arith.mulf %312, %311 : vector<16x128xf32>
    %cst_129 = arith.constant 5.000000e-01 : f32
    %314 = vector.broadcast %cst_129 : f32 to vector<16x128xf32>
    %315 = arith.addf %313, %314 : vector<16x128xf32>
    %316 = arith.mulf %305, %279 : vector<16x128xf32>
    %317 = arith.mulf %297, %307 : vector<16x128xf32>
    %318 = arith.addf %316, %317 : vector<16x128xf32>
    %319 = math.tanh %318 : vector<16x128xf32>
    %320 = arith.mulf %315, %319 : vector<16x128xf32>
    %c3_i32_130 = arith.constant 3 : i32
    %c16_i32_131 = arith.constant 16 : i32
    %321 = arith.muli %c3_i32_130, %c16_i32_131 : i32
    %322 = tpu.assume_multiple %321, 16 : i32
    %323 = arith.index_cast %322 : i32 to index
    %c0_132 = arith.constant 0 : index
    %324 = vector.load %arg13[%323, %c0_132] : memref<64x512xbf16, #tpu.memory_space<vmem>>, vector<16x512xbf16>
    %325 = arith.extf %324 : vector<16x512xbf16> to vector<16x512xf32>
    %326 = arith.truncf %320 : vector<16x128xf32> to vector<16x128xbf16>
    %cst_133 = arith.constant dense<0.000000e+00> : vector<16x512xf32>
    %327 = tpu.matmul %326, %199, %cst_133 {dimension_numbers = #tpu.dot_dimension_numbers<[1], [0], [0], [1], [0, 0, 1, 1], [], []>} : vector<16x128xbf16>, vector<128x512xbf16>, vector<16x512xf32> -> vector<16x512xf32>
    %328 = arith.addf %325, %327 : vector<16x512xf32>
    %329 = vector.extract_strided_slice %328 {offsets = [0, 0], sizes = [16, 128], strides = [1, 1]} : vector<16x512xf32> to vector<16x128xf32>
    %cst_134 = arith.constant 5.000000e-01 : f32
    %330 = vector.broadcast %cst_134 : f32 to vector<16x128xf32>
    %331 = arith.mulf %330, %329 : vector<16x128xf32>
    %332 = math.tanh %331 : vector<16x128xf32>
    %cst_135 = arith.constant 5.000000e-01 : f32
    %333 = vector.broadcast %cst_135 : f32 to vector<16x128xf32>
    %334 = arith.mulf %333, %332 : vector<16x128xf32>
    %cst_136 = arith.constant 5.000000e-01 : f32
    %335 = vector.broadcast %cst_136 : f32 to vector<16x128xf32>
    %336 = arith.addf %334, %335 : vector<16x128xf32>
    %337 = vector.extract_strided_slice %328 {offsets = [0, 128], sizes = [16, 128], strides = [1, 1]} : vector<16x512xf32> to vector<16x128xf32>
    %cst_137 = arith.constant 5.000000e-01 : f32
    %338 = vector.broadcast %cst_137 : f32 to vector<16x128xf32>
    %339 = arith.mulf %338, %337 : vector<16x128xf32>
    %340 = math.tanh %339 : vector<16x128xf32>
    %cst_138 = arith.constant 5.000000e-01 : f32
    %341 = vector.broadcast %cst_138 : f32 to vector<16x128xf32>
    %342 = arith.mulf %341, %340 : vector<16x128xf32>
    %cst_139 = arith.constant 5.000000e-01 : f32
    %343 = vector.broadcast %cst_139 : f32 to vector<16x128xf32>
    %344 = arith.addf %342, %343 : vector<16x128xf32>
    %345 = vector.extract_strided_slice %328 {offsets = [0, 256], sizes = [16, 128], strides = [1, 1]} : vector<16x512xf32> to vector<16x128xf32>
    %346 = math.tanh %345 : vector<16x128xf32>
    %347 = vector.extract_strided_slice %328 {offsets = [0, 384], sizes = [16, 128], strides = [1, 1]} : vector<16x512xf32> to vector<16x128xf32>
    %cst_140 = arith.constant 5.000000e-01 : f32
    %348 = vector.broadcast %cst_140 : f32 to vector<16x128xf32>
    %349 = arith.mulf %348, %347 : vector<16x128xf32>
    %350 = math.tanh %349 : vector<16x128xf32>
    %cst_141 = arith.constant 5.000000e-01 : f32
    %351 = vector.broadcast %cst_141 : f32 to vector<16x128xf32>
    %352 = arith.mulf %351, %350 : vector<16x128xf32>
    %cst_142 = arith.constant 5.000000e-01 : f32
    %353 = vector.broadcast %cst_142 : f32 to vector<16x128xf32>
    %354 = arith.addf %352, %353 : vector<16x128xf32>
    %355 = arith.mulf %344, %318 : vector<16x128xf32>
    %356 = arith.mulf %336, %346 : vector<16x128xf32>
    %357 = arith.addf %355, %356 : vector<16x128xf32>
    %358 = math.tanh %357 : vector<16x128xf32>
    %359 = arith.mulf %354, %358 : vector<16x128xf32>
    %c4_i32_143 = arith.constant 4 : i32
    %c1_144 = arith.constant 1 : index
    %c0_145 = arith.constant 0 : index
    %c0_146 = arith.constant 0 : index
    %360 = vector.load %arg14[%c1_144, %c0_145, %c0_146] : memref<2x16x128xf32, #tpu.memory_space<vmem>>, vector<1x16x128xf32>
    %361 = vector.shape_cast %360 : vector<1x16x128xf32> to vector<16x128xf32>
    %362 = vector.shape_cast %359 : vector<16x128xf32> to vector<1x16x128xf32>
    tpu.vector_store %arg14[%c1_144, %c0_145, %c0_146], %362 {strides = array<i32>} : memref<2x16x128xf32, #tpu.memory_space<vmem>>, vector<1x16x128xf32>,
    %c1_147 = arith.constant 1 : index
    %c0_148 = arith.constant 0 : index
    %c0_149 = arith.constant 0 : index
    %363 = vector.load %arg15[%c1_147, %c0_148, %c0_149] : memref<2x16x128xf32, #tpu.memory_space<vmem>>, vector<1x16x128xf32>
    %364 = vector.shape_cast %363 : vector<1x16x128xf32> to vector<16x128xf32>
    %365 = vector.shape_cast %357 : vector<16x128xf32> to vector<1x16x128xf32>
    tpu.vector_store %arg15[%c1_147, %c0_148, %c0_149], %365 {strides = array<i32>} : memref<2x16x128xf32, #tpu.memory_space<vmem>>, vector<1x16x128xf32>,
    %c1_i32_150 = arith.constant 1 : i32
    %366 = arith.cmpi eq, %arg1, %c1_i32_150 : i32
    %367 = arith.extui %366 : i1 to i32
    %c0_i32_151 = arith.constant 0 : i32
    %368 = arith.cmpi ne, %367, %c0_i32_151 : i32
    scf.if %368 {
      %c1_152 = arith.constant 1 : index
      %c0_153 = arith.constant 0 : index
      %c0_154 = arith.constant 0 : index
      %369 = vector.load %arg14[%c1_152, %c0_153, %c0_154] : memref<2x16x128xf32, #tpu.memory_space<vmem>>, vector<1x16x128xf32>
      %370 = vector.shape_cast %369 : vector<1x16x128xf32> to vector<16x128xf32>
      %371 = arith.truncf %370 : vector<16x128xf32> to vector<16x128xbf16>
      %c0_155 = arith.constant 0 : index
      %c0_156 = arith.constant 0 : index
      %372 = vector.load %arg9[%c0_155, %c0_156] : memref<128x128xbf16, #tpu.memory_space<vmem>>, vector<128x128xbf16>
      %cst_157 = arith.constant dense<0.000000e+00> : vector<16x128xf32>
      %373 = tpu.matmul %371, %372, %cst_157 {dimension_numbers = #tpu.dot_dimension_numbers<[1], [0], [0], [1], [0, 0, 1, 1], [], []>} : vector<16x128xbf16>, vector<128x128xbf16>, vector<16x128xf32> -> vector<16x128xf32>
      %c0_158 = arith.constant 0 : index
      %c0_159 = arith.constant 0 : index
      %374 = vector.load %arg10[%c0_158, %c0_159] : memref<1x128xf32, #tpu.memory_space<vmem>>, vector<1x128xf32>
      %375 = vector.broadcast %374 : vector<1x128xf32> to vector<16x128xf32>
      %376 = arith.addf %373, %375 : vector<16x128xf32>
      %c0_160 = arith.constant 0 : index
      %c0_161 = arith.constant 0 : index
      %377 = vector.load %arg11[%c0_160, %c0_161] : memref<16x128xf32, #tpu.memory_space<vmem>>, vector<16x128xf32>
      tpu.vector_store %arg11[%c0_160, %c0_161], %376 {strides = array<i32>} : memref<16x128xf32, #tpu.memory_space<vmem>>, vector<16x128xf32>,
    } else {
    }
    return
  }
  func.func @transform_0(%arg0: i32, %arg1: i32) -> (i32, i32, i32) {
    %c0_i32 = arith.constant 0 : i32
    %c0_i32_0 = arith.constant 0 : i32
    return %arg1, %arg0, %c0_i32 : i32, i32, i32
  }
  func.func @transform_1(%arg0: i32, %arg1: i32) -> (i32, i32) {
    %c0_i32 = arith.constant 0 : i32
    %c0_i32_0 = arith.constant 0 : i32
    %c0_i32_1 = arith.constant 0 : i32
    return %c0_i32, %c0_i32_0 : i32, i32
  }
  func.func @transform_2(%arg0: i32, %arg1: i32) -> (i32, i32) {
    %c0_i32 = arith.constant 0 : i32
    %c0_i32_0 = arith.constant 0 : i32
    %c0_i32_1 = arith.constant 0 : i32
    return %c0_i32, %c0_i32_0 : i32, i32
  }
  func.func @transform_3(%arg0: i32, %arg1: i32) -> (i32, i32) {
    %c0_i32 = arith.constant 0 : i32
    %c0_i32_0 = arith.constant 0 : i32
    %c0_i32_1 = arith.constant 0 : i32
    return %c0_i32, %c0_i32_0 : i32, i32
  }
  func.func @transform_4(%arg0: i32, %arg1: i32) -> (i32, i32) {
    %c0_i32 = arith.constant 0 : i32
    %c0_i32_0 = arith.constant 0 : i32
    %c0_i32_1 = arith.constant 0 : i32
    return %c0_i32, %c0_i32_0 : i32, i32
  }
  func.func @transform_5(%arg0: i32, %arg1: i32) -> (i32, i32) {
    %c0_i32 = arith.constant 0 : i32
    %c0_i32_0 = arith.constant 0 : i32
    %c0_i32_1 = arith.constant 0 : i32
    return %c0_i32, %c0_i32_0 : i32, i32
  }
  func.func @transform_6(%arg0: i32, %arg1: i32) -> (i32, i32) {
    %c0_i32 = arith.constant 0 : i32
    %c0_i32_0 = arith.constant 0 : i32
    %c0_i32_1 = arith.constant 0 : i32
    return %c0_i32, %c0_i32_0 : i32, i32
  }
  func.func @transform_7(%arg0: i32, %arg1: i32) -> (i32, i32) {
    %c0_i32 = arith.constant 0 : i32
    %c0_i32_0 = arith.constant 0 : i32
    %c0_i32_1 = arith.constant 0 : i32
    return %c0_i32, %c0_i32_0 : i32, i32
  }
  func.func @transform_8(%arg0: i32, %arg1: i32) -> (i32, i32) {
    %c0_i32 = arith.constant 0 : i32
    %c0_i32_0 = arith.constant 0 : i32
    %c0_i32_1 = arith.constant 0 : i32
    return %c0_i32, %c0_i32_0 : i32, i32
  }
  func.func @transform_9(%arg0: i32, %arg1: i32) -> (i32, i32) {
    %c0_i32 = arith.constant 0 : i32
    %c0_i32_0 = arith.constant 0 : i32
    return %arg0, %c0_i32 : i32, i32
  }
}

</mosaic_0001>

<bundles_post_ra>
// kernel: tpu_custom_call.1
= control target key start
LH: loop header
LB: loop body
LE: loop exit
PB: predicated region body
PF: predicated region fallthrough
CT: control target
= control target key end

     0   :  { %s5145_s0 = inlined_call_operand.hbm [shape: bf16[8,16,128], index: 0, kind: input, shape index: {}]   ;;  %s5146_s1 = inlined_call_operand.hbm [shape: bf16[128,512], index: 1, kind: input, shape index: {}]   ;;  %s5147_s2 = inlined_call_operand.hbm [shape: bf16[128,512], index: 2, kind: input, shape index: {}]   ;;  %s5148_s3 = inlined_call_operand.vmem [shape: f32[1,512], index: 3, kind: input, shape index: {}]   ;;  %s5149_s4 = inlined_call_operand.hbm [shape: bf16[128,512], index: 4, kind: input, shape index: {}]   ;;  %s5150_s5 = inlined_call_operand.hbm [shape: bf16[128,512], index: 5, kind: input, shape index: {}]   ;;  %s5151_s6 = inlined_call_operand.vmem [shape: f32[1,512], index: 6, kind: input, shape index: {}]   ;;  %s5152_s7 = inlined_call_operand.hbm [shape: bf16[128,128], index: 7, kind: input, shape index: {}]   ;;  %s5153_s8 = inlined_call_operand.vmem [shape: f32[1,128], index: 8, kind: input, shape index: {}]   ;;  %s5154_s9 = inlined_call_operand.hbm [shape: f32[16,128], index: 9, kind: output, shape index: {}]  }
   0x1   :  { %5181 = sst [smem:[#allocation30_spill]] %s5146_s1 }
   0x2   :  { %5182 = sst [smem:[#allocation31_spill]] %s5151_s6 }
   0x3   :  { %5183 = sst [smem:[#allocation32_spill]] %s5153_s8 }
   0x4   :  { %5184 = sst [smem:[#allocation33_spill]] %s5154_s9 }
   0x5   :  { %14 = vsyncpa [#allocation7], 0 }
   0x6   :  { %16 = vsyncpa [#allocation7 + $0x1], 0 }
   0x7   :  { %17 = vsyncpa [#allocation10], 0 }
   0x8   :  { %18 = vsyncpa [#allocation13], 0 }
   0x9   :  { %19 = vsyncpa [#allocation16], 0 }
   0xa   :  { %20 = vsyncpa [#allocation8], 0  ;;  %s4101_s30 = smov 0   ;;  %s4103_s10 = smov 0  }
   0xb   :  { %s4105_s11 = smov 0   ;;  %s4107_s12 = smov 0  }
   0xc   :  { %s4109_s13 = smov 0   ;;  %s4111_s14 = smov 0  }
   0xd LB: > { %s5155_s15 = sadd.s32 4294967295, %s4032_s14   ;;  %p3087_p0 = scmp.ge.s32.totalorder %s4032_s14, 1  ;;  %s4032_s14 = sphi %s4111_s14, %s26_s14   ;;  %s4028_s13 = sphi %s4109_s13, %s5238_s13   ;;  %s4024_s12 = sphi %s4107_s12, %s5237_s12   ;;  %s4020_s11 = sphi %s4105_s11, %s5236_s11   ;;  %s4016_s10 = sphi %s4103_s10, %s5235_s10   ;;  %s4012_s30 = sphi %s4101_s30, %s5234_s30  }
   0xe   : > { %p4135_p1 = scmp.eq.s32.totalorder %s5155_s15, 0  ;;  %p265_p2 = scmp.lt.s32.totalorder %s4032_s14, 3 }
   0xf   : > { %s4034_s18 = smov [#allocation9]   ;;  %s4035_s21 = smov [#allocation12]  }
  0x10   : > { %s5185_s16 = scalar_select %p4135_p1, 1, 0 }
  0x11   : > { %p4140_p3 = pnand %p3087_p0, %p265_p2  ;;  %s277_s19 = sshll.u32 %s4034_s18, 4  ;;  %s4144_s19 = int_to_ptr.vmem [resolvable:$true] %s277_s19 }
  0x12   : > { %s306_s22 = sshll.u32 %s4035_s21, 4  ;;  %s4036_s23 = smov [#allocation11]   ;;  %s4154_s22 = int_to_ptr.vmem [resolvable:$true] %s306_s22 }
  0x13   : > { %s5186_s17 = scalar_select %p4140_p3, 1, 0 }
  0x14   : > { %p3309_p4 = pneg %p4140_p3  ;;  %s4156_s24 = sshll.u32 %s4036_s23, 4  ;;  %s291_s24 = int_to_ptr.vmem [resolvable:$true] %s4156_s24 }
  0x15   : > { %s5188_s1 = sld [smem:[#allocation30_spill]] }
  0x16   : > { %p4150_p5 = pnand %p3309_p4, %p4135_p1 }
  0x18   : > { %p4166_p7 = pneg %p4150_p5 }
  0x1b   : > { %s3770_s27 = scalar_lea.hbm %s5188_s1, 4096 }
  0x1c   : > { %p3771_p6 = scmp.ne.s32.totalorder %s5188_s1, %s3770_s27  ;;  %p3777_p10 = scmp.lt.u32.totalorder %s3770_s27, %s5188_s1 }
  0x1e   : > { %p3773_p8 = pnand %p4166_p7, %p3771_p6 }
  0x20   : > { %p3774_p9 = pneg %p3773_p8 }
  0x22   : > { %p3779_p11 = pnand %p3777_p10, %p3774_p9 }
  0x24   : > { %3782 = shalt.err (!%p3779_p11)
}
  0x25   : > { %s3783_s25 = scalar_lea.vmem %s4144_s19, 4096  ;;  %p3791_p2 = scmp.lt.s32.totalorder %s4144_s19, %s4144_s19 }
  0x26   : > { %p3784_p12 = scmp.ne.s32.totalorder %s4144_s19, %s3783_s25  ;;  %p3792_p4 = scmp.lt.s32.totalorder %s3783_s25, %s3783_s25 }
  0x28   : > { %p3786_p13 = pnand %p3784_p12, %p4166_p7  ;;  %p3793_p6 = por %p3792_p4, %p3791_p2 }
  0x2a   : > { %p3787_p0 = pneg %p3786_p13 }
  0x2c   : > { %p3794_p8 = pnand %p3793_p6, %p3787_p0 }
  0x2e   : > { %3797 = shalt.err (!%p3794_p8)
}
  0x2f   : > { %s4037_s26 = smov 256   ;;  %s4038_s27 = smov 16  }
  0x30   : > { %3312 = dma.hbm_to_vmem [thread:$0]  (!%p4150_p5), %s5188_s1, 4096, %s4144_s19, [#allocation10], %s4037_s26, %s4037_s26, %s4038_s27  }
  0x31   : > { %s3798_s25 = scalar_lea.hbm %s5149_s4, 4096 }
  0x32   : > { %p3799_p9 = scmp.ne.s32.totalorder %s5149_s4, %s3798_s25  ;;  %p3805_p12 = scmp.lt.u32.totalorder %s3798_s25, %s5149_s4 }
  0x34   : > { %p3801_p10 = pnand %p3799_p9, %p4166_p7 }
  0x36   : > { %p3802_p11 = pneg %p3801_p10 }
  0x38   : > { %p3807_p13 = pnand %p3805_p12, %p3802_p11 }
  0x3a   : > { %3810 = shalt.err (!%p3807_p13)
}
  0x3b   : > { %s3811_s19 = scalar_lea.vmem %s4154_s22, 4096  ;;  %p3819_p6 = scmp.lt.s32.totalorder %s4154_s22, %s4154_s22 }
  0x3c   : > { %p3812_p0 = scmp.ne.s32.totalorder %s4154_s22, %s3811_s19  ;;  %p3820_p8 = scmp.lt.s32.totalorder %s3811_s19, %s3811_s19 }
  0x3e   : > { %p3814_p2 = pnand %p3812_p0, %p4166_p7  ;;  %p3821_p9 = por %p3820_p8, %p3819_p6 }
  0x40   : > { %p3815_p4 = pneg %p3814_p2 }
  0x42   : > { %p3822_p10 = pnand %p3821_p9, %p3815_p4 }
  0x44   : > { %3825 = shalt.err (!%p3822_p10)
}
  0x45   : > { %3318 = dma.hbm_to_vmem [thread:$0]  (!%p4150_p5), %s5149_s4, 4096, %s4154_s22, [#allocation13], %s4037_s26, %s4037_s26, %s4038_s27  }
  0x46   : > { %s3826_s28 = scalar_lea.hbm %s5147_s2, 4096 }
  0x47   : > { %p3827_p11 = scmp.ne.s32.totalorder %s5147_s2, %s3826_s28  ;;  %p3833_p0 = scmp.lt.u32.totalorder %s3826_s28, %s5147_s2 }
  0x49   : > { %p3829_p12 = pnand %p3827_p11, %p4166_p7 }
  0x4b   : > { %p3830_p13 = pneg %p3829_p12 }
  0x4d   : > { %p3835_p2 = pnand %p3833_p0, %p3830_p13 }
  0x4f   : > { %3838 = shalt.err (!%p3835_p2)
}
  0x50   : > { %s3839_s19 = scalar_lea.vmem %s291_s24, 4096  ;;  %p3847_p9 = scmp.lt.s32.totalorder %s291_s24, %s291_s24 }
  0x51   : > { %p3840_p4 = scmp.ne.s32.totalorder %s291_s24, %s3839_s19  ;;  %p3848_p10 = scmp.lt.s32.totalorder %s3839_s19, %s3839_s19 }
  0x53   : > { %p3842_p6 = pnand %p3840_p4, %p4166_p7  ;;  %p3849_p3 = por %p3848_p10, %p3847_p9 }
  0x55   : > { %p3843_p8 = pneg %p3842_p6 }
  0x57   : > { %p3850_p1 = pnand %p3849_p3, %p3843_p8 }
  0x59   : > { %3853 = shalt.err (!%p3850_p1)
}
  0x5a   : > { %3315 = dma.hbm_to_vmem [thread:$0]  (!%p4150_p5), %s5147_s2, 4096, %s291_s24, [#allocation10], %s4037_s26, %s4037_s26, %s4038_s27  }
  0x5b   : > { %s4039_s8 = smov [#allocation14]   ;;  %s4040_s15 = smov [#allocation15]  }
  0x5c   : > { %s319_s9 = sshll.u32 %s4039_s8, 4  ;;  %s335_s28 = sshll.u32 %s4040_s15, 4  ;;  %s320_s9 = int_to_ptr.vmem [resolvable:$true] %s319_s9  ;;  %s336_s28 = int_to_ptr.vmem [resolvable:$true] %s335_s28 }
  0x5d   : > { %s3854_s23 = scalar_lea.hbm %s5150_s5, 4096 }
  0x5e   : > { %p3855_p1 = scmp.ne.s32.totalorder %s5150_s5, %s3854_s23  ;;  %p3861_p12 = scmp.lt.u32.totalorder %s3854_s23, %s5150_s5 }
  0x60   : > { %p3857_p3 = pnand %p3855_p1, %p4166_p7 }
  0x62   : > { %p3858_p11 = pneg %p3857_p3 }
  0x64   : > { %p3863_p13 = pnand %p3861_p12, %p3858_p11 }
  0x66   : > { %3866 = shalt.err (!%p3863_p13)
}
  0x67   : > { %s3867_s24 = scalar_lea.vmem %s320_s9, 4096  ;;  %p3875_p6 = scmp.lt.s32.totalorder %s320_s9, %s320_s9 }
  0x68   : > { %p3868_p0 = scmp.ne.s32.totalorder %s320_s9, %s3867_s24  ;;  %p3876_p8 = scmp.lt.s32.totalorder %s3867_s24, %s3867_s24 }
  0x6a   : > { %p3870_p2 = pnand %p3868_p0, %p4166_p7  ;;  %p3877_p9 = por %p3876_p8, %p3875_p6 }
  0x6c   : > { %p3871_p4 = pneg %p3870_p2 }
  0x6e   : > { %p3878_p10 = pnand %p3877_p9, %p3871_p4 }
  0x70   : > { %3881 = shalt.err (!%p3878_p10)
}
  0x71   : > { %3321 = dma.hbm_to_vmem [thread:$0]  (!%p4150_p5), %s5150_s5, 4096, %s320_s9, [#allocation13], %s4037_s26, %s4037_s26, %s4038_s27  }
  0x72   : > { %s3882_s29 = scalar_lea.hbm %s5152_s7, 1024 }
  0x73   : > { %p3883_p1 = scmp.ne.s32.totalorder %s5152_s7, %s3882_s29  ;;  %p3889_p12 = scmp.lt.u32.totalorder %s3882_s29, %s5152_s7 }
  0x75   : > { %p3885_p3 = pnand %p3883_p1, %p4166_p7 }
  0x77   : > { %p3886_p11 = pneg %p3885_p3 }
  0x79   : > { %p3891_p13 = pnand %p3889_p12, %p3886_p11 }
  0x7b   : > { %3894 = shalt.err (!%p3891_p13)
}
  0x7c   : > { %s3895_s22 = scalar_lea.vmem %s336_s28, 1024  ;;  %p3903_p6 = scmp.lt.s32.totalorder %s336_s28, %s336_s28 }
  0x7d   : > { %p3896_p0 = scmp.ne.s32.totalorder %s336_s28, %s3895_s22  ;;  %p3904_p8 = scmp.lt.s32.totalorder %s3895_s22, %s3895_s22 }
  0x7f   : > { %p3898_p2 = pnand %p3896_p0, %p4166_p7  ;;  %p3905_p9 = por %p3904_p8, %p3903_p6 }
  0x81   : > { %p3899_p4 = pneg %p3898_p2 }
  0x83   : > { %p3906_p10 = pnand %p3905_p9, %p3899_p4 }
  0x85   : > { %3909 = shalt.err (!%p3906_p10)
}
  0x86   : > { %s4041_s26 = smov 64   ;;  %s4042_s18 = smov 4  }
  0x87   : > { %3324 = dma.hbm_to_vmem [thread:$0]  (!%p4150_p5), %s5152_s7, 1024, %s336_s28, [#allocation16], %s4041_s26, %s4041_s26, %s4042_s18  }
  0x88   : > { %s35_s24 = sadd.s32 1, %s4028_s13  ;;  %s47_s1 = sadd.s32 1, %s4020_s11 }
  0x89   : > { %p36_p7 = scmp.ge.s32.totalorder %s35_s24, 2  ;;  %p54_p1 = scmp.ne.s32.totalorder %s4020_s11, %s4016_s10 }
  0x8a   : > { %p55_p3 = scmp.eq.s32.totalorder %s4032_s14, 0  ;;  %p60_p12 = scmp.ne.s32.totalorder %s4016_s10, %s4012_s30 }
  0x8b   : > { %s5240_s24 = smov (%p36_p7, %s35_s24), 0  ;;  %p3334_p13 = scmp.lt.s32.totalorder %s4032_s14, 2 }
  0x8c   : > { %p4287_p11 = por %p55_p3, %p54_p1  ;;  %s42_s20 = ssub.s32 %s4028_s13, %s5240_s24 }
  0x8d   : > { %p45_p0 = scmp.eq.s32.totalorder %s42_s20, 0  ;;  %p5191_p2 = scmp.ne.s32.totalorder %s5185_s16, 0 }
  0x8e   : > { %s352_s8 = sand.u32 1, %s4020_s11   ;;  %s3253_s15 = sshll.u32 %s4028_s13, 9 }
  0x8f   : > { %p4298_p4 = por %p5191_p2, %p60_p12  ;;  %s3094_s21 = sshll.u32 %s352_s8, 5 }
  0x90   : > { %s4305_s29 = scalar_select %p45_p0, %s4020_s11, %s47_s1  }
  0x91   : > { %s4310_s19 = scalar_lea.hbm %s5145_s0, %s3253_s15  ;;  %s356_s30 = scalar_lea.vmem [#allocation6], %s3094_s21 }
  0x92   : > { %s366_s22 = sshll.u32 %s356_s30, 4  ;;  %p4314_p5 = pnand %p3334_p13, %p4287_p11  ;;  %s4318_s22 = int_to_ptr.vmem [resolvable:$true] %s366_s22 }
  0x93   : > { %s4320_s9 = scalar_lea.sflag [#allocation7], %s352_s8  ;;  %s3910_s1 = scalar_lea.hbm %s4310_s19, 512 }
  0x94   : > { %p3911_p6 = scmp.ne.s32.totalorder %s4310_s19, %s3910_s1  ;;  %p3912_p8 = pneg %p4314_p5 }
  0x95   : > { %s3915_s15 = scalar_lea.hbm %s5145_s0, 1024  ;;  %p3916_p7 = scmp.lt.u32.totalorder %s4310_s19, %s5145_s0 }
  0x96   : > { %p3913_p9 = pnand %p3912_p8, %p3911_p6  ;;  %p3917_p1 = scmp.lt.u32.totalorder %s3915_s15, %s3910_s1 }
  0x97   : > { %p3919_p11 = scmp.lt.u32.totalorder %s3910_s1, %s4310_s19 }
  0x98   : > { %p3914_p10 = pneg %p3913_p9  ;;  %p3918_p3 = por %p3917_p1, %p3916_p7 }
  0x9a   : > { %p3920_p12 = por %p3919_p11, %p3918_p3 }
  0x9c   : > { %p3921_p13 = pnand %p3920_p12, %p3914_p10 }
  0x9e   : > { %3924 = shalt.err (!%p3921_p13)
}
  0x9f   : > { %s3925_s8 = scalar_lea.vmem %s4318_s22, 512  ;;  %s4043_s25 = smov [#allocation6]  }
  0xa0   : > { %p3926_p0 = scmp.ne.s32.totalorder %s4318_s22, %s3925_s8  ;;  %s3930_s30 = sshll.u32 %s4043_s25, 4  ;;  %s3931_s30 = int_to_ptr.vmem [resolvable:$false] %s3930_s30 }
  0xa1   : > { %s3932_s20 = scalar_lea.vmem %s3931_s30, 1024  ;;  %p3933_p9 = scmp.lt.s32.totalorder %s4318_s22, %s3931_s30 }
  0xa2   : > { %p3928_p2 = pnand %p3926_p0, %p3912_p8  ;;  %p3934_p7 = scmp.lt.s32.totalorder %s3932_s20, %s3925_s8 }
  0xa4   : > { %p3929_p6 = pneg %p3928_p2  ;;  %p3935_p1 = por %p3934_p7, %p3933_p9 }
  0xa6   : > { %p3936_p3 = pnand %p3935_p1, %p3929_p6 }
  0xa8   : > { %3939 = shalt.err (!%p3936_p3)
}
  0xa9   : > { %3328 = dma.hbm_to_vmem [thread:$0]  (!%p4314_p5), %s4310_s19, 512, %s4318_s22, %s4320_s9, %s4041_s26, %s4041_s26, %s4042_s18  }
  0xaa   : > { %p5194_p8 = scmp.ne.s32.totalorder %s5186_s17, 0 }
  0xac   : > { %378 = sbr.rel (%p5194_p8) target bundleno = 2568 (0xa08), region = 56 }
  0xb3   : > { %s380_s1 = sand.u32 1, %s4016_s10  }
  0xb4   : > { %s3099_s6 = sshll.u32 %s380_s1, 5  ;;  %s381_s15 = scalar_lea.sflag [#allocation7], %s380_s1 }
  0xb5   : > { %s4354_s21 = scalar_lea.vmem [#allocation6], %s3099_s6 }
  0xb6   : > { %3991 = dma.done.wait (%p4298_p4), %s381_s15, 512  }
  0xb7   : > { %3993 = vsyncadd (%p4298_p4), %s381_s15, 4294966784  ;;  %p5195_p10 = scmp.ne.s32.totalorder %s5185_s16, 0 }
  0xb9   : > { %3995 = dma.done.wait (%p5195_p10), [#allocation10], 8192  }
  0xba   : > { %3997 = vsyncadd (%p5195_p10), [#allocation10], 4294959104 }
  0xbb   : > { %3999 = dma.done.wait (%p5195_p10), [#allocation13], 8192  }
  0xbc   : > { %4001 = vsyncadd (%p5195_p10), [#allocation13], 4294959104 }
  0xbd   : > { %4003 = dma.done.wait (%p5195_p10), [#allocation16], 1024  }
  0xbe   : > { %4005 = vsyncadd (%p5195_p10), [#allocation16], 4294966272  ;;  %p3105_p4 = scmp.ne.s32.totalorder %s4024_s12, 0 }
  0xbf   : > { %v4044_v0 = vmov (!%p3105_p4), 0.0  }
  0xc0   : > { %441 = sbr.rel (%p3105_p4) target bundleno = 199 (0xc7), region = 84  ;;  %442 = vst [vmem:[#allocation4] sm:$0xff] (!%p3105_p4), %v4044_v0  ;;  %443 = vst [vmem:[#allocation4 + $0x8] sm:$0xff] (!%p3105_p4), %v4044_v0 }
  0xc1   : > { %444 = vst [vmem:[#allocation4 + $0x10] sm:$0xff] (!%p3105_p4), %v4044_v0  ;;  %445 = vst [vmem:[#allocation4 + $0x18] sm:$0xff] (!%p3105_p4), %v4044_v0 }
  0xc2   : > { %446 = vst [vmem:[#allocation5] sm:$0xff] (!%p3105_p4), %v4044_v0  ;;  %447 = vst [vmem:[#allocation5 + $0x8] sm:$0xff] (!%p3105_p4), %v4044_v0 }
  0xc3   : > { %448 = vst [vmem:[#allocation5 + $0x10] sm:$0xff] (!%p3105_p4), %v4044_v0  ;;  %449 = vst [vmem:[#allocation5 + $0x18] sm:$0xff] (!%p3105_p4), %v4044_v0 }
  0xc4   : > { %450 = vst [vmem:[#allocation17] sm:$0xff] (!%p3105_p4), %v4044_v0  ;;  %451 = vst [vmem:[#allocation17 + $0x8] sm:$0xff] (!%p3105_p4), %v4044_v0 }
  0xc7 PF: > { %v3406_v1 = vld [vmem:[#allocation9 + $0x4] ss:$16 sps:$4 sm:$0xff]   ;;  %v3408_v2 = vld [vmem:[#allocation9 + $0xc] ss:$16 sps:$4 sm:$0xff]   ;;  %v5164_v3 = vmov 0   ;;  %s5210_s28 = sld [smem:[#allocation31_spill]] }
  0xc8   : > { %730 = vmatprep.mubr.bf16.mxu0 %v5164_v3  ;;  %803 = vmatprep.mubr.bf16.mxu1 %v5164_v3  ;;  %v3410_v4 = vld [vmem:[#allocation9] ss:$16 sps:$4 sm:$0xff]   ;;  %v3411_v5 = vld [vmem:[#allocation9 + $0x8] ss:$16 sps:$4 sm:$0xff]   ;;  %v3412_v6 = vld [vmem:[#allocation9 + $0x24] ss:$16 sps:$4 sm:$0xff]  }
  0xc9   : > { %698 = vmatprep.subr.bf16.mxu0 %v3406_v1  ;;  %771 = vmatprep.subr.bf16.mxu1 %v3408_v2  ;;  %v3414_v7 = vld [vmem:[#allocation9 + $0x2c] ss:$16 sps:$4 sm:$0xff]   ;;  %v3416_v8 = vld [vmem:[#allocation9 + $0x20] ss:$16 sps:$4 sm:$0xff]   ;;  %v3417_v9 = vld [vmem:[#allocation9 + $0x28] ss:$16 sps:$4 sm:$0xff]  }
  0xca   : > { %699 = vmatpush1.bf16.msra.mxu0 %v3410_v4  ;;  %772 = vmatpush1.bf16.msra.mxu1 %v3411_v5  ;;  %v3418_v10 = vld [vmem:[#allocation9 + $0x44] ss:$16 sps:$4 sm:$0xff]   ;;  %v3420_v11 = vld [vmem:[#allocation9 + $0x4c] ss:$16 sps:$4 sm:$0xff]   ;;  %v3422_v12 = vld [vmem:[#allocation9 + $0x40] ss:$16 sps:$4 sm:$0xff]  }
  0xcb   : > { %700 = vmatprep.subr.bf16.mxu0 %v3412_v6  ;;  %773 = vmatprep.subr.bf16.mxu1 %v3414_v7  ;;  %v3423_v13 = vld [vmem:[#allocation9 + $0x48] ss:$16 sps:$4 sm:$0xff]   ;;  %v3424_v14 = vld [vmem:[#allocation9 + $0x64] ss:$16 sps:$4 sm:$0xff]   ;;  %v3426_v15 = vld [vmem:[#allocation9 + $0x6c] ss:$16 sps:$4 sm:$0xff]  }
  0xcc   : > { %v3428_v16 = vld [vmem:[#allocation9 + $0x60] ss:$16 sps:$4 sm:$0xff]   ;;  %v3429_v17 = vld [vmem:[#allocation9 + $0x68] ss:$16 sps:$4 sm:$0xff]   ;;  %v3430_v18 = vld [vmem:[#allocation9 + $0x84] ss:$16 sps:$4 sm:$0xff]  }
  0xcd   : > { %v3432_v19 = vld [vmem:[#allocation9 + $0x8c] ss:$16 sps:$4 sm:$0xff]   ;;  %v3434_v20 = vld [vmem:[#allocation9 + $0x80] ss:$16 sps:$4 sm:$0xff]   ;;  %v3435_v21 = vld [vmem:[#allocation9 + $0x88] ss:$16 sps:$4 sm:$0xff]  }
  0xce   : > { %701 = vmatpush1.bf16.msra.mxu0 %v3416_v8  ;;  %774 = vmatpush1.bf16.msra.mxu1 %v3417_v9  ;;  %v3436_v22 = vld [vmem:[#allocation9 + $0xa4] ss:$16 sps:$4 sm:$0xff]   ;;  %v3438_v23 = vld [vmem:[#allocation9 + $0xac] ss:$16 sps:$4 sm:$0xff]   ;;  %v3440_v24 = vld [vmem:[#allocation9 + $0xa0] ss:$16 sps:$4 sm:$0xff]  }
  0xcf   : > { %702 = vmatprep.subr.bf16.mxu0 %v3418_v10  ;;  %775 = vmatprep.subr.bf16.mxu1 %v3420_v11  ;;  %v3441_v25 = vld [vmem:[#allocation9 + $0xa8] ss:$16 sps:$4 sm:$0xff]   ;;  %v3442_v26 = vld [vmem:[#allocation9 + $0xc4] ss:$16 sps:$4 sm:$0xff]   ;;  %v3444_v27 = vld [vmem:[#allocation9 + $0xcc] ss:$16 sps:$4 sm:$0xff]   ;;  %v494_v10 = vlaneseq }
  0xd0   : > { %v3446_v28 = vld [vmem:[#allocation9 + $0xc0] ss:$16 sps:$4 sm:$0xff]   ;;  %v3447_v29 = vld [vmem:[#allocation9 + $0xc8] ss:$16 sps:$4 sm:$0xff]   ;;  %v3448_v30 = vld [vmem:[#allocation9 + $0xe4] ss:$16 sps:$4 sm:$0xff]  }
  0xd1   : > { %v3450_v31 = vld [vmem:[#allocation9 + $0xec] ss:$16 sps:$4 sm:$0xff]   ;;  %v3452_v32 = vld [vmem:[#allocation9 + $0xe0] ss:$16 sps:$4 sm:$0xff]   ;;  %v3453_v33 = vld [vmem:[#allocation9 + $0xe8] ss:$16 sps:$4 sm:$0xff]  }
  0xd2   : > { %703 = vmatpush1.bf16.msra.mxu0 %v3422_v12  ;;  %776 = vmatpush1.bf16.msra.mxu1 %v3423_v13  ;;  %v4375_v34 = vld [vmem:[#allocation11 + $0x4] ss:$16 sps:$4 sm:$0xff]   ;;  %v4377_v35 = vld [vmem:[#allocation11 + $0xc] ss:$16 sps:$4 sm:$0xff]   ;;  %v4380_v37 = vld [vmem:[#allocation11] ss:$16 sps:$4 sm:$0xff]  }
  0xd3   : > { %704 = vmatprep.subr.bf16.mxu0 %v3424_v14  ;;  %777 = vmatprep.subr.bf16.mxu1 %v3426_v15  ;;  %v3454_v36 = vld [vmem:[%s4354_s21] sm:$0xff]   ;;  %v4382_v38 = vld [vmem:[#allocation11 + $0x8] ss:$16 sps:$4 sm:$0xff]   ;;  %v4388_v40 = vld [vmem:[#allocation11 + $0x2c] ss:$16 sps:$4 sm:$0xff]   ;;  %v4519_v11 = vshrl.u32 %v494_v10, 7 }
  0xd4   : > { %v4386_v39 = vld [vmem:[#allocation11 + $0x24] ss:$16 sps:$4 sm:$0xff]   ;;  %v4390_v41 = vld [vmem:[#allocation11 + $0x20] ss:$16 sps:$4 sm:$0xff]   ;;  %v4394_v42 = vld [vmem:[#allocation11 + $0x28] ss:$16 sps:$4 sm:$0xff]  }
  0xd5   : > { %v4398_v43 = vld [vmem:[#allocation11 + $0x44] ss:$16 sps:$4 sm:$0xff]   ;;  %v4400_v44 = vld [vmem:[#allocation11 + $0x4c] ss:$16 sps:$4 sm:$0xff]   ;;  %v4405_v46 = vld [vmem:[#allocation11 + $0x40] ss:$16 sps:$4 sm:$0xff]  }
  0xd6   : > { %705 = vmatpush1.bf16.msra.mxu0 %v3428_v16  ;;  %778 = vmatpush1.bf16.msra.mxu1 %v3429_v17  ;;  %v3467_v45 = vld [vmem:[%s4354_s21 + $0x8] sm:$0xff]   ;;  %v4411_v48 = vld [vmem:[#allocation11 + $0x64] ss:$16 sps:$4 sm:$0xff]   ;;  %v4417_v50 = vld [vmem:[#allocation11 + $0x60] ss:$16 sps:$4 sm:$0xff]   ;;  %5196 = vst [vmem:[#allocation23_spill] sm:$0xff] %v4519_v11 }
  0xd7   : > { %706 = vmatprep.subr.bf16.mxu0 %v3430_v18  ;;  %779 = vmatprep.subr.bf16.mxu1 %v3432_v19  ;;  %v4407_v47 = vld [vmem:[#allocation11 + $0x48] ss:$16 sps:$4 sm:$0xff]   ;;  %v4415_v49 = vld [vmem:[#allocation11 + $0x6c] ss:$16 sps:$4 sm:$0xff]   ;;  %v4423_v52 = vld [vmem:[#allocation11 + $0x84] ss:$16 sps:$4 sm:$0xff]  }
  0xd8   : > { %v4419_v51 = vld [vmem:[#allocation11 + $0x68] ss:$16 sps:$4 sm:$0xff]   ;;  %v4427_v53 = vld [vmem:[#allocation11 + $0x8c] ss:$16 sps:$4 sm:$0xff]   ;;  %v3480_v54 = vld [vmem:[%s4354_s21 + $0x10] sm:$0xff]   ;;  %v5162_v12 = vsub.s32 2, %v4519_v11 }
  0xd9   : > { %v4432_v55 = vld [vmem:[#allocation11 + $0x80] ss:$16 sps:$4 sm:$0xff]   ;;  %v4434_v56 = vld [vmem:[#allocation11 + $0x88] ss:$16 sps:$4 sm:$0xff]   ;;  %v4436_v57 = vld [vmem:[#allocation11 + $0xa4] ss:$16 sps:$4 sm:$0xff]  }
  0xda   : > { %707 = vmatpush1.bf16.msra.mxu0 %v3434_v20  ;;  %780 = vmatpush1.bf16.msra.mxu1 %v3435_v21  ;;  %v4438_v58 = vld [vmem:[#allocation11 + $0xac] ss:$16 sps:$4 sm:$0xff]   ;;  %v4444_v59 = vld [vmem:[#allocation11 + $0xa0] ss:$16 sps:$4 sm:$0xff]   ;;  %v4446_v60 = vld [vmem:[#allocation11 + $0xa8] ss:$16 sps:$4 sm:$0xff]  }
  0xdb   : > { %708 = vmatprep.subr.bf16.mxu0 %v3436_v22  ;;  %781 = vmatprep.subr.bf16.mxu1 %v3438_v23  ;;  %v4448_v61 = vld [vmem:[#allocation11 + $0xc4] ss:$16 sps:$4 sm:$0xff]   ;;  %v4450_v62 = vld [vmem:[#allocation11 + $0xcc] ss:$16 sps:$4 sm:$0xff]   ;;  %v4459_v0 = vld [vmem:[#allocation11 + $0xc0] ss:$16 sps:$4 sm:$0xff]  }
  0xdc   : > { %v3493_v63 = vld [vmem:[%s4354_s21 + $0x18] sm:$0xff]   ;;  %v4463_v2 = vld [vmem:[#allocation11 + $0xe4] ss:$16 sps:$4 sm:$0xff]   ;;  %v4471_v5 = vld [vmem:[#allocation11 + $0xe0] ss:$16 sps:$4 sm:$0xff]   ;;  %v5160_v13 = vsub.s32 3, %v4519_v11 }
  0xdd   : > { %v4461_v1 = vld [vmem:[#allocation11 + $0xc8] ss:$16 sps:$4 sm:$0xff]   ;;  %v4465_v4 = vld [vmem:[#allocation11 + $0xec] ss:$16 sps:$4 sm:$0xff]   ;;  %v908_v7 = vld [vmem:[#allocation4] sm:$0xff]  ;;  %v5163_v14 = vsub.s32 0, %v4519_v11 }
  0xde   : > { %709 = vmatpush1.bf16.msra.mxu0 %v3440_v24  ;;  %782 = vmatpush1.bf16.msra.mxu1 %v3441_v25  ;;  %v4473_v6 = vld [vmem:[#allocation11 + $0xe8] ss:$16 sps:$4 sm:$0xff]   ;;  %v492_v15 = vld [vmem:[%s5148_s3] sm:$0xf]  ;;  %v5161_v16 = vsub.s32 1, %v4519_v11  ;;  %p3238_p5 = scmp.ne.s32.totalorder %s4024_s12, 1 }
  0xdf   : > { %710 = vmatprep.subr.bf16.mxu0 %v3442_v26  ;;  %783 = vmatprep.subr.bf16.mxu1 %v3444_v27  ;;  %v909_v8 = vld [vmem:[#allocation4 + $0x8] sm:$0xff]  ;;  %v4530_v17 = vrot.slane %v492_v15, %v5162_v12  ;;  %v4534_v18 = vrot.slane %v492_v15, %v5160_v13  ;;  %v4538_v19 = vrot.slane %v492_v15, %v5163_v14  ;;  %vm4047_vm0 = vmmov (!%p3238_p5), 0   ;;  %s5230_s22 = sld [smem:[#allocation32_spill]] (!%p3238_p5) }
  0xe0   : > { %v927_v9 = vpack.c.bf16 %v909_v8, %v908_v7  ;;  %v4542_v21 = vrot.slane %v492_v15, %v5161_v16 }
  0xe2   : > { %711 = vmatpush1.bf16.msra.mxu0 %v3446_v28  ;;  %784 = vmatpush1.bf16.msra.mxu1 %v3447_v29 }
  0xe3   : > { %712 = vmatprep.subr.bf16.mxu0 %v3448_v30  ;;  %785 = vmatprep.subr.bf16.mxu1 %v3450_v31 }
  0xe6   : > { %713 = vmatpush1.bf16.msra.mxu0 %v3452_v32  ;;  %786 = vmatpush1.bf16.msra.mxu1 %v3453_v33 }
  0xe7   : > { %1088 = vmatprep.subr.bf16.mxu0 %v4375_v34  ;;  %1131 = vmatprep.subr.bf16.mxu1 %v4377_v35 }
  0xe9   : > { %731 = vmatmul.mubr.bf16.vlgmr.msra.gmra.mrb[0].mxu0 %v3454_v36  ;;  %804 = vmatmul.mubr.bf16.vlgmr.msra.gmra.mrb[0].mxu1 %v3454_v36 }
  0xea   : > { %1089 = vmatpush1.bf16.msra.mxu0 %v4380_v37  ;;  %1132 = vmatpush1.bf16.msra.mxu1 %v4382_v38 }
  0xeb   : > { %1090 = vmatprep.subr.bf16.mxu0 %v4386_v39  ;;  %1133 = vmatprep.subr.bf16.mxu1 %v4388_v40 }
  0xec   : > { %740 = vmatprep.mubr.bf16.mxu0 %v5164_v3  ;;  %813 = vmatprep.mubr.bf16.mxu1 %v5164_v3 }
  0xee   : > { %1091 = vmatpush1.bf16.msra.mxu0 %v4390_v41  ;;  %1134 = vmatpush1.bf16.msra.mxu1 %v4394_v42 }
  0xef   : > { %1092 = vmatprep.subr.bf16.mxu0 %v4398_v43  ;;  %1135 = vmatprep.subr.bf16.mxu1 %v4400_v44 }
  0xf1   : > { %741 = vmatmul.mubr.bf16.gmra.mrb[4].mxu0 %v3467_v45  ;;  %814 = vmatmul.mubr.bf16.gmra.mrb[4].mxu1 %v3467_v45 }
  0xf2   : > { %1093 = vmatpush1.bf16.msra.mxu0 %v4405_v46  ;;  %1136 = vmatpush1.bf16.msra.mxu1 %v4407_v47 }
  0xf3   : > { %1094 = vmatprep.subr.bf16.mxu0 %v4411_v48  ;;  %1137 = vmatprep.subr.bf16.mxu1 %v4415_v49 }
  0xf4   : > { %750 = vmatprep.mubr.bf16.mxu0 %v5164_v3  ;;  %823 = vmatprep.mubr.bf16.mxu1 %v5164_v3 }
  0xf6   : > { %1095 = vmatpush1.bf16.msra.mxu0 %v4417_v50  ;;  %1138 = vmatpush1.bf16.msra.mxu1 %v4419_v51 }
  0xf7   : > { %1096 = vmatprep.subr.bf16.mxu0 %v4423_v52  ;;  %1139 = vmatprep.subr.bf16.mxu1 %v4427_v53 }
  0xf9   : > { %751 = vmatmul.mubr.bf16.gmra.mrb[8].mxu0 %v3480_v54  ;;  %824 = vmatmul.mubr.bf16.gmra.mrb[8].mxu1 %v3480_v54 }
  0xfa   : > { %1097 = vmatpush1.bf16.msra.mxu0 %v4432_v55  ;;  %1140 = vmatpush1.bf16.msra.mxu1 %v4434_v56 }
  0xfb   : > { %1098 = vmatprep.subr.bf16.mxu0 %v4436_v57  ;;  %1141 = vmatprep.subr.bf16.mxu1 %v4438_v58 }
  0xfc   : > { %760 = vmatprep.mubr.bf16.mxu0 %v5164_v3  ;;  %833 = vmatprep.mubr.bf16.mxu1 %v5164_v3 }
  0xfe   : > { %1099 = vmatpush1.bf16.msra.mxu0 %v4444_v59  ;;  %1142 = vmatpush1.bf16.msra.mxu1 %v4446_v60 }
  0xff   : > { %1100 = vmatprep.subr.bf16.mxu0 %v4448_v61  ;;  %1143 = vmatprep.subr.bf16.mxu1 %v4450_v62 }
 0x101   : > { %761 = vmatmul.mubr.bf16.gmra.mrb[12].mxu0 %v3493_v63  ;;  %834 = vmatmul.mubr.bf16.gmra.mrb[12].mxu1 %v3493_v63 }
 0x102   : > { %1101 = vmatpush1.bf16.msra.mxu0 %v4459_v0  ;;  %1144 = vmatpush1.bf16.msra.mxu1 %v4461_v1 }
 0x103   : > { %1102 = vmatprep.subr.bf16.mxu0 %v4463_v2  ;;  %1145 = vmatprep.subr.bf16.mxu1 %v4465_v4 }
 0x104   : > { %1120 = vmatprep.mubr.bf16.mxu0 %v5164_v3  ;;  %1163 = vmatprep.mubr.bf16.mxu1 %v5164_v3 }
 0x106   : > { %1103 = vmatpush1.bf16.msra.mxu0 %v4471_v5  ;;  %1146 = vmatpush1.bf16.msra.mxu1 %v4473_v6 }
 0x107   : > { %1235 = vmatprep.subr.bf16.mxu0 %v4375_v34  ;;  %1278 = vmatprep.subr.bf16.mxu1 %v4377_v35 }
 0x109   : > { %1121 = vmatmul.mubr.bf16.vlgmr.msra.gmra.mrb[16].mxu0 %v927_v9  ;;  %1164 = vmatmul.mubr.bf16.vlgmr.msra.gmra.mrb[16].mxu1 %v927_v9 }
 0x10a   : > { %1236 = vmatpush1.bf16.msra.mxu0 %v4380_v37  ;;  %1279 = vmatpush1.bf16.msra.mxu1 %v4382_v38 }
 0x10b   : > { %1237 = vmatprep.subr.bf16.mxu0 %v4386_v39  ;;  %1280 = vmatprep.subr.bf16.mxu1 %v4388_v40 }
 0x10c   : > { %1267 = vmatprep.mubr.bf16.mxu0 %v5164_v3  ;;  %1310 = vmatprep.mubr.bf16.mxu1 %v5164_v3 }
 0x10e   : > { %1238 = vmatpush1.bf16.msra.mxu0 %v4390_v41  ;;  %1281 = vmatpush1.bf16.msra.mxu1 %v4394_v42 }
 0x10f   : > { %1239 = vmatprep.subr.bf16.mxu0 %v4398_v43  ;;  %1282 = vmatprep.subr.bf16.mxu1 %v4400_v44 }
 0x112   : > { %1240 = vmatpush1.bf16.msra.mxu0 %v4405_v46  ;;  %1283 = vmatpush1.bf16.msra.mxu1 %v4407_v47 }
 0x113   : > { %1241 = vmatprep.subr.bf16.mxu0 %v4411_v48  ;;  %1284 = vmatprep.subr.bf16.mxu1 %v4415_v49 }
 0x116   : > { %1242 = vmatpush1.bf16.msra.mxu0 %v4417_v50  ;;  %1285 = vmatpush1.bf16.msra.mxu1 %v4419_v51 }
 0x117   : > { %1243 = vmatprep.subr.bf16.mxu0 %v4423_v52  ;;  %1286 = vmatprep.subr.bf16.mxu1 %v4427_v53 }
 0x11a   : > { %1244 = vmatpush1.bf16.msra.mxu0 %v4432_v55  ;;  %1287 = vmatpush1.bf16.msra.mxu1 %v4434_v56 }
 0x11b   : > { %1245 = vmatprep.subr.bf16.mxu0 %v4436_v57  ;;  %1288 = vmatprep.subr.bf16.mxu1 %v4438_v58 }
 0x11e   : > { %1246 = vmatpush1.bf16.msra.mxu0 %v4444_v59  ;;  %1289 = vmatpush1.bf16.msra.mxu1 %v4446_v60 }
 0x11f   : > { %1247 = vmatprep.subr.bf16.mxu0 %v4448_v61  ;;  %1290 = vmatprep.subr.bf16.mxu1 %v4450_v62 }
 0x122   : > { %1248 = vmatpush1.bf16.msra.mxu0 %v4459_v0  ;;  %1291 = vmatpush1.bf16.msra.mxu1 %v4461_v1 }
 0x123   : > { %1249 = vmatprep.subr.bf16.mxu0 %v4463_v2  ;;  %1292 = vmatprep.subr.bf16.mxu1 %v4465_v4 }
 0x126   : > { %1250 = vmatpush1.bf16.msra.mxu0 %v4471_v5  ;;  %1293 = vmatpush1.bf16.msra.mxu1 %v4473_v6 }
 0x127   : > { %1383 = vmatprep.subr.bf16.mxu0 %v4375_v34  ;;  %1426 = vmatprep.subr.bf16.mxu1 %v4377_v35 }
 0x1bc   : > { %v732_v20 = vpop.f32.mrb[0].mxu0  ;;  %v805_v22 = vpop.f32.mrb[0].mxu1 }
 0x1bd   : > { %v734_v23 = vpop.f32.mrb[1].mxu0  ;;  %v806_v24 = vadd.f32 %v805_v22, %v4530_v17  ;;  %v807_v25 = vpop.f32.mrb[1].mxu1  ;;  %v733_v29 = vadd.f32 %v732_v20, %v4538_v19 }
 0x1be   : > { %v736_v26 = vpop.f32.mrb[2].mxu0  ;;  %v808_v27 = vadd.f32 %v807_v25, %v4534_v18  ;;  %v809_v28 = vpop.f32.mrb[2].mxu1  ;;  %v735_v36 = vadd.f32 %v734_v23, %v4542_v21 }
 0x1bf   : > { %v737_v30 = vadd.f32 %v736_v26, %v4538_v19  ;;  %v738_v31 = vpop.f32.mrb[3].mxu0  ;;  %v810_v32 = vadd.f32 %v809_v28, %v4530_v17  ;;  %v811_v33 = vpop.f32.mrb[3].mxu1 }
 0x1c0   : > { %v739_v45 = vadd.f32 %v738_v31, %v4542_v21  ;;  %v812_v54 = vadd.f32 %v811_v33, %v4534_v18 }
 0x1c1   : > { %v4552_v63 = vpack.c.bf16 %v737_v30, %v733_v29  ;;  %v4554_v7 = vpack.c.bf16 %v810_v32, %v806_v24 }
 0x1c2   : > { %v4556_v8 = vpack.c.bf16 %v739_v45, %v735_v36  ;;  %v4558_v9 = vpack.c.bf16 %v812_v54, %v808_v27 }
 0x1c4   : > { %v742_v10 = vpop.f32.mrb[4].mxu0  ;;  %v815_v15 = vpop.f32.mrb[4].mxu1 }
 0x1c5   : > { %v743_v20 = vadd.f32 %v742_v10, %v4538_v19  ;;  %v744_v22 = vpop.f32.mrb[5].mxu0  ;;  %v816_v25 = vadd.f32 %v815_v15, %v4530_v17  ;;  %v817_v23 = vpop.f32.mrb[5].mxu1 }
 0x1c6   : > { %v745_v26 = vadd.f32 %v744_v22, %v4542_v21  ;;  %v746_v28 = vpop.f32.mrb[6].mxu0  ;;  %v818_v29 = vadd.f32 %v817_v23, %v4534_v18  ;;  %v819_v30 = vpop.f32.mrb[6].mxu1 }
 0x1c7   : > { %v747_v24 = vadd.f32 %v746_v28, %v4538_v19  ;;  %v748_v31 = vpop.f32.mrb[7].mxu0  ;;  %v820_v27 = vadd.f32 %v819_v30, %v4530_v17  ;;  %v821_v32 = vpop.f32.mrb[7].mxu1 }
 0x1c8   : > { %v749_v33 = vadd.f32 %v748_v31, %v4542_v21  ;;  %v822_v36 = vadd.f32 %v821_v32, %v4534_v18 }
 0x1c9   : > { %v4568_v45 = vpack.c.bf16 %v747_v24, %v743_v20  ;;  %v4570_v54 = vpack.c.bf16 %v820_v27, %v816_v25 }
 0x1ca   : > { %v4572_v10 = vpack.c.bf16 %v749_v33, %v745_v26  ;;  %v4574_v15 = vpack.c.bf16 %v822_v36, %v818_v29 }
 0x1cc   : > { %5197 = vst [vmem:[#allocation24_spill] sm:$0xff] %v4574_v15  ;;  %v752_v22 = vpop.f32.mrb[8].mxu0  ;;  %v825_v23 = vpop.f32.mrb[8].mxu1 }
 0x1cd   : > { %v753_v28 = vadd.f32 %v752_v22, %v4538_v19  ;;  %v754_v13 = vpop.f32.mrb[9].mxu0  ;;  %v826_v30 = vadd.f32 %v825_v23, %v4530_v17  ;;  %v827_v16 = vpop.f32.mrb[9].mxu1 }
 0x1ce   : > { %v755_v31 = vadd.f32 %v754_v13, %v4542_v21  ;;  %v756_v12 = vpop.f32.mrb[10].mxu0  ;;  %v828_v20 = vadd.f32 %v827_v16, %v4534_v18  ;;  %v829_v24 = vpop.f32.mrb[10].mxu1 }
 0x1cf   : > { %v757_v25 = vadd.f32 %v756_v12, %v4538_v19  ;;  %v758_v26 = vpop.f32.mrb[11].mxu0  ;;  %v830_v29 = vadd.f32 %v829_v24, %v4530_v17  ;;  %v831_v27 = vpop.f32.mrb[11].mxu1 }
 0x1d0   : > { %v759_v32 = vadd.f32 %v758_v26, %v4542_v21  ;;  %v832_v33 = vadd.f32 %v831_v27, %v4534_v18 }
 0x1d1   : > { %v4584_v36 = vpack.c.bf16 %v757_v25, %v753_v28  ;;  %v4586_v22 = vpack.c.bf16 %v830_v29, %v826_v30 }
 0x1d2   : > { %v4588_v23 = vpack.c.bf16 %v759_v32, %v755_v31  ;;  %v4590_v13 = vpack.c.bf16 %v832_v33, %v828_v20 }
 0x1d4   : > { %5198 = vst [vmem:[#allocation25_spill] sm:$0xff] %v4590_v13  ;;  %v762_v16 = vpop.f32.mrb[12].mxu0  ;;  %v835_v14 = vpop.f32.mrb[12].mxu1 }
 0x1d5   : > { %v763_v12 = vadd.f32 %v762_v16, %v4538_v19  ;;  %v764_v3 = vpop.f32.mrb[13].mxu0  ;;  %v836_v24 = vadd.f32 %v835_v14, %v4530_v17  ;;  %v837_v11 = vpop.f32.mrb[13].mxu1 }
 0x1d6   : > { %v765_v26 = vadd.f32 %v764_v3, %v4542_v21  ;;  %v766_v15 = vpop.f32.mrb[14].mxu0  ;;  %v838_v28 = vadd.f32 %v837_v11, %v4534_v18  ;;  %v839_v25 = vpop.f32.mrb[14].mxu1  ;;  %v919_v11 = vunpack.c.l.bf16 %v4552_v63 }
 0x1d7   : > { %v767_v30 = vadd.f32 %v766_v15, %v4538_v19  ;;  %v768_v31 = vpop.f32.mrb[15].mxu0  ;;  %v840_v20 = vadd.f32 %v839_v25, %v4530_v17  ;;  %v841_v29 = vpop.f32.mrb[15].mxu1  ;;  %v921_v19 = vunpack.c.l.bf16 %v4554_v7  ;;  %v920_v17 = vunpack.c.l.bf16 %v4556_v8 }
 0x1d8   : > { %v769_v27 = vadd.f32 %v768_v31, %v4542_v21  ;;  %v842_v32 = vadd.f32 %v841_v29, %v4534_v18  ;;  %v922_v21 = vunpack.c.l.bf16 %v4558_v9 }
 0x1d9   : > { %v4600_v33 = vpack.c.bf16 %v767_v30, %v763_v12  ;;  %v4602_v14 = vpack.c.bf16 %v840_v20, %v836_v24  ;;  %v923_v24 = vunpack.c.h.bf16 %v4552_v63 }
 0x1da   : > { %v4604_v16 = vpack.c.bf16 %v769_v27, %v765_v26  ;;  %v4606_v3 = vpack.c.bf16 %v842_v32, %v838_v28  ;;  %v925_v26 = vunpack.c.h.bf16 %v4554_v7  ;;  %v924_v27 = vunpack.c.h.bf16 %v4556_v8 }
 0x1db   : > { %5199 = vst [vmem:[#allocation26_spill] sm:$0xff] %v4600_v33  ;;  %5200 = vst [vmem:[#allocation27_spill] sm:$0xff] %v4602_v14  ;;  %v926_v32 = vunpack.c.h.bf16 %v4558_v9 }
 0x1dc   : > { %5201 = vst [vmem:[#allocation28_spill] sm:$0xff] %v4604_v16  ;;  %5202 = vst [vmem:[#allocation29_spill] sm:$0xff] %v4606_v3  ;;  %v1122_v15 = vpop.f32.mrb[16].mxu0  ;;  %v1165_v13 = vpop.f32.mrb[16].mxu1 }
 0x1dd   : > { %v1174_v25 = vadd.f32 %v1122_v15, %v919_v11  ;;  %v1176_v18 = vadd.f32 %v1165_v13, %v921_v19  ;;  %v1124_v12 = vpop.f32.mrb[17].mxu0  ;;  %v1167_v30 = vpop.f32.mrb[17].mxu1 }
 0x1de   : > { %v1175_v28 = vadd.f32 %v1124_v12, %v920_v17  ;;  %v1177_v31 = vadd.f32 %v1167_v30, %v922_v21  ;;  %v1126_v20 = vpop.f32.mrb[18].mxu0  ;;  %v1169_v29 = vpop.f32.mrb[18].mxu1 }
 0x1df   : > { %v1182_v3 = vmul.f32 0.5, %v1174_v25  ;;  %v1178_v16 = vadd.f32 %v1126_v20, %v923_v24  ;;  %v1180_v14 = vadd.f32 %v1169_v29, %v925_v26  ;;  %v1128_v33 = vpop.f32.mrb[19].mxu0  ;;  %v1171_v11 = vpop.f32.mrb[19].mxu1  ;;  %v910_v26 = vld [vmem:[#allocation5] sm:$0xff] }
 0x1e0   : > { %v1190_v13 = vmul.f32 0.5, %v1175_v28  ;;  %v1179_v19 = vadd.f32 %v1128_v33, %v924_v27  ;;  %v1181_v15 = vadd.f32 %v1171_v11, %v926_v32  ;;  %v1200_v9 = vmul.f32 0.5, %v1177_v31  ;;  %v911_v32 = vld [vmem:[#allocation5 + $0x8] sm:$0xff] }
 0x1e1   : > { %3602 = vtanh.f32 %v1182_v3  ;;  %v1183_v63 = vmul.f32 0.5, %v1178_v16 }
 0x1e2   : > { %3604 = vtanh.f32 %v1190_v13  ;;  %v1191_v7 = vmul.f32 0.5, %v1179_v19  ;;  %v1201_v12 = vmul.f32 0.5, %v1181_v15 }
 0x1e3   : > { %3606 = vtanh.f32 %v1183_v63 }
 0x1e4   : > { %3608 = vtanh.f32 %v1176_v18 }
 0x1e5   : > { %3610 = vtanh.f32 %v1191_v7 }
 0x1e6   : > { %3612 = vtanh.f32 %v1180_v14 }
 0x1e7   : > { %3614 = vtanh.f32 %v1200_v9 }
 0x1e8   : > { %3616 = vtanh.f32 %v1201_v12 }
 0x1eb   : > { %v3603_v17 = vpop.eup %3602 }
 0x1ec   : > { %v3605_v8 = vpop.eup %3604  ;;  %v1186_v21 = vmul.f32 0.5, %v3603_v17 }
 0x1ed   : > { %v1194_v25 = vmul.f32 0.5, %v3605_v8  ;;  %v3607_v30 = vpop.eup %3606 }
 0x1ee   : > { %v1188_v24 = vadd.f32 0.5, %v1186_v21  ;;  %v3609_v28 = vpop.eup %3608  ;;  %v1187_v20 = vmul.f32 0.5, %v3607_v30 }
 0x1ef   : > { %v1196_v33 = vadd.f32 0.5, %v1194_v25  ;;  %v3611_v3 = vpop.eup %3610 }
 0x1f0   : > { %v1210_v16 = vmul.f32 %v3609_v28, %v1188_v24  ;;  %v1189_v27 = vadd.f32 0.5, %v1187_v20  ;;  %v1195_v18 = vmul.f32 0.5, %v3611_v3  ;;  %v3613_v14 = vpop.eup %3612  ;;  %v5203_v28 = vmov 0  }
 0x1f1   : > { %v1208_v29 = vmul.f32 %v1196_v33, %v910_v26  ;;  %v3615_v63 = vpop.eup %3614  ;;  %v1227_v33 = vunpack.c.l.bf16 %v4568_v45  ;;  %v1229_v20 = vunpack.c.l.bf16 %v4570_v54 }
 0x1f2   : > { %v1197_v31 = vadd.f32 0.5, %v1195_v18  ;;  %v1211_v13 = vmul.f32 %v3613_v14, %v1189_v27  ;;  %v3617_v7 = vpop.eup %3616  ;;  %v1204_v17 = vmul.f32 0.5, %v3615_v63  ;;  %v5204_v27 = vld [vmem:[#allocation24_spill] sm:$0xff] }
 0x1f3   : > { %v4616_v11 = vadd.f32 %v1210_v16, %v1208_v29  ;;  %v1205_v8 = vmul.f32 0.5, %v3617_v7  ;;  %v1228_v29 = vunpack.c.l.bf16 %v4572_v10  ;;  %v1230_v18 = vunpack.c.l.bf16 %v5204_v27 }
 0x1f4   : > { %v1209_v19 = vmul.f32 %v1197_v31, %v911_v32  ;;  %v1206_v9 = vadd.f32 0.5, %v1204_v17 }
 0x1f5   : > { %3618 = vtanh.f32 %v4616_v11  ;;  %v1207_v25 = vadd.f32 0.5, %v1205_v8  ;;  %v1232_v8 = vunpack.c.h.bf16 %v4572_v10 }
 0x1f6   : > { %v4619_v15 = vadd.f32 %v1211_v13, %v1209_v19  ;;  %v1231_v19 = vunpack.c.h.bf16 %v4568_v45 }
 0x1f8   : > { %3620 = vtanh.f32 %v4619_v15 }
 0x1ff   : > { %v3619_v21 = vpop.eup %3618 }
 0x200   : > { %v1216_v30 = vmul.f32 %v3619_v21, %v1206_v9  ;;  %v1234_v21 = vunpack.c.h.bf16 %v5204_v27 }
 0x202   : > { %v3621_v12 = vpop.eup %3620 }
 0x203   : > { %v1217_v24 = vmul.f32 %v3621_v12, %v1207_v25 }
 0x205   : > { %v4622_v26 = vpack.c.bf16 %v1217_v24, %v1216_v30 }
 0x207   : > { %1268 = vmatmul.mubr.bf16.vlgmr.msra.gmra.mrb[20].mxu0 %v4622_v26  ;;  %1311 = vmatmul.mubr.bf16.vlgmr.msra.gmra.mrb[20].mxu1 %v4622_v26 }
 0x208   : > { %1384 = vmatpush1.bf16.msra.mxu0 %v4380_v37  ;;  %1427 = vmatpush1.bf16.msra.mxu1 %v4382_v38 }
 0x209   : > { %1385 = vmatprep.subr.bf16.mxu0 %v4386_v39  ;;  %1428 = vmatprep.subr.bf16.mxu1 %v4388_v40 }
 0x20a   : > { %1415 = vmatprep.mubr.bf16.mxu0 %v5203_v28  ;;  %1458 = vmatprep.mubr.bf16.mxu1 %v5203_v28 }
 0x20c   : > { %1386 = vmatpush1.bf16.msra.mxu0 %v4390_v41  ;;  %1429 = vmatpush1.bf16.msra.mxu1 %v4394_v42 }
 0x20d   : > { %1387 = vmatprep.subr.bf16.mxu0 %v4398_v43  ;;  %1430 = vmatprep.subr.bf16.mxu1 %v4400_v44 }
 0x210   : > { %1388 = vmatpush1.bf16.msra.mxu0 %v4405_v46  ;;  %1431 = vmatpush1.bf16.msra.mxu1 %v4407_v47 }
 0x211   : > { %1389 = vmatprep.subr.bf16.mxu0 %v4411_v48  ;;  %1432 = vmatprep.subr.bf16.mxu1 %v4415_v49 }
 0x214   : > { %1390 = vmatpush1.bf16.msra.mxu0 %v4417_v50  ;;  %1433 = vmatpush1.bf16.msra.mxu1 %v4419_v51 }
 0x215   : > { %1391 = vmatprep.subr.bf16.mxu0 %v4423_v52  ;;  %1434 = vmatprep.subr.bf16.mxu1 %v4427_v53 }
 0x218   : > { %1392 = vmatpush1.bf16.msra.mxu0 %v4432_v55  ;;  %1435 = vmatpush1.bf16.msra.mxu1 %v4434_v56 }
 0x219   : > { %1393 = vmatprep.subr.bf16.mxu0 %v4436_v57  ;;  %1436 = vmatprep.subr.bf16.mxu1 %v4438_v58 }
 0x21c   : > { %1394 = vmatpush1.bf16.msra.mxu0 %v4444_v59  ;;  %1437 = vmatpush1.bf16.msra.mxu1 %v4446_v60 }
 0x21d   : > { %1395 = vmatprep.subr.bf16.mxu0 %v4448_v61  ;;  %1438 = vmatprep.subr.bf16.mxu1 %v4450_v62 }
 0x220   : > { %1396 = vmatpush1.bf16.msra.mxu0 %v4459_v0  ;;  %1439 = vmatpush1.bf16.msra.mxu1 %v4461_v1 }
 0x221   : > { %1397 = vmatprep.subr.bf16.mxu0 %v4463_v2  ;;  %1440 = vmatprep.subr.bf16.mxu1 %v4465_v4 }
 0x224   : > { %1398 = vmatpush1.bf16.msra.mxu0 %v4471_v5  ;;  %1441 = vmatpush1.bf16.msra.mxu1 %v4473_v6 }
 0x225   : > { %1531 = vmatprep.subr.bf16.mxu0 %v4375_v34  ;;  %1574 = vmatprep.subr.bf16.mxu1 %v4377_v35  ;;  %v1233_v34 = vunpack.c.h.bf16 %v4570_v54 }
 0x2da   : > { %v1269_v3 = vpop.f32.mrb[20].mxu0  ;;  %v1312_v16 = vpop.f32.mrb[20].mxu1 }
 0x2db   : > { %v1321_v14 = vadd.f32 %v1269_v3, %v1227_v33  ;;  %v1323_v32 = vadd.f32 %v1312_v16, %v1229_v20  ;;  %v1271_v31 = vpop.f32.mrb[21].mxu0  ;;  %v1314_v13 = vpop.f32.mrb[21].mxu1 }
 0x2dc   : > { %v1322_v63 = vadd.f32 %v1271_v31, %v1228_v29  ;;  %v1324_v35 = vadd.f32 %v1314_v13, %v1230_v18  ;;  %v1273_v7 = vpop.f32.mrb[22].mxu0  ;;  %v1316_v17 = vpop.f32.mrb[22].mxu1 }
 0x2dd   : > { %v1329_v9 = vmul.f32 0.5, %v1321_v14  ;;  %v1325_v25 = vadd.f32 %v1273_v7, %v1231_v19  ;;  %v1327_v12 = vadd.f32 %v1316_v17, %v1233_v34  ;;  %v1275_v30 = vpop.f32.mrb[23].mxu0  ;;  %v1318_v24 = vpop.f32.mrb[23].mxu1 }
 0x2de   : > { %v1337_v33 = vmul.f32 0.5, %v1322_v63  ;;  %v1326_v20 = vadd.f32 %v1275_v30, %v1232_v8  ;;  %v1328_v3 = vadd.f32 %v1318_v24, %v1234_v21  ;;  %v1347_v27 = vmul.f32 0.5, %v1324_v35 }
 0x2df   : > { %3622 = vtanh.f32 %v1329_v9  ;;  %v1330_v45 = vmul.f32 0.5, %v1325_v25 }
 0x2e0   : > { %3624 = vtanh.f32 %v1337_v33  ;;  %v1338_v54 = vmul.f32 0.5, %v1326_v20  ;;  %v1348_v14 = vmul.f32 0.5, %v1328_v3 }
 0x2e1   : > { %3626 = vtanh.f32 %v1330_v45 }
 0x2e2   : > { %3628 = vtanh.f32 %v1323_v32 }
 0x2e3   : > { %3630 = vtanh.f32 %v1338_v54 }
 0x2e4   : > { %3632 = vtanh.f32 %v1327_v12 }
 0x2e5   : > { %3634 = vtanh.f32 %v1347_v27 }
 0x2e6   : > { %3636 = vtanh.f32 %v1348_v14 }
 0x2e9   : > { %v3623_v16 = vpop.eup %3622 }
 0x2ea   : > { %v3625_v10 = vpop.eup %3624  ;;  %v1333_v29 = vmul.f32 0.5, %v3623_v16 }
 0x2eb   : > { %v1341_v18 = vmul.f32 0.5, %v3625_v10  ;;  %v3627_v31 = vpop.eup %3626 }
 0x2ec   : > { %v1335_v13 = vadd.f32 0.5, %v1333_v29  ;;  %v3629_v19 = vpop.eup %3628  ;;  %v1334_v63 = vmul.f32 0.5, %v3627_v31 }
 0x2ed   : > { %v1343_v34 = vadd.f32 0.5, %v1341_v18  ;;  %v3631_v7 = vpop.eup %3630 }
 0x2ee   : > { %v1357_v17 = vmul.f32 %v3629_v19, %v1335_v13  ;;  %v1336_v21 = vadd.f32 0.5, %v1334_v63  ;;  %v1342_v32 = vmul.f32 0.5, %v3631_v7  ;;  %v3633_v9 = vpop.eup %3632 }
 0x2ef   : > { %v1355_v8 = vmul.f32 %v1343_v34, %v4616_v11  ;;  %v3635_v33 = vpop.eup %3634 }
 0x2f0   : > { %v1344_v12 = vadd.f32 0.5, %v1342_v32  ;;  %v1358_v35 = vmul.f32 %v3633_v9, %v1336_v21  ;;  %v3637_v20 = vpop.eup %3636  ;;  %v1351_v3 = vmul.f32 0.5, %v3635_v33 }
 0x2f1   : > { %v4669_v25 = vadd.f32 %v1357_v17, %v1355_v8  ;;  %v1352_v11 = vmul.f32 0.5, %v3637_v20 }
 0x2f2   : > { %v1356_v30 = vmul.f32 %v1344_v12, %v4619_v15  ;;  %v1353_v54 = vadd.f32 0.5, %v1351_v3 }
 0x2f3   : > { %3638 = vtanh.f32 %v4669_v25  ;;  %v1354_v16 = vadd.f32 0.5, %v1352_v11 }
 0x2f4   : > { %v4673_v24 = vadd.f32 %v1358_v35, %v1356_v30 }
 0x2f6   : > { %3640 = vtanh.f32 %v4673_v24 }
 0x2fd   : > { %v3639_v45 = vpop.eup %3638 }
 0x2fe   : > { %v1363_v29 = vmul.f32 %v3639_v45, %v1353_v54 }
 0x300   : > { %v3641_v10 = vpop.eup %3640 }
 0x301   : > { %v1364_v27 = vmul.f32 %v3641_v10, %v1354_v16 }
 0x303   : > { %v4676_v18 = vpack.c.bf16 %v1364_v27, %v1363_v29 }
 0x305   : > { %1416 = vmatmul.mubr.bf16.vlgmr.msra.gmra.mrb[24].mxu0 %v4676_v18  ;;  %1459 = vmatmul.mubr.bf16.vlgmr.msra.gmra.mrb[24].mxu1 %v4676_v18 }
 0x306   : > { %1532 = vmatpush1.bf16.msra.mxu0 %v4380_v37  ;;  %1575 = vmatpush1.bf16.msra.mxu1 %v4382_v38  ;;  %v3508_v37 = vld [vmem:[#allocation12 + $0x4] ss:$16 sps:$4 sm:$0xff]   ;;  %v3511_v38 = vld [vmem:[#allocation12 + $0xc] ss:$16 sps:$4 sm:$0xff]  }
 0x307   : > { %1533 = vmatprep.subr.bf16.mxu0 %v4386_v39  ;;  %1576 = vmatprep.subr.bf16.mxu1 %v4388_v40  ;;  %v1375_v39 = vunpack.c.l.bf16 %v4584_v36  ;;  %v1377_v40 = vunpack.c.l.bf16 %v4586_v22 }
 0x308   : > { %1563 = vmatprep.mubr.bf16.mxu0 %v5203_v28  ;;  %1606 = vmatprep.mubr.bf16.mxu1 %v5203_v28 }
 0x30a   : > { %1534 = vmatpush1.bf16.msra.mxu0 %v4390_v41  ;;  %1577 = vmatpush1.bf16.msra.mxu1 %v4394_v42 }
 0x30b   : > { %1535 = vmatprep.subr.bf16.mxu0 %v4398_v43  ;;  %1578 = vmatprep.subr.bf16.mxu1 %v4400_v44  ;;  %v1376_v43 = vunpack.c.l.bf16 %v4588_v23  ;;  %v5205_v44 = vld [vmem:[#allocation25_spill] sm:$0xff] }
 0x30e   : > { %1536 = vmatpush1.bf16.msra.mxu0 %v4405_v46  ;;  %1579 = vmatpush1.bf16.msra.mxu1 %v4407_v47  ;;  %v1378_v46 = vunpack.c.l.bf16 %v5205_v44 }
 0x30f   : > { %1537 = vmatprep.subr.bf16.mxu0 %v4411_v48  ;;  %1580 = vmatprep.subr.bf16.mxu1 %v4415_v49 }
 0x312   : > { %1538 = vmatpush1.bf16.msra.mxu0 %v4417_v50  ;;  %1581 = vmatpush1.bf16.msra.mxu1 %v4419_v51  ;;  %v1379_v51 = vunpack.c.h.bf16 %v4584_v36 }
 0x313   : > { %1539 = vmatprep.subr.bf16.mxu0 %v4423_v52  ;;  %1582 = vmatprep.subr.bf16.mxu1 %v4427_v53  ;;  %v1381_v52 = vunpack.c.h.bf16 %v4586_v22 }
 0x316   : > { %1540 = vmatpush1.bf16.msra.mxu0 %v4432_v55  ;;  %1583 = vmatpush1.bf16.msra.mxu1 %v4434_v56 }
 0x317   : > { %1541 = vmatprep.subr.bf16.mxu0 %v4436_v57  ;;  %1584 = vmatprep.subr.bf16.mxu1 %v4438_v58  ;;  %v1380_v58 = vunpack.c.h.bf16 %v4588_v23 }
 0x31a   : > { %1542 = vmatpush1.bf16.msra.mxu0 %v4444_v59  ;;  %1585 = vmatpush1.bf16.msra.mxu1 %v4446_v60  ;;  %v1382_v59 = vunpack.c.h.bf16 %v5205_v44  ;;  %v3512_v44 = vld [vmem:[#allocation12 + $0x20] ss:$16 sps:$4 sm:$0xff]  }
 0x31b   : > { %1543 = vmatprep.subr.bf16.mxu0 %v4448_v61  ;;  %1586 = vmatprep.subr.bf16.mxu1 %v4450_v62 }
 0x31e   : > { %1544 = vmatpush1.bf16.msra.mxu0 %v4459_v0  ;;  %1587 = vmatpush1.bf16.msra.mxu1 %v4461_v1 }
 0x31f   : > { %1545 = vmatprep.subr.bf16.mxu0 %v4463_v2  ;;  %1588 = vmatprep.subr.bf16.mxu1 %v4465_v4 }
 0x322   : > { %1546 = vmatpush1.bf16.msra.mxu0 %v4471_v5  ;;  %1589 = vmatpush1.bf16.msra.mxu1 %v4473_v6 }
 0x323   : > { %1886 = vmatprep.subr.bf16.mxu0 %v3508_v37  ;;  %1959 = vmatprep.subr.bf16.mxu1 %v3511_v38 }
 0x3d8   : > { %v1417_v41 = vpop.f32.mrb[24].mxu0  ;;  %v1460_v42 = vpop.f32.mrb[24].mxu1 }
 0x3d9   : > { %v1469_v47 = vadd.f32 %v1417_v41, %v1375_v39  ;;  %v1471_v48 = vadd.f32 %v1460_v42, %v1377_v40  ;;  %v1419_v49 = vpop.f32.mrb[25].mxu0  ;;  %v1462_v50 = vpop.f32.mrb[25].mxu1  ;;  %v3506_v40 = vld [vmem:[#allocation12] ss:$16 sps:$4 sm:$0xff]   ;;  %v3509_v41 = vld [vmem:[#allocation12 + $0x8] ss:$16 sps:$4 sm:$0xff]  }
 0x3da   : > { %v1470_v53 = vadd.f32 %v1419_v49, %v1376_v43  ;;  %v1472_v55 = vadd.f32 %v1462_v50, %v1378_v46  ;;  %v1421_v56 = vpop.f32.mrb[26].mxu0  ;;  %v1464_v57 = vpop.f32.mrb[26].mxu1  ;;  %v3517_v43 = vld [vmem:[#allocation12 + $0x2c] ss:$16 sps:$4 sm:$0xff]   ;;  %v3515_v46 = vld [vmem:[#allocation12 + $0x28] ss:$16 sps:$4 sm:$0xff]  }
 0x3db   : > { %v1477_v60 = vmul.f32 0.5, %v1469_v47  ;;  %v1473_v61 = vadd.f32 %v1421_v56, %v1379_v51  ;;  %v1475_v62 = vadd.f32 %v1464_v57, %v1381_v52  ;;  %v1423_v0 = vpop.f32.mrb[27].mxu0  ;;  %v1466_v1 = vpop.f32.mrb[27].mxu1  ;;  %v3520_v47 = vld [vmem:[#allocation12 + $0x44] ss:$16 sps:$4 sm:$0xff]  }
 0x3dc   : > { %v1485_v2 = vmul.f32 0.5, %v1470_v53  ;;  %v1474_v4 = vadd.f32 %v1423_v0, %v1380_v58  ;;  %v1476_v5 = vadd.f32 %v1466_v1, %v1382_v59  ;;  %v1495_v14 = vmul.f32 0.5, %v1472_v55  ;;  %v3518_v49 = vld [vmem:[#allocation12 + $0x40] ss:$16 sps:$4 sm:$0xff]   ;;  %v3521_v50 = vld [vmem:[#allocation12 + $0x48] ss:$16 sps:$4 sm:$0xff]  }
 0x3dd   : > { %3642 = vtanh.f32 %v1477_v60  ;;  %v1478_v6 = vmul.f32 0.5, %v1473_v61  ;;  %v3526_v51 = vld [vmem:[#allocation12 + $0x64] ss:$16 sps:$4 sm:$0xff]   ;;  %v3529_v52 = vld [vmem:[#allocation12 + $0x6c] ss:$16 sps:$4 sm:$0xff]  }
 0x3de   : > { %3644 = vtanh.f32 %v1485_v2  ;;  %v1486_v36 = vmul.f32 0.5, %v1474_v4  ;;  %v1496_v13 = vmul.f32 0.5, %v1476_v5  ;;  %v3524_v53 = vld [vmem:[#allocation12 + $0x60] ss:$16 sps:$4 sm:$0xff]   ;;  %v3527_v55 = vld [vmem:[#allocation12 + $0x68] ss:$16 sps:$4 sm:$0xff]  }
 0x3df   : > { %3646 = vtanh.f32 %v1478_v6  ;;  %v3532_v56 = vld [vmem:[#allocation12 + $0x84] ss:$16 sps:$4 sm:$0xff]   ;;  %v3535_v57 = vld [vmem:[#allocation12 + $0x8c] ss:$16 sps:$4 sm:$0xff]   ;;  %v3530_v58 = vld [vmem:[#allocation12 + $0x80] ss:$16 sps:$4 sm:$0xff]  }
 0x3e0   : > { %3648 = vtanh.f32 %v1471_v48  ;;  %v3523_v48 = vld [vmem:[#allocation12 + $0x4c] ss:$16 sps:$4 sm:$0xff]   ;;  %v3533_v59 = vld [vmem:[#allocation12 + $0x88] ss:$16 sps:$4 sm:$0xff]   ;;  %v3538_v60 = vld [vmem:[#allocation12 + $0xa4] ss:$16 sps:$4 sm:$0xff]  }
 0x3e1   : > { %3650 = vtanh.f32 %v1486_v36  ;;  %v3541_v61 = vld [vmem:[#allocation12 + $0xac] ss:$16 sps:$4 sm:$0xff]   ;;  %v3539_v0 = vld [vmem:[#allocation12 + $0xa8] ss:$16 sps:$4 sm:$0xff]   ;;  %v3544_v1 = vld [vmem:[#allocation12 + $0xc4] ss:$16 sps:$4 sm:$0xff]  }
 0x3e2   : > { %3652 = vtanh.f32 %v1475_v62  ;;  %v3536_v62 = vld [vmem:[#allocation12 + $0xa0] ss:$16 sps:$4 sm:$0xff]   ;;  %v3547_v2 = vld [vmem:[#allocation12 + $0xcc] ss:$16 sps:$4 sm:$0xff]   ;;  %v3545_v5 = vld [vmem:[#allocation12 + $0xc8] ss:$16 sps:$4 sm:$0xff]  }
 0x3e3   : > { %3654 = vtanh.f32 %v1495_v14  ;;  %v3542_v4 = vld [vmem:[#allocation12 + $0xc0] ss:$16 sps:$4 sm:$0xff]   ;;  %v3550_v6 = vld [vmem:[#allocation12 + $0xe4] ss:$16 sps:$4 sm:$0xff]   ;;  %v3553_v36 = vld [vmem:[#allocation12 + $0xec] ss:$16 sps:$4 sm:$0xff]  }
 0x3e4   : > { %3656 = vtanh.f32 %v1496_v13  ;;  %v4750_v14 = vld [vmem:[#allocation14] ss:$16 sps:$4 sm:$0xff]   ;;  %v4760_v13 = vld [vmem:[#allocation14 + $0x2c] ss:$16 sps:$4 sm:$0xff]  }
 0x3e7   : > { %v3643_v22 = vpop.eup %3642 }
 0x3e8   : > { %v3645_v23 = vpop.eup %3644  ;;  %v1481_v15 = vmul.f32 0.5, %v3643_v22  ;;  %v3548_v22 = vld [vmem:[#allocation12 + $0xe0] ss:$16 sps:$4 sm:$0xff]  }
 0x3e9   : > { %v1489_v31 = vmul.f32 0.5, %v3645_v23  ;;  %v3647_v19 = vpop.eup %3646  ;;  %v3551_v23 = vld [vmem:[#allocation12 + $0xe8] ss:$16 sps:$4 sm:$0xff]  }
 0x3ea   : > { %v1483_v34 = vadd.f32 0.5, %v1481_v15  ;;  %v3649_v63 = vpop.eup %3648  ;;  %v1482_v17 = vmul.f32 0.5, %v3647_v19  ;;  %v4748_v15 = vld [vmem:[#allocation14 + $0xc] ss:$16 sps:$4 sm:$0xff]   ;;  %v4762_v19 = vld [vmem:[#allocation14 + $0x20] ss:$16 sps:$4 sm:$0xff]  }
 0x3eb   : > { %v1491_v7 = vadd.f32 0.5, %v1489_v31  ;;  %v3651_v8 = vpop.eup %3650  ;;  %v4752_v31 = vld [vmem:[#allocation14 + $0x8] ss:$16 sps:$4 sm:$0xff]  }
 0x3ec   : > { %v1505_v21 = vmul.f32 %v3649_v63, %v1483_v34  ;;  %v1484_v9 = vadd.f32 0.5, %v1482_v17  ;;  %v1490_v12 = vmul.f32 0.5, %v3651_v8  ;;  %v3653_v35 = vpop.eup %3652  ;;  %v4764_v34 = vld [vmem:[#allocation14 + $0x28] ss:$16 sps:$4 sm:$0xff]   ;;  %v4770_v63 = vld [vmem:[#allocation14 + $0x44] ss:$16 sps:$4 sm:$0xff]  }
 0x3ed   : > { %v1503_v32 = vmul.f32 %v1491_v7, %v4669_v25  ;;  %v3655_v45 = vpop.eup %3654  ;;  %v4772_v7 = vld [vmem:[#allocation14 + $0x4c] ss:$16 sps:$4 sm:$0xff]   ;;  %v4774_v17 = vld [vmem:[#allocation14 + $0x40] ss:$16 sps:$4 sm:$0xff]   ;;  %v4776_v8 = vld [vmem:[#allocation14 + $0x48] ss:$16 sps:$4 sm:$0xff]  }
 0x3ee   : > { %v1492_v33 = vadd.f32 0.5, %v1490_v12  ;;  %v1506_v20 = vmul.f32 %v3653_v35, %v1484_v9  ;;  %v3657_v54 = vpop.eup %3656  ;;  %v1499_v16 = vmul.f32 0.5, %v3655_v45  ;;  %v4788_v9 = vld [vmem:[#allocation14 + $0x60] ss:$16 sps:$4 sm:$0xff]   ;;  %v4790_v12 = vld [vmem:[#allocation14 + $0x68] ss:$16 sps:$4 sm:$0xff]  }
 0x3ef   : > { %v4721_v30 = vadd.f32 %v1505_v21, %v1503_v32  ;;  %v1500_v25 = vmul.f32 0.5, %v3657_v54  ;;  %v4778_v21 = vld [vmem:[#allocation14 + $0x64] ss:$16 sps:$4 sm:$0xff]   ;;  %v4782_v32 = vld [vmem:[#allocation14 + $0x6c] ss:$16 sps:$4 sm:$0xff]  }
 0x3f0   : > { %v1504_v3 = vmul.f32 %v1492_v33, %v4673_v24  ;;  %v1501_v29 = vadd.f32 0.5, %v1499_v16  ;;  %v3514_v24 = vld [vmem:[#allocation12 + $0x24] ss:$16 sps:$4 sm:$0xff]   ;;  %v4796_v33 = vld [vmem:[#allocation14 + $0x8c] ss:$16 sps:$4 sm:$0xff]  }
 0x3f1   : > { %3658 = vtanh.f32 %v4721_v30  ;;  %v1502_v27 = vadd.f32 0.5, %v1500_v25  ;;  %v4794_v35 = vld [vmem:[#allocation14 + $0x84] ss:$16 sps:$4 sm:$0xff]   ;;  %v4806_v54 = vld [vmem:[#allocation14 + $0xac] ss:$16 sps:$4 sm:$0xff]  }
 0x3f2   : > { %v4725_v11 = vadd.f32 %v1506_v20, %v1504_v3  ;;  %v4798_v20 = vld [vmem:[#allocation14 + $0x80] ss:$16 sps:$4 sm:$0xff]   ;;  %v4800_v3 = vld [vmem:[#allocation14 + $0x88] ss:$16 sps:$4 sm:$0xff]   ;;  %v4804_v45 = vld [vmem:[#allocation14 + $0xa4] ss:$16 sps:$4 sm:$0xff]  }
 0x3f3   : > { %v4812_v16 = vld [vmem:[#allocation14 + $0xa0] ss:$16 sps:$4 sm:$0xff]   ;;  %v4814_v25 = vld [vmem:[#allocation14 + $0xa8] ss:$16 sps:$4 sm:$0xff]  }
 0x3f4   : > { %3660 = vtanh.f32 %v4725_v11 }
 0x3fb   : > { %v3659_v10 = vpop.eup %3658 }
 0x3fc   : > { %v1511_v38 = vmul.f32 %v3659_v10, %v1501_v29  ;;  %v4818_v10 = vld [vmem:[#allocation14 + $0xc4] ss:$16 sps:$4 sm:$0xff]   ;;  %v4820_v29 = vld [vmem:[#allocation14 + $0xcc] ss:$16 sps:$4 sm:$0xff]  }
 0x3fe   : > { %v3661_v37 = vpop.eup %3660 }
 0x3ff   : > { %v1512_v39 = vmul.f32 %v3661_v37, %v1502_v27  ;;  %v4822_v27 = vld [vmem:[#allocation14 + $0xc0] ss:$16 sps:$4 sm:$0xff]   ;;  %v4824_v37 = vld [vmem:[#allocation14 + $0xc8] ss:$16 sps:$4 sm:$0xff]  }
 0x401   : > { %v4728_v42 = vpack.c.bf16 %v1512_v39, %v1511_v38  ;;  %v4828_v38 = vld [vmem:[#allocation14 + $0xe4] ss:$16 sps:$4 sm:$0xff]   ;;  %v4830_v39 = vld [vmem:[#allocation14 + $0xec] ss:$16 sps:$4 sm:$0xff]  }
 0x403   : > { %1564 = vmatmul.mubr.bf16.vlgmr.msra.gmra.mrb[28].mxu0 %v4728_v42  ;;  %1607 = vmatmul.mubr.bf16.vlgmr.msra.gmra.mrb[28].mxu1 %v4728_v42 }
 0x404   : > { %1887 = vmatpush1.bf16.msra.mxu0 %v3506_v40  ;;  %1960 = vmatpush1.bf16.msra.mxu1 %v3509_v41  ;;  %v4836_v40 = vld [vmem:[#allocation14 + $0xe0] ss:$16 sps:$4 sm:$0xff]   ;;  %v4838_v41 = vld [vmem:[#allocation14 + $0xe8] ss:$16 sps:$4 sm:$0xff]  }
 0x405   : > { %1888 = vmatprep.subr.bf16.mxu0 %v3514_v24  ;;  %1961 = vmatprep.subr.bf16.mxu1 %v3517_v43  ;;  %v5207_v43 = vld [vmem:[#allocation27_spill] sm:$0xff] }
 0x406   : > { %1918 = vmatprep.mubr.bf16.mxu0 %v5203_v28  ;;  %1991 = vmatprep.mubr.bf16.mxu1 %v5203_v28 }
 0x408   : > { %1889 = vmatpush1.bf16.msra.mxu0 %v3512_v44  ;;  %1962 = vmatpush1.bf16.msra.mxu1 %v3515_v46  ;;  %v1525_v44 = vunpack.c.l.bf16 %v5207_v43 }
 0x409   : > { %1890 = vmatprep.subr.bf16.mxu0 %v3520_v47  ;;  %1963 = vmatprep.subr.bf16.mxu1 %v3523_v48  ;;  %v5208_v48 = vld [vmem:[#allocation28_spill] sm:$0xff] }
 0x40c   : > { %1891 = vmatpush1.bf16.msra.mxu0 %v3518_v49  ;;  %1964 = vmatpush1.bf16.msra.mxu1 %v3521_v50  ;;  %v1524_v49 = vunpack.c.l.bf16 %v5208_v48  ;;  %v5209_v50 = vld [vmem:[#allocation29_spill] sm:$0xff] }
 0x40d   : > { %1892 = vmatprep.subr.bf16.mxu0 %v3526_v51  ;;  %1965 = vmatprep.subr.bf16.mxu1 %v3529_v52  ;;  %v1526_v51 = vunpack.c.l.bf16 %v5209_v50 }
 0x410   : > { %1893 = vmatpush1.bf16.msra.mxu0 %v3524_v53  ;;  %1966 = vmatpush1.bf16.msra.mxu1 %v3527_v55 }
 0x411   : > { %1894 = vmatprep.subr.bf16.mxu0 %v3532_v56  ;;  %1967 = vmatprep.subr.bf16.mxu1 %v3535_v57 }
 0x414   : > { %1895 = vmatpush1.bf16.msra.mxu0 %v3530_v58  ;;  %1968 = vmatpush1.bf16.msra.mxu1 %v3533_v59  ;;  %v1529_v58 = vunpack.c.h.bf16 %v5207_v43 }
 0x415   : > { %1896 = vmatprep.subr.bf16.mxu0 %v3538_v60  ;;  %1969 = vmatprep.subr.bf16.mxu1 %v3541_v61 }
 0x418   : > { %1897 = vmatpush1.bf16.msra.mxu0 %v3536_v62  ;;  %1970 = vmatpush1.bf16.msra.mxu1 %v3539_v0  ;;  %v1528_v0 = vunpack.c.h.bf16 %v5208_v48 }
 0x419   : > { %1898 = vmatprep.subr.bf16.mxu0 %v3544_v1  ;;  %1971 = vmatprep.subr.bf16.mxu1 %v3547_v2  ;;  %v1530_v1 = vunpack.c.h.bf16 %v5209_v50 }
 0x41c   : > { %1899 = vmatpush1.bf16.msra.mxu0 %v3542_v4  ;;  %1972 = vmatpush1.bf16.msra.mxu1 %v3545_v5 }
 0x41d   : > { %1900 = vmatprep.subr.bf16.mxu0 %v3550_v6  ;;  %1973 = vmatprep.subr.bf16.mxu1 %v3553_v36 }
 0x420   : > { %1901 = vmatpush1.bf16.msra.mxu0 %v3548_v22  ;;  %1974 = vmatpush1.bf16.msra.mxu1 %v3551_v23 }
 0x421   : > { %2318 = vmatprep.subr.bf16.mxu1 %v4748_v15 }
 0x423   : > { %1919 = vmatmul.mubr.bf16.vlgmr.msra.gmra.mrb[32].mxu0 %v4622_v26  ;;  %1992 = vmatmul.mubr.bf16.vlgmr.msra.gmra.mrb[32].mxu1 %v4622_v26  ;;  %v4746_v26 = vld [vmem:[#allocation14 + $0x4] ss:$16 sps:$4 sm:$0xff]  }
 0x424   : > { %1928 = vmatprep.mubr.bf16.mxu0 %v5203_v28  ;;  %2001 = vmatprep.mubr.bf16.mxu1 %v5203_v28 }
 0x425   : > { %2275 = vmatprep.subr.bf16.mxu0 %v4746_v26  ;;  %2319 = vmatpush1.bf16.msra.mxu1 %v4752_v31 }
 0x426   : > { %2276 = vmatpush1.bf16.msra.mxu0 %v4750_v14  ;;  %2320 = vmatprep.subr.bf16.mxu1 %v4760_v13 }
 0x429   : > { %2321 = vmatpush1.bf16.msra.mxu1 %v4764_v34 }
 0x42a   : > { %2322 = vmatprep.subr.bf16.mxu1 %v4772_v7 }
 0x42b   : > { %1929 = vmatmul.mubr.bf16.gmra.mrb[36].mxu0 %v4676_v18  ;;  %2002 = vmatmul.mubr.bf16.gmra.mrb[36].mxu1 %v4676_v18  ;;  %v4758_v18 = vld [vmem:[#allocation14 + $0x24] ss:$16 sps:$4 sm:$0xff]  }
 0x42c   : > { %1938 = vmatprep.mubr.bf16.mxu0 %v5203_v28  ;;  %2011 = vmatprep.mubr.bf16.mxu1 %v5203_v28 }
 0x42d   : > { %2277 = vmatprep.subr.bf16.mxu0 %v4758_v18  ;;  %2323 = vmatpush1.bf16.msra.mxu1 %v4776_v8 }
 0x42e   : > { %2278 = vmatpush1.bf16.msra.mxu0 %v4762_v19  ;;  %2324 = vmatprep.subr.bf16.mxu1 %v4782_v32 }
 0x42f   : > { %2279 = vmatprep.subr.bf16.mxu0 %v4770_v63 }
 0x431   : > { %2325 = vmatpush1.bf16.msra.mxu1 %v4790_v12 }
 0x432   : > { %2280 = vmatpush1.bf16.msra.mxu0 %v4774_v17  ;;  %2326 = vmatprep.subr.bf16.mxu1 %v4796_v33 }
 0x433   : > { %1939 = vmatmul.mubr.bf16.gmra.mrb[40].mxu0 %v4728_v42  ;;  %2012 = vmatmul.mubr.bf16.gmra.mrb[40].mxu1 %v4728_v42  ;;  %v5206_v42 = vld [vmem:[#allocation26_spill] sm:$0xff] }
 0x434   : > { %1948 = vmatprep.mubr.bf16.mxu0 %v5203_v28  ;;  %2021 = vmatprep.mubr.bf16.mxu1 %v5203_v28  ;;  %v1523_v24 = vunpack.c.l.bf16 %v5206_v42  ;;  %v1527_v57 = vunpack.c.h.bf16 %v5206_v42 }
 0x435   : > { %2281 = vmatprep.subr.bf16.mxu0 %v4778_v21  ;;  %2327 = vmatpush1.bf16.msra.mxu1 %v4800_v3 }
 0x436   : > { %2282 = vmatpush1.bf16.msra.mxu0 %v4788_v9  ;;  %2328 = vmatprep.subr.bf16.mxu1 %v4806_v54 }
 0x437   : > { %2283 = vmatprep.subr.bf16.mxu0 %v4794_v35 }
 0x439   : > { %2329 = vmatpush1.bf16.msra.mxu1 %v4814_v25 }
 0x43a   : > { %2284 = vmatpush1.bf16.msra.mxu0 %v4798_v20  ;;  %2330 = vmatprep.subr.bf16.mxu1 %v4820_v29 }
 0x43b   : > { %2285 = vmatprep.subr.bf16.mxu0 %v4804_v45 }
 0x43d   : > { %2331 = vmatpush1.bf16.msra.mxu1 %v4824_v37 }
 0x43e   : > { %2286 = vmatpush1.bf16.msra.mxu0 %v4812_v16  ;;  %2332 = vmatprep.subr.bf16.mxu1 %v4830_v39 }
 0x43f   : > { %2287 = vmatprep.subr.bf16.mxu0 %v4818_v10 }
 0x441   : > { %2333 = vmatpush1.bf16.msra.mxu1 %v4838_v41 }
 0x442   : > { %2288 = vmatpush1.bf16.msra.mxu0 %v4822_v27  ;;  %2461 = vmatprep.subr.bf16.mxu1 %v4748_v15 }
 0x443   : > { %2289 = vmatprep.subr.bf16.mxu0 %v4828_v38 }
 0x446   : > { %2290 = vmatpush1.bf16.msra.mxu0 %v4836_v40 }
 0x447   : > { %2418 = vmatprep.subr.bf16.mxu0 %v4746_v26 }
 0x4d6   : > { %v1565_v46 = vpop.f32.mrb[28].mxu0  ;;  %v1608_v47 = vpop.f32.mrb[28].mxu1 }
 0x4d7   : > { %v1617_v52 = vadd.f32 %v1565_v46, %v1523_v24  ;;  %v1619_v53 = vadd.f32 %v1608_v47, %v1525_v44  ;;  %v1567_v55 = vpop.f32.mrb[29].mxu0  ;;  %v1610_v56 = vpop.f32.mrb[29].mxu1 }
 0x4d8   : > { %v1618_v59 = vadd.f32 %v1567_v55, %v1524_v49  ;;  %v1620_v60 = vadd.f32 %v1610_v56, %v1526_v51  ;;  %v1569_v61 = vpop.f32.mrb[30].mxu0  ;;  %v1612_v62 = vpop.f32.mrb[30].mxu1 }
 0x4d9   : > { %v1625_v2 = vmul.f32 0.5, %v1617_v52  ;;  %v1621_v4 = vadd.f32 %v1569_v61, %v1527_v57  ;;  %v1623_v5 = vadd.f32 %v1612_v62, %v1529_v58  ;;  %v1571_v6 = vpop.f32.mrb[31].mxu0  ;;  %v1614_v36 = vpop.f32.mrb[31].mxu1 }
 0x4da   : > { %v1633_v22 = vmul.f32 0.5, %v1618_v59  ;;  %v1622_v23 = vadd.f32 %v1571_v6, %v1528_v0  ;;  %v1624_v24 = vadd.f32 %v1614_v36, %v1530_v1  ;;  %v1643_v44 = vmul.f32 0.5, %v1620_v60  ;;  %v1704_v36 = vld [vmem:[%s5210_s28] sm:$0xf] }
 0x4db   : > { %3662 = vtanh.f32 %v1625_v2  ;;  %v1626_v42 = vmul.f32 0.5, %v1621_v4 }
 0x4dc   : > { %3664 = vtanh.f32 %v1633_v22  ;;  %v1634_v43 = vmul.f32 0.5, %v1622_v23  ;;  %v1644_v50 = vmul.f32 0.5, %v1624_v24  ;;  %v5211_v22 = vld [vmem:[#allocation23_spill] sm:$0xff] }
 0x4dd   : > { %3666 = vtanh.f32 %v1626_v42  ;;  %v5212_v23 = vsub.s32 0, %v5211_v22 }
 0x4de   : > { %3668 = vtanh.f32 %v1619_v53 }
 0x4df   : > { %3670 = vtanh.f32 %v1634_v43  ;;  %v4859_v24 = vrot.slane %v1704_v36, %v5212_v23  ;;  %v5213_v43 = vsub.s32 2, %v5211_v22 }
 0x4e0   : > { %3672 = vtanh.f32 %v1623_v5 }
 0x4e1   : > { %3674 = vtanh.f32 %v1643_v44  ;;  %v4863_v44 = vrot.slane %v1704_v36, %v5213_v43 }
 0x4e2   : > { %3676 = vtanh.f32 %v1644_v50 }
 0x4e5   : > { %v3663_v46 = vpop.eup %3662 }
 0x4e6   : > { %v3665_v47 = vpop.eup %3664  ;;  %v1629_v48 = vmul.f32 0.5, %v3663_v46 }
 0x4e7   : > { %v1637_v49 = vmul.f32 0.5, %v3665_v47  ;;  %v3667_v51 = vpop.eup %3666 }
 0x4e8   : > { %v1631_v52 = vadd.f32 0.5, %v1629_v48  ;;  %v3669_v55 = vpop.eup %3668  ;;  %v1630_v57 = vmul.f32 0.5, %v3667_v51 }
 0x4e9   : > { %v1639_v56 = vadd.f32 0.5, %v1637_v49  ;;  %v3671_v58 = vpop.eup %3670  ;;  %v5215_v49 = vsub.s32 3, %v5211_v22 }
 0x4ea   : > { %v1653_v59 = vmul.f32 %v3669_v55, %v1631_v52  ;;  %v1632_v62 = vadd.f32 0.5, %v1630_v57  ;;  %v1638_v53 = vmul.f32 0.5, %v3671_v58  ;;  %v3673_v0 = vpop.eup %3672 }
 0x4eb   : > { %v1651_v61 = vmul.f32 %v1639_v56, %v4721_v30  ;;  %v3675_v5 = vpop.eup %3674  ;;  %v4871_v50 = vrot.slane %v1704_v36, %v5215_v49 }
 0x4ec   : > { %v1640_v1 = vadd.f32 0.5, %v1638_v53  ;;  %v1654_v2 = vmul.f32 %v3673_v0, %v1632_v62  ;;  %v1647_v30 = vmul.f32 0.5, %v3675_v5  ;;  %v3677_v42 = vpop.eup %3676 }
 0x4ed   : > { %v1655_v60 = vadd.f32 %v1653_v59, %v1651_v61  ;;  %v1648_v56 = vmul.f32 0.5, %v3677_v42 }
 0x4ee   : > { %v1652_v4 = vmul.f32 %v1640_v1, %v4725_v11  ;;  %v5214_v11 = vsub.s32 1, %v5211_v22  ;;  %v1649_v55 = vadd.f32 0.5, %v1647_v30 }
 0x4ef   : > { %3678 = vtanh.f32 %v1655_v60  ;;  %1666 = vst [vmem:[#allocation5] sm:$0xff] %v1655_v60  ;;  %v1650_v23 = vadd.f32 0.5, %v1648_v56 }
 0x4f0   : > { %v1656_v6 = vadd.f32 %v1654_v2, %v1652_v4  ;;  %v4867_v46 = vrot.slane %v1704_v36, %v5214_v11 }
 0x4f2   : > { %3680 = vtanh.f32 %v1656_v6  ;;  %1667 = vst [vmem:[#allocation5 + $0x8] sm:$0xff] %v1656_v6 }
 0x4f6   : > { %v1920_v47 = vpop.f32.mrb[32].mxu0  ;;  %v1993_v48 = vpop.f32.mrb[32].mxu1 }
 0x4f7   : > { %v1922_v51 = vpop.f32.mrb[33].mxu0  ;;  %v1995_v52 = vpop.f32.mrb[33].mxu1  ;;  %v1921_v57 = vadd.f32 %v1920_v47, %v4859_v24  ;;  %v1994_v62 = vadd.f32 %v1993_v48, %v4863_v44 }
 0x4f8   : > { %v1924_v58 = vpop.f32.mrb[34].mxu0  ;;  %v1997_v59 = vpop.f32.mrb[34].mxu1  ;;  %v1923_v53 = vadd.f32 %v1922_v51, %v4867_v46  ;;  %v1996_v4 = vadd.f32 %v1995_v52, %v4871_v50 }
 0x4f9   : > { %v3679_v61 = vpop.eup %3678  ;;  %v1925_v0 = vadd.f32 %v1924_v58, %v4859_v24  ;;  %v1998_v60 = vadd.f32 %v1997_v59, %v4863_v44  ;;  %v1926_v1 = vpop.f32.mrb[35].mxu0 }
 0x4fa   : > { %v1999_v2 = vpop.f32.mrb[35].mxu1  ;;  %v1927_v5 = vadd.f32 %v1926_v1, %v4867_v46  ;;  %v1659_v36 = vmul.f32 %v3679_v61, %v1649_v55 }
 0x4fb   : > { %v2000_v6 = vadd.f32 %v1999_v2, %v4871_v50  ;;  %v4881_v30 = vpack.c.bf16 %v1925_v0, %v1921_v57  ;;  %v4883_v22 = vpack.c.bf16 %v1998_v60, %v1994_v62 }
 0x4fc   : > { %v4885_v42 = vpack.c.bf16 %v1927_v5, %v1923_v53  ;;  %1664 = vst [vmem:[#allocation4] sm:$0xff] %v1659_v36  ;;  %v3681_v11 = vpop.eup %3680 }
 0x4fd   : > { %v4887_v43 = vpack.c.bf16 %v2000_v6, %v1996_v4  ;;  %v1660_v49 = vmul.f32 %v3681_v11, %v1650_v23  ;;  %v2098_v23 = vld [vmem:[#allocation4 + $0x18] sm:$0xff] }
 0x4fe   : > { %v1930_v47 = vpop.f32.mrb[36].mxu0  ;;  %v2003_v48 = vpop.f32.mrb[36].mxu1 }
 0x4ff   : > { %v1932_v51 = vpop.f32.mrb[37].mxu0  ;;  %v2005_v52 = vpop.f32.mrb[37].mxu1  ;;  %v1931_v58 = vadd.f32 %v1930_v47, %v4859_v24  ;;  %v1661_v57 = vpack.c.bf16 %v1660_v49, %v1659_v36  ;;  %1665 = vst [vmem:[#allocation4 + $0x8] sm:$0xff] %v1660_v49  ;;  %v2004_v61 = vadd.f32 %v2003_v48, %v4863_v44  ;;  %v2097_v36 = vld [vmem:[#allocation4 + $0x10] sm:$0xff] }
 0x500   : > { %v1934_v59 = vpop.f32.mrb[38].mxu0  ;;  %v2007_v55 = vpop.f32.mrb[38].mxu1  ;;  %v1933_v56 = vadd.f32 %v1932_v51, %v4867_v46  ;;  %v2006_v1 = vadd.f32 %v2005_v52, %v4871_v50  ;;  %v2114_v51 = vpack.c.bf16 %v2098_v23, %v2097_v36 }
 0x501   : > { %v1935_v62 = vadd.f32 %v1934_v59, %v4859_v24  ;;  %v2008_v53 = vadd.f32 %v2007_v55, %v4863_v44  ;;  %v1936_v0 = vpop.f32.mrb[39].mxu0  ;;  %v2009_v60 = vpop.f32.mrb[39].mxu1  ;;  %1949 = vmatmul.mubr.bf16.gmra.mrb[44].mxu0 %v1661_v57  ;;  %2022 = vmatmul.mubr.bf16.gmra.mrb[44].mxu1 %v1661_v57 }
 0x502   : > { %v1937_v2 = vadd.f32 %v1936_v0, %v4867_v46  ;;  %v2010_v4 = vadd.f32 %v2009_v60, %v4871_v50  ;;  %2307 = vmatprep.mubr.bf16.mxu0 %v5203_v28  ;;  %2350 = vmatprep.mubr.bf16.mxu1 %v5203_v28 }
 0x503   : > { %v4897_v5 = vpack.c.bf16 %v1935_v62, %v1931_v58  ;;  %v4899_v6 = vpack.c.bf16 %v2008_v53, %v2004_v61 }
 0x504   : > { %v4903_v11 = vpack.c.bf16 %v1937_v2, %v1933_v56  ;;  %v4905_v47 = vpack.c.bf16 %v2010_v4, %v2006_v1 }
 0x506   : > { %v1940_v48 = vpop.f32.mrb[40].mxu0  ;;  %v2013_v49 = vpop.f32.mrb[40].mxu1 }
 0x507   : > { %v1942_v52 = vpop.f32.mrb[41].mxu0  ;;  %v2015_v59 = vpop.f32.mrb[41].mxu1  ;;  %v1941_v58 = vadd.f32 %v1940_v48, %v4859_v24  ;;  %v2014_v61 = vadd.f32 %v2013_v49, %v4863_v44 }
 0x508   : > { %v1944_v55 = vpop.f32.mrb[42].mxu0  ;;  %v2017_v57 = vpop.f32.mrb[42].mxu1  ;;  %v1943_v62 = vadd.f32 %v1942_v52, %v4867_v46  ;;  %v2016_v1 = vadd.f32 %v2015_v59, %v4871_v50 }
 0x509   : > { %v1945_v53 = vadd.f32 %v1944_v55, %v4859_v24  ;;  %v2018_v56 = vadd.f32 %v2017_v57, %v4863_v44  ;;  %v1946_v0 = vpop.f32.mrb[43].mxu0  ;;  %v2019_v60 = vpop.f32.mrb[43].mxu1  ;;  %2308 = vmatmul.mubr.bf16.vlgmr.msra.gmra.mrb[48].mxu0 %v2114_v51  ;;  %2351 = vmatmul.mubr.bf16.vlgmr.msra.gmra.mrb[48].mxu1 %v2114_v51 }
 0x50a   : > { %v1947_v2 = vadd.f32 %v1946_v0, %v4867_v46  ;;  %v2020_v4 = vadd.f32 %v2019_v60, %v4871_v50  ;;  %2419 = vmatpush1.bf16.msra.mxu0 %v4750_v14  ;;  %2462 = vmatpush1.bf16.msra.mxu1 %v4752_v31 }
 0x50b   : > { %v4915_v36 = vpack.c.bf16 %v1945_v53, %v1941_v58  ;;  %v4917_v23 = vpack.c.bf16 %v2018_v56, %v2014_v61  ;;  %2420 = vmatprep.subr.bf16.mxu0 %v4758_v18  ;;  %2463 = vmatprep.subr.bf16.mxu1 %v4760_v13 }
 0x50c   : > { %v4921_v48 = vpack.c.bf16 %v1947_v2, %v1943_v62  ;;  %v4923_v49 = vpack.c.bf16 %v2020_v4, %v2016_v1  ;;  %2450 = vmatprep.mubr.bf16.mxu0 %v5203_v28  ;;  %2493 = vmatprep.mubr.bf16.mxu1 %v5203_v28 }
 0x50d   : > { %5216 = vst [vmem:[#allocation24_spill] sm:$0xff] %v4917_v23 }
 0x50e   : > { %5217 = vst [vmem:[#allocation25_spill] sm:$0xff] %v4921_v48  ;;  %5218 = vst [vmem:[#allocation26_spill] sm:$0xff] %v4923_v49  ;;  %2421 = vmatpush1.bf16.msra.mxu0 %v4762_v19  ;;  %2464 = vmatpush1.bf16.msra.mxu1 %v4764_v34 }
 0x50f   : > { %2422 = vmatprep.subr.bf16.mxu0 %v4770_v63  ;;  %2465 = vmatprep.subr.bf16.mxu1 %v4772_v7 }
 0x512   : > { %2423 = vmatpush1.bf16.msra.mxu0 %v4774_v17  ;;  %2466 = vmatpush1.bf16.msra.mxu1 %v4776_v8 }
 0x513   : > { %2424 = vmatprep.subr.bf16.mxu0 %v4778_v21  ;;  %2467 = vmatprep.subr.bf16.mxu1 %v4782_v32 }
 0x516   : > { %2425 = vmatpush1.bf16.msra.mxu0 %v4788_v9  ;;  %2468 = vmatpush1.bf16.msra.mxu1 %v4790_v12 }
 0x517   : > { %2426 = vmatprep.subr.bf16.mxu0 %v4794_v35  ;;  %2469 = vmatprep.subr.bf16.mxu1 %v4796_v33 }
 0x51a   : > { %2427 = vmatpush1.bf16.msra.mxu0 %v4798_v20  ;;  %2470 = vmatpush1.bf16.msra.mxu1 %v4800_v3 }
 0x51b   : > { %2428 = vmatprep.subr.bf16.mxu0 %v4804_v45  ;;  %2471 = vmatprep.subr.bf16.mxu1 %v4806_v54 }
 0x51e   : > { %2429 = vmatpush1.bf16.msra.mxu0 %v4812_v16  ;;  %2472 = vmatpush1.bf16.msra.mxu1 %v4814_v25 }
 0x51f   : > { %2430 = vmatprep.subr.bf16.mxu0 %v4818_v10  ;;  %2473 = vmatprep.subr.bf16.mxu1 %v4820_v29 }
 0x522   : > { %2431 = vmatpush1.bf16.msra.mxu0 %v4822_v27  ;;  %2474 = vmatpush1.bf16.msra.mxu1 %v4824_v37 }
 0x523   : > { %2432 = vmatprep.subr.bf16.mxu0 %v4828_v38  ;;  %2475 = vmatprep.subr.bf16.mxu1 %v4830_v39 }
 0x526   : > { %2433 = vmatpush1.bf16.msra.mxu0 %v4836_v40  ;;  %2476 = vmatpush1.bf16.msra.mxu1 %v4838_v41 }
 0x527   : > { %2561 = vmatprep.subr.bf16.mxu0 %v4746_v26  ;;  %2604 = vmatprep.subr.bf16.mxu1 %v4748_v15 }
 0x5d4   : > { %v1950_v51 = vpop.f32.mrb[44].mxu0  ;;  %v2023_v52 = vpop.f32.mrb[44].mxu1 }
 0x5d5   : > { %v1952_v59 = vpop.f32.mrb[45].mxu0  ;;  %v2025_v58 = vpop.f32.mrb[45].mxu1  ;;  %v1951_v61 = vadd.f32 %v1950_v51, %v4859_v24  ;;  %v2024_v62 = vadd.f32 %v2023_v52, %v4863_v44 }
 0x5d6   : > { %v1954_v55 = vpop.f32.mrb[46].mxu0  ;;  %v2027_v57 = vpop.f32.mrb[46].mxu1  ;;  %v1953_v1 = vadd.f32 %v1952_v59, %v4867_v46  ;;  %v2026_v2 = vadd.f32 %v2025_v58, %v4871_v50  ;;  %v2107_v58 = vunpack.c.l.bf16 %v4885_v42 }
 0x5d7   : > { %v1955_v53 = vadd.f32 %v1954_v55, %v4859_v24  ;;  %v2028_v56 = vadd.f32 %v2027_v57, %v4863_v44  ;;  %v1956_v0 = vpop.f32.mrb[47].mxu0  ;;  %v2029_v60 = vpop.f32.mrb[47].mxu1  ;;  %v2106_v24 = vunpack.c.l.bf16 %v4881_v30  ;;  %v2108_v44 = vunpack.c.l.bf16 %v4883_v22 }
 0x5d8   : > { %v1957_v4 = vadd.f32 %v1956_v0, %v4867_v46  ;;  %v2030_v49 = vadd.f32 %v2029_v60, %v4871_v50  ;;  %v2109_v46 = vunpack.c.l.bf16 %v4887_v43 }
 0x5d9   : > { %v4965_v48 = vpack.c.bf16 %v1955_v53, %v1951_v61  ;;  %v4967_v23 = vpack.c.bf16 %v2028_v56, %v2024_v62  ;;  %v2110_v62 = vunpack.c.h.bf16 %v4881_v30  ;;  %v2112_v56 = vunpack.c.h.bf16 %v4883_v22 }
 0x5da   : > { %v4969_v51 = vpack.c.bf16 %v1957_v4, %v1953_v1  ;;  %v4971_v52 = vpack.c.bf16 %v2030_v49, %v2026_v2  ;;  %v2111_v2 = vunpack.c.h.bf16 %v4885_v42  ;;  %v2113_v4 = vunpack.c.h.bf16 %v4887_v43 }
 0x5db   : > { %5219 = vst [vmem:[#allocation27_spill] sm:$0xff] %v4965_v48  ;;  %5220 = vst [vmem:[#allocation28_spill] sm:$0xff] %v4967_v23 }
 0x5dc   : > { %5221 = vst [vmem:[#allocation29_spill] sm:$0xff] %v4969_v51  ;;  %5222 = vst [vmem:[#allocation23_spill] sm:$0xff] %v4971_v52  ;;  %v2309_v55 = vpop.f32.mrb[48].mxu0  ;;  %v2352_v59 = vpop.f32.mrb[48].mxu1 }
 0x5dd   : > { %v2361_v57 = vadd.f32 %v2309_v55, %v2106_v24  ;;  %v2363_v50 = vadd.f32 %v2352_v59, %v2108_v44  ;;  %v2311_v61 = vpop.f32.mrb[49].mxu0  ;;  %v2354_v53 = vpop.f32.mrb[49].mxu1 }
 0x5de   : > { %v2362_v49 = vadd.f32 %v2311_v61, %v2107_v58  ;;  %v2364_v0 = vadd.f32 %v2354_v53, %v2109_v46  ;;  %v2313_v60 = vpop.f32.mrb[50].mxu0  ;;  %v2356_v1 = vpop.f32.mrb[50].mxu1 }
 0x5df   : > { %v2369_v52 = vmul.f32 0.5, %v2361_v57  ;;  %v2365_v51 = vadd.f32 %v2313_v60, %v2110_v62  ;;  %v2367_v23 = vadd.f32 %v2356_v1, %v2112_v56  ;;  %v2315_v48 = vpop.f32.mrb[51].mxu0  ;;  %v2358_v24 = vpop.f32.mrb[51].mxu1  ;;  %v2100_v56 = vld [vmem:[#allocation5 + $0x10] sm:$0xff] }
 0x5e0   : > { %v2377_v44 = vmul.f32 0.5, %v2362_v49  ;;  %v2366_v55 = vadd.f32 %v2315_v48, %v2111_v2  ;;  %v2368_v59 = vadd.f32 %v2358_v24, %v2113_v4  ;;  %v2387_v43 = vmul.f32 0.5, %v2364_v0  ;;  %v2101_v4 = vld [vmem:[#allocation5 + $0x18] sm:$0xff] }
 0x5e1   : > { %3682 = vtanh.f32 %v2369_v52  ;;  %v2370_v30 = vmul.f32 0.5, %v2365_v51 }
 0x5e2   : > { %3684 = vtanh.f32 %v2377_v44  ;;  %v2378_v22 = vmul.f32 0.5, %v2366_v55  ;;  %v2388_v61 = vmul.f32 0.5, %v2368_v59 }
 0x5e3   : > { %3686 = vtanh.f32 %v2370_v30 }
 0x5e4   : > { %3688 = vtanh.f32 %v2363_v50 }
 0x5e5   : > { %3690 = vtanh.f32 %v2378_v22 }
 0x5e6   : > { %3692 = vtanh.f32 %v2367_v23 }
 0x5e7   : > { %3694 = vtanh.f32 %v2387_v43 }
 0x5e8   : > { %3696 = vtanh.f32 %v2388_v61 }
 0x5eb   : > { %v3683_v58 = vpop.eup %3682 }
 0x5ec   : > { %v3685_v42 = vpop.eup %3684  ;;  %v2373_v46 = vmul.f32 0.5, %v3683_v58 }
 0x5ed   : > { %v2381_v57 = vmul.f32 0.5, %v3685_v42  ;;  %v3687_v53 = vpop.eup %3686 }
 0x5ee   : > { %v2375_v62 = vadd.f32 0.5, %v2373_v46  ;;  %v3689_v49 = vpop.eup %3688  ;;  %v2374_v60 = vmul.f32 0.5, %v3687_v53 }
 0x5ef   : > { %v2383_v48 = vadd.f32 0.5, %v2381_v57  ;;  %v3691_v52 = vpop.eup %3690 }
 0x5f0   : > { %v2397_v51 = vmul.f32 %v3689_v49, %v2375_v62  ;;  %v2376_v2 = vadd.f32 0.5, %v2374_v60  ;;  %v2382_v50 = vmul.f32 0.5, %v3691_v52  ;;  %v3693_v23 = vpop.eup %3692  ;;  %v2409_v49 = vunpack.c.l.bf16 %v4897_v5 }
 0x5f1   : > { %v2395_v1 = vmul.f32 %v2383_v48, %v2100_v56  ;;  %v3695_v30 = vpop.eup %3694  ;;  %v2411_v48 = vunpack.c.l.bf16 %v4899_v6 }
 0x5f2   : > { %v2384_v0 = vadd.f32 0.5, %v2382_v50  ;;  %v2398_v44 = vmul.f32 %v3693_v23, %v2376_v2  ;;  %v3697_v22 = vpop.eup %3696  ;;  %v2391_v58 = vmul.f32 0.5, %v3695_v30 }
 0x5f3   : > { %v4981_v24 = vadd.f32 %v2397_v51, %v2395_v1  ;;  %v2392_v42 = vmul.f32 0.5, %v3697_v22  ;;  %v2410_v51 = vunpack.c.l.bf16 %v4903_v11  ;;  %v2412_v1 = vunpack.c.l.bf16 %v4905_v47 }
 0x5f4   : > { %v2396_v55 = vmul.f32 %v2384_v0, %v2101_v4  ;;  %v2393_v43 = vadd.f32 0.5, %v2391_v58  ;;  %v2413_v0 = vunpack.c.h.bf16 %v4897_v5  ;;  %v2414_v22 = vunpack.c.h.bf16 %v4903_v11 }
 0x5f5   : > { %3698 = vtanh.f32 %v4981_v24  ;;  %v2394_v57 = vadd.f32 0.5, %v2392_v42  ;;  %v2416_v58 = vunpack.c.h.bf16 %v4905_v47 }
 0x5f6   : > { %v4984_v59 = vadd.f32 %v2398_v44, %v2396_v55 }
 0x5f8   : > { %3700 = vtanh.f32 %v4984_v59 }
 0x5ff   : > { %v3699_v46 = vpop.eup %3698 }
 0x600   : > { %v2403_v53 = vmul.f32 %v3699_v46, %v2393_v43 }
 0x602   : > { %v3701_v61 = vpop.eup %3700 }
 0x603   : > { %v2404_v62 = vmul.f32 %v3701_v61, %v2394_v57 }
 0x605   : > { %v2417_v56 = vpack.c.bf16 %v2404_v62, %v2403_v53 }
 0x607   : > { %2451 = vmatmul.mubr.bf16.vlgmr.msra.gmra.mrb[52].mxu0 %v2417_v56  ;;  %2494 = vmatmul.mubr.bf16.vlgmr.msra.gmra.mrb[52].mxu1 %v2417_v56 }
 0x608   : > { %2562 = vmatpush1.bf16.msra.mxu0 %v4750_v14  ;;  %2605 = vmatpush1.bf16.msra.mxu1 %v4752_v31 }
 0x609   : > { %2563 = vmatprep.subr.bf16.mxu0 %v4758_v18  ;;  %2606 = vmatprep.subr.bf16.mxu1 %v4760_v13 }
 0x60a   : > { %2593 = vmatprep.mubr.bf16.mxu0 %v5203_v28  ;;  %2636 = vmatprep.mubr.bf16.mxu1 %v5203_v28 }
 0x60c   : > { %2564 = vmatpush1.bf16.msra.mxu0 %v4762_v19  ;;  %2607 = vmatpush1.bf16.msra.mxu1 %v4764_v34 }
 0x60d   : > { %2565 = vmatprep.subr.bf16.mxu0 %v4770_v63  ;;  %2608 = vmatprep.subr.bf16.mxu1 %v4772_v7 }
 0x610   : > { %2566 = vmatpush1.bf16.msra.mxu0 %v4774_v17  ;;  %2609 = vmatpush1.bf16.msra.mxu1 %v4776_v8 }
 0x611   : > { %2567 = vmatprep.subr.bf16.mxu0 %v4778_v21  ;;  %2610 = vmatprep.subr.bf16.mxu1 %v4782_v32 }
 0x614   : > { %2568 = vmatpush1.bf16.msra.mxu0 %v4788_v9  ;;  %2611 = vmatpush1.bf16.msra.mxu1 %v4790_v12 }
 0x615   : > { %2569 = vmatprep.subr.bf16.mxu0 %v4794_v35  ;;  %2612 = vmatprep.subr.bf16.mxu1 %v4796_v33 }
 0x618   : > { %2570 = vmatpush1.bf16.msra.mxu0 %v4798_v20  ;;  %2613 = vmatpush1.bf16.msra.mxu1 %v4800_v3 }
 0x619   : > { %2571 = vmatprep.subr.bf16.mxu0 %v4804_v45  ;;  %2614 = vmatprep.subr.bf16.mxu1 %v4806_v54 }
 0x61c   : > { %2572 = vmatpush1.bf16.msra.mxu0 %v4812_v16  ;;  %2615 = vmatpush1.bf16.msra.mxu1 %v4814_v25 }
 0x61d   : > { %2573 = vmatprep.subr.bf16.mxu0 %v4818_v10  ;;  %2616 = vmatprep.subr.bf16.mxu1 %v4820_v29 }
 0x620   : > { %2574 = vmatpush1.bf16.msra.mxu0 %v4822_v27  ;;  %2617 = vmatpush1.bf16.msra.mxu1 %v4824_v37 }
 0x621   : > { %2575 = vmatprep.subr.bf16.mxu0 %v4828_v38  ;;  %2618 = vmatprep.subr.bf16.mxu1 %v4830_v39 }
 0x624   : > { %2576 = vmatpush1.bf16.msra.mxu0 %v4836_v40  ;;  %2619 = vmatpush1.bf16.msra.mxu1 %v4838_v41 }
 0x625   : > { %2704 = vmatprep.subr.bf16.mxu0 %v4746_v26  ;;  %2747 = vmatprep.subr.bf16.mxu1 %v4748_v15  ;;  %v2415_v26 = vunpack.c.h.bf16 %v4899_v6 }
 0x6da   : > { %v2452_v60 = vpop.f32.mrb[52].mxu0  ;;  %v2495_v52 = vpop.f32.mrb[52].mxu1 }
 0x6db   : > { %v2504_v2 = vadd.f32 %v2452_v60, %v2409_v49  ;;  %v2506_v50 = vadd.f32 %v2495_v52, %v2411_v48  ;;  %v2454_v23 = vpop.f32.mrb[53].mxu0  ;;  %v2497_v4 = vpop.f32.mrb[53].mxu1 }
 0x6dc   : > { %v2505_v44 = vadd.f32 %v2454_v23, %v2410_v51  ;;  %v2507_v15 = vadd.f32 %v2497_v4, %v2412_v1  ;;  %v2456_v55 = vpop.f32.mrb[54].mxu0  ;;  %v2499_v30 = vpop.f32.mrb[54].mxu1 }
 0x6dd   : > { %v2512_v42 = vmul.f32 0.5, %v2504_v2  ;;  %v2508_v46 = vadd.f32 %v2456_v55, %v2413_v0  ;;  %v2510_v43 = vadd.f32 %v2499_v30, %v2415_v26  ;;  %v2458_v57 = vpop.f32.mrb[55].mxu0  ;;  %v2501_v61 = vpop.f32.mrb[55].mxu1 }
 0x6de   : > { %v2520_v53 = vmul.f32 0.5, %v2505_v44  ;;  %v2509_v62 = vadd.f32 %v2458_v57, %v2414_v22  ;;  %v2511_v56 = vadd.f32 %v2501_v61, %v2416_v58  ;;  %v2530_v47 = vmul.f32 0.5, %v2507_v15 }
 0x6df   : > { %3702 = vtanh.f32 %v2512_v42  ;;  %v2513_v5 = vmul.f32 0.5, %v2508_v46 }
 0x6e0   : > { %3704 = vtanh.f32 %v2520_v53  ;;  %v2521_v6 = vmul.f32 0.5, %v2509_v62  ;;  %v2531_v52 = vmul.f32 0.5, %v2511_v56 }
 0x6e1   : > { %3706 = vtanh.f32 %v2513_v5 }
 0x6e2   : > { %3708 = vtanh.f32 %v2506_v50 }
 0x6e3   : > { %3710 = vtanh.f32 %v2521_v6 }
 0x6e4   : > { %3712 = vtanh.f32 %v2510_v43 }
 0x6e5   : > { %3714 = vtanh.f32 %v2530_v47 }
 0x6e6   : > { %3716 = vtanh.f32 %v2531_v52 }
 0x6e9   : > { %v3703_v49 = vpop.eup %3702 }
 0x6ea   : > { %v3705_v11 = vpop.eup %3704  ;;  %v2516_v48 = vmul.f32 0.5, %v3703_v49 }
 0x6eb   : > { %v2524_v60 = vmul.f32 0.5, %v3705_v11  ;;  %v3707_v51 = vpop.eup %3706 }
 0x6ec   : > { %v2518_v1 = vadd.f32 0.5, %v2516_v48  ;;  %v3709_v2 = vpop.eup %3708  ;;  %v2517_v4 = vmul.f32 0.5, %v3707_v51 }
 0x6ed   : > { %v2526_v23 = vadd.f32 0.5, %v2524_v60  ;;  %v3711_v0 = vpop.eup %3710 }
 0x6ee   : > { %v2540_v26 = vmul.f32 %v3709_v2, %v2518_v1  ;;  %v2519_v55 = vadd.f32 0.5, %v2517_v4  ;;  %v2525_v50 = vmul.f32 0.5, %v3711_v0  ;;  %v3713_v30 = vpop.eup %3712 }
 0x6ef   : > { %v2538_v44 = vmul.f32 %v2526_v23, %v4981_v24  ;;  %v3715_v43 = vpop.eup %3714 }
 0x6f0   : > { %v2527_v58 = vadd.f32 0.5, %v2525_v50  ;;  %v2541_v15 = vmul.f32 %v3713_v30, %v2519_v55  ;;  %v3717_v57 = vpop.eup %3716  ;;  %v2534_v61 = vmul.f32 0.5, %v3715_v43 }
 0x6f1   : > { %v5030_v22 = vadd.f32 %v2540_v26, %v2538_v44  ;;  %v2535_v24 = vmul.f32 0.5, %v3717_v57 }
 0x6f2   : > { %v2539_v42 = vmul.f32 %v2527_v58, %v4984_v59  ;;  %v2536_v62 = vadd.f32 0.5, %v2534_v61 }
 0x6f3   : > { %3718 = vtanh.f32 %v5030_v22  ;;  %v2537_v56 = vadd.f32 0.5, %v2535_v24 }
 0x6f4   : > { %v5034_v46 = vadd.f32 %v2541_v15, %v2539_v42 }
 0x6f6   : > { %3720 = vtanh.f32 %v5034_v46 }
 0x6fd   : > { %v3719_v53 = vpop.eup %3718 }
 0x6fe   : > { %v2546_v6 = vmul.f32 %v3719_v53, %v2536_v62 }
 0x700   : > { %v3721_v5 = vpop.eup %3720 }
 0x701   : > { %v2547_v49 = vmul.f32 %v3721_v5, %v2537_v56 }
 0x703   : > { %v2560_v11 = vpack.c.bf16 %v2547_v49, %v2546_v6 }
 0x705   : > { %2594 = vmatmul.mubr.bf16.vlgmr.msra.gmra.mrb[56].mxu0 %v2560_v11  ;;  %2637 = vmatmul.mubr.bf16.vlgmr.msra.gmra.mrb[56].mxu1 %v2560_v11 }
 0x706   : > { %2705 = vmatpush1.bf16.msra.mxu0 %v4750_v14  ;;  %2748 = vmatpush1.bf16.msra.mxu1 %v4752_v31  ;;  %v5223_v14 = vld [vmem:[#allocation24_spill] sm:$0xff] }
 0x707   : > { %2706 = vmatprep.subr.bf16.mxu0 %v4758_v18  ;;  %2749 = vmatprep.subr.bf16.mxu1 %v4760_v13  ;;  %v2554_v31 = vunpack.c.l.bf16 %v5223_v14 }
 0x708   : > { %2736 = vmatprep.mubr.bf16.mxu0 %v5203_v28  ;;  %2779 = vmatprep.mubr.bf16.mxu1 %v5203_v28  ;;  %v2552_v28 = vunpack.c.l.bf16 %v4915_v36 }
 0x70a   : > { %2707 = vmatpush1.bf16.msra.mxu0 %v4762_v19  ;;  %2750 = vmatpush1.bf16.msra.mxu1 %v4764_v34  ;;  %v5224_v19 = vld [vmem:[#allocation25_spill] sm:$0xff] }
 0x70b   : > { %2708 = vmatprep.subr.bf16.mxu0 %v4770_v63  ;;  %2751 = vmatprep.subr.bf16.mxu1 %v4772_v7  ;;  %v2553_v34 = vunpack.c.l.bf16 %v5224_v19  ;;  %v5225_v63 = vld [vmem:[#allocation26_spill] sm:$0xff] }
 0x70c   : > { %v2555_v7 = vunpack.c.l.bf16 %v5225_v63 }
 0x70e   : > { %2709 = vmatpush1.bf16.msra.mxu0 %v4774_v17  ;;  %2752 = vmatpush1.bf16.msra.mxu1 %v4776_v8 }
 0x70f   : > { %2710 = vmatprep.subr.bf16.mxu0 %v4778_v21  ;;  %2753 = vmatprep.subr.bf16.mxu1 %v4782_v32 }
 0x712   : > { %2711 = vmatpush1.bf16.msra.mxu0 %v4788_v9  ;;  %2754 = vmatpush1.bf16.msra.mxu1 %v4790_v12  ;;  %v2556_v9 = vunpack.c.h.bf16 %v4915_v36  ;;  %v2558_v12 = vunpack.c.h.bf16 %v5223_v14 }
 0x713   : > { %2712 = vmatprep.subr.bf16.mxu0 %v4794_v35  ;;  %2755 = vmatprep.subr.bf16.mxu1 %v4796_v33 }
 0x716   : > { %2713 = vmatpush1.bf16.msra.mxu0 %v4798_v20  ;;  %2756 = vmatpush1.bf16.msra.mxu1 %v4800_v3 }
 0x717   : > { %2714 = vmatprep.subr.bf16.mxu0 %v4804_v45  ;;  %2757 = vmatprep.subr.bf16.mxu1 %v4806_v54  ;;  %v2557_v45 = vunpack.c.h.bf16 %v5224_v19  ;;  %v2559_v54 = vunpack.c.h.bf16 %v5225_v63 }
 0x71a   : > { %2715 = vmatpush1.bf16.msra.mxu0 %v4812_v16  ;;  %2758 = vmatpush1.bf16.msra.mxu1 %v4814_v25 }
 0x71b   : > { %2716 = vmatprep.subr.bf16.mxu0 %v4818_v10  ;;  %2759 = vmatprep.subr.bf16.mxu1 %v4820_v29 }
 0x71e   : > { %2717 = vmatpush1.bf16.msra.mxu0 %v4822_v27  ;;  %2760 = vmatpush1.bf16.msra.mxu1 %v4824_v37 }
 0x71f   : > { %2718 = vmatprep.subr.bf16.mxu0 %v4828_v38  ;;  %2761 = vmatprep.subr.bf16.mxu1 %v4830_v39 }
 0x722   : > { %2719 = vmatpush1.bf16.msra.mxu0 %v4836_v40  ;;  %2762 = vmatpush1.bf16.msra.mxu1 %v4838_v41 }
 0x7d8   : > { %v2595_v18 = vpop.f32.mrb[56].mxu0  ;;  %v2638_v13 = vpop.f32.mrb[56].mxu1 }
 0x7d9   : > { %v2647_v17 = vadd.f32 %v2595_v18, %v2552_v28  ;;  %v2649_v8 = vadd.f32 %v2638_v13, %v2554_v31  ;;  %v2597_v21 = vpop.f32.mrb[57].mxu0  ;;  %v2640_v32 = vpop.f32.mrb[57].mxu1  ;;  %v5227_v31 = vld [vmem:[#allocation28_spill] sm:$0xff] }
 0x7da   : > { %v2648_v35 = vadd.f32 %v2597_v21, %v2553_v34  ;;  %v2650_v33 = vadd.f32 %v2640_v32, %v2555_v7  ;;  %v2599_v20 = vpop.f32.mrb[58].mxu0  ;;  %v2642_v3 = vpop.f32.mrb[58].mxu1  ;;  %v2697_v18 = vunpack.c.l.bf16 %v5227_v31  ;;  %v5228_v34 = vld [vmem:[#allocation29_spill] sm:$0xff]  ;;  %v5229_v7 = vld [vmem:[#allocation23_spill] sm:$0xff] }
 0x7db   : > { %v2655_v16 = vmul.f32 0.5, %v2647_v17  ;;  %v2651_v25 = vadd.f32 %v2599_v20, %v2556_v9  ;;  %v2653_v10 = vadd.f32 %v2642_v3, %v2558_v12  ;;  %v2601_v29 = vpop.f32.mrb[59].mxu0  ;;  %v2644_v27 = vpop.f32.mrb[59].mxu1  ;;  %v2696_v63 = vunpack.c.l.bf16 %v5228_v34 }
 0x7dc   : > { %v2663_v37 = vmul.f32 0.5, %v2648_v35  ;;  %v2652_v38 = vadd.f32 %v2601_v29, %v2557_v45  ;;  %v2654_v39 = vadd.f32 %v2644_v27, %v2559_v54  ;;  %v2673_v47 = vmul.f32 0.5, %v2650_v33 }
 0x7dd   : > { %3722 = vtanh.f32 %v2655_v16  ;;  %v2656_v40 = vmul.f32 0.5, %v2651_v25  ;;  %v2698_v17 = vunpack.c.l.bf16 %v5229_v7  ;;  %v2701_v35 = vunpack.c.h.bf16 %v5227_v31  ;;  %v3763_v31 = vld [vmem:[#allocation15 + $0x8] sm:$0xff] (!%p3238_p5)  }
 0x7de   : > { %3724 = vtanh.f32 %v2663_v37  ;;  %v2664_v41 = vmul.f32 0.5, %v2652_v38  ;;  %v2674_v52 = vmul.f32 0.5, %v2654_v39  ;;  %v2700_v54 = vunpack.c.h.bf16 %v5228_v34  ;;  %v3767_v34 = vld [vmem:[#allocation15 + $0x28] sm:$0xff] (!%p3238_p5)  }
 0x7df   : > { %3726 = vtanh.f32 %v2656_v40  ;;  %v2702_v16 = vunpack.c.h.bf16 %v5229_v7  ;;  %v3769_v7 = vld [vmem:[#allocation15 + $0x38] sm:$0xff] (!%p3238_p5)  }
 0x7e0   : > { %3728 = vtanh.f32 %v2649_v8 }
 0x7e1   : > { %3730 = vtanh.f32 %v2664_v41 }
 0x7e2   : > { %3732 = vtanh.f32 %v2653_v10 }
 0x7e3   : > { %3734 = vtanh.f32 %v2673_v47 }
 0x7e4   : > { %3736 = vtanh.f32 %v2674_v52 }
 0x7e7   : > { %v3723_v36 = vpop.eup %3722 }
 0x7e8   : > { %v3725_v59 = vpop.eup %3724  ;;  %v2659_v48 = vmul.f32 0.5, %v3723_v36 }
 0x7e9   : > { %v2667_v60 = vmul.f32 0.5, %v3725_v59  ;;  %v3727_v51 = vpop.eup %3726 }
 0x7ea   : > { %v2661_v1 = vadd.f32 0.5, %v2659_v48  ;;  %v3729_v2 = vpop.eup %3728  ;;  %v2660_v4 = vmul.f32 0.5, %v3727_v51 }
 0x7eb   : > { %v2669_v23 = vadd.f32 0.5, %v2667_v60  ;;  %v3731_v0 = vpop.eup %3730 }
 0x7ec   : > { %v2683_v26 = vmul.f32 %v3729_v2, %v2661_v1  ;;  %v2662_v55 = vadd.f32 0.5, %v2660_v4  ;;  %v2668_v50 = vmul.f32 0.5, %v3731_v0  ;;  %v3733_v30 = vpop.eup %3732 }
 0x7ed   : > { %v2681_v44 = vmul.f32 %v2669_v23, %v5030_v22  ;;  %v3735_v61 = vpop.eup %3734 }
 0x7ee   : > { %v2670_v15 = vadd.f32 0.5, %v2668_v50  ;;  %v2684_v42 = vmul.f32 %v3733_v30, %v2662_v55  ;;  %v3737_v24 = vpop.eup %3736  ;;  %v2677_v53 = vmul.f32 0.5, %v3735_v61 }
 0x7ef   : > { %v5078_v58 = vadd.f32 %v2683_v26, %v2681_v44  ;;  %v2678_v22 = vmul.f32 0.5, %v3737_v24 }
 0x7f0   : > { %v2682_v43 = vmul.f32 %v2670_v15, %v5034_v46  ;;  %v2679_v56 = vadd.f32 0.5, %v2677_v53  ;;  %v5226_v46 = vld [vmem:[#allocation27_spill] sm:$0xff] }
 0x7f1   : > { %3738 = vtanh.f32 %v5078_v58  ;;  %v2680_v5 = vadd.f32 0.5, %v2678_v22  ;;  %v2695_v14 = vunpack.c.l.bf16 %v5226_v46  ;;  %v2699_v12 = vunpack.c.h.bf16 %v5226_v46 }
 0x7f2   : > { %v5082_v57 = vadd.f32 %v2684_v42, %v2682_v43 }
 0x7f4   : > { %3740 = vtanh.f32 %v5082_v57 }
 0x7fb   : > { %v3739_v62 = vpop.eup %3738 }
 0x7fc   : > { %v2689_v49 = vmul.f32 %v3739_v62, %v2679_v56 }
 0x7fe   : > { %v3741_v6 = vpop.eup %3740 }
 0x7ff   : > { %v2690_v11 = vmul.f32 %v3741_v6, %v2680_v5 }
 0x801   : > { %v2703_v28 = vpack.c.bf16 %v2690_v11, %v2689_v49 }
 0x803   : > { %2737 = vmatmul.mubr.bf16.vlgmr.msra.gmra.mrb[60].mxu0 %v2703_v28  ;;  %2780 = vmatmul.mubr.bf16.vlgmr.msra.gmra.mrb[60].mxu1 %v2703_v28 }
 0x8d6   : > { %v2738_v13 = vpop.f32.mrb[60].mxu0  ;;  %v2781_v19 = vpop.f32.mrb[60].mxu1 }
 0x8d7   : > { %v2790_v8 = vadd.f32 %v2738_v13, %v2695_v14  ;;  %v2792_v21 = vadd.f32 %v2781_v19, %v2697_v18  ;;  %v2740_v32 = vpop.f32.mrb[61].mxu0  ;;  %v2783_v9 = vpop.f32.mrb[61].mxu1  ;;  %v3762_v14 = vld [vmem:[#allocation15] sm:$0xff] (!%p3238_p5)   ;;  %v3764_v18 = vld [vmem:[#allocation15 + $0x10] sm:$0xff] (!%p3238_p5)   ;;  %v3765_v13 = vld [vmem:[#allocation15 + $0x18] sm:$0xff] (!%p3238_p5)  }
 0x8d8   : > { %v2791_v33 = vadd.f32 %v2740_v32, %v2696_v63  ;;  %v2793_v20 = vadd.f32 %v2783_v9, %v2698_v17  ;;  %v2742_v3 = vpop.f32.mrb[62].mxu0  ;;  %v2785_v45 = vpop.f32.mrb[62].mxu1  ;;  %v3766_v19 = vld [vmem:[#allocation15 + $0x20] sm:$0xff] (!%p3238_p5)   ;;  %v3768_v63 = vld [vmem:[#allocation15 + $0x30] sm:$0xff] (!%p3238_p5)  }
 0x8d9   : > { %v2798_v25 = vmul.f32 0.5, %v2790_v8  ;;  %v2794_v10 = vadd.f32 %v2742_v3, %v2699_v12  ;;  %v2796_v29 = vadd.f32 %v2785_v45, %v2701_v35  ;;  %v2744_v27 = vpop.f32.mrb[63].mxu0  ;;  %v2787_v37 = vpop.f32.mrb[63].mxu1  ;;  %v3239_v32 = vld [vmem:[%s5230_s22] ss:$0 sm:$0xff] (!%p3238_p5) }
 0x8da   : > { %v2806_v38 = vmul.f32 0.5, %v2791_v33  ;;  %v2795_v39 = vadd.f32 %v2744_v27, %v2700_v54  ;;  %v2797_v40 = vadd.f32 %v2787_v37, %v2702_v16  ;;  %v2816_v59 = vmul.f32 0.5, %v2793_v20 }
 0x8db   : > { %3742 = vtanh.f32 %v2798_v25  ;;  %v2799_v41 = vmul.f32 0.5, %v2794_v10 }
 0x8dc   : > { %3744 = vtanh.f32 %v2806_v38  ;;  %v2807_v36 = vmul.f32 0.5, %v2795_v39  ;;  %v2817_v51 = vmul.f32 0.5, %v2797_v40 }
 0x8dd   : > { %3746 = vtanh.f32 %v2799_v41 }
 0x8de   : > { %3748 = vtanh.f32 %v2792_v21 }
 0x8df   : > { %3750 = vtanh.f32 %v2807_v36 }
 0x8e0   : > { %3752 = vtanh.f32 %v2796_v29 }
 0x8e1   : > { %3754 = vtanh.f32 %v2816_v59 }
 0x8e2   : > { %3756 = vtanh.f32 %v2817_v51 }
 0x8e5   : > { %v3743_v48 = vpop.eup %3742 }
 0x8e6   : > { %v3745_v47 = vpop.eup %3744  ;;  %v2802_v60 = vmul.f32 0.5, %v3743_v48 }
 0x8e7   : > { %v2810_v52 = vmul.f32 0.5, %v3745_v47  ;;  %v3747_v1 = vpop.eup %3746 }
 0x8e8   : > { %v2804_v2 = vadd.f32 0.5, %v2802_v60  ;;  %v3749_v23 = vpop.eup %3748  ;;  %v2803_v0 = vmul.f32 0.5, %v3747_v1 }
 0x8e9   : > { %v2812_v4 = vadd.f32 0.5, %v2810_v52  ;;  %v3751_v26 = vpop.eup %3750 }
 0x8ea   : > { %v2826_v44 = vmul.f32 %v3749_v23, %v2804_v2  ;;  %v2805_v50 = vadd.f32 0.5, %v2803_v0  ;;  %v2811_v30 = vmul.f32 0.5, %v3751_v26  ;;  %v3753_v15 = vpop.eup %3752 }
 0x8eb   : > { %v2824_v55 = vmul.f32 %v2812_v4, %v5078_v58  ;;  %v3755_v53 = vpop.eup %3754 }
 0x8ec   : > { %v2813_v43 = vadd.f32 0.5, %v2811_v30  ;;  %v2827_v61 = vmul.f32 %v3753_v15, %v2805_v50  ;;  %v2820_v62 = vmul.f32 0.5, %v3755_v53  ;;  %v3757_v56 = vpop.eup %3756 }
 0x8ed   : > { %v2828_v42 = vadd.f32 %v2826_v44, %v2824_v55  ;;  %v2821_v6 = vmul.f32 0.5, %v3757_v56 }
 0x8ee   : > { %v2825_v24 = vmul.f32 %v2813_v43, %v5082_v57  ;;  %v2822_v5 = vadd.f32 0.5, %v2820_v62  ;;  %v4046_v57 = vmov (!%p3238_p5), 0.0  }
 0x8ef   : > { %3758 = vtanh.f32 %v2828_v42  ;;  %2836 = vst [vmem:[#allocation5 + $0x10] sm:$0xff] %v2828_v42  ;;  %v2823_v11 = vadd.f32 0.5, %v2821_v6  ;;  %3263 = vmatprep.subr.bf16.mxu0 (!%p3238_p5), %v4046_v57  ;;  %3279 = vmatprep.mubr.msk.bf16.mxu0 (!%p3238_p5), %vm4047_vm0, %v4046_v57 }
 0x8f0   : > { %v2829_v22 = vadd.f32 %v2827_v61, %v2825_v24  ;;  %3264 = vmatpush3.bf16.msra.mxu0 (!%p3238_p5), %v3762_v14 }
 0x8f1   : > { %3265 = vmatprep.subr.bf16.mxu0 (!%p3238_p5), %v4046_v57 }
 0x8f2   : > { %3760 = vtanh.f32 %v2829_v22  ;;  %2837 = vst [vmem:[#allocation5 + $0x18] sm:$0xff] %v2829_v22 }
 0x8f4   : > { %3266 = vmatpush3.bf16.msra.mxu0 (!%p3238_p5), %v3763_v31 }
 0x8f5   : > { %3267 = vmatprep.subr.bf16.mxu0 (!%p3238_p5), %v4046_v57 }
 0x8f8   : > { %3268 = vmatpush3.bf16.msra.mxu0 (!%p3238_p5), %v3764_v18 }
 0x8f9   : > { %v3759_v58 = vpop.eup %3758  ;;  %2841 = sbr.rel (%p3238_p5) target bundleno = 2536 (0x9e8), region = 88  ;;  %3269 = vmatprep.subr.bf16.mxu0 (!%p3238_p5), %v4046_v57 }
 0x8fa   : > { %v2832_v49 = vmul.f32 %v3759_v58, %v2822_v5 }
 0x8fc   : > { %2834 = vst [vmem:[#allocation4 + $0x10] sm:$0xff] %v2832_v49  ;;  %v3761_v28 = vpop.eup %3760  ;;  %3270 = vmatpush3.bf16.msra.mxu0 (!%p3238_p5), %v3765_v13 }
 0x8fd   : > { %v2833_v46 = vmul.f32 %v3761_v28, %v2823_v11  ;;  %3271 = vmatprep.subr.bf16.mxu0 (!%p3238_p5), %v4046_v57 }
 0x8ff   : > { %2835 = vst [vmem:[#allocation4 + $0x18] sm:$0xff] %v2833_v46 }
 0x900   : > { %3272 = vmatpush3.bf16.msra.mxu0 %v3766_v19 }
 0x901   : > { %3273 = vmatprep.subr.bf16.mxu0 %v4046_v57 }
 0x903   : > { %v2842_v17 = vld [vmem:[#allocation4 + $0x10] sm:$0xff] }
 0x904   : > { %3274 = vmatpush3.bf16.msra.mxu0 %v3767_v34 }
 0x905   : > { %3275 = vmatprep.subr.bf16.mxu0 %v4046_v57 }
 0x906   : > { %v2843_v8 = vld [vmem:[#allocation4 + $0x18] sm:$0xff] }
 0x907   : > { %v2844_v21 = vpack.c.bf16 %v2843_v8, %v2842_v17 }
 0x908   : > { %3276 = vmatpush3.bf16.msra.mxu0 %v3768_v63 }
 0x909   : > { %3277 = vmatprep.subr.bf16.mxu0 %v4046_v57 }
 0x90c   : > { %3278 = vmatpush3.bf16.msra.mxu0 %v3769_v7 }
 0x90f   : > { %3280 = vmatmul.mubr.bf16.vlgmr.msra.gmra.mrb[0].mxu0 %v2844_v21 }
 0x9e2   : > { %v2950_v9 = vpop.f32.mrb[0].mxu0 }
 0x9e3   : > { %v2951_v12 = vadd.f32 %v3239_v32, %v2950_v9  ;;  %v3281_v35 = vpop.f32.mrb[1].mxu0 }
 0x9e4   : > { %v2953_v33 = vpop.f32.mrb[2].mxu0 }
 0x9e5   : > { %2957 = vst [vmem:[#allocation17] sm:$0xff] %v2951_v12  ;;  %v2954_v20 = vadd.f32 %v3239_v32, %v2953_v33  ;;  %v3282_v3 = vpop.f32.mrb[3].mxu0 }
 0x9e7   : > { %2958 = vst [vmem:[#allocation17 + $0x8] sm:$0xff] %v2954_v20 }
 0x9e8 PF: > { %s5231_s27 = sadd.s32 4294967295, %s4032_s14   ;;  %s4048_s23 = smov [#allocation17]  }
 0x9e9   : > { %p5101_p11 = scmp.eq.s32.totalorder %s5231_s27, 1  ;;  %s2968_s8 = sshll.u32 %s4048_s23, 4  ;;  %s2969_s8 = int_to_ptr.vmem [resolvable:$true] %s2968_s8 }
 0x9ea   : > { %s3940_s25 = scalar_lea.vmem %s2969_s8, 256  ;;  %p3947_p2 = scmp.lt.s32.totalorder %s2969_s8, %s2969_s8 }
 0x9eb   : > { %p3941_p12 = scmp.ne.s32.totalorder %s2969_s8, %s3940_s25  ;;  %p3948_p6 = scmp.lt.s32.totalorder %s3940_s25, %s3940_s25 }
 0x9ed   : > { %p3942_p13 = pnand %p3941_p12, %p5101_p11  ;;  %p3949_p9 = por %p3948_p6, %p3947_p2 }
 0x9ef   : > { %p3943_p0 = pneg %p3942_p13 }
 0x9f1   : > { %p3950_p7 = pnand %p3949_p9, %p3943_p0 }
 0x9f3   : > { %3953 = shalt.err (!%p3950_p7)
}
 0x9f4   : > { %s5233_s1 = sld [smem:[#allocation33_spill]] }
 0x9fa   : > { %s3954_s6 = scalar_lea.hbm %s5233_s1, 256 }
 0x9fb   : > { %p3955_p1 = scmp.ne.s32.totalorder %s5233_s1, %s3954_s6  ;;  %p3960_p10 = scmp.lt.u32.totalorder %s3954_s6, %s5233_s1 }
 0x9fd   : > { %p3956_p3 = pnand %p3955_p1, %p5101_p11 }
 0x9ff   : > { %p3957_p8 = pneg %p3956_p3 }
 0xa01   : > { %p3962_p4 = pnand %p3960_p10, %p3957_p8 }
 0xa03   : > { %3965 = shalt.err (!%p3962_p4)
}
 0xa04   : > { %s4049_s26 = smov 128   ;;  %s4050_s18 = smov 8  }
 0xa05   : > { %3306 = dma.vmem_to_hbm [thread:$0]  (%p5101_p11), %s2969_s8, 256, %s5233_s1, [#allocation8], %s4049_s26, %s4049_s26, %s4050_s18  }
 0xa06   : > { %4007 = dma.done.wait (%p5101_p11), [#allocation8], 256  }
 0xa07   : > { %4009 = vsyncadd (%p5101_p11), [#allocation8], 4294967040 }
 0xa08 PF: > { %s26_s14 = sadd.s32 1, %s4032_s14   ;;  %s5234_s30 = smov %s4016_s10 }
 0xa09   : > { %p23_p5 = scmp.ge.s32.totalorder %s26_s14, 4   ;;  %s5235_s10 = smov %s4020_s11 }
 0xa0a   : > { %s5236_s11 = smov %s4305_s29  ;;  %s5237_s12 = smov %s4028_s13 }
 0xa0b   : > { %s5238_s13 = smov %s5240_s24  ;;  %25 = sbr.rel (!%p23_p5) target bundleno = 13 (0xd), region = 131 }
 0xa12   :  { %2984 = vsyncpa [#allocation7], 1 }
 0xa13   :  { %2986 = vsyncpa [#allocation7 + $0x1], 1 }
 0xa14   :  { %2987 = vsyncpa [#allocation10], 1 }
 0xa15   :  { %2988 = vsyncpa [#allocation13], 1 }
 0xa16   :  { %2989 = vsyncpa [#allocation16], 1 }
 0xa17   :  { %2990 = vsyncpa [#allocation8], 1 }
 0xa18   :  { %2992 = vsyncpa [#allocation8 + $0x1], 1 }

// kernel: tpu_custom_call.1
= control target key start
LH: loop header
LB: loop body
LE: loop exit
PB: predicated region body
PF: predicated region fallthrough
CT: control target
= control target key end

     0   :  { %s5145_s0 = inlined_call_operand.hbm [shape: bf16[8,16,128], index: 0, kind: input, shape index: {}]   ;;  %s5146_s1 = inlined_call_operand.hbm [shape: bf16[128,512], index: 1, kind: input, shape index: {}]   ;;  %s5147_s2 = inlined_call_operand.hbm [shape: bf16[128,512], index: 2, kind: input, shape index: {}]   ;;  %s5148_s3 = inlined_call_operand.vmem [shape: f32[1,512], index: 3, kind: input, shape index: {}]   ;;  %s5149_s4 = inlined_call_operand.hbm [shape: bf16[128,512], index: 4, kind: input, shape index: {}]   ;;  %s5150_s5 = inlined_call_operand.hbm [shape: bf16[128,512], index: 5, kind: input, shape index: {}]   ;;  %s5151_s6 = inlined_call_operand.vmem [shape: f32[1,512], index: 6, kind: input, shape index: {}]   ;;  %s5152_s7 = inlined_call_operand.hbm [shape: bf16[128,128], index: 7, kind: input, shape index: {}]   ;;  %s5153_s8 = inlined_call_operand.vmem [shape: f32[1,128], index: 8, kind: input, shape index: {}]   ;;  %s5154_s9 = inlined_call_operand.hbm [shape: f32[16,128], index: 9, kind: output, shape index: {}]  }
   0x1   :  { %5181 = sst [smem:[#allocation30_spill]] %s5146_s1 }
   0x2   :  { %5182 = sst [smem:[#allocation31_spill]] %s5151_s6 }
   0x3   :  { %5183 = sst [smem:[#allocation32_spill]] %s5153_s8 }
   0x4   :  { %5184 = sst [smem:[#allocation33_spill]] %s5154_s9 }
   0x5   :  { %14 = vsyncpa [#allocation7], 0 }
   0x6   :  { %16 = vsyncpa [#allocation7 + $0x1], 0 }
   0x7   :  { %17 = vsyncpa [#allocation10], 0 }
   0x8   :  { %18 = vsyncpa [#allocation13], 0 }
   0x9   :  { %19 = vsyncpa [#allocation16], 0 }
   0xa   :  { %20 = vsyncpa [#allocation8], 0  ;;  %s4101_s30 = smov 0   ;;  %s4103_s10 = smov 0  }
   0xb   :  { %s4105_s11 = smov 0   ;;  %s4107_s12 = smov 0  }
   0xc   :  { %s4109_s13 = smov 0   ;;  %s4111_s14 = smov 0  }
   0xd LB: > { %s5155_s15 = sadd.s32 4294967295, %s4032_s14   ;;  %p3087_p0 = scmp.ge.s32.totalorder %s4032_s14, 1  ;;  %s4032_s14 = sphi %s4111_s14, %s26_s14   ;;  %s4028_s13 = sphi %s4109_s13, %s5238_s13   ;;  %s4024_s12 = sphi %s4107_s12, %s5237_s12   ;;  %s4020_s11 = sphi %s4105_s11, %s5236_s11   ;;  %s4016_s10 = sphi %s4103_s10, %s5235_s10   ;;  %s4012_s30 = sphi %s4101_s30, %s5234_s30  }
   0xe   : > { %p4135_p1 = scmp.eq.s32.totalorder %s5155_s15, 0  ;;  %p265_p2 = scmp.lt.s32.totalorder %s4032_s14, 3 }
   0xf   : > { %s4034_s18 = smov [#allocation9]   ;;  %s4035_s21 = smov [#allocation12]  }
  0x10   : > { %s5185_s16 = scalar_select %p4135_p1, 1, 0 }
  0x11   : > { %p4140_p3 = pnand %p3087_p0, %p265_p2  ;;  %s277_s19 = sshll.u32 %s4034_s18, 4  ;;  %s4144_s19 = int_to_ptr.vmem [resolvable:$true] %s277_s19 }
  0x12   : > { %s306_s22 = sshll.u32 %s4035_s21, 4  ;;  %s4036_s23 = smov [#allocation11]   ;;  %s4154_s22 = int_to_ptr.vmem [resolvable:$true] %s306_s22 }
  0x13   : > { %s5186_s17 = scalar_select %p4140_p3, 1, 0 }
  0x14   : > { %p3309_p4 = pneg %p4140_p3  ;;  %s4156_s24 = sshll.u32 %s4036_s23, 4  ;;  %s291_s24 = int_to_ptr.vmem [resolvable:$true] %s4156_s24 }
  0x15   : > { %s5188_s1 = sld [smem:[#allocation30_spill]] }
  0x16   : > { %p4150_p5 = pnand %p3309_p4, %p4135_p1 }
  0x18   : > { %p4166_p7 = pneg %p4150_p5 }
  0x1b   : > { %s3770_s27 = scalar_lea.hbm %s5188_s1, 4096 }
  0x1c   : > { %p3771_p6 = scmp.ne.s32.totalorder %s5188_s1, %s3770_s27  ;;  %p3777_p10 = scmp.lt.u32.totalorder %s3770_s27, %s5188_s1 }
  0x1e   : > { %p3773_p8 = pnand %p4166_p7, %p3771_p6 }
  0x20   : > { %p3774_p9 = pneg %p3773_p8 }
  0x22   : > { %p3779_p11 = pnand %p3777_p10, %p3774_p9 }
  0x24   : > { %3782 = shalt.err (!%p3779_p11)
}
  0x25   : > { %s3783_s25 = scalar_lea.vmem %s4144_s19, 4096  ;;  %p3791_p2 = scmp.lt.s32.totalorder %s4144_s19, %s4144_s19 }
  0x26   : > { %p3784_p12 = scmp.ne.s32.totalorder %s4144_s19, %s3783_s25  ;;  %p3792_p4 = scmp.lt.s32.totalorder %s3783_s25, %s3783_s25 }
  0x28   : > { %p3786_p13 = pnand %p3784_p12, %p4166_p7  ;;  %p3793_p6 = por %p3792_p4, %p3791_p2 }
  0x2a   : > { %p3787_p0 = pneg %p3786_p13 }
  0x2c   : > { %p3794_p8 = pnand %p3793_p6, %p3787_p0 }
  0x2e   : > { %3797 = shalt.err (!%p3794_p8)
}
  0x2f   : > { %s4037_s26 = smov 256   ;;  %s4038_s27 = smov 16  }
  0x30   : > { %3312 = dma.hbm_to_vmem [thread:$0]  (!%p4150_p5), %s5188_s1, 4096, %s4144_s19, [#allocation10], %s4037_s26, %s4037_s26, %s4038_s27  }
  0x31   : > { %s3798_s25 = scalar_lea.hbm %s5149_s4, 4096 }
  0x32   : > { %p3799_p9 = scmp.ne.s32.totalorder %s5149_s4, %s3798_s25  ;;  %p3805_p12 = scmp.lt.u32.totalorder %s3798_s25, %s5149_s4 }
  0x34   : > { %p3801_p10 = pnand %p3799_p9, %p4166_p7 }
  0x36   : > { %p3802_p11 = pneg %p3801_p10 }
  0x38   : > { %p3807_p13 = pnand %p3805_p12, %p3802_p11 }
  0x3a   : > { %3810 = shalt.err (!%p3807_p13)
}
  0x3b   : > { %s3811_s19 = scalar_lea.vmem %s4154_s22, 4096  ;;  %p3819_p6 = scmp.lt.s32.totalorder %s4154_s22, %s4154_s22 }
  0x3c   : > { %p3812_p0 = scmp.ne.s32.totalorder %s4154_s22, %s3811_s19  ;;  %p3820_p8 = scmp.lt.s32.totalorder %s3811_s19, %s3811_s19 }
  0x3e   : > { %p3814_p2 = pnand %p3812_p0, %p4166_p7  ;;  %p3821_p9 = por %p3820_p8, %p3819_p6 }
  0x40   : > { %p3815_p4 = pneg %p3814_p2 }
  0x42   : > { %p3822_p10 = pnand %p3821_p9, %p3815_p4 }
  0x44   : > { %3825 = shalt.err (!%p3822_p10)
}
  0x45   : > { %3318 = dma.hbm_to_vmem [thread:$0]  (!%p4150_p5), %s5149_s4, 4096, %s4154_s22, [#allocation13], %s4037_s26, %s4037_s26, %s4038_s27  }
  0x46   : > { %s3826_s28 = scalar_lea.hbm %s5147_s2, 4096 }
  0x47   : > { %p3827_p11 = scmp.ne.s32.totalorder %s5147_s2, %s3826_s28  ;;  %p3833_p0 = scmp.lt.u32.totalorder %s3826_s28, %s5147_s2 }
  0x49   : > { %p3829_p12 = pnand %p3827_p11, %p4166_p7 }
  0x4b   : > { %p3830_p13 = pneg %p3829_p12 }
  0x4d   : > { %p3835_p2 = pnand %p3833_p0, %p3830_p13 }
  0x4f   : > { %3838 = shalt.err (!%p3835_p2)
}
  0x50   : > { %s3839_s19 = scalar_lea.vmem %s291_s24, 4096  ;;  %p3847_p9 = scmp.lt.s32.totalorder %s291_s24, %s291_s24 }
  0x51   : > { %p3840_p4 = scmp.ne.s32.totalorder %s291_s24, %s3839_s19  ;;  %p3848_p10 = scmp.lt.s32.totalorder %s3839_s19, %s3839_s19 }
  0x53   : > { %p3842_p6 = pnand %p3840_p4, %p4166_p7  ;;  %p3849_p3 = por %p3848_p10, %p3847_p9 }
  0x55   : > { %p3843_p8 = pneg %p3842_p6 }
  0x57   : > { %p3850_p1 = pnand %p3849_p3, %p3843_p8 }
  0x59   : > { %3853 = shalt.err (!%p3850_p1)
}
  0x5a   : > { %3315 = dma.hbm_to_vmem [thread:$0]  (!%p4150_p5), %s5147_s2, 4096, %s291_s24, [#allocation10], %s4037_s26, %s4037_s26, %s4038_s27  }
  0x5b   : > { %s4039_s8 = smov [#allocation14]   ;;  %s4040_s15 = smov [#allocation15]  }
  0x5c   : > { %s319_s9 = sshll.u32 %s4039_s8, 4  ;;  %s335_s28 = sshll.u32 %s4040_s15, 4  ;;  %s320_s9 = int_to_ptr.vmem [resolvable:$true] %s319_s9  ;;  %s336_s28 = int_to_ptr.vmem [resolvable:$true] %s335_s28 }
  0x5d   : > { %s3854_s23 = scalar_lea.hbm %s5150_s5, 4096 }
  0x5e   : > { %p3855_p1 = scmp.ne.s32.totalorder %s5150_s5, %s3854_s23  ;;  %p3861_p12 = scmp.lt.u32.totalorder %s3854_s23, %s5150_s5 }
  0x60   : > { %p3857_p3 = pnand %p3855_p1, %p4166_p7 }
  0x62   : > { %p3858_p11 = pneg %p3857_p3 }
  0x64   : > { %p3863_p13 = pnand %p3861_p12, %p3858_p11 }
  0x66   : > { %3866 = shalt.err (!%p3863_p13)
}
  0x67   : > { %s3867_s24 = scalar_lea.vmem %s320_s9, 4096  ;;  %p3875_p6 = scmp.lt.s32.totalorder %s320_s9, %s320_s9 }
  0x68   : > { %p3868_p0 = scmp.ne.s32.totalorder %s320_s9, %s3867_s24  ;;  %p3876_p8 = scmp.lt.s32.totalorder %s3867_s24, %s3867_s24 }
  0x6a   : > { %p3870_p2 = pnand %p3868_p0, %p4166_p7  ;;  %p3877_p9 = por %p3876_p8, %p3875_p6 }
  0x6c   : > { %p3871_p4 = pneg %p3870_p2 }
  0x6e   : > { %p3878_p10 = pnand %p3877_p9, %p3871_p4 }
  0x70   : > { %3881 = shalt.err (!%p3878_p10)
}
  0x71   : > { %3321 = dma.hbm_to_vmem [thread:$0]  (!%p4150_p5), %s5150_s5, 4096, %s320_s9, [#allocation13], %s4037_s26, %s4037_s26, %s4038_s27  }
  0x72   : > { %s3882_s29 = scalar_lea.hbm %s5152_s7, 1024 }
  0x73   : > { %p3883_p1 = scmp.ne.s32.totalorder %s5152_s7, %s3882_s29  ;;  %p3889_p12 = scmp.lt.u32.totalorder %s3882_s29, %s5152_s7 }
  0x75   : > { %p3885_p3 = pnand %p3883_p1, %p4166_p7 }
  0x77   : > { %p3886_p11 = pneg %p3885_p3 }
  0x79   : > { %p3891_p13 = pnand %p3889_p12, %p3886_p11 }
  0x7b   : > { %3894 = shalt.err (!%p3891_p13)
}
  0x7c   : > { %s3895_s22 = scalar_lea.vmem %s336_s28, 1024  ;;  %p3903_p6 = scmp.lt.s32.totalorder %s336_s28, %s336_s28 }
  0x7d   : > { %p3896_p0 = scmp.ne.s32.totalorder %s336_s28, %s3895_s22  ;;  %p3904_p8 = scmp.lt.s32.totalorder %s3895_s22, %s3895_s22 }
  0x7f   : > { %p3898_p2 = pnand %p3896_p0, %p4166_p7  ;;  %p3905_p9 = por %p3904_p8, %p3903_p6 }
  0x81   : > { %p3899_p4 = pneg %p3898_p2 }
  0x83   : > { %p3906_p10 = pnand %p3905_p9, %p3899_p4 }
  0x85   : > { %3909 = shalt.err (!%p3906_p10)
}
  0x86   : > { %s4041_s26 = smov 64   ;;  %s4042_s18 = smov 4  }
  0x87   : > { %3324 = dma.hbm_to_vmem [thread:$0]  (!%p4150_p5), %s5152_s7, 1024, %s336_s28, [#allocation16], %s4041_s26, %s4041_s26, %s4042_s18  }
  0x88   : > { %s35_s24 = sadd.s32 1, %s4028_s13  ;;  %s47_s1 = sadd.s32 1, %s4020_s11 }
  0x89   : > { %p36_p7 = scmp.ge.s32.totalorder %s35_s24, 2  ;;  %p54_p1 = scmp.ne.s32.totalorder %s4020_s11, %s4016_s10 }
  0x8a   : > { %p55_p3 = scmp.eq.s32.totalorder %s4032_s14, 0  ;;  %p60_p12 = scmp.ne.s32.totalorder %s4016_s10, %s4012_s30 }
  0x8b   : > { %s5240_s24 = smov (%p36_p7, %s35_s24), 0  ;;  %p3334_p13 = scmp.lt.s32.totalorder %s4032_s14, 2 }
  0x8c   : > { %p4287_p11 = por %p55_p3, %p54_p1  ;;  %s42_s20 = ssub.s32 %s4028_s13, %s5240_s24 }
  0x8d   : > { %p45_p0 = scmp.eq.s32.totalorder %s42_s20, 0  ;;  %p5191_p2 = scmp.ne.s32.totalorder %s5185_s16, 0 }
  0x8e   : > { %s352_s8 = sand.u32 1, %s4020_s11   ;;  %s3253_s15 = sshll.u32 %s4028_s13, 9 }
  0x8f   : > { %p4298_p4 = por %p5191_p2, %p60_p12  ;;  %s3094_s21 = sshll.u32 %s352_s8, 5 }
  0x90   : > { %s4305_s29 = scalar_select %p45_p0, %s4020_s11, %s47_s1  }
  0x91   : > { %s4310_s19 = scalar_lea.hbm %s5145_s0, %s3253_s15  ;;  %s356_s30 = scalar_lea.vmem [#allocation6], %s3094_s21 }
  0x92   : > { %s366_s22 = sshll.u32 %s356_s30, 4  ;;  %p4314_p5 = pnand %p3334_p13, %p4287_p11  ;;  %s4318_s22 = int_to_ptr.vmem [resolvable:$true] %s366_s22 }
  0x93   : > { %s4320_s9 = scalar_lea.sflag [#allocation7], %s352_s8  ;;  %s3910_s1 = scalar_lea.hbm %s4310_s19, 512 }
  0x94   : > { %p3911_p6 = scmp.ne.s32.totalorder %s4310_s19, %s3910_s1  ;;  %p3912_p8 = pneg %p4314_p5 }
  0x95   : > { %s3915_s15 = scalar_lea.hbm %s5145_s0, 1024  ;;  %p3916_p7 = scmp.lt.u32.totalorder %s4310_s19, %s5145_s0 }
  0x96   : > { %p3913_p9 = pnand %p3912_p8, %p3911_p6  ;;  %p3917_p1 = scmp.lt.u32.totalorder %s3915_s15, %s3910_s1 }
  0x97   : > { %p3919_p11 = scmp.lt.u32.totalorder %s3910_s1, %s4310_s19 }
  0x98   : > { %p3914_p10 = pneg %p3913_p9  ;;  %p3918_p3 = por %p3917_p1, %p3916_p7 }
  0x9a   : > { %p3920_p12 = por %p3919_p11, %p3918_p3 }
  0x9c   : > { %p3921_p13 = pnand %p3920_p12, %p3914_p10 }
  0x9e   : > { %3924 = shalt.err (!%p3921_p13)
}
  0x9f   : > { %s3925_s8 = scalar_lea.vmem %s4318_s22, 512  ;;  %s4043_s25 = smov [#allocation6]  }
  0xa0   : > { %p3926_p0 = scmp.ne.s32.totalorder %s4318_s22, %s3925_s8  ;;  %s3930_s30 = sshll.u32 %s4043_s25, 4  ;;  %s3931_s30 = int_to_ptr.vmem [resolvable:$false] %s3930_s30 }
  0xa1   : > { %s3932_s20 = scalar_lea.vmem %s3931_s30, 1024  ;;  %p3933_p9 = scmp.lt.s32.totalorder %s4318_s22, %s3931_s30 }
  0xa2   : > { %p3928_p2 = pnand %p3926_p0, %p3912_p8  ;;  %p3934_p7 = scmp.lt.s32.totalorder %s3932_s20, %s3925_s8 }
  0xa4   : > { %p3929_p6 = pneg %p3928_p2  ;;  %p3935_p1 = por %p3934_p7, %p3933_p9 }
  0xa6   : > { %p3936_p3 = pnand %p3935_p1, %p3929_p6 }
  0xa8   : > { %3939 = shalt.err (!%p3936_p3)
}
  0xa9   : > { %3328 = dma.hbm_to_vmem [thread:$0]  (!%p4314_p5), %s4310_s19, 512, %s4318_s22, %s4320_s9, %s4041_s26, %s4041_s26, %s4042_s18  }
  0xaa   : > { %p5194_p8 = scmp.ne.s32.totalorder %s5186_s17, 0 }
  0xac   : > { %378 = sbr.rel (%p5194_p8) target bundleno = 2568 (0xa08), region = 56 }
  0xb3   : > { %s380_s1 = sand.u32 1, %s4016_s10  }
  0xb4   : > { %s3099_s6 = sshll.u32 %s380_s1, 5  ;;  %s381_s15 = scalar_lea.sflag [#allocation7], %s380_s1 }
  0xb5   : > { %s4354_s21 = scalar_lea.vmem [#allocation6], %s3099_s6 }
  0xb6   : > { %3991 = dma.done.wait (%p4298_p4), %s381_s15, 512  }
  0xb7   : > { %3993 = vsyncadd (%p4298_p4), %s381_s15, 4294966784  ;;  %p5195_p10 = scmp.ne.s32.totalorder %s5185_s16, 0 }
  0xb9   : > { %3995 = dma.done.wait (%p5195_p10), [#allocation10], 8192  }
  0xba   : > { %3997 = vsyncadd (%p5195_p10), [#allocation10], 4294959104 }
  0xbb   : > { %3999 = dma.done.wait (%p5195_p10), [#allocation13], 8192  }
  0xbc   : > { %4001 = vsyncadd (%p5195_p10), [#allocation13], 4294959104 }
  0xbd   : > { %4003 = dma.done.wait (%p5195_p10), [#allocation16], 1024  }
  0xbe   : > { %4005 = vsyncadd (%p5195_p10), [#allocation16], 4294966272  ;;  %p3105_p4 = scmp.ne.s32.totalorder %s4024_s12, 0 }
  0xbf   : > { %v4044_v0 = vmov (!%p3105_p4), 0.0  }
  0xc0   : > { %441 = sbr.rel (%p3105_p4) target bundleno = 199 (0xc7), region = 84  ;;  %442 = vst [vmem:[#allocation4] sm:$0xff] (!%p3105_p4), %v4044_v0  ;;  %443 = vst [vmem:[#allocation4 + $0x8] sm:$0xff] (!%p3105_p4), %v4044_v0 }
  0xc1   : > { %444 = vst [vmem:[#allocation4 + $0x10] sm:$0xff] (!%p3105_p4), %v4044_v0  ;;  %445 = vst [vmem:[#allocation4 + $0x18] sm:$0xff] (!%p3105_p4), %v4044_v0 }
  0xc2   : > { %446 = vst [vmem:[#allocation5] sm:$0xff] (!%p3105_p4), %v4044_v0  ;;  %447 = vst [vmem:[#allocation5 + $0x8] sm:$0xff] (!%p3105_p4), %v4044_v0 }
  0xc3   : > { %448 = vst [vmem:[#allocation5 + $0x10] sm:$0xff] (!%p3105_p4), %v4044_v0  ;;  %449 = vst [vmem:[#allocation5 + $0x18] sm:$0xff] (!%p3105_p4), %v4044_v0 }
  0xc4   : > { %450 = vst [vmem:[#allocation17] sm:$0xff] (!%p3105_p4), %v4044_v0  ;;  %451 = vst [vmem:[#allocation17 + $0x8] sm:$0xff] (!%p3105_p4), %v4044_v0 }
  0xc7 PF: > { %v3406_v1 = vld [vmem:[#allocation9 + $0x4] ss:$16 sps:$4 sm:$0xff]   ;;  %v3408_v2 = vld [vmem:[#allocation9 + $0xc] ss:$16 sps:$4 sm:$0xff]   ;;  %v5164_v3 = vmov 0   ;;  %s5210_s28 = sld [smem:[#allocation31_spill]] }
  0xc8   : > { %730 = vmatprep.mubr.bf16.mxu0 %v5164_v3  ;;  %803 = vmatprep.mubr.bf16.mxu1 %v5164_v3  ;;  %v3410_v4 = vld [vmem:[#allocation9] ss:$16 sps:$4 sm:$0xff]   ;;  %v3411_v5 = vld [vmem:[#allocation9 + $0x8] ss:$16 sps:$4 sm:$0xff]   ;;  %v3412_v6 = vld [vmem:[#allocation9 + $0x24] ss:$16 sps:$4 sm:$0xff]  }
  0xc9   : > { %698 = vmatprep.subr.bf16.mxu0 %v3406_v1  ;;  %771 = vmatprep.subr.bf16.mxu1 %v3408_v2  ;;  %v3414_v7 = vld [vmem:[#allocation9 + $0x2c] ss:$16 sps:$4 sm:$0xff]   ;;  %v3416_v8 = vld [vmem:[#allocation9 + $0x20] ss:$16 sps:$4 sm:$0xff]   ;;  %v3417_v9 = vld [vmem:[#allocation9 + $0x28] ss:$16 sps:$4 sm:$0xff]  }
  0xca   : > { %699 = vmatpush1.bf16.msra.mxu0 %v3410_v4  ;;  %772 = vmatpush1.bf16.msra.mxu1 %v3411_v5  ;;  %v3418_v10 = vld [vmem:[#allocation9 + $0x44] ss:$16 sps:$4 sm:$0xff]   ;;  %v3420_v11 = vld [vmem:[#allocation9 + $0x4c] ss:$16 sps:$4 sm:$0xff]   ;;  %v3422_v12 = vld [vmem:[#allocation9 + $0x40] ss:$16 sps:$4 sm:$0xff]  }
  0xcb   : > { %700 = vmatprep.subr.bf16.mxu0 %v3412_v6  ;;  %773 = vmatprep.subr.bf16.mxu1 %v3414_v7  ;;  %v3423_v13 = vld [vmem:[#allocation9 + $0x48] ss:$16 sps:$4 sm:$0xff]   ;;  %v3424_v14 = vld [vmem:[#allocation9 + $0x64] ss:$16 sps:$4 sm:$0xff]   ;;  %v3426_v15 = vld [vmem:[#allocation9 + $0x6c] ss:$16 sps:$4 sm:$0xff]  }
  0xcc   : > { %v3428_v16 = vld [vmem:[#allocation9 + $0x60] ss:$16 sps:$4 sm:$0xff]   ;;  %v3429_v17 = vld [vmem:[#allocation9 + $0x68] ss:$16 sps:$4 sm:$0xff]   ;;  %v3430_v18 = vld [vmem:[#allocation9 + $0x84] ss:$16 sps:$4 sm:$0xff]  }
  0xcd   : > { %v3432_v19 = vld [vmem:[#allocation9 + $0x8c] ss:$16 sps:$4 sm:$0xff]   ;;  %v3434_v20 = vld [vmem:[#allocation9 + $0x80] ss:$16 sps:$4 sm:$0xff]   ;;  %v3435_v21 = vld [vmem:[#allocation9 + $0x88] ss:$16 sps:$4 sm:$0xff]  }
  0xce   : > { %701 = vmatpush1.bf16.msra.mxu0 %v3416_v8  ;;  %774 = vmatpush1.bf16.msra.mxu1 %v3417_v9  ;;  %v3436_v22 = vld [vmem:[#allocation9 + $0xa4] ss:$16 sps:$4 sm:$0xff]   ;;  %v3438_v23 = vld [vmem:[#allocation9 + $0xac] ss:$16 sps:$4 sm:$0xff]   ;;  %v3440_v24 = vld [vmem:[#allocation9 + $0xa0] ss:$16 sps:$4 sm:$0xff]  }
  0xcf   : > { %702 = vmatprep.subr.bf16.mxu0 %v3418_v10  ;;  %775 = vmatprep.subr.bf16.mxu1 %v3420_v11  ;;  %v3441_v25 = vld [vmem:[#allocation9 + $0xa8] ss:$16 sps:$4 sm:$0xff]   ;;  %v3442_v26 = vld [vmem:[#allocation9 + $0xc4] ss:$16 sps:$4 sm:$0xff]   ;;  %v3444_v27 = vld [vmem:[#allocation9 + $0xcc] ss:$16 sps:$4 sm:$0xff]   ;;  %v494_v10 = vlaneseq }
  0xd0   : > { %v3446_v28 = vld [vmem:[#allocation9 + $0xc0] ss:$16 sps:$4 sm:$0xff]   ;;  %v3447_v29 = vld [vmem:[#allocation9 + $0xc8] ss:$16 sps:$4 sm:$0xff]   ;;  %v3448_v30 = vld [vmem:[#allocation9 + $0xe4] ss:$16 sps:$4 sm:$0xff]  }
  0xd1   : > { %v3450_v31 = vld [vmem:[#allocation9 + $0xec] ss:$16 sps:$4 sm:$0xff]   ;;  %v3452_v32 = vld [vmem:[#allocation9 + $0xe0] ss:$16 sps:$4 sm:$0xff]   ;;  %v3453_v33 = vld [vmem:[#allocation9 + $0xe8] ss:$16 sps:$4 sm:$0xff]  }
  0xd2   : > { %703 = vmatpush1.bf16.msra.mxu0 %v3422_v12  ;;  %776 = vmatpush1.bf16.msra.mxu1 %v3423_v13  ;;  %v4375_v34 = vld [vmem:[#allocation11 + $0x4] ss:$16 sps:$4 sm:$0xff]   ;;  %v4377_v35 = vld [vmem:[#allocation11 + $0xc] ss:$16 sps:$4 sm:$0xff]   ;;  %v4380_v37 = vld [vmem:[#allocation11] ss:$16 sps:$4 sm:$0xff]  }
  0xd3   : > { %704 = vmatprep.subr.bf16.mxu0 %v3424_v14  ;;  %777 = vmatprep.subr.bf16.mxu1 %v3426_v15  ;;  %v3454_v36 = vld [vmem:[%s4354_s21] sm:$0xff]   ;;  %v4382_v38 = vld [vmem:[#allocation11 + $0x8] ss:$16 sps:$4 sm:$0xff]   ;;  %v4388_v40 = vld [vmem:[#allocation11 + $0x2c] ss:$16 sps:$4 sm:$0xff]   ;;  %v4519_v11 = vshrl.u32 %v494_v10, 7 }
  0xd4   : > { %v4386_v39 = vld [vmem:[#allocation11 + $0x24] ss:$16 sps:$4 sm:$0xff]   ;;  %v4390_v41 = vld [vmem:[#allocation11 + $0x20] ss:$16 sps:$4 sm:$0xff]   ;;  %v4394_v42 = vld [vmem:[#allocation11 + $0x28] ss:$16 sps:$4 sm:$0xff]  }
  0xd5   : > { %v4398_v43 = vld [vmem:[#allocation11 + $0x44] ss:$16 sps:$4 sm:$0xff]   ;;  %v4400_v44 = vld [vmem:[#allocation11 + $0x4c] ss:$16 sps:$4 sm:$0xff]   ;;  %v4405_v46 = vld [vmem:[#allocation11 + $0x40] ss:$16 sps:$4 sm:$0xff]  }
  0xd6   : > { %705 = vmatpush1.bf16.msra.mxu0 %v3428_v16  ;;  %778 = vmatpush1.bf16.msra.mxu1 %v3429_v17  ;;  %v3467_v45 = vld [vmem:[%s4354_s21 + $0x8] sm:$0xff]   ;;  %v4411_v48 = vld [vmem:[#allocation11 + $0x64] ss:$16 sps:$4 sm:$0xff]   ;;  %v4417_v50 = vld [vmem:[#allocation11 + $0x60] ss:$16 sps:$4 sm:$0xff]   ;;  %5196 = vst [vmem:[#allocation23_spill] sm:$0xff] %v4519_v11 }
  0xd7   : > { %706 = vmatprep.subr.bf16.mxu0 %v3430_v18  ;;  %779 = vmatprep.subr.bf16.mxu1 %v3432_v19  ;;  %v4407_v47 = vld [vmem:[#allocation11 + $0x48] ss:$16 sps:$4 sm:$0xff]   ;;  %v4415_v49 = vld [vmem:[#allocation11 + $0x6c] ss:$16 sps:$4 sm:$0xff]   ;;  %v4423_v52 = vld [vmem:[#allocation11 + $0x84] ss:$16 sps:$4 sm:$0xff]  }
  0xd8   : > { %v4419_v51 = vld [vmem:[#allocation11 + $0x68] ss:$16 sps:$4 sm:$0xff]   ;;  %v4427_v53 = vld [vmem:[#allocation11 + $0x8c] ss:$16 sps:$4 sm:$0xff]   ;;  %v3480_v54 = vld [vmem:[%s4354_s21 + $0x10] sm:$0xff]   ;;  %v5162_v12 = vsub.s32 2, %v4519_v11 }
  0xd9   : > { %v4432_v55 = vld [vmem:[#allocation11 + $0x80] ss:$16 sps:$4 sm:$0xff]   ;;  %v4434_v56 = vld [vmem:[#allocation11 + $0x88] ss:$16 sps:$4 sm:$0xff]   ;;  %v4436_v57 = vld [vmem:[#allocation11 + $0xa4] ss:$16 sps:$4 sm:$0xff]  }
  0xda   : > { %707 = vmatpush1.bf16.msra.mxu0 %v3434_v20  ;;  %780 = vmatpush1.bf16.msra.mxu1 %v3435_v21  ;;  %v4438_v58 = vld [vmem:[#allocation11 + $0xac] ss:$16 sps:$4 sm:$0xff]   ;;  %v4444_v59 = vld [vmem:[#allocation11 + $0xa0] ss:$16 sps:$4 sm:$0xff]   ;;  %v4446_v60 = vld [vmem:[#allocation11 + $0xa8] ss:$16 sps:$4 sm:$0xff]  }
  0xdb   : > { %708 = vmatprep.subr.bf16.mxu0 %v3436_v22  ;;  %781 = vmatprep.subr.bf16.mxu1 %v3438_v23  ;;  %v4448_v61 = vld [vmem:[#allocation11 + $0xc4] ss:$16 sps:$4 sm:$0xff]   ;;  %v4450_v62 = vld [vmem:[#allocation11 + $0xcc] ss:$16 sps:$4 sm:$0xff]   ;;  %v4459_v0 = vld [vmem:[#allocation11 + $0xc0] ss:$16 sps:$4 sm:$0xff]  }
  0xdc   : > { %v3493_v63 = vld [vmem:[%s4354_s21 + $0x18] sm:$0xff]   ;;  %v4463_v2 = vld [vmem:[#allocation11 + $0xe4] ss:$16 sps:$4 sm:$0xff]   ;;  %v4471_v5 = vld [vmem:[#allocation11 + $0xe0] ss:$16 sps:$4 sm:$0xff]   ;;  %v5160_v13 = vsub.s32 3, %v4519_v11 }
  0xdd   : > { %v4461_v1 = vld [vmem:[#allocation11 + $0xc8] ss:$16 sps:$4 sm:$0xff]   ;;  %v4465_v4 = vld [vmem:[#allocation11 + $0xec] ss:$16 sps:$4 sm:$0xff]   ;;  %v908_v7 = vld [vmem:[#allocation4] sm:$0xff]  ;;  %v5163_v14 = vsub.s32 0, %v4519_v11 }
  0xde   : > { %709 = vmatpush1.bf16.msra.mxu0 %v3440_v24  ;;  %782 = vmatpush1.bf16.msra.mxu1 %v3441_v25  ;;  %v4473_v6 = vld [vmem:[#allocation11 + $0xe8] ss:$16 sps:$4 sm:$0xff]   ;;  %v492_v15 = vld [vmem:[%s5148_s3] sm:$0xf]  ;;  %v5161_v16 = vsub.s32 1, %v4519_v11  ;;  %p3238_p5 = scmp.ne.s32.totalorder %s4024_s12, 1 }
  0xdf   : > { %710 = vmatprep.subr.bf16.mxu0 %v3442_v26  ;;  %783 = vmatprep.subr.bf16.mxu1 %v3444_v27  ;;  %v909_v8 = vld [vmem:[#allocation4 + $0x8] sm:$0xff]  ;;  %v4530_v17 = vrot.slane %v492_v15, %v5162_v12  ;;  %v4534_v18 = vrot.slane %v492_v15, %v5160_v13  ;;  %v4538_v19 = vrot.slane %v492_v15, %v5163_v14  ;;  %vm4047_vm0 = vmmov (!%p3238_p5), 0   ;;  %s5230_s22 = sld [smem:[#allocation32_spill]] (!%p3238_p5) }
  0xe0   : > { %v927_v9 = vpack.c.bf16 %v909_v8, %v908_v7  ;;  %v4542_v21 = vrot.slane %v492_v15, %v5161_v16 }
  0xe2   : > { %711 = vmatpush1.bf16.msra.mxu0 %v3446_v28  ;;  %784 = vmatpush1.bf16.msra.mxu1 %v3447_v29 }
  0xe3   : > { %712 = vmatprep.subr.bf16.mxu0 %v3448_v30  ;;  %785 = vmatprep.subr.bf16.mxu1 %v3450_v31 }
  0xe6   : > { %713 = vmatpush1.bf16.msra.mxu0 %v3452_v32  ;;  %786 = vmatpush1.bf16.msra.mxu1 %v3453_v33 }
  0xe7   : > { %1088 = vmatprep.subr.bf16.mxu0 %v4375_v34  ;;  %1131 = vmatprep.subr.bf16.mxu1 %v4377_v35 }
  0xe9   : > { %731 = vmatmul.mubr.bf16.vlgmr.msra.gmra.mrb[0].mxu0 %v3454_v36  ;;  %804 = vmatmul.mubr.bf16.vlgmr.msra.gmra.mrb[0].mxu1 %v3454_v36 }
  0xea   : > { %1089 = vmatpush1.bf16.msra.mxu0 %v4380_v37  ;;  %1132 = vmatpush1.bf16.msra.mxu1 %v4382_v38 }
  0xeb   : > { %1090 = vmatprep.subr.bf16.mxu0 %v4386_v39  ;;  %1133 = vmatprep.subr.bf16.mxu1 %v4388_v40 }
  0xec   : > { %740 = vmatprep.mubr.bf16.mxu0 %v5164_v3  ;;  %813 = vmatprep.mubr.bf16.mxu1 %v5164_v3 }
  0xee   : > { %1091 = vmatpush1.bf16.msra.mxu0 %v4390_v41  ;;  %1134 = vmatpush1.bf16.msra.mxu1 %v4394_v42 }
  0xef   : > { %1092 = vmatprep.subr.bf16.mxu0 %v4398_v43  ;;  %1135 = vmatprep.subr.bf16.mxu1 %v4400_v44 }
  0xf1   : > { %741 = vmatmul.mubr.bf16.gmra.mrb[4].mxu0 %v3467_v45  ;;  %814 = vmatmul.mubr.bf16.gmra.mrb[4].mxu1 %v3467_v45 }
  0xf2   : > { %1093 = vmatpush1.bf16.msra.mxu0 %v4405_v46  ;;  %1136 = vmatpush1.bf16.msra.mxu1 %v4407_v47 }
  0xf3   : > { %1094 = vmatprep.subr.bf16.mxu0 %v4411_v48  ;;  %1137 = vmatprep.subr.bf16.mxu1 %v4415_v49 }
  0xf4   : > { %750 = vmatprep.mubr.bf16.mxu0 %v5164_v3  ;;  %823 = vmatprep.mubr.bf16.mxu1 %v5164_v3 }
  0xf6   : > { %1095 = vmatpush1.bf16.msra.mxu0 %v4417_v50  ;;  %1138 = vmatpush1.bf16.msra.mxu1 %v4419_v51 }
  0xf7   : > { %1096 = vmatprep.subr.bf16.mxu0 %v4423_v52  ;;  %1139 = vmatprep.subr.bf16.mxu1 %v4427_v53 }
  0xf9   : > { %751 = vmatmul.mubr.bf16.gmra.mrb[8].mxu0 %v3480_v54  ;;  %824 = vmatmul.mubr.bf16.gmra.mrb[8].mxu1 %v3480_v54 }
  0xfa   : > { %1097 = vmatpush1.bf16.msra.mxu0 %v4432_v55  ;;  %1140 = vmatpush1.bf16.msra.mxu1 %v4434_v56 }
  0xfb   : > { %1098 = vmatprep.subr.bf16.mxu0 %v4436_v57  ;;  %1141 = vmatprep.subr.bf16.mxu1 %v4438_v58 }
  0xfc   : > { %760 = vmatprep.mubr.bf16.mxu0 %v5164_v3  ;;  %833 = vmatprep.mubr.bf16.mxu1 %v5164_v3 }
  0xfe   : > { %1099 = vmatpush1.bf16.msra.mxu0 %v4444_v59  ;;  %1142 = vmatpush1.bf16.msra.mxu1 %v4446_v60 }
  0xff   : > { %1100 = vmatprep.subr.bf16.mxu0 %v4448_v61  ;;  %1143 = vmatprep.subr.bf16.mxu1 %v4450_v62 }
 0x101   : > { %761 = vmatmul.mubr.bf16.gmra.mrb[12].mxu0 %v3493_v63  ;;  %834 = vmatmul.mubr.bf16.gmra.mrb[12].mxu1 %v3493_v63 }
 0x102   : > { %1101 = vmatpush1.bf16.msra.mxu0 %v4459_v0  ;;  %1144 = vmatpush1.bf16.msra.mxu1 %v4461_v1 }
 0x103   : > { %1102 = vmatprep.subr.bf16.mxu0 %v4463_v2  ;;  %1145 = vmatprep.subr.bf16.mxu1 %v4465_v4 }
 0x104   : > { %1120 = vmatprep.mubr.bf16.mxu0 %v5164_v3  ;;  %1163 = vmatprep.mubr.bf16.mxu1 %v5164_v3 }
 0x106   : > { %1103 = vmatpush1.bf16.msra.mxu0 %v4471_v5  ;;  %1146 = vmatpush1.bf16.msra.mxu1 %v4473_v6 }
 0x107   : > { %1235 = vmatprep.subr.bf16.mxu0 %v4375_v34  ;;  %1278 = vmatprep.subr.bf16.mxu1 %v4377_v35 }
 0x109   : > { %1121 = vmatmul.mubr.bf16.vlgmr.msra.gmra.mrb[16].mxu0 %v927_v9  ;;  %1164 = vmatmul.mubr.bf16.vlgmr.msra.gmra.mrb[16].mxu1 %v927_v9 }
 0x10a   : > { %1236 = vmatpush1.bf16.msra.mxu0 %v4380_v37  ;;  %1279 = vmatpush1.bf16.msra.mxu1 %v4382_v38 }
 0x10b   : > { %1237 = vmatprep.subr.bf16.mxu0 %v4386_v39  ;;  %1280 = vmatprep.subr.bf16.mxu1 %v4388_v40 }
 0x10c   : > { %1267 = vmatprep.mubr.bf16.mxu0 %v5164_v3  ;;  %1310 = vmatprep.mubr.bf16.mxu1 %v5164_v3 }
 0x10e   : > { %1238 = vmatpush1.bf16.msra.mxu0 %v4390_v41  ;;  %1281 = vmatpush1.bf16.msra.mxu1 %v4394_v42 }
 0x10f   : > { %1239 = vmatprep.subr.bf16.mxu0 %v4398_v43  ;;  %1282 = vmatprep.subr.bf16.mxu1 %v4400_v44 }
 0x112   : > { %1240 = vmatpush1.bf16.msra.mxu0 %v4405_v46  ;;  %1283 = vmatpush1.bf16.msra.mxu1 %v4407_v47 }
 0x113   : > { %1241 = vmatprep.subr.bf16.mxu0 %v4411_v48  ;;  %1284 = vmatprep.subr.bf16.mxu1 %v4415_v49 }
 0x116   : > { %1242 = vmatpush1.bf16.msra.mxu0 %v4417_v50  ;;  %1285 = vmatpush1.bf16.msra.mxu1 %v4419_v51 }
 0x117   : > { %1243 = vmatprep.subr.bf16.mxu0 %v4423_v52  ;;  %1286 = vmatprep.subr.bf16.mxu1 %v4427_v53 }
 0x11a   : > { %1244 = vmatpush1.bf16.msra.mxu0 %v4432_v55  ;;  %1287 = vmatpush1.bf16.msra.mxu1 %v4434_v56 }
 0x11b   : > { %1245 = vmatprep.subr.bf16.mxu0 %v4436_v57  ;;  %1288 = vmatprep.subr.bf16.mxu1 %v4438_v58 }
 0x11e   : > { %1246 = vmatpush1.bf16.msra.mxu0 %v4444_v59  ;;  %1289 = vmatpush1.bf16.msra.mxu1 %v4446_v60 }
 0x11f   : > { %1247 = vmatprep.subr.bf16.mxu0 %v4448_v61  ;;  %1290 = vmatprep.subr.bf16.mxu1 %v4450_v62 }
 0x122   : > { %1248 = vmatpush1.bf16.msra.mxu0 %v4459_v0  ;;  %1291 = vmatpush1.bf16.msra.mxu1 %v4461_v1 }
 0x123   : > { %1249 = vmatprep.subr.bf16.mxu0 %v4463_v2  ;;  %1292 = vmatprep.subr.bf16.mxu1 %v4465_v4 }
 0x126   : > { %1250 = vmatpush1.bf16.msra.mxu0 %v4471_v5  ;;  %1293 = vmatpush1.bf16.msra.mxu1 %v4473_v6 }
 0x127   : > { %1383 = vmatprep.subr.bf16.mxu0 %v4375_v34  ;;  %1426 = vmatprep.subr.bf16.mxu1 %v4377_v35 }
 0x1bc   : > { %v732_v20 = vpop.f32.mrb[0].mxu0  ;;  %v805_v22 = vpop.f32.mrb[0].mxu1 }
 0x1bd   : > { %v734_v23 = vpop.f32.mrb[1].mxu0  ;;  %v806_v24 = vadd.f32 %v805_v22, %v4530_v17  ;;  %v807_v25 = vpop.f32.mrb[1].mxu1  ;;  %v733_v29 = vadd.f32 %v732_v20, %v4538_v19 }
 0x1be   : > { %v736_v26 = vpop.f32.mrb[2].mxu0  ;;  %v808_v27 = vadd.f32 %v807_v25, %v4534_v18  ;;  %v809_v28 = vpop.f32.mrb[2].mxu1  ;;  %v735_v36 = vadd.f32 %v734_v23, %v4542_v21 }
 0x1bf   : > { %v737_v30 = vadd.f32 %v736_v26, %v4538_v19  ;;  %v738_v31 = vpop.f32.mrb[3].mxu0  ;;  %v810_v32 = vadd.f32 %v809_v28, %v4530_v17  ;;  %v811_v33 = vpop.f32.mrb[3].mxu1 }
 0x1c0   : > { %v739_v45 = vadd.f32 %v738_v31, %v4542_v21  ;;  %v812_v54 = vadd.f32 %v811_v33, %v4534_v18 }
 0x1c1   : > { %v4552_v63 = vpack.c.bf16 %v737_v30, %v733_v29  ;;  %v4554_v7 = vpack.c.bf16 %v810_v32, %v806_v24 }
 0x1c2   : > { %v4556_v8 = vpack.c.bf16 %v739_v45, %v735_v36  ;;  %v4558_v9 = vpack.c.bf16 %v812_v54, %v808_v27 }
 0x1c4   : > { %v742_v10 = vpop.f32.mrb[4].mxu0  ;;  %v815_v15 = vpop.f32.mrb[4].mxu1 }
 0x1c5   : > { %v743_v20 = vadd.f32 %v742_v10, %v4538_v19  ;;  %v744_v22 = vpop.f32.mrb[5].mxu0  ;;  %v816_v25 = vadd.f32 %v815_v15, %v4530_v17  ;;  %v817_v23 = vpop.f32.mrb[5].mxu1 }
 0x1c6   : > { %v745_v26 = vadd.f32 %v744_v22, %v4542_v21  ;;  %v746_v28 = vpop.f32.mrb[6].mxu0  ;;  %v818_v29 = vadd.f32 %v817_v23, %v4534_v18  ;;  %v819_v30 = vpop.f32.mrb[6].mxu1 }
 0x1c7   : > { %v747_v24 = vadd.f32 %v746_v28, %v4538_v19  ;;  %v748_v31 = vpop.f32.mrb[7].mxu0  ;;  %v820_v27 = vadd.f32 %v819_v30, %v4530_v17  ;;  %v821_v32 = vpop.f32.mrb[7].mxu1 }
 0x1c8   : > { %v749_v33 = vadd.f32 %v748_v31, %v4542_v21  ;;  %v822_v36 = vadd.f32 %v821_v32, %v4534_v18 }
 0x1c9   : > { %v4568_v45 = vpack.c.bf16 %v747_v24, %v743_v20  ;;  %v4570_v54 = vpack.c.bf16 %v820_v27, %v816_v25 }
 0x1ca   : > { %v4572_v10 = vpack.c.bf16 %v749_v33, %v745_v26  ;;  %v4574_v15 = vpack.c.bf16 %v822_v36, %v818_v29 }
 0x1cc   : > { %5197 = vst [vmem:[#allocation24_spill] sm:$0xff] %v4574_v15  ;;  %v752_v22 = vpop.f32.mrb[8].mxu0  ;;  %v825_v23 = vpop.f32.mrb[8].mxu1 }
 0x1cd   : > { %v753_v28 = vadd.f32 %v752_v22, %v4538_v19  ;;  %v754_v13 = vpop.f32.mrb[9].mxu0  ;;  %v826_v30 = vadd.f32 %v825_v23, %v4530_v17  ;;  %v827_v16 = vpop.f32.mrb[9].mxu1 }
 0x1ce   : > { %v755_v31 = vadd.f32 %v754_v13, %v4542_v21  ;;  %v756_v12 = vpop.f32.mrb[10].mxu0  ;;  %v828_v20 = vadd.f32 %v827_v16, %v4534_v18  ;;  %v829_v24 = vpop.f32.mrb[10].mxu1 }
 0x1cf   : > { %v757_v25 = vadd.f32 %v756_v12, %v4538_v19  ;;  %v758_v26 = vpop.f32.mrb[11].mxu0  ;;  %v830_v29 = vadd.f32 %v829_v24, %v4530_v17  ;;  %v831_v27 = vpop.f32.mrb[11].mxu1 }
 0x1d0   : > { %v759_v32 = vadd.f32 %v758_v26, %v4542_v21  ;;  %v832_v33 = vadd.f32 %v831_v27, %v4534_v18 }
 0x1d1   : > { %v4584_v36 = vpack.c.bf16 %v757_v25, %v753_v28  ;;  %v4586_v22 = vpack.c.bf16 %v830_v29, %v826_v30 }
 0x1d2   : > { %v4588_v23 = vpack.c.bf16 %v759_v32, %v755_v31  ;;  %v4590_v13 = vpack.c.bf16 %v832_v33, %v828_v20 }
 0x1d4   : > { %5198 = vst [vmem:[#allocation25_spill] sm:$0xff] %v4590_v13  ;;  %v762_v16 = vpop.f32.mrb[12].mxu0  ;;  %v835_v14 = vpop.f32.mrb[12].mxu1 }
 0x1d5   : > { %v763_v12 = vadd.f32 %v762_v16, %v4538_v19  ;;  %v764_v3 = vpop.f32.mrb[13].mxu0  ;;  %v836_v24 = vadd.f32 %v835_v14, %v4530_v17  ;;  %v837_v11 = vpop.f32.mrb[13].mxu1 }
 0x1d6   : > { %v765_v26 = vadd.f32 %v764_v3, %v4542_v21  ;;  %v766_v15 = vpop.f32.mrb[14].mxu0  ;;  %v838_v28 = vadd.f32 %v837_v11, %v4534_v18  ;;  %v839_v25 = vpop.f32.mrb[14].mxu1  ;;  %v919_v11 = vunpack.c.l.bf16 %v4552_v63 }
 0x1d7   : > { %v767_v30 = vadd.f32 %v766_v15, %v4538_v19  ;;  %v768_v31 = vpop.f32.mrb[15].mxu0  ;;  %v840_v20 = vadd.f32 %v839_v25, %v4530_v17  ;;  %v841_v29 = vpop.f32.mrb[15].mxu1  ;;  %v921_v19 = vunpack.c.l.bf16 %v4554_v7  ;;  %v920_v17 = vunpack.c.l.bf16 %v4556_v8 }
 0x1d8   : > { %v769_v27 = vadd.f32 %v768_v31, %v4542_v21  ;;  %v842_v32 = vadd.f32 %v841_v29, %v4534_v18  ;;  %v922_v21 = vunpack.c.l.bf16 %v4558_v9 }
 0x1d9   : > { %v4600_v33 = vpack.c.bf16 %v767_v30, %v763_v12  ;;  %v4602_v14 = vpack.c.bf16 %v840_v20, %v836_v24  ;;  %v923_v24 = vunpack.c.h.bf16 %v4552_v63 }
 0x1da   : > { %v4604_v16 = vpack.c.bf16 %v769_v27, %v765_v26  ;;  %v4606_v3 = vpack.c.bf16 %v842_v32, %v838_v28  ;;  %v925_v26 = vunpack.c.h.bf16 %v4554_v7  ;;  %v924_v27 = vunpack.c.h.bf16 %v4556_v8 }
 0x1db   : > { %5199 = vst [vmem:[#allocation26_spill] sm:$0xff] %v4600_v33  ;;  %5200 = vst [vmem:[#allocation27_spill] sm:$0xff] %v4602_v14  ;;  %v926_v32 = vunpack.c.h.bf16 %v4558_v9 }
 0x1dc   : > { %5201 = vst [vmem:[#allocation28_spill] sm:$0xff] %v4604_v16  ;;  %5202 = vst [vmem:[#allocation29_spill] sm:$0xff] %v4606_v3  ;;  %v1122_v15 = vpop.f32.mrb[16].mxu0  ;;  %v1165_v13 = vpop.f32.mrb[16].mxu1 }
 0x1dd   : > { %v1174_v25 = vadd.f32 %v1122_v15, %v919_v11  ;;  %v1176_v18 = vadd.f32 %v1165_v13, %v921_v19  ;;  %v1124_v12 = vpop.f32.mrb[17].mxu0  ;;  %v1167_v30 = vpop.f32.mrb[17].mxu1 }
 0x1de   : > { %v1175_v28 = vadd.f32 %v1124_v12, %v920_v17  ;;  %v1177_v31 = vadd.f32 %v1167_v30, %v922_v21  ;;  %v1126_v20 = vpop.f32.mrb[18].mxu0  ;;  %v1169_v29 = vpop.f32.mrb[18].mxu1 }
 0x1df   : > { %v1182_v3 = vmul.f32 0.5, %v1174_v25  ;;  %v1178_v16 = vadd.f32 %v1126_v20, %v923_v24  ;;  %v1180_v14 = vadd.f32 %v1169_v29, %v925_v26  ;;  %v1128_v33 = vpop.f32.mrb[19].mxu0  ;;  %v1171_v11 = vpop.f32.mrb[19].mxu1  ;;  %v910_v26 = vld [vmem:[#allocation5] sm:$0xff] }
 0x1e0   : > { %v1190_v13 = vmul.f32 0.5, %v1175_v28  ;;  %v1179_v19 = vadd.f32 %v1128_v33, %v924_v27  ;;  %v1181_v15 = vadd.f32 %v1171_v11, %v926_v32  ;;  %v1200_v9 = vmul.f32 0.5, %v1177_v31  ;;  %v911_v32 = vld [vmem:[#allocation5 + $0x8] sm:$0xff] }
 0x1e1   : > { %3602 = vtanh.f32 %v1182_v3  ;;  %v1183_v63 = vmul.f32 0.5, %v1178_v16 }
 0x1e2   : > { %3604 = vtanh.f32 %v1190_v13  ;;  %v1191_v7 = vmul.f32 0.5, %v1179_v19  ;;  %v1201_v12 = vmul.f32 0.5, %v1181_v15 }
 0x1e3   : > { %3606 = vtanh.f32 %v1183_v63 }
 0x1e4   : > { %3608 = vtanh.f32 %v1176_v18 }
 0x1e5   : > { %3610 = vtanh.f32 %v1191_v7 }
 0x1e6   : > { %3612 = vtanh.f32 %v1180_v14 }
 0x1e7   : > { %3614 = vtanh.f32 %v1200_v9 }
 0x1e8   : > { %3616 = vtanh.f32 %v1201_v12 }
 0x1eb   : > { %v3603_v17 = vpop.eup %3602 }
 0x1ec   : > { %v3605_v8 = vpop.eup %3604  ;;  %v1186_v21 = vmul.f32 0.5, %v3603_v17 }
 0x1ed   : > { %v1194_v25 = vmul.f32 0.5, %v3605_v8  ;;  %v3607_v30 = vpop.eup %3606 }
 0x1ee   : > { %v1188_v24 = vadd.f32 0.5, %v1186_v21  ;;  %v3609_v28 = vpop.eup %3608  ;;  %v1187_v20 = vmul.f32 0.5, %v3607_v30 }
 0x1ef   : > { %v1196_v33 = vadd.f32 0.5, %v1194_v25  ;;  %v3611_v3 = vpop.eup %3610 }
 0x1f0   : > { %v1210_v16 = vmul.f32 %v3609_v28, %v1188_v24  ;;  %v1189_v27 = vadd.f32 0.5, %v1187_v20  ;;  %v1195_v18 = vmul.f32 0.5, %v3611_v3  ;;  %v3613_v14 = vpop.eup %3612  ;;  %v5203_v28 = vmov 0  }
 0x1f1   : > { %v1208_v29 = vmul.f32 %v1196_v33, %v910_v26  ;;  %v3615_v63 = vpop.eup %3614  ;;  %v1227_v33 = vunpack.c.l.bf16 %v4568_v45  ;;  %v1229_v20 = vunpack.c.l.bf16 %v4570_v54 }
 0x1f2   : > { %v1197_v31 = vadd.f32 0.5, %v1195_v18  ;;  %v1211_v13 = vmul.f32 %v3613_v14, %v1189_v27  ;;  %v3617_v7 = vpop.eup %3616  ;;  %v1204_v17 = vmul.f32 0.5, %v3615_v63  ;;  %v5204_v27 = vld [vmem:[#allocation24_spill] sm:$0xff] }
 0x1f3   : > { %v4616_v11 = vadd.f32 %v1210_v16, %v1208_v29  ;;  %v1205_v8 = vmul.f32 0.5, %v3617_v7  ;;  %v1228_v29 = vunpack.c.l.bf16 %v4572_v10  ;;  %v1230_v18 = vunpack.c.l.bf16 %v5204_v27 }
 0x1f4   : > { %v1209_v19 = vmul.f32 %v1197_v31, %v911_v32  ;;  %v1206_v9 = vadd.f32 0.5, %v1204_v17 }
 0x1f5   : > { %3618 = vtanh.f32 %v4616_v11  ;;  %v1207_v25 = vadd.f32 0.5, %v1205_v8  ;;  %v1232_v8 = vunpack.c.h.bf16 %v4572_v10 }
 0x1f6   : > { %v4619_v15 = vadd.f32 %v1211_v13, %v1209_v19  ;;  %v1231_v19 = vunpack.c.h.bf16 %v4568_v45 }
 0x1f8   : > { %3620 = vtanh.f32 %v4619_v15 }
 0x1ff   : > { %v3619_v21 = vpop.eup %3618 }
 0x200   : > { %v1216_v30 = vmul.f32 %v3619_v21, %v1206_v9  ;;  %v1234_v21 = vunpack.c.h.bf16 %v5204_v27 }
 0x202   : > { %v3621_v12 = vpop.eup %3620 }
 0x203   : > { %v1217_v24 = vmul.f32 %v3621_v12, %v1207_v25 }
 0x205   : > { %v4622_v26 = vpack.c.bf16 %v1217_v24, %v1216_v30 }
 0x207   : > { %1268 = vmatmul.mubr.bf16.vlgmr.msra.gmra.mrb[20].mxu0 %v4622_v26  ;;  %1311 = vmatmul.mubr.bf16.vlgmr.msra.gmra.mrb[20].mxu1 %v4622_v26 }
 0x208   : > { %1384 = vmatpush1.bf16.msra.mxu0 %v4380_v37  ;;  %1427 = vmatpush1.bf16.msra.mxu1 %v4382_v38 }
 0x209   : > { %1385 = vmatprep.subr.bf16.mxu0 %v4386_v39  ;;  %1428 = vmatprep.subr.bf16.mxu1 %v4388_v40 }
 0x20a   : > { %1415 = vmatprep.mubr.bf16.mxu0 %v5203_v28  ;;  %1458 = vmatprep.mubr.bf16.mxu1 %v5203_v28 }
 0x20c   : > { %1386 = vmatpush1.bf16.msra.mxu0 %v4390_v41  ;;  %1429 = vmatpush1.bf16.msra.mxu1 %v4394_v42 }
 0x20d   : > { %1387 = vmatprep.subr.bf16.mxu0 %v4398_v43  ;;  %1430 = vmatprep.subr.bf16.mxu1 %v4400_v44 }
 0x210   : > { %1388 = vmatpush1.bf16.msra.mxu0 %v4405_v46  ;;  %1431 = vmatpush1.bf16.msra.mxu1 %v4407_v47 }
 0x211   : > { %1389 = vmatprep.subr.bf16.mxu0 %v4411_v48  ;;  %1432 = vmatprep.subr.bf16.mxu1 %v4415_v49 }
 0x214   : > { %1390 = vmatpush1.bf16.msra.mxu0 %v4417_v50  ;;  %1433 = vmatpush1.bf16.msra.mxu1 %v4419_v51 }
 0x215   : > { %1391 = vmatprep.subr.bf16.mxu0 %v4423_v52  ;;  %1434 = vmatprep.subr.bf16.mxu1 %v4427_v53 }
 0x218   : > { %1392 = vmatpush1.bf16.msra.mxu0 %v4432_v55  ;;  %1435 = vmatpush1.bf16.msra.mxu1 %v4434_v56 }
 0x219   : > { %1393 = vmatprep.subr.bf16.mxu0 %v4436_v57  ;;  %1436 = vmatprep.subr.bf16.mxu1 %v4438_v58 }
 0x21c   : > { %1394 = vmatpush1.bf16.msra.mxu0 %v4444_v59  ;;  %1437 = vmatpush1.bf16.msra.mxu1 %v4446_v60 }
 0x21d   : > { %1395 = vmatprep.subr.bf16.mxu0 %v4448_v61  ;;  %1438 = vmatprep.subr.bf16.mxu1 %v4450_v62 }
 0x220   : > { %1396 = vmatpush1.bf16.msra.mxu0 %v4459_v0  ;;  %1439 = vmatpush1.bf16.msra.mxu1 %v4461_v1 }
 0x221   : > { %1397 = vmatprep.subr.bf16.mxu0 %v4463_v2  ;;  %1440 = vmatprep.subr.bf16.mxu1 %v4465_v4 }
 0x224   : > { %1398 = vmatpush1.bf16.msra.mxu0 %v4471_v5  ;;  %1441 = vmatpush1.bf16.msra.mxu1 %v4473_v6 }
 0x225   : > { %1531 = vmatprep.subr.bf16.mxu0 %v4375_v34  ;;  %1574 = vmatprep.subr.bf16.mxu1 %v4377_v35  ;;  %v1233_v34 = vunpack.c.h.bf16 %v4570_v54 }
 0x2da   : > { %v1269_v3 = vpop.f32.mrb[20].mxu0  ;;  %v1312_v16 = vpop.f32.mrb[20].mxu1 }
 0x2db   : > { %v1321_v14 = vadd.f32 %v1269_v3, %v1227_v33  ;;  %v1323_v32 = vadd.f32 %v1312_v16, %v1229_v20  ;;  %v1271_v31 = vpop.f32.mrb[21].mxu0  ;;  %v1314_v13 = vpop.f32.mrb[21].mxu1 }
 0x2dc   : > { %v1322_v63 = vadd.f32 %v1271_v31, %v1228_v29  ;;  %v1324_v35 = vadd.f32 %v1314_v13, %v1230_v18  ;;  %v1273_v7 = vpop.f32.mrb[22].mxu0  ;;  %v1316_v17 = vpop.f32.mrb[22].mxu1 }
 0x2dd   : > { %v1329_v9 = vmul.f32 0.5, %v1321_v14  ;;  %v1325_v25 = vadd.f32 %v1273_v7, %v1231_v19  ;;  %v1327_v12 = vadd.f32 %v1316_v17, %v1233_v34  ;;  %v1275_v30 = vpop.f32.mrb[23].mxu0  ;;  %v1318_v24 = vpop.f32.mrb[23].mxu1 }
 0x2de   : > { %v1337_v33 = vmul.f32 0.5, %v1322_v63  ;;  %v1326_v20 = vadd.f32 %v1275_v30, %v1232_v8  ;;  %v1328_v3 = vadd.f32 %v1318_v24, %v1234_v21  ;;  %v1347_v27 = vmul.f32 0.5, %v1324_v35 }
 0x2df   : > { %3622 = vtanh.f32 %v1329_v9  ;;  %v1330_v45 = vmul.f32 0.5, %v1325_v25 }
 0x2e0   : > { %3624 = vtanh.f32 %v1337_v33  ;;  %v1338_v54 = vmul.f32 0.5, %v1326_v20  ;;  %v1348_v14 = vmul.f32 0.5, %v1328_v3 }
 0x2e1   : > { %3626 = vtanh.f32 %v1330_v45 }
 0x2e2   : > { %3628 = vtanh.f32 %v1323_v32 }
 0x2e3   : > { %3630 = vtanh.f32 %v1338_v54 }
 0x2e4   : > { %3632 = vtanh.f32 %v1327_v12 }
 0x2e5   : > { %3634 = vtanh.f32 %v1347_v27 }
 0x2e6   : > { %3636 = vtanh.f32 %v1348_v14 }
 0x2e9   : > { %v3623_v16 = vpop.eup %3622 }
 0x2ea   : > { %v3625_v10 = vpop.eup %3624  ;;  %v1333_v29 = vmul.f32 0.5, %v3623_v16 }
 0x2eb   : > { %v1341_v18 = vmul.f32 0.5, %v3625_v10  ;;  %v3627_v31 = vpop.eup %3626 }
 0x2ec   : > { %v1335_v13 = vadd.f32 0.5, %v1333_v29  ;;  %v3629_v19 = vpop.eup %3628  ;;  %v1334_v63 = vmul.f32 0.5, %v3627_v31 }
 0x2ed   : > { %v1343_v34 = vadd.f32 0.5, %v1341_v18  ;;  %v3631_v7 = vpop.eup %3630 }
 0x2ee   : > { %v1357_v17 = vmul.f32 %v3629_v19, %v1335_v13  ;;  %v1336_v21 = vadd.f32 0.5, %v1334_v63  ;;  %v1342_v32 = vmul.f32 0.5, %v3631_v7  ;;  %v3633_v9 = vpop.eup %3632 }
 0x2ef   : > { %v1355_v8 = vmul.f32 %v1343_v34, %v4616_v11  ;;  %v3635_v33 = vpop.eup %3634 }
 0x2f0   : > { %v1344_v12 = vadd.f32 0.5, %v1342_v32  ;;  %v1358_v35 = vmul.f32 %v3633_v9, %v1336_v21  ;;  %v3637_v20 = vpop.eup %3636  ;;  %v1351_v3 = vmul.f32 0.5, %v3635_v33 }
 0x2f1   : > { %v4669_v25 = vadd.f32 %v1357_v17, %v1355_v8  ;;  %v1352_v11 = vmul.f32 0.5, %v3637_v20 }
 0x2f2   : > { %v1356_v30 = vmul.f32 %v1344_v12, %v4619_v15  ;;  %v1353_v54 = vadd.f32 0.5, %v1351_v3 }
 0x2f3   : > { %3638 = vtanh.f32 %v4669_v25  ;;  %v1354_v16 = vadd.f32 0.5, %v1352_v11 }
 0x2f4   : > { %v4673_v24 = vadd.f32 %v1358_v35, %v1356_v30 }
 0x2f6   : > { %3640 = vtanh.f32 %v4673_v24 }
 0x2fd   : > { %v3639_v45 = vpop.eup %3638 }
 0x2fe   : > { %v1363_v29 = vmul.f32 %v3639_v45, %v1353_v54 }
 0x300   : > { %v3641_v10 = vpop.eup %3640 }
 0x301   : > { %v1364_v27 = vmul.f32 %v3641_v10, %v1354_v16 }
 0x303   : > { %v4676_v18 = vpack.c.bf16 %v1364_v27, %v1363_v29 }
 0x305   : > { %1416 = vmatmul.mubr.bf16.vlgmr.msra.gmra.mrb[24].mxu0 %v4676_v18  ;;  %1459 = vmatmul.mubr.bf16.vlgmr.msra.gmra.mrb[24].mxu1 %v4676_v18 }
 0x306   : > { %1532 = vmatpush1.bf16.msra.mxu0 %v4380_v37  ;;  %1575 = vmatpush1.bf16.msra.mxu1 %v4382_v38  ;;  %v3508_v37 = vld [vmem:[#allocation12 + $0x4] ss:$16 sps:$4 sm:$0xff]   ;;  %v3511_v38 = vld [vmem:[#allocation12 + $0xc] ss:$16 sps:$4 sm:$0xff]  }
 0x307   : > { %1533 = vmatprep.subr.bf16.mxu0 %v4386_v39  ;;  %1576 = vmatprep.subr.bf16.mxu1 %v4388_v40  ;;  %v1375_v39 = vunpack.c.l.bf16 %v4584_v36  ;;  %v1377_v40 = vunpack.c.l.bf16 %v4586_v22 }
 0x308   : > { %1563 = vmatprep.mubr.bf16.mxu0 %v5203_v28  ;;  %1606 = vmatprep.mubr.bf16.mxu1 %v5203_v28 }
 0x30a   : > { %1534 = vmatpush1.bf16.msra.mxu0 %v4390_v41  ;;  %1577 = vmatpush1.bf16.msra.mxu1 %v4394_v42 }
 0x30b   : > { %1535 = vmatprep.subr.bf16.mxu0 %v4398_v43  ;;  %1578 = vmatprep.subr.bf16.mxu1 %v4400_v44  ;;  %v1376_v43 = vunpack.c.l.bf16 %v4588_v23  ;;  %v5205_v44 = vld [vmem:[#allocation25_spill] sm:$0xff] }
 0x30e   : > { %1536 = vmatpush1.bf16.msra.mxu0 %v4405_v46  ;;  %1579 = vmatpush1.bf16.msra.mxu1 %v4407_v47  ;;  %v1378_v46 = vunpack.c.l.bf16 %v5205_v44 }
 0x30f   : > { %1537 = vmatprep.subr.bf16.mxu0 %v4411_v48  ;;  %1580 = vmatprep.subr.bf16.mxu1 %v4415_v49 }
 0x312   : > { %1538 = vmatpush1.bf16.msra.mxu0 %v4417_v50  ;;  %1581 = vmatpush1.bf16.msra.mxu1 %v4419_v51  ;;  %v1379_v51 = vunpack.c.h.bf16 %v4584_v36 }
 0x313   : > { %1539 = vmatprep.subr.bf16.mxu0 %v4423_v52  ;;  %1582 = vmatprep.subr.bf16.mxu1 %v4427_v53  ;;  %v1381_v52 = vunpack.c.h.bf16 %v4586_v22 }
 0x316   : > { %1540 = vmatpush1.bf16.msra.mxu0 %v4432_v55  ;;  %1583 = vmatpush1.bf16.msra.mxu1 %v4434_v56 }
 0x317   : > { %1541 = vmatprep.subr.bf16.mxu0 %v4436_v57  ;;  %1584 = vmatprep.subr.bf16.mxu1 %v4438_v58  ;;  %v1380_v58 = vunpack.c.h.bf16 %v4588_v23 }
 0x31a   : > { %1542 = vmatpush1.bf16.msra.mxu0 %v4444_v59  ;;  %1585 = vmatpush1.bf16.msra.mxu1 %v4446_v60  ;;  %v1382_v59 = vunpack.c.h.bf16 %v5205_v44  ;;  %v3512_v44 = vld [vmem:[#allocation12 + $0x20] ss:$16 sps:$4 sm:$0xff]  }
 0x31b   : > { %1543 = vmatprep.subr.bf16.mxu0 %v4448_v61  ;;  %1586 = vmatprep.subr.bf16.mxu1 %v4450_v62 }
 0x31e   : > { %1544 = vmatpush1.bf16.msra.mxu0 %v4459_v0  ;;  %1587 = vmatpush1.bf16.msra.mxu1 %v4461_v1 }
 0x31f   : > { %1545 = vmatprep.subr.bf16.mxu0 %v4463_v2  ;;  %1588 = vmatprep.subr.bf16.mxu1 %v4465_v4 }
 0x322   : > { %1546 = vmatpush1.bf16.msra.mxu0 %v4471_v5  ;;  %1589 = vmatpush1.bf16.msra.mxu1 %v4473_v6 }
 0x323   : > { %1886 = vmatprep.subr.bf16.mxu0 %v3508_v37  ;;  %1959 = vmatprep.subr.bf16.mxu1 %v3511_v38 }
 0x3d8   : > { %v1417_v41 = vpop.f32.mrb[24].mxu0  ;;  %v1460_v42 = vpop.f32.mrb[24].mxu1 }
 0x3d9   : > { %v1469_v47 = vadd.f32 %v1417_v41, %v1375_v39  ;;  %v1471_v48 = vadd.f32 %v1460_v42, %v1377_v40  ;;  %v1419_v49 = vpop.f32.mrb[25].mxu0  ;;  %v1462_v50 = vpop.f32.mrb[25].mxu1  ;;  %v3506_v40 = vld [vmem:[#allocation12] ss:$16 sps:$4 sm:$0xff]   ;;  %v3509_v41 = vld [vmem:[#allocation12 + $0x8] ss:$16 sps:$4 sm:$0xff]  }
 0x3da   : > { %v1470_v53 = vadd.f32 %v1419_v49, %v1376_v43  ;;  %v1472_v55 = vadd.f32 %v1462_v50, %v1378_v46  ;;  %v1421_v56 = vpop.f32.mrb[26].mxu0  ;;  %v1464_v57 = vpop.f32.mrb[26].mxu1  ;;  %v3517_v43 = vld [vmem:[#allocation12 + $0x2c] ss:$16 sps:$4 sm:$0xff]   ;;  %v3515_v46 = vld [vmem:[#allocation12 + $0x28] ss:$16 sps:$4 sm:$0xff]  }
 0x3db   : > { %v1477_v60 = vmul.f32 0.5, %v1469_v47  ;;  %v1473_v61 = vadd.f32 %v1421_v56, %v1379_v51  ;;  %v1475_v62 = vadd.f32 %v1464_v57, %v1381_v52  ;;  %v1423_v0 = vpop.f32.mrb[27].mxu0  ;;  %v1466_v1 = vpop.f32.mrb[27].mxu1  ;;  %v3520_v47 = vld [vmem:[#allocation12 + $0x44] ss:$16 sps:$4 sm:$0xff]  }
 0x3dc   : > { %v1485_v2 = vmul.f32 0.5, %v1470_v53  ;;  %v1474_v4 = vadd.f32 %v1423_v0, %v1380_v58  ;;  %v1476_v5 = vadd.f32 %v1466_v1, %v1382_v59  ;;  %v1495_v14 = vmul.f32 0.5, %v1472_v55  ;;  %v3518_v49 = vld [vmem:[#allocation12 + $0x40] ss:$16 sps:$4 sm:$0xff]   ;;  %v3521_v50 = vld [vmem:[#allocation12 + $0x48] ss:$16 sps:$4 sm:$0xff]  }
 0x3dd   : > { %3642 = vtanh.f32 %v1477_v60  ;;  %v1478_v6 = vmul.f32 0.5, %v1473_v61  ;;  %v3526_v51 = vld [vmem:[#allocation12 + $0x64] ss:$16 sps:$4 sm:$0xff]   ;;  %v3529_v52 = vld [vmem:[#allocation12 + $0x6c] ss:$16 sps:$4 sm:$0xff]  }
 0x3de   : > { %3644 = vtanh.f32 %v1485_v2  ;;  %v1486_v36 = vmul.f32 0.5, %v1474_v4  ;;  %v1496_v13 = vmul.f32 0.5, %v1476_v5  ;;  %v3524_v53 = vld [vmem:[#allocation12 + $0x60] ss:$16 sps:$4 sm:$0xff]   ;;  %v3527_v55 = vld [vmem:[#allocation12 + $0x68] ss:$16 sps:$4 sm:$0xff]  }
 0x3df   : > { %3646 = vtanh.f32 %v1478_v6  ;;  %v3532_v56 = vld [vmem:[#allocation12 + $0x84] ss:$16 sps:$4 sm:$0xff]   ;;  %v3535_v57 = vld [vmem:[#allocation12 + $0x8c] ss:$16 sps:$4 sm:$0xff]   ;;  %v3530_v58 = vld [vmem:[#allocation12 + $0x80] ss:$16 sps:$4 sm:$0xff]  }
 0x3e0   : > { %3648 = vtanh.f32 %v1471_v48  ;;  %v3523_v48 = vld [vmem:[#allocation12 + $0x4c] ss:$16 sps:$4 sm:$0xff]   ;;  %v3533_v59 = vld [vmem:[#allocation12 + $0x88] ss:$16 sps:$4 sm:$0xff]   ;;  %v3538_v60 = vld [vmem:[#allocation12 + $0xa4] ss:$16 sps:$4 sm:$0xff]  }
 0x3e1   : > { %3650 = vtanh.f32 %v1486_v36  ;;  %v3541_v61 = vld [vmem:[#allocation12 + $0xac] ss:$16 sps:$4 sm:$0xff]   ;;  %v3539_v0 = vld [vmem:[#allocation12 + $0xa8] ss:$16 sps:$4 sm:$0xff]   ;;  %v3544_v1 = vld [vmem:[#allocation12 + $0xc4] ss:$16 sps:$4 sm:$0xff]  }
 0x3e2   : > { %3652 = vtanh.f32 %v1475_v62  ;;  %v3536_v62 = vld [vmem:[#allocation12 + $0xa0] ss:$16 sps:$4 sm:$0xff]   ;;  %v3547_v2 = vld [vmem:[#allocation12 + $0xcc] ss:$16 sps:$4 sm:$0xff]   ;;  %v3545_v5 = vld [vmem:[#allocation12 + $0xc8] ss:$16 sps:$4 sm:$0xff]  }
 0x3e3   : > { %3654 = vtanh.f32 %v1495_v14  ;;  %v3542_v4 = vld [vmem:[#allocation12 + $0xc0] ss:$16 sps:$4 sm:$0xff]   ;;  %v3550_v6 = vld [vmem:[#allocation12 + $0xe4] ss:$16 sps:$4 sm:$0xff]   ;;  %v3553_v36 = vld [vmem:[#allocation12 + $0xec] ss:$16 sps:$4 sm:$0xff]  }
 0x3e4   : > { %3656 = vtanh.f32 %v1496_v13  ;;  %v4750_v14 = vld [vmem:[#allocation14] ss:$16 sps:$4 sm:$0xff]   ;;  %v4760_v13 = vld [vmem:[#allocation14 + $0x2c] ss:$16 sps:$4 sm:$0xff]  }
 0x3e7   : > { %v3643_v22 = vpop.eup %3642 }
 0x3e8   : > { %v3645_v23 = vpop.eup %3644  ;;  %v1481_v15 = vmul.f32 0.5, %v3643_v22  ;;  %v3548_v22 = vld [vmem:[#allocation12 + $0xe0] ss:$16 sps:$4 sm:$0xff]  }
 0x3e9   : > { %v1489_v31 = vmul.f32 0.5, %v3645_v23  ;;  %v3647_v19 = vpop.eup %3646  ;;  %v3551_v23 = vld [vmem:[#allocation12 + $0xe8] ss:$16 sps:$4 sm:$0xff]  }
 0x3ea   : > { %v1483_v34 = vadd.f32 0.5, %v1481_v15  ;;  %v3649_v63 = vpop.eup %3648  ;;  %v1482_v17 = vmul.f32 0.5, %v3647_v19  ;;  %v4748_v15 = vld [vmem:[#allocation14 + $0xc] ss:$16 sps:$4 sm:$0xff]   ;;  %v4762_v19 = vld [vmem:[#allocation14 + $0x20] ss:$16 sps:$4 sm:$0xff]  }
 0x3eb   : > { %v1491_v7 = vadd.f32 0.5, %v1489_v31  ;;  %v3651_v8 = vpop.eup %3650  ;;  %v4752_v31 = vld [vmem:[#allocation14 + $0x8] ss:$16 sps:$4 sm:$0xff]  }
 0x3ec   : > { %v1505_v21 = vmul.f32 %v3649_v63, %v1483_v34  ;;  %v1484_v9 = vadd.f32 0.5, %v1482_v17  ;;  %v1490_v12 = vmul.f32 0.5, %v3651_v8  ;;  %v3653_v35 = vpop.eup %3652  ;;  %v4764_v34 = vld [vmem:[#allocation14 + $0x28] ss:$16 sps:$4 sm:$0xff]   ;;  %v4770_v63 = vld [vmem:[#allocation14 + $0x44] ss:$16 sps:$4 sm:$0xff]  }
 0x3ed   : > { %v1503_v32 = vmul.f32 %v1491_v7, %v4669_v25  ;;  %v3655_v45 = vpop.eup %3654  ;;  %v4772_v7 = vld [vmem:[#allocation14 + $0x4c] ss:$16 sps:$4 sm:$0xff]   ;;  %v4774_v17 = vld [vmem:[#allocation14 + $0x40] ss:$16 sps:$4 sm:$0xff]   ;;  %v4776_v8 = vld [vmem:[#allocation14 + $0x48] ss:$16 sps:$4 sm:$0xff]  }
 0x3ee   : > { %v1492_v33 = vadd.f32 0.5, %v1490_v12  ;;  %v1506_v20 = vmul.f32 %v3653_v35, %v1484_v9  ;;  %v3657_v54 = vpop.eup %3656  ;;  %v1499_v16 = vmul.f32 0.5, %v3655_v45  ;;  %v4788_v9 = vld [vmem:[#allocation14 + $0x60] ss:$16 sps:$4 sm:$0xff]   ;;  %v4790_v12 = vld [vmem:[#allocation14 + $0x68] ss:$16 sps:$4 sm:$0xff]  }
 0x3ef   : > { %v4721_v30 = vadd.f32 %v1505_v21, %v1503_v32  ;;  %v1500_v25 = vmul.f32 0.5, %v3657_v54  ;;  %v4778_v21 = vld [vmem:[#allocation14 + $0x64] ss:$16 sps:$4 sm:$0xff]   ;;  %v4782_v32 = vld [vmem:[#allocation14 + $0x6c] ss:$16 sps:$4 sm:$0xff]  }
 0x3f0   : > { %v1504_v3 = vmul.f32 %v1492_v33, %v4673_v24  ;;  %v1501_v29 = vadd.f32 0.5, %v1499_v16  ;;  %v3514_v24 = vld [vmem:[#allocation12 + $0x24] ss:$16 sps:$4 sm:$0xff]   ;;  %v4796_v33 = vld [vmem:[#allocation14 + $0x8c] ss:$16 sps:$4 sm:$0xff]  }
 0x3f1   : > { %3658 = vtanh.f32 %v4721_v30  ;;  %v1502_v27 = vadd.f32 0.5, %v1500_v25  ;;  %v4794_v35 = vld [vmem:[#allocation14 + $0x84] ss:$16 sps:$4 sm:$0xff]   ;;  %v4806_v54 = vld [vmem:[#allocation14 + $0xac] ss:$16 sps:$4 sm:$0xff]  }
 0x3f2   : > { %v4725_v11 = vadd.f32 %v1506_v20, %v1504_v3  ;;  %v4798_v20 = vld [vmem:[#allocation14 + $0x80] ss:$16 sps:$4 sm:$0xff]   ;;  %v4800_v3 = vld [vmem:[#allocation14 + $0x88] ss:$16 sps:$4 sm:$0xff]   ;;  %v4804_v45 = vld [vmem:[#allocation14 + $0xa4] ss:$16 sps:$4 sm:$0xff]  }
 0x3f3   : > { %v4812_v16 = vld [vmem:[#allocation14 + $0xa0] ss:$16 sps:$4 sm:$0xff]   ;;  %v4814_v25 = vld [vmem:[#allocation14 + $0xa8] ss:$16 sps:$4 sm:$0xff]  }
 0x3f4   : > { %3660 = vtanh.f32 %v4725_v11 }
 0x3fb   : > { %v3659_v10 = vpop.eup %3658 }
 0x3fc   : > { %v1511_v38 = vmul.f32 %v3659_v10, %v1501_v29  ;;  %v4818_v10 = vld [vmem:[#allocation14 + $0xc4] ss:$16 sps:$4 sm:$0xff]   ;;  %v4820_v29 = vld [vmem:[#allocation14 + $0xcc] ss:$16 sps:$4 sm:$0xff]  }
 0x3fe   : > { %v3661_v37 = vpop.eup %3660 }
 0x3ff   : > { %v1512_v39 = vmul.f32 %v3661_v37, %v1502_v27  ;;  %v4822_v27 = vld [vmem:[#allocation14 + $0xc0] ss:$16 sps:$4 sm:$0xff]   ;;  %v4824_v37 = vld [vmem:[#allocation14 + $0xc8] ss:$16 sps:$4 sm:$0xff]  }
 0x401   : > { %v4728_v42 = vpack.c.bf16 %v1512_v39, %v1511_v38  ;;  %v4828_v38 = vld [vmem:[#allocation14 + $0xe4] ss:$16 sps:$4 sm:$0xff]   ;;  %v4830_v39 = vld [vmem:[#allocation14 + $0xec] ss:$16 sps:$4 sm:$0xff]  }
 0x403   : > { %1564 = vmatmul.mubr.bf16.vlgmr.msra.gmra.mrb[28].mxu0 %v4728_v42  ;;  %1607 = vmatmul.mubr.bf16.vlgmr.msra.gmra.mrb[28].mxu1 %v4728_v42 }
 0x404   : > { %1887 = vmatpush1.bf16.msra.mxu0 %v3506_v40  ;;  %1960 = vmatpush1.bf16.msra.mxu1 %v3509_v41  ;;  %v4836_v40 = vld [vmem:[#allocation14 + $0xe0] ss:$16 sps:$4 sm:$0xff]   ;;  %v4838_v41 = vld [vmem:[#allocation14 + $0xe8] ss:$16 sps:$4 sm:$0xff]  }
 0x405   : > { %1888 = vmatprep.subr.bf16.mxu0 %v3514_v24  ;;  %1961 = vmatprep.subr.bf16.mxu1 %v3517_v43  ;;  %v5207_v43 = vld [vmem:[#allocation27_spill] sm:$0xff] }
 0x406   : > { %1918 = vmatprep.mubr.bf16.mxu0 %v5203_v28  ;;  %1991 = vmatprep.mubr.bf16.mxu1 %v5203_v28 }
 0x408   : > { %1889 = vmatpush1.bf16.msra.mxu0 %v3512_v44  ;;  %1962 = vmatpush1.bf16.msra.mxu1 %v3515_v46  ;;  %v1525_v44 = vunpack.c.l.bf16 %v5207_v43 }
 0x409   : > { %1890 = vmatprep.subr.bf16.mxu0 %v3520_v47  ;;  %1963 = vmatprep.subr.bf16.mxu1 %v3523_v48  ;;  %v5208_v48 = vld [vmem:[#allocation28_spill] sm:$0xff] }
 0x40c   : > { %1891 = vmatpush1.bf16.msra.mxu0 %v3518_v49  ;;  %1964 = vmatpush1.bf16.msra.mxu1 %v3521_v50  ;;  %v1524_v49 = vunpack.c.l.bf16 %v5208_v48  ;;  %v5209_v50 = vld [vmem:[#allocation29_spill] sm:$0xff] }
 0x40d   : > { %1892 = vmatprep.subr.bf16.mxu0 %v3526_v51  ;;  %1965 = vmatprep.subr.bf16.mxu1 %v3529_v52  ;;  %v1526_v51 = vunpack.c.l.bf16 %v5209_v50 }
 0x410   : > { %1893 = vmatpush1.bf16.msra.mxu0 %v3524_v53  ;;  %1966 = vmatpush1.bf16.msra.mxu1 %v3527_v55 }
 0x411   : > { %1894 = vmatprep.subr.bf16.mxu0 %v3532_v56  ;;  %1967 = vmatprep.subr.bf16.mxu1 %v3535_v57 }
 0x414   : > { %1895 = vmatpush1.bf16.msra.mxu0 %v3530_v58  ;;  %1968 = vmatpush1.bf16.msra.mxu1 %v3533_v59  ;;  %v1529_v58 = vunpack.c.h.bf16 %v5207_v43 }
 0x415   : > { %1896 = vmatprep.subr.bf16.mxu0 %v3538_v60  ;;  %1969 = vmatprep.subr.bf16.mxu1 %v3541_v61 }
 0x418   : > { %1897 = vmatpush1.bf16.msra.mxu0 %v3536_v62  ;;  %1970 = vmatpush1.bf16.msra.mxu1 %v3539_v0  ;;  %v1528_v0 = vunpack.c.h.bf16 %v5208_v48 }
 0x419   : > { %1898 = vmatprep.subr.bf16.mxu0 %v3544_v1  ;;  %1971 = vmatprep.subr.bf16.mxu1 %v3547_v2  ;;  %v1530_v1 = vunpack.c.h.bf16 %v5209_v50 }
 0x41c   : > { %1899 = vmatpush1.bf16.msra.mxu0 %v3542_v4  ;;  %1972 = vmatpush1.bf16.msra.mxu1 %v3545_v5 }
 0x41d   : > { %1900 = vmatprep.subr.bf16.mxu0 %v3550_v6  ;;  %1973 = vmatprep.subr.bf16.mxu1 %v3553_v36 }
 0x420   : > { %1901 = vmatpush1.bf16.msra.mxu0 %v3548_v22  ;;  %1974 = vmatpush1.bf16.msra.mxu1 %v3551_v23 }
 0x421   : > { %2318 = vmatprep.subr.bf16.mxu1 %v4748_v15 }
 0x423   : > { %1919 = vmatmul.mubr.bf16.vlgmr.msra.gmra.mrb[32].mxu0 %v4622_v26  ;;  %1992 = vmatmul.mubr.bf16.vlgmr.msra.gmra.mrb[32].mxu1 %v4622_v26  ;;  %v4746_v26 = vld [vmem:[#allocation14 + $0x4] ss:$16 sps:$4 sm:$0xff]  }
 0x424   : > { %1928 = vmatprep.mubr.bf16.mxu0 %v5203_v28  ;;  %2001 = vmatprep.mubr.bf16.mxu1 %v5203_v28 }
 0x425   : > { %2275 = vmatprep.subr.bf16.mxu0 %v4746_v26  ;;  %2319 = vmatpush1.bf16.msra.mxu1 %v4752_v31 }
 0x426   : > { %2276 = vmatpush1.bf16.msra.mxu0 %v4750_v14  ;;  %2320 = vmatprep.subr.bf16.mxu1 %v4760_v13 }
 0x429   : > { %2321 = vmatpush1.bf16.msra.mxu1 %v4764_v34 }
 0x42a   : > { %2322 = vmatprep.subr.bf16.mxu1 %v4772_v7 }
 0x42b   : > { %1929 = vmatmul.mubr.bf16.gmra.mrb[36].mxu0 %v4676_v18  ;;  %2002 = vmatmul.mubr.bf16.gmra.mrb[36].mxu1 %v4676_v18  ;;  %v4758_v18 = vld [vmem:[#allocation14 + $0x24] ss:$16 sps:$4 sm:$0xff]  }
 0x42c   : > { %1938 = vmatprep.mubr.bf16.mxu0 %v5203_v28  ;;  %2011 = vmatprep.mubr.bf16.mxu1 %v5203_v28 }
 0x42d   : > { %2277 = vmatprep.subr.bf16.mxu0 %v4758_v18  ;;  %2323 = vmatpush1.bf16.msra.mxu1 %v4776_v8 }
 0x42e   : > { %2278 = vmatpush1.bf16.msra.mxu0 %v4762_v19  ;;  %2324 = vmatprep.subr.bf16.mxu1 %v4782_v32 }
 0x42f   : > { %2279 = vmatprep.subr.bf16.mxu0 %v4770_v63 }
 0x431   : > { %2325 = vmatpush1.bf16.msra.mxu1 %v4790_v12 }
 0x432   : > { %2280 = vmatpush1.bf16.msra.mxu0 %v4774_v17  ;;  %2326 = vmatprep.subr.bf16.mxu1 %v4796_v33 }
 0x433   : > { %1939 = vmatmul.mubr.bf16.gmra.mrb[40].mxu0 %v4728_v42  ;;  %2012 = vmatmul.mubr.bf16.gmra.mrb[40].mxu1 %v4728_v42  ;;  %v5206_v42 = vld [vmem:[#allocation26_spill] sm:$0xff] }
 0x434   : > { %1948 = vmatprep.mubr.bf16.mxu0 %v5203_v28  ;;  %2021 = vmatprep.mubr.bf16.mxu1 %v5203_v28  ;;  %v1523_v24 = vunpack.c.l.bf16 %v5206_v42  ;;  %v1527_v57 = vunpack.c.h.bf16 %v5206_v42 }
 0x435   : > { %2281 = vmatprep.subr.bf16.mxu0 %v4778_v21  ;;  %2327 = vmatpush1.bf16.msra.mxu1 %v4800_v3 }
 0x436   : > { %2282 = vmatpush1.bf16.msra.mxu0 %v4788_v9  ;;  %2328 = vmatprep.subr.bf16.mxu1 %v4806_v54 }
 0x437   : > { %2283 = vmatprep.subr.bf16.mxu0 %v4794_v35 }
 0x439   : > { %2329 = vmatpush1.bf16.msra.mxu1 %v4814_v25 }
 0x43a   : > { %2284 = vmatpush1.bf16.msra.mxu0 %v4798_v20  ;;  %2330 = vmatprep.subr.bf16.mxu1 %v4820_v29 }
 0x43b   : > { %2285 = vmatprep.subr.bf16.mxu0 %v4804_v45 }
 0x43d   : > { %2331 = vmatpush1.bf16.msra.mxu1 %v4824_v37 }
 0x43e   : > { %2286 = vmatpush1.bf16.msra.mxu0 %v4812_v16  ;;  %2332 = vmatprep.subr.bf16.mxu1 %v4830_v39 }
 0x43f   : > { %2287 = vmatprep.subr.bf16.mxu0 %v4818_v10 }
 0x441   : > { %2333 = vmatpush1.bf16.msra.mxu1 %v4838_v41 }
 0x442   : > { %2288 = vmatpush1.bf16.msra.mxu0 %v4822_v27  ;;  %2461 = vmatprep.subr.bf16.mxu1 %v4748_v15 }
 0x443   : > { %2289 = vmatprep.subr.bf16.mxu0 %v4828_v38 }
 0x446   : > { %2290 = vmatpush1.bf16.msra.mxu0 %v4836_v40 }
 0x447   : > { %2418 = vmatprep.subr.bf16.mxu0 %v4746_v26 }
 0x4d6   : > { %v1565_v46 = vpop.f32.mrb[28].mxu0  ;;  %v1608_v47 = vpop.f32.mrb[28].mxu1 }
 0x4d7   : > { %v1617_v52 = vadd.f32 %v1565_v46, %v1523_v24  ;;  %v1619_v53 = vadd.f32 %v1608_v47, %v1525_v44  ;;  %v1567_v55 = vpop.f32.mrb[29].mxu0  ;;  %v1610_v56 = vpop.f32.mrb[29].mxu1 }
 0x4d8   : > { %v1618_v59 = vadd.f32 %v1567_v55, %v1524_v49  ;;  %v1620_v60 = vadd.f32 %v1610_v56, %v1526_v51  ;;  %v1569_v61 = vpop.f32.mrb[30].mxu0  ;;  %v1612_v62 = vpop.f32.mrb[30].mxu1 }
 0x4d9   : > { %v1625_v2 = vmul.f32 0.5, %v1617_v52  ;;  %v1621_v4 = vadd.f32 %v1569_v61, %v1527_v57  ;;  %v1623_v5 = vadd.f32 %v1612_v62, %v1529_v58  ;;  %v1571_v6 = vpop.f32.mrb[31].mxu0  ;;  %v1614_v36 = vpop.f32.mrb[31].mxu1 }
 0x4da   : > { %v1633_v22 = vmul.f32 0.5, %v1618_v59  ;;  %v1622_v23 = vadd.f32 %v1571_v6, %v1528_v0  ;;  %v1624_v24 = vadd.f32 %v1614_v36, %v1530_v1  ;;  %v1643_v44 = vmul.f32 0.5, %v1620_v60  ;;  %v1704_v36 = vld [vmem:[%s5210_s28] sm:$0xf] }
 0x4db   : > { %3662 = vtanh.f32 %v1625_v2  ;;  %v1626_v42 = vmul.f32 0.5, %v1621_v4 }
 0x4dc   : > { %3664 = vtanh.f32 %v1633_v22  ;;  %v1634_v43 = vmul.f32 0.5, %v1622_v23  ;;  %v1644_v50 = vmul.f32 0.5, %v1624_v24  ;;  %v5211_v22 = vld [vmem:[#allocation23_spill] sm:$0xff] }
 0x4dd   : > { %3666 = vtanh.f32 %v1626_v42  ;;  %v5212_v23 = vsub.s32 0, %v5211_v22 }
 0x4de   : > { %3668 = vtanh.f32 %v1619_v53 }
 0x4df   : > { %3670 = vtanh.f32 %v1634_v43  ;;  %v4859_v24 = vrot.slane %v1704_v36, %v5212_v23  ;;  %v5213_v43 = vsub.s32 2, %v5211_v22 }
 0x4e0   : > { %3672 = vtanh.f32 %v1623_v5 }
 0x4e1   : > { %3674 = vtanh.f32 %v1643_v44  ;;  %v4863_v44 = vrot.slane %v1704_v36, %v5213_v43 }
 0x4e2   : > { %3676 = vtanh.f32 %v1644_v50 }
 0x4e5   : > { %v3663_v46 = vpop.eup %3662 }
 0x4e6   : > { %v3665_v47 = vpop.eup %3664  ;;  %v1629_v48 = vmul.f32 0.5, %v3663_v46 }
 0x4e7   : > { %v1637_v49 = vmul.f32 0.5, %v3665_v47  ;;  %v3667_v51 = vpop.eup %3666 }
 0x4e8   : > { %v1631_v52 = vadd.f32 0.5, %v1629_v48  ;;  %v3669_v55 = vpop.eup %3668  ;;  %v1630_v57 = vmul.f32 0.5, %v3667_v51 }
 0x4e9   : > { %v1639_v56 = vadd.f32 0.5, %v1637_v49  ;;  %v3671_v58 = vpop.eup %3670  ;;  %v5215_v49 = vsub.s32 3, %v5211_v22 }
 0x4ea   : > { %v1653_v59 = vmul.f32 %v3669_v55, %v1631_v52  ;;  %v1632_v62 = vadd.f32 0.5, %v1630_v57  ;;  %v1638_v53 = vmul.f32 0.5, %v3671_v58  ;;  %v3673_v0 = vpop.eup %3672 }
 0x4eb   : > { %v1651_v61 = vmul.f32 %v1639_v56, %v4721_v30  ;;  %v3675_v5 = vpop.eup %3674  ;;  %v4871_v50 = vrot.slane %v1704_v36, %v5215_v49 }
 0x4ec   : > { %v1640_v1 = vadd.f32 0.5, %v1638_v53  ;;  %v1654_v2 = vmul.f32 %v3673_v0, %v1632_v62  ;;  %v1647_v30 = vmul.f32 0.5, %v3675_v5  ;;  %v3677_v42 = vpop.eup %3676 }
 0x4ed   : > { %v1655_v60 = vadd.f32 %v1653_v59, %v1651_v61  ;;  %v1648_v56 = vmul.f32 0.5, %v3677_v42 }
 0x4ee   : > { %v1652_v4 = vmul.f32 %v1640_v1, %v4725_v11  ;;  %v5214_v11 = vsub.s32 1, %v5211_v22  ;;  %v1649_v55 = vadd.f32 0.5, %v1647_v30 }
 0x4ef   : > { %3678 = vtanh.f32 %v1655_v60  ;;  %1666 = vst [vmem:[#allocation5] sm:$0xff] %v1655_v60  ;;  %v1650_v23 = vadd.f32 0.5, %v1648_v56 }
 0x4f0   : > { %v1656_v6 = vadd.f32 %v1654_v2, %v1652_v4  ;;  %v4867_v46 = vrot.slane %v1704_v36, %v5214_v11 }
 0x4f2   : > { %3680 = vtanh.f32 %v1656_v6  ;;  %1667 = vst [vmem:[#allocation5 + $0x8] sm:$0xff] %v1656_v6 }
 0x4f6   : > { %v1920_v47 = vpop.f32.mrb[32].mxu0  ;;  %v1993_v48 = vpop.f32.mrb[32].mxu1 }
 0x4f7   : > { %v1922_v51 = vpop.f32.mrb[33].mxu0  ;;  %v1995_v52 = vpop.f32.mrb[33].mxu1  ;;  %v1921_v57 = vadd.f32 %v1920_v47, %v4859_v24  ;;  %v1994_v62 = vadd.f32 %v1993_v48, %v4863_v44 }
 0x4f8   : > { %v1924_v58 = vpop.f32.mrb[34].mxu0  ;;  %v1997_v59 = vpop.f32.mrb[34].mxu1  ;;  %v1923_v53 = vadd.f32 %v1922_v51, %v4867_v46  ;;  %v1996_v4 = vadd.f32 %v1995_v52, %v4871_v50 }
 0x4f9   : > { %v3679_v61 = vpop.eup %3678  ;;  %v1925_v0 = vadd.f32 %v1924_v58, %v4859_v24  ;;  %v1998_v60 = vadd.f32 %v1997_v59, %v4863_v44  ;;  %v1926_v1 = vpop.f32.mrb[35].mxu0 }
 0x4fa   : > { %v1999_v2 = vpop.f32.mrb[35].mxu1  ;;  %v1927_v5 = vadd.f32 %v1926_v1, %v4867_v46  ;;  %v1659_v36 = vmul.f32 %v3679_v61, %v1649_v55 }
 0x4fb   : > { %v2000_v6 = vadd.f32 %v1999_v2, %v4871_v50  ;;  %v4881_v30 = vpack.c.bf16 %v1925_v0, %v1921_v57  ;;  %v4883_v22 = vpack.c.bf16 %v1998_v60, %v1994_v62 }
 0x4fc   : > { %v4885_v42 = vpack.c.bf16 %v1927_v5, %v1923_v53  ;;  %1664 = vst [vmem:[#allocation4] sm:$0xff] %v1659_v36  ;;  %v3681_v11 = vpop.eup %3680 }
 0x4fd   : > { %v4887_v43 = vpack.c.bf16 %v2000_v6, %v1996_v4  ;;  %v1660_v49 = vmul.f32 %v3681_v11, %v1650_v23  ;;  %v2098_v23 = vld [vmem:[#allocation4 + $0x18] sm:$0xff] }
 0x4fe   : > { %v1930_v47 = vpop.f32.mrb[36].mxu0  ;;  %v2003_v48 = vpop.f32.mrb[36].mxu1 }
 0x4ff   : > { %v1932_v51 = vpop.f32.mrb[37].mxu0  ;;  %v2005_v52 = vpop.f32.mrb[37].mxu1  ;;  %v1931_v58 = vadd.f32 %v1930_v47, %v4859_v24  ;;  %v1661_v57 = vpack.c.bf16 %v1660_v49, %v1659_v36  ;;  %1665 = vst [vmem:[#allocation4 + $0x8] sm:$0xff] %v1660_v49  ;;  %v2004_v61 = vadd.f32 %v2003_v48, %v4863_v44  ;;  %v2097_v36 = vld [vmem:[#allocation4 + $0x10] sm:$0xff] }
 0x500   : > { %v1934_v59 = vpop.f32.mrb[38].mxu0  ;;  %v2007_v55 = vpop.f32.mrb[38].mxu1  ;;  %v1933_v56 = vadd.f32 %v1932_v51, %v4867_v46  ;;  %v2006_v1 = vadd.f32 %v2005_v52, %v4871_v50  ;;  %v2114_v51 = vpack.c.bf16 %v2098_v23, %v2097_v36 }
 0x501   : > { %v1935_v62 = vadd.f32 %v1934_v59, %v4859_v24  ;;  %v2008_v53 = vadd.f32 %v2007_v55, %v4863_v44  ;;  %v1936_v0 = vpop.f32.mrb[39].mxu0  ;;  %v2009_v60 = vpop.f32.mrb[39].mxu1  ;;  %1949 = vmatmul.mubr.bf16.gmra.mrb[44].mxu0 %v1661_v57  ;;  %2022 = vmatmul.mubr.bf16.gmra.mrb[44].mxu1 %v1661_v57 }
 0x502   : > { %v1937_v2 = vadd.f32 %v1936_v0, %v4867_v46  ;;  %v2010_v4 = vadd.f32 %v2009_v60, %v4871_v50  ;;  %2307 = vmatprep.mubr.bf16.mxu0 %v5203_v28  ;;  %2350 = vmatprep.mubr.bf16.mxu1 %v5203_v28 }
 0x503   : > { %v4897_v5 = vpack.c.bf16 %v1935_v62, %v1931_v58  ;;  %v4899_v6 = vpack.c.bf16 %v2008_v53, %v2004_v61 }
 0x504   : > { %v4903_v11 = vpack.c.bf16 %v1937_v2, %v1933_v56  ;;  %v4905_v47 = vpack.c.bf16 %v2010_v4, %v2006_v1 }
 0x506   : > { %v1940_v48 = vpop.f32.mrb[40].mxu0  ;;  %v2013_v49 = vpop.f32.mrb[40].mxu1 }
 0x507   : > { %v1942_v52 = vpop.f32.mrb[41].mxu0  ;;  %v2015_v59 = vpop.f32.mrb[41].mxu1  ;;  %v1941_v58 = vadd.f32 %v1940_v48, %v4859_v24  ;;  %v2014_v61 = vadd.f32 %v2013_v49, %v4863_v44 }
 0x508   : > { %v1944_v55 = vpop.f32.mrb[42].mxu0  ;;  %v2017_v57 = vpop.f32.mrb[42].mxu1  ;;  %v1943_v62 = vadd.f32 %v1942_v52, %v4867_v46  ;;  %v2016_v1 = vadd.f32 %v2015_v59, %v4871_v50 }
 0x509   : > { %v1945_v53 = vadd.f32 %v1944_v55, %v4859_v24  ;;  %v2018_v56 = vadd.f32 %v2017_v57, %v4863_v44  ;;  %v1946_v0 = vpop.f32.mrb[43].mxu0  ;;  %v2019_v60 = vpop.f32.mrb[43].mxu1  ;;  %2308 = vmatmul.mubr.bf16.vlgmr.msra.gmra.mrb[48].mxu0 %v2114_v51  ;;  %2351 = vmatmul.mubr.bf16.vlgmr.msra.gmra.mrb[48].mxu1 %v2114_v51 }
 0x50a   : > { %v1947_v2 = vadd.f32 %v1946_v0, %v4867_v46  ;;  %v2020_v4 = vadd.f32 %v2019_v60, %v4871_v50  ;;  %2419 = vmatpush1.bf16.msra.mxu0 %v4750_v14  ;;  %2462 = vmatpush1.bf16.msra.mxu1 %v4752_v31 }
 0x50b   : > { %v4915_v36 = vpack.c.bf16 %v1945_v53, %v1941_v58  ;;  %v4917_v23 = vpack.c.bf16 %v2018_v56, %v2014_v61  ;;  %2420 = vmatprep.subr.bf16.mxu0 %v4758_v18  ;;  %2463 = vmatprep.subr.bf16.mxu1 %v4760_v13 }
 0x50c   : > { %v4921_v48 = vpack.c.bf16 %v1947_v2, %v1943_v62  ;;  %v4923_v49 = vpack.c.bf16 %v2020_v4, %v2016_v1  ;;  %2450 = vmatprep.mubr.bf16.mxu0 %v5203_v28  ;;  %2493 = vmatprep.mubr.bf16.mxu1 %v5203_v28 }
 0x50d   : > { %5216 = vst [vmem:[#allocation24_spill] sm:$0xff] %v4917_v23 }
 0x50e   : > { %5217 = vst [vmem:[#allocation25_spill] sm:$0xff] %v4921_v48  ;;  %5218 = vst [vmem:[#allocation26_spill] sm:$0xff] %v4923_v49  ;;  %2421 = vmatpush1.bf16.msra.mxu0 %v4762_v19  ;;  %2464 = vmatpush1.bf16.msra.mxu1 %v4764_v34 }
 0x50f   : > { %2422 = vmatprep.subr.bf16.mxu0 %v4770_v63  ;;  %2465 = vmatprep.subr.bf16.mxu1 %v4772_v7 }
 0x512   : > { %2423 = vmatpush1.bf16.msra.mxu0 %v4774_v17  ;;  %2466 = vmatpush1.bf16.msra.mxu1 %v4776_v8 }
 0x513   : > { %2424 = vmatprep.subr.bf16.mxu0 %v4778_v21  ;;  %2467 = vmatprep.subr.bf16.mxu1 %v4782_v32 }
 0x516   : > { %2425 = vmatpush1.bf16.msra.mxu0 %v4788_v9  ;;  %2468 = vmatpush1.bf16.msra.mxu1 %v4790_v12 }
 0x517   : > { %2426 = vmatprep.subr.bf16.mxu0 %v4794_v35  ;;  %2469 = vmatprep.subr.bf16.mxu1 %v4796_v33 }
 0x51a   : > { %2427 = vmatpush1.bf16.msra.mxu0 %v4798_v20  ;;  %2470 = vmatpush1.bf16.msra.mxu1 %v4800_v3 }
 0x51b   : > { %2428 = vmatprep.subr.bf16.mxu0 %v4804_v45  ;;  %2471 = vmatprep.subr.bf16.mxu1 %v4806_v54 }
 0x51e   : > { %2429 = vmatpush1.bf16.msra.mxu0 %v4812_v16  ;;  %2472 = vmatpush1.bf16.msra.mxu1 %v4814_v25 }
 0x51f   : > { %2430 = vmatprep.subr.bf16.mxu0 %v4818_v10  ;;  %2473 = vmatprep.subr.bf16.mxu1 %v4820_v29 }
 0x522   : > { %2431 = vmatpush1.bf16.msra.mxu0 %v4822_v27  ;;  %2474 = vmatpush1.bf16.msra.mxu1 %v4824_v37 }
 0x523   : > { %2432 = vmatprep.subr.bf16.mxu0 %v4828_v38  ;;  %2475 = vmatprep.subr.bf16.mxu1 %v4830_v39 }
 0x526   : > { %2433 = vmatpush1.bf16.msra.mxu0 %v4836_v40  ;;  %2476 = vmatpush1.bf16.msra.mxu1 %v4838_v41 }
 0x527   : > { %2561 = vmatprep.subr.bf16.mxu0 %v4746_v26  ;;  %2604 = vmatprep.subr.bf16.mxu1 %v4748_v15 }
 0x5d4   : > { %v1950_v51 = vpop.f32.mrb[44].mxu0  ;;  %v2023_v52 = vpop.f32.mrb[44].mxu1 }
 0x5d5   : > { %v1952_v59 = vpop.f32.mrb[45].mxu0  ;;  %v2025_v58 = vpop.f32.mrb[45].mxu1  ;;  %v1951_v61 = vadd.f32 %v1950_v51, %v4859_v24  ;;  %v2024_v62 = vadd.f32 %v2023_v52, %v4863_v44 }
 0x5d6   : > { %v1954_v55 = vpop.f32.mrb[46].mxu0  ;;  %v2027_v57 = vpop.f32.mrb[46].mxu1  ;;  %v1953_v1 = vadd.f32 %v1952_v59, %v4867_v46  ;;  %v2026_v2 = vadd.f32 %v2025_v58, %v4871_v50  ;;  %v2107_v58 = vunpack.c.l.bf16 %v4885_v42 }
 0x5d7   : > { %v1955_v53 = vadd.f32 %v1954_v55, %v4859_v24  ;;  %v2028_v56 = vadd.f32 %v2027_v57, %v4863_v44  ;;  %v1956_v0 = vpop.f32.mrb[47].mxu0  ;;  %v2029_v60 = vpop.f32.mrb[47].mxu1  ;;  %v2106_v24 = vunpack.c.l.bf16 %v4881_v30  ;;  %v2108_v44 = vunpack.c.l.bf16 %v4883_v22 }
 0x5d8   : > { %v1957_v4 = vadd.f32 %v1956_v0, %v4867_v46  ;;  %v2030_v49 = vadd.f32 %v2029_v60, %v4871_v50  ;;  %v2109_v46 = vunpack.c.l.bf16 %v4887_v43 }
 0x5d9   : > { %v4965_v48 = vpack.c.bf16 %v1955_v53, %v1951_v61  ;;  %v4967_v23 = vpack.c.bf16 %v2028_v56, %v2024_v62  ;;  %v2110_v62 = vunpack.c.h.bf16 %v4881_v30  ;;  %v2112_v56 = vunpack.c.h.bf16 %v4883_v22 }
 0x5da   : > { %v4969_v51 = vpack.c.bf16 %v1957_v4, %v1953_v1  ;;  %v4971_v52 = vpack.c.bf16 %v2030_v49, %v2026_v2  ;;  %v2111_v2 = vunpack.c.h.bf16 %v4885_v42  ;;  %v2113_v4 = vunpack.c.h.bf16 %v4887_v43 }
 0x5db   : > { %5219 = vst [vmem:[#allocation27_spill] sm:$0xff] %v4965_v48  ;;  %5220 = vst [vmem:[#allocation28_spill] sm:$0xff] %v4967_v23 }
 0x5dc   : > { %5221 = vst [vmem:[#allocation29_spill] sm:$0xff] %v4969_v51  ;;  %5222 = vst [vmem:[#allocation23_spill] sm:$0xff] %v4971_v52  ;;  %v2309_v55 = vpop.f32.mrb[48].mxu0  ;;  %v2352_v59 = vpop.f32.mrb[48].mxu1 }
 0x5dd   : > { %v2361_v57 = vadd.f32 %v2309_v55, %v2106_v24  ;;  %v2363_v50 = vadd.f32 %v2352_v59, %v2108_v44  ;;  %v2311_v61 = vpop.f32.mrb[49].mxu0  ;;  %v2354_v53 = vpop.f32.mrb[49].mxu1 }
 0x5de   : > { %v2362_v49 = vadd.f32 %v2311_v61, %v2107_v58  ;;  %v2364_v0 = vadd.f32 %v2354_v53, %v2109_v46  ;;  %v2313_v60 = vpop.f32.mrb[50].mxu0  ;;  %v2356_v1 = vpop.f32.mrb[50].mxu1 }
 0x5df   : > { %v2369_v52 = vmul.f32 0.5, %v2361_v57  ;;  %v2365_v51 = vadd.f32 %v2313_v60, %v2110_v62  ;;  %v2367_v23 = vadd.f32 %v2356_v1, %v2112_v56  ;;  %v2315_v48 = vpop.f32.mrb[51].mxu0  ;;  %v2358_v24 = vpop.f32.mrb[51].mxu1  ;;  %v2100_v56 = vld [vmem:[#allocation5 + $0x10] sm:$0xff] }
 0x5e0   : > { %v2377_v44 = vmul.f32 0.5, %v2362_v49  ;;  %v2366_v55 = vadd.f32 %v2315_v48, %v2111_v2  ;;  %v2368_v59 = vadd.f32 %v2358_v24, %v2113_v4  ;;  %v2387_v43 = vmul.f32 0.5, %v2364_v0  ;;  %v2101_v4 = vld [vmem:[#allocation5 + $0x18] sm:$0xff] }
 0x5e1   : > { %3682 = vtanh.f32 %v2369_v52  ;;  %v2370_v30 = vmul.f32 0.5, %v2365_v51 }
 0x5e2   : > { %3684 = vtanh.f32 %v2377_v44  ;;  %v2378_v22 = vmul.f32 0.5, %v2366_v55  ;;  %v2388_v61 = vmul.f32 0.5, %v2368_v59 }
 0x5e3   : > { %3686 = vtanh.f32 %v2370_v30 }
 0x5e4   : > { %3688 = vtanh.f32 %v2363_v50 }
 0x5e5   : > { %3690 = vtanh.f32 %v2378_v22 }
 0x5e6   : > { %3692 = vtanh.f32 %v2367_v23 }
 0x5e7   : > { %3694 = vtanh.f32 %v2387_v43 }
 0x5e8   : > { %3696 = vtanh.f32 %v2388_v61 }
 0x5eb   : > { %v3683_v58 = vpop.eup %3682 }
 0x5ec   : > { %v3685_v42 = vpop.eup %3684  ;;  %v2373_v46 = vmul.f32 0.5, %v3683_v58 }
 0x5ed   : > { %v2381_v57 = vmul.f32 0.5, %v3685_v42  ;;  %v3687_v53 = vpop.eup %3686 }
 0x5ee   : > { %v2375_v62 = vadd.f32 0.5, %v2373_v46  ;;  %v3689_v49 = vpop.eup %3688  ;;  %v2374_v60 = vmul.f32 0.5, %v3687_v53 }
 0x5ef   : > { %v2383_v48 = vadd.f32 0.5, %v2381_v57  ;;  %v3691_v52 = vpop.eup %3690 }
 0x5f0   : > { %v2397_v51 = vmul.f32 %v3689_v49, %v2375_v62  ;;  %v2376_v2 = vadd.f32 0.5, %v2374_v60  ;;  %v2382_v50 = vmul.f32 0.5, %v3691_v52  ;;  %v3693_v23 = vpop.eup %3692  ;;  %v2409_v49 = vunpack.c.l.bf16 %v4897_v5 }
 0x5f1   : > { %v2395_v1 = vmul.f32 %v2383_v48, %v2100_v56  ;;  %v3695_v30 = vpop.eup %3694  ;;  %v2411_v48 = vunpack.c.l.bf16 %v4899_v6 }
 0x5f2   : > { %v2384_v0 = vadd.f32 0.5, %v2382_v50  ;;  %v2398_v44 = vmul.f32 %v3693_v23, %v2376_v2  ;;  %v3697_v22 = vpop.eup %3696  ;;  %v2391_v58 = vmul.f32 0.5, %v3695_v30 }
 0x5f3   : > { %v4981_v24 = vadd.f32 %v2397_v51, %v2395_v1  ;;  %v2392_v42 = vmul.f32 0.5, %v3697_v22  ;;  %v2410_v51 = vunpack.c.l.bf16 %v4903_v11  ;;  %v2412_v1 = vunpack.c.l.bf16 %v4905_v47 }
 0x5f4   : > { %v2396_v55 = vmul.f32 %v2384_v0, %v2101_v4  ;;  %v2393_v43 = vadd.f32 0.5, %v2391_v58  ;;  %v2413_v0 = vunpack.c.h.bf16 %v4897_v5  ;;  %v2414_v22 = vunpack.c.h.bf16 %v4903_v11 }
 0x5f5   : > { %3698 = vtanh.f32 %v4981_v24  ;;  %v2394_v57 = vadd.f32 0.5, %v2392_v42  ;;  %v2416_v58 = vunpack.c.h.bf16 %v4905_v47 }
 0x5f6   : > { %v4984_v59 = vadd.f32 %v2398_v44, %v2396_v55 }
 0x5f8   : > { %3700 = vtanh.f32 %v4984_v59 }
 0x5ff   : > { %v3699_v46 = vpop.eup %3698 }
 0x600   : > { %v2403_v53 = vmul.f32 %v3699_v46, %v2393_v43 }
 0x602   : > { %v3701_v61 = vpop.eup %3700 }
 0x603   : > { %v2404_v62 = vmul.f32 %v3701_v61, %v2394_v57 }
 0x605   : > { %v2417_v56 = vpack.c.bf16 %v2404_v62, %v2403_v53 }
 0x607   : > { %2451 = vmatmul.mubr.bf16.vlgmr.msra.gmra.mrb[52].mxu0 %v2417_v56  ;;  %2494 = vmatmul.mubr.bf16.vlgmr.msra.gmra.mrb[52].mxu1 %v2417_v56 }
 0x608   : > { %2562 = vmatpush1.bf16.msra.mxu0 %v4750_v14  ;;  %2605 = vmatpush1.bf16.msra.mxu1 %v4752_v31 }
 0x609   : > { %2563 = vmatprep.subr.bf16.mxu0 %v4758_v18  ;;  %2606 = vmatprep.subr.bf16.mxu1 %v4760_v13 }
 0x60a   : > { %2593 = vmatprep.mubr.bf16.mxu0 %v5203_v28  ;;  %2636 = vmatprep.mubr.bf16.mxu1 %v5203_v28 }
 0x60c   : > { %2564 = vmatpush1.bf16.msra.mxu0 %v4762_v19  ;;  %2607 = vmatpush1.bf16.msra.mxu1 %v4764_v34 }
 0x60d   : > { %2565 = vmatprep.subr.bf16.mxu0 %v4770_v63  ;;  %2608 = vmatprep.subr.bf16.mxu1 %v4772_v7 }
 0x610   : > { %2566 = vmatpush1.bf16.msra.mxu0 %v4774_v17  ;;  %2609 = vmatpush1.bf16.msra.mxu1 %v4776_v8 }
 0x611   : > { %2567 = vmatprep.subr.bf16.mxu0 %v4778_v21  ;;  %2610 = vmatprep.subr.bf16.mxu1 %v4782_v32 }
 0x614   : > { %2568 = vmatpush1.bf16.msra.mxu0 %v4788_v9  ;;  %2611 = vmatpush1.bf16.msra.mxu1 %v4790_v12 }
 0x615   : > { %2569 = vmatprep.subr.bf16.mxu0 %v4794_v35  ;;  %2612 = vmatprep.subr.bf16.mxu1 %v4796_v33 }
 0x618   : > { %2570 = vmatpush1.bf16.msra.mxu0 %v4798_v20  ;;  %2613 = vmatpush1.bf16.msra.mxu1 %v4800_v3 }
 0x619   : > { %2571 = vmatprep.subr.bf16.mxu0 %v4804_v45  ;;  %2614 = vmatprep.subr.bf16.mxu1 %v4806_v54 }
 0x61c   : > { %2572 = vmatpush1.bf16.msra.mxu0 %v4812_v16  ;;  %2615 = vmatpush1.bf16.msra.mxu1 %v4814_v25 }
 0x61d   : > { %2573 = vmatprep.subr.bf16.mxu0 %v4818_v10  ;;  %2616 = vmatprep.subr.bf16.mxu1 %v4820_v29 }
 0x620   : > { %2574 = vmatpush1.bf16.msra.mxu0 %v4822_v27  ;;  %2617 = vmatpush1.bf16.msra.mxu1 %v4824_v37 }
 0x621   : > { %2575 = vmatprep.subr.bf16.mxu0 %v4828_v38  ;;  %2618 = vmatprep.subr.bf16.mxu1 %v4830_v39 }
 0x624   : > { %2576 = vmatpush1.bf16.msra.mxu0 %v4836_v40  ;;  %2619 = vmatpush1.bf16.msra.mxu1 %v4838_v41 }
 0x625   : > { %2704 = vmatprep.subr.bf16.mxu0 %v4746_v26  ;;  %2747 = vmatprep.subr.bf16.mxu1 %v4748_v15  ;;  %v2415_v26 = vunpack.c.h.bf16 %v4899_v6 }
 0x6da   : > { %v2452_v60 = vpop.f32.mrb[52].mxu0  ;;  %v2495_v52 = vpop.f32.mrb[52].mxu1 }
 0x6db   : > { %v2504_v2 = vadd.f32 %v2452_v60, %v2409_v49  ;;  %v2506_v50 = vadd.f32 %v2495_v52, %v2411_v48  ;;  %v2454_v23 = vpop.f32.mrb[53].mxu0  ;;  %v2497_v4 = vpop.f32.mrb[53].mxu1 }
 0x6dc   : > { %v2505_v44 = vadd.f32 %v2454_v23, %v2410_v51  ;;  %v2507_v15 = vadd.f32 %v2497_v4, %v2412_v1  ;;  %v2456_v55 = vpop.f32.mrb[54].mxu0  ;;  %v2499_v30 = vpop.f32.mrb[54].mxu1 }
 0x6dd   : > { %v2512_v42 = vmul.f32 0.5, %v2504_v2  ;;  %v2508_v46 = vadd.f32 %v2456_v55, %v2413_v0  ;;  %v2510_v43 = vadd.f32 %v2499_v30, %v2415_v26  ;;  %v2458_v57 = vpop.f32.mrb[55].mxu0  ;;  %v2501_v61 = vpop.f32.mrb[55].mxu1 }
 0x6de   : > { %v2520_v53 = vmul.f32 0.5, %v2505_v44  ;;  %v2509_v62 = vadd.f32 %v2458_v57, %v2414_v22  ;;  %v2511_v56 = vadd.f32 %v2501_v61, %v2416_v58  ;;  %v2530_v47 = vmul.f32 0.5, %v2507_v15 }
 0x6df   : > { %3702 = vtanh.f32 %v2512_v42  ;;  %v2513_v5 = vmul.f32 0.5, %v2508_v46 }
 0x6e0   : > { %3704 = vtanh.f32 %v2520_v53  ;;  %v2521_v6 = vmul.f32 0.5, %v2509_v62  ;;  %v2531_v52 = vmul.f32 0.5, %v2511_v56 }
 0x6e1   : > { %3706 = vtanh.f32 %v2513_v5 }
 0x6e2   : > { %3708 = vtanh.f32 %v2506_v50 }
 0x6e3   : > { %3710 = vtanh.f32 %v2521_v6 }
 0x6e4   : > { %3712 = vtanh.f32 %v2510_v43 }
 0x6e5   : > { %3714 = vtanh.f32 %v2530_v47 }
 0x6e6   : > { %3716 = vtanh.f32 %v2531_v52 }
 0x6e9   : > { %v3703_v49 = vpop.eup %3702 }
 0x6ea   : > { %v3705_v11 = vpop.eup %3704  ;;  %v2516_v48 = vmul.f32 0.5, %v3703_v49 }
 0x6eb   : > { %v2524_v60 = vmul.f32 0.5, %v3705_v11  ;;  %v3707_v51 = vpop.eup %3706 }
 0x6ec   : > { %v2518_v1 = vadd.f32 0.5, %v2516_v48  ;;  %v3709_v2 = vpop.eup %3708  ;;  %v2517_v4 = vmul.f32 0.5, %v3707_v51 }
 0x6ed   : > { %v2526_v23 = vadd.f32 0.5, %v2524_v60  ;;  %v3711_v0 = vpop.eup %3710 }
 0x6ee   : > { %v2540_v26 = vmul.f32 %v3709_v2, %v2518_v1  ;;  %v2519_v55 = vadd.f32 0.5, %v2517_v4  ;;  %v2525_v50 = vmul.f32 0.5, %v3711_v0  ;;  %v3713_v30 = vpop.eup %3712 }
 0x6ef   : > { %v2538_v44 = vmul.f32 %v2526_v23, %v4981_v24  ;;  %v3715_v43 = vpop.eup %3714 }
 0x6f0   : > { %v2527_v58 = vadd.f32 0.5, %v2525_v50  ;;  %v2541_v15 = vmul.f32 %v3713_v30, %v2519_v55  ;;  %v3717_v57 = vpop.eup %3716  ;;  %v2534_v61 = vmul.f32 0.5, %v3715_v43 }
 0x6f1   : > { %v5030_v22 = vadd.f32 %v2540_v26, %v2538_v44  ;;  %v2535_v24 = vmul.f32 0.5, %v3717_v57 }
 0x6f2   : > { %v2539_v42 = vmul.f32 %v2527_v58, %v4984_v59  ;;  %v2536_v62 = vadd.f32 0.5, %v2534_v61 }
 0x6f3   : > { %3718 = vtanh.f32 %v5030_v22  ;;  %v2537_v56 = vadd.f32 0.5, %v2535_v24 }
 0x6f4   : > { %v5034_v46 = vadd.f32 %v2541_v15, %v2539_v42 }
 0x6f6   : > { %3720 = vtanh.f32 %v5034_v46 }
 0x6fd   : > { %v3719_v53 = vpop.eup %3718 }
 0x6fe   : > { %v2546_v6 = vmul.f32 %v3719_v53, %v2536_v62 }
 0x700   : > { %v3721_v5 = vpop.eup %3720 }
 0x701   : > { %v2547_v49 = vmul.f32 %v3721_v5, %v2537_v56 }
 0x703   : > { %v2560_v11 = vpack.c.bf16 %v2547_v49, %v2546_v6 }
 0x705   : > { %2594 = vmatmul.mubr.bf16.vlgmr.msra.gmra.mrb[56].mxu0 %v2560_v11  ;;  %2637 = vmatmul.mubr.bf16.vlgmr.msra.gmra.mrb[56].mxu1 %v2560_v11 }
 0x706   : > { %2705 = vmatpush1.bf16.msra.mxu0 %v4750_v14  ;;  %2748 = vmatpush1.bf16.msra.mxu1 %v4752_v31  ;;  %v5223_v14 = vld [vmem:[#allocation24_spill] sm:$0xff] }
 0x707   : > { %2706 = vmatprep.subr.bf16.mxu0 %v4758_v18  ;;  %2749 = vmatprep.subr.bf16.mxu1 %v4760_v13  ;;  %v2554_v31 = vunpack.c.l.bf16 %v5223_v14 }
 0x708   : > { %2736 = vmatprep.mubr.bf16.mxu0 %v5203_v28  ;;  %2779 = vmatprep.mubr.bf16.mxu1 %v5203_v28  ;;  %v2552_v28 = vunpack.c.l.bf16 %v4915_v36 }
 0x70a   : > { %2707 = vmatpush1.bf16.msra.mxu0 %v4762_v19  ;;  %2750 = vmatpush1.bf16.msra.mxu1 %v4764_v34  ;;  %v5224_v19 = vld [vmem:[#allocation25_spill] sm:$0xff] }
 0x70b   : > { %2708 = vmatprep.subr.bf16.mxu0 %v4770_v63  ;;  %2751 = vmatprep.subr.bf16.mxu1 %v4772_v7  ;;  %v2553_v34 = vunpack.c.l.bf16 %v5224_v19  ;;  %v5225_v63 = vld [vmem:[#allocation26_spill] sm:$0xff] }
 0x70c   : > { %v2555_v7 = vunpack.c.l.bf16 %v5225_v63 }
 0x70e   : > { %2709 = vmatpush1.bf16.msra.mxu0 %v4774_v17  ;;  %2752 = vmatpush1.bf16.msra.mxu1 %v4776_v8 }
 0x70f   : > { %2710 = vmatprep.subr.bf16.mxu0 %v4778_v21  ;;  %2753 = vmatprep.subr.bf16.mxu1 %v4782_v32 }
 0x712   : > { %2711 = vmatpush1.bf16.msra.mxu0 %v4788_v9  ;;  %2754 = vmatpush1.bf16.msra.mxu1 %v4790_v12  ;;  %v2556_v9 = vunpack.c.h.bf16 %v4915_v36  ;;  %v2558_v12 = vunpack.c.h.bf16 %v5223_v14 }
 0x713   : > { %2712 = vmatprep.subr.bf16.mxu0 %v4794_v35  ;;  %2755 = vmatprep.subr.bf16.mxu1 %v4796_v33 }
 0x716   : > { %2713 = vmatpush1.bf16.msra.mxu0 %v4798_v20  ;;  %2756 = vmatpush1.bf16.msra.mxu1 %v4800_v3 }
 0x717   : > { %2714 = vmatprep.subr.bf16.mxu0 %v4804_v45  ;;  %2757 = vmatprep.subr.bf16.mxu1 %v4806_v54  ;;  %v2557_v45 = vunpack.c.h.bf16 %v5224_v19  ;;  %v2559_v54 = vunpack.c.h.bf16 %v5225_v63 }
 0x71a   : > { %2715 = vmatpush1.bf16.msra.mxu0 %v4812_v16  ;;  %2758 = vmatpush1.bf16.msra.mxu1 %v4814_v25 }
 0x71b   : > { %2716 = vmatprep.subr.bf16.mxu0 %v4818_v10  ;;  %2759 = vmatprep.subr.bf16.mxu1 %v4820_v29 }
 0x71e   : > { %2717 = vmatpush1.bf16.msra.mxu0 %v4822_v27  ;;  %2760 = vmatpush1.bf16.msra.mxu1 %v4824_v37 }
 0x71f   : > { %2718 = vmatprep.subr.bf16.mxu0 %v4828_v38  ;;  %2761 = vmatprep.subr.bf16.mxu1 %v4830_v39 }
 0x722   : > { %2719 = vmatpush1.bf16.msra.mxu0 %v4836_v40  ;;  %2762 = vmatpush1.bf16.msra.mxu1 %v4838_v41 }
 0x7d8   : > { %v2595_v18 = vpop.f32.mrb[56].mxu0  ;;  %v2638_v13 = vpop.f32.mrb[56].mxu1 }
 0x7d9   : > { %v2647_v17 = vadd.f32 %v2595_v18, %v2552_v28  ;;  %v2649_v8 = vadd.f32 %v2638_v13, %v2554_v31  ;;  %v2597_v21 = vpop.f32.mrb[57].mxu0  ;;  %v2640_v32 = vpop.f32.mrb[57].mxu1  ;;  %v5227_v31 = vld [vmem:[#allocation28_spill] sm:$0xff] }
 0x7da   : > { %v2648_v35 = vadd.f32 %v2597_v21, %v2553_v34  ;;  %v2650_v33 = vadd.f32 %v2640_v32, %v2555_v7  ;;  %v2599_v20 = vpop.f32.mrb[58].mxu0  ;;  %v2642_v3 = vpop.f32.mrb[58].mxu1  ;;  %v2697_v18 = vunpack.c.l.bf16 %v5227_v31  ;;  %v5228_v34 = vld [vmem:[#allocation29_spill] sm:$0xff]  ;;  %v5229_v7 = vld [vmem:[#allocation23_spill] sm:$0xff] }
 0x7db   : > { %v2655_v16 = vmul.f32 0.5, %v2647_v17  ;;  %v2651_v25 = vadd.f32 %v2599_v20, %v2556_v9  ;;  %v2653_v10 = vadd.f32 %v2642_v3, %v2558_v12  ;;  %v2601_v29 = vpop.f32.mrb[59].mxu0  ;;  %v2644_v27 = vpop.f32.mrb[59].mxu1  ;;  %v2696_v63 = vunpack.c.l.bf16 %v5228_v34 }
 0x7dc   : > { %v2663_v37 = vmul.f32 0.5, %v2648_v35  ;;  %v2652_v38 = vadd.f32 %v2601_v29, %v2557_v45  ;;  %v2654_v39 = vadd.f32 %v2644_v27, %v2559_v54  ;;  %v2673_v47 = vmul.f32 0.5, %v2650_v33 }
 0x7dd   : > { %3722 = vtanh.f32 %v2655_v16  ;;  %v2656_v40 = vmul.f32 0.5, %v2651_v25  ;;  %v2698_v17 = vunpack.c.l.bf16 %v5229_v7  ;;  %v2701_v35 = vunpack.c.h.bf16 %v5227_v31  ;;  %v3763_v31 = vld [vmem:[#allocation15 + $0x8] sm:$0xff] (!%p3238_p5)  }
 0x7de   : > { %3724 = vtanh.f32 %v2663_v37  ;;  %v2664_v41 = vmul.f32 0.5, %v2652_v38  ;;  %v2674_v52 = vmul.f32 0.5, %v2654_v39  ;;  %v2700_v54 = vunpack.c.h.bf16 %v5228_v34  ;;  %v3767_v34 = vld [vmem:[#allocation15 + $0x28] sm:$0xff] (!%p3238_p5)  }
 0x7df   : > { %3726 = vtanh.f32 %v2656_v40  ;;  %v2702_v16 = vunpack.c.h.bf16 %v5229_v7  ;;  %v3769_v7 = vld [vmem:[#allocation15 + $0x38] sm:$0xff] (!%p3238_p5)  }
 0x7e0   : > { %3728 = vtanh.f32 %v2649_v8 }
 0x7e1   : > { %3730 = vtanh.f32 %v2664_v41 }
 0x7e2   : > { %3732 = vtanh.f32 %v2653_v10 }
 0x7e3   : > { %3734 = vtanh.f32 %v2673_v47 }
 0x7e4   : > { %3736 = vtanh.f32 %v2674_v52 }
 0x7e7   : > { %v3723_v36 = vpop.eup %3722 }
 0x7e8   : > { %v3725_v59 = vpop.eup %3724  ;;  %v2659_v48 = vmul.f32 0.5, %v3723_v36 }
 0x7e9   : > { %v2667_v60 = vmul.f32 0.5, %v3725_v59  ;;  %v3727_v51 = vpop.eup %3726 }
 0x7ea   : > { %v2661_v1 = vadd.f32 0.5, %v2659_v48  ;;  %v3729_v2 = vpop.eup %3728  ;;  %v2660_v4 = vmul.f32 0.5, %v3727_v51 }
 0x7eb   : > { %v2669_v23 = vadd.f32 0.5, %v2667_v60  ;;  %v3731_v0 = vpop.eup %3730 }
 0x7ec   : > { %v2683_v26 = vmul.f32 %v3729_v2, %v2661_v1  ;;  %v2662_v55 = vadd.f32 0.5, %v2660_v4  ;;  %v2668_v50 = vmul.f32 0.5, %v3731_v0  ;;  %v3733_v30 = vpop.eup %3732 }
 0x7ed   : > { %v2681_v44 = vmul.f32 %v2669_v23, %v5030_v22  ;;  %v3735_v61 = vpop.eup %3734 }
 0x7ee   : > { %v2670_v15 = vadd.f32 0.5, %v2668_v50  ;;  %v2684_v42 = vmul.f32 %v3733_v30, %v2662_v55  ;;  %v3737_v24 = vpop.eup %3736  ;;  %v2677_v53 = vmul.f32 0.5, %v3735_v61 }
 0x7ef   : > { %v5078_v58 = vadd.f32 %v2683_v26, %v2681_v44  ;;  %v2678_v22 = vmul.f32 0.5, %v3737_v24 }
 0x7f0   : > { %v2682_v43 = vmul.f32 %v2670_v15, %v5034_v46  ;;  %v2679_v56 = vadd.f32 0.5, %v2677_v53  ;;  %v5226_v46 = vld [vmem:[#allocation27_spill] sm:$0xff] }
 0x7f1   : > { %3738 = vtanh.f32 %v5078_v58  ;;  %v2680_v5 = vadd.f32 0.5, %v2678_v22  ;;  %v2695_v14 = vunpack.c.l.bf16 %v5226_v46  ;;  %v2699_v12 = vunpack.c.h.bf16 %v5226_v46 }
 0x7f2   : > { %v5082_v57 = vadd.f32 %v2684_v42, %v2682_v43 }
 0x7f4   : > { %3740 = vtanh.f32 %v5082_v57 }
 0x7fb   : > { %v3739_v62 = vpop.eup %3738 }
 0x7fc   : > { %v2689_v49 = vmul.f32 %v3739_v62, %v2679_v56 }
 0x7fe   : > { %v3741_v6 = vpop.eup %3740 }
 0x7ff   : > { %v2690_v11 = vmul.f32 %v3741_v6, %v2680_v5 }
 0x801   : > { %v2703_v28 = vpack.c.bf16 %v2690_v11, %v2689_v49 }
 0x803   : > { %2737 = vmatmul.mubr.bf16.vlgmr.msra.gmra.mrb[60].mxu0 %v2703_v28  ;;  %2780 = vmatmul.mubr.bf16.vlgmr.msra.gmra.mrb[60].mxu1 %v2703_v28 }
 0x8d6   : > { %v2738_v13 = vpop.f32.mrb[60].mxu0  ;;  %v2781_v19 = vpop.f32.mrb[60].mxu1 }
 0x8d7   : > { %v2790_v8 = vadd.f32 %v2738_v13, %v2695_v14  ;;  %v2792_v21 = vadd.f32 %v2781_v19, %v2697_v18  ;;  %v2740_v32 = vpop.f32.mrb[61].mxu0  ;;  %v2783_v9 = vpop.f32.mrb[61].mxu1  ;;  %v3762_v14 = vld [vmem:[#allocation15] sm:$0xff] (!%p3238_p5)   ;;  %v3764_v18 = vld [vmem:[#allocation15 + $0x10] sm:$0xff] (!%p3238_p5)   ;;  %v3765_v13 = vld [vmem:[#allocation15 + $0x18] sm:$0xff] (!%p3238_p5)  }
 0x8d8   : > { %v2791_v33 = vadd.f32 %v2740_v32, %v2696_v63  ;;  %v2793_v20 = vadd.f32 %v2783_v9, %v2698_v17  ;;  %v2742_v3 = vpop.f32.mrb[62].mxu0  ;;  %v2785_v45 = vpop.f32.mrb[62].mxu1  ;;  %v3766_v19 = vld [vmem:[#allocation15 + $0x20] sm:$0xff] (!%p3238_p5)   ;;  %v3768_v63 = vld [vmem:[#allocation15 + $0x30] sm:$0xff] (!%p3238_p5)  }
 0x8d9   : > { %v2798_v25 = vmul.f32 0.5, %v2790_v8  ;;  %v2794_v10 = vadd.f32 %v2742_v3, %v2699_v12  ;;  %v2796_v29 = vadd.f32 %v2785_v45, %v2701_v35  ;;  %v2744_v27 = vpop.f32.mrb[63].mxu0  ;;  %v2787_v37 = vpop.f32.mrb[63].mxu1  ;;  %v3239_v32 = vld [vmem:[%s5230_s22] ss:$0 sm:$0xff] (!%p3238_p5) }
 0x8da   : > { %v2806_v38 = vmul.f32 0.5, %v2791_v33  ;;  %v2795_v39 = vadd.f32 %v2744_v27, %v2700_v54  ;;  %v2797_v40 = vadd.f32 %v2787_v37, %v2702_v16  ;;  %v2816_v59 = vmul.f32 0.5, %v2793_v20 }
 0x8db   : > { %3742 = vtanh.f32 %v2798_v25  ;;  %v2799_v41 = vmul.f32 0.5, %v2794_v10 }
 0x8dc   : > { %3744 = vtanh.f32 %v2806_v38  ;;  %v2807_v36 = vmul.f32 0.5, %v2795_v39  ;;  %v2817_v51 = vmul.f32 0.5, %v2797_v40 }
 0x8dd   : > { %3746 = vtanh.f32 %v2799_v41 }
 0x8de   : > { %3748 = vtanh.f32 %v2792_v21 }
 0x8df   : > { %3750 = vtanh.f32 %v2807_v36 }
 0x8e0   : > { %3752 = vtanh.f32 %v2796_v29 }
 0x8e1   : > { %3754 = vtanh.f32 %v2816_v59 }
 0x8e2   : > { %3756 = vtanh.f32 %v2817_v51 }
 0x8e5   : > { %v3743_v48 = vpop.eup %3742 }
 0x8e6   : > { %v3745_v47 = vpop.eup %3744  ;;  %v2802_v60 = vmul.f32 0.5, %v3743_v48 }
 0x8e7   : > { %v2810_v52 = vmul.f32 0.5, %v3745_v47  ;;  %v3747_v1 = vpop.eup %3746 }
 0x8e8   : > { %v2804_v2 = vadd.f32 0.5, %v2802_v60  ;;  %v3749_v23 = vpop.eup %3748  ;;  %v2803_v0 = vmul.f32 0.5, %v3747_v1 }
 0x8e9   : > { %v2812_v4 = vadd.f32 0.5, %v2810_v52  ;;  %v3751_v26 = vpop.eup %3750 }
 0x8ea   : > { %v2826_v44 = vmul.f32 %v3749_v23, %v2804_v2  ;;  %v2805_v50 = vadd.f32 0.5, %v2803_v0  ;;  %v2811_v30 = vmul.f32 0.5, %v3751_v26  ;;  %v3753_v15 = vpop.eup %3752 }
 0x8eb   : > { %v2824_v55 = vmul.f32 %v2812_v4, %v5078_v58  ;;  %v3755_v53 = vpop.eup %3754 }
 0x8ec   : > { %v2813_v43 = vadd.f32 0.5, %v2811_v30  ;;  %v2827_v61 = vmul.f32 %v3753_v15, %v2805_v50  ;;  %v2820_v62 = vmul.f32 0.5, %v3755_v53  ;;  %v3757_v56 = vpop.eup %3756 }
 0x8ed   : > { %v2828_v42 = vadd.f32 %v2826_v44, %v2824_v55  ;;  %v2821_v6 = vmul.f32 0.5, %v3757_v56 }
 0x8ee   : > { %v2825_v24 = vmul.f32 %v2813_v43, %v5082_v57  ;;  %v2822_v5 = vadd.f32 0.5, %v2820_v62  ;;  %v4046_v57 = vmov (!%p3238_p5), 0.0  }
 0x8ef   : > { %3758 = vtanh.f32 %v2828_v42  ;;  %2836 = vst [vmem:[#allocation5 + $0x10] sm:$0xff] %v2828_v42  ;;  %v2823_v11 = vadd.f32 0.5, %v2821_v6  ;;  %3263 = vmatprep.subr.bf16.mxu0 (!%p3238_p5), %v4046_v57  ;;  %3279 = vmatprep.mubr.msk.bf16.mxu0 (!%p3238_p5), %vm4047_vm0, %v4046_v57 }
 0x8f0   : > { %v2829_v22 = vadd.f32 %v2827_v61, %v2825_v24  ;;  %3264 = vmatpush3.bf16.msra.mxu0 (!%p3238_p5), %v3762_v14 }
 0x8f1   : > { %3265 = vmatprep.subr.bf16.mxu0 (!%p3238_p5), %v4046_v57 }
 0x8f2   : > { %3760 = vtanh.f32 %v2829_v22  ;;  %2837 = vst [vmem:[#allocation5 + $0x18] sm:$0xff] %v2829_v22 }
 0x8f4   : > { %3266 = vmatpush3.bf16.msra.mxu0 (!%p3238_p5), %v3763_v31 }
 0x8f5   : > { %3267 = vmatprep.subr.bf16.mxu0 (!%p3238_p5), %v4046_v57 }
 0x8f8   : > { %3268 = vmatpush3.bf16.msra.mxu0 (!%p3238_p5), %v3764_v18 }
 0x8f9   : > { %v3759_v58 = vpop.eup %3758  ;;  %2841 = sbr.rel (%p3238_p5) target bundleno = 2536 (0x9e8), region = 88  ;;  %3269 = vmatprep.subr.bf16.mxu0 (!%p3238_p5), %v4046_v57 }
 0x8fa   : > { %v2832_v49 = vmul.f32 %v3759_v58, %v2822_v5 }
 0x8fc   : > { %2834 = vst [vmem:[#allocation4 + $0x10] sm:$0xff] %v2832_v49  ;;  %v3761_v28 = vpop.eup %3760  ;;  %3270 = vmatpush3.bf16.msra.mxu0 (!%p3238_p5), %v3765_v13 }
 0x8fd   : > { %v2833_v46 = vmul.f32 %v3761_v28, %v2823_v11  ;;  %3271 = vmatprep.subr.bf16.mxu0 (!%p3238_p5), %v4046_v57 }
 0x8ff   : > { %2835 = vst [vmem:[#allocation4 + $0x18] sm:$0xff] %v2833_v46 }
 0x900   : > { %3272 = vmatpush3.bf16.msra.mxu0 %v3766_v19 }
 0x901   : > { %3273 = vmatprep.subr.bf16.mxu0 %v4046_v57 }
 0x903   : > { %v2842_v17 = vld [vmem:[#allocation4 + $0x10] sm:$0xff] }
 0x904   : > { %3274 = vmatpush3.bf16.msra.mxu0 %v3767_v34 }
 0x905   : > { %3275 = vmatprep.subr.bf16.mxu0 %v4046_v57 }
 0x906   : > { %v2843_v8 = vld [vmem:[#allocation4 + $0x18] sm:$0xff] }
 0x907   : > { %v2844_v21 = vpack.c.bf16 %v2843_v8, %v2842_v17 }
 0x908   : > { %3276 = vmatpush3.bf16.msra.mxu0 %v3768_v63 }
 0x909   : > { %3277 = vmatprep.subr.bf16.mxu0 %v4046_v57 }
 0x90c   : > { %3278 = vmatpush3.bf16.msra.mxu0 %v3769_v7 }
 0x90f   : > { %3280 = vmatmul.mubr.bf16.vlgmr.msra.gmra.mrb[0].mxu0 %v2844_v21 }
 0x9e2   : > { %v2950_v9 = vpop.f32.mrb[0].mxu0 }
 0x9e3   : > { %v2951_v12 = vadd.f32 %v3239_v32, %v2950_v9  ;;  %v3281_v35 = vpop.f32.mrb[1].mxu0 }
 0x9e4   : > { %v2953_v33 = vpop.f32.mrb[2].mxu0 }
 0x9e5   : > { %2957 = vst [vmem:[#allocation17] sm:$0xff] %v2951_v12  ;;  %v2954_v20 = vadd.f32 %v3239_v32, %v2953_v33  ;;  %v3282_v3 = vpop.f32.mrb[3].mxu0 }
 0x9e7   : > { %2958 = vst [vmem:[#allocation17 + $0x8] sm:$0xff] %v2954_v20 }
 0x9e8 PF: > { %s5231_s27 = sadd.s32 4294967295, %s4032_s14   ;;  %s4048_s23 = smov [#allocation17]  }
 0x9e9   : > { %p5101_p11 = scmp.eq.s32.totalorder %s5231_s27, 1  ;;  %s2968_s8 = sshll.u32 %s4048_s23, 4  ;;  %s2969_s8 = int_to_ptr.vmem [resolvable:$true] %s2968_s8 }
 0x9ea   : > { %s3940_s25 = scalar_lea.vmem %s2969_s8, 256  ;;  %p3947_p2 = scmp.lt.s32.totalorder %s2969_s8, %s2969_s8 }
 0x9eb   : > { %p3941_p12 = scmp.ne.s32.totalorder %s2969_s8, %s3940_s25  ;;  %p3948_p6 = scmp.lt.s32.totalorder %s3940_s25, %s3940_s25 }
 0x9ed   : > { %p3942_p13 = pnand %p3941_p12, %p5101_p11  ;;  %p3949_p9 = por %p3948_p6, %p3947_p2 }
 0x9ef   : > { %p3943_p0 = pneg %p3942_p13 }
 0x9f1   : > { %p3950_p7 = pnand %p3949_p9, %p3943_p0 }
 0x9f3   : > { %3953 = shalt.err (!%p3950_p7)
}
 0x9f4   : > { %s5233_s1 = sld [smem:[#allocation33_spill]] }
 0x9fa   : > { %s3954_s6 = scalar_lea.hbm %s5233_s1, 256 }
 0x9fb   : > { %p3955_p1 = scmp.ne.s32.totalorder %s5233_s1, %s3954_s6  ;;  %p3960_p10 = scmp.lt.u32.totalorder %s3954_s6, %s5233_s1 }
 0x9fd   : > { %p3956_p3 = pnand %p3955_p1, %p5101_p11 }
 0x9ff   : > { %p3957_p8 = pneg %p3956_p3 }
 0xa01   : > { %p3962_p4 = pnand %p3960_p10, %p3957_p8 }
 0xa03   : > { %3965 = shalt.err (!%p3962_p4)
}
 0xa04   : > { %s4049_s26 = smov 128   ;;  %s4050_s18 = smov 8  }
 0xa05   : > { %3306 = dma.vmem_to_hbm [thread:$0]  (%p5101_p11), %s2969_s8, 256, %s5233_s1, [#allocation8], %s4049_s26, %s4049_s26, %s4050_s18  }
 0xa06   : > { %4007 = dma.done.wait (%p5101_p11), [#allocation8], 256  }
 0xa07   : > { %4009 = vsyncadd (%p5101_p11), [#allocation8], 4294967040 }
 0xa08 PF: > { %s26_s14 = sadd.s32 1, %s4032_s14   ;;  %s5234_s30 = smov %s4016_s10 }
 0xa09   : > { %p23_p5 = scmp.ge.s32.totalorder %s26_s14, 4   ;;  %s5235_s10 = smov %s4020_s11 }
 0xa0a   : > { %s5236_s11 = smov %s4305_s29  ;;  %s5237_s12 = smov %s4028_s13 }
 0xa0b   : > { %s5238_s13 = smov %s5240_s24  ;;  %25 = sbr.rel (!%p23_p5) target bundleno = 13 (0xd), region = 131 }
 0xa12   :  { %2984 = vsyncpa [#allocation7], 1 }
 0xa13   :  { %2986 = vsyncpa [#allocation7 + $0x1], 1 }
 0xa14   :  { %2987 = vsyncpa [#allocation10], 1 }
 0xa15   :  { %2988 = vsyncpa [#allocation13], 1 }
 0xa16   :  { %2989 = vsyncpa [#allocation16], 1 }
 0xa17   :  { %2990 = vsyncpa [#allocation8], 1 }
 0xa18   :  { %2992 = vsyncpa [#allocation8 + $0x1], 1 }

</bundles_post_ra>
